<compile_context>
chip_gen: v7x
topology: tpu7x:2x2x1
jax: 0.10.0
libtpu: 0.0.40
codegen_flags: <defaults>
</compile_context>

<pallas_src>
import jax
import jax.numpy as jnp
from jax.experimental import pallas as pl
from jax.experimental.pallas import tpu as pltpu


def decoder_kernel(emb_ih_ref, u_hs_ref, feat_ref,
                   wcat_ref, aw_ref, ab_ref, wih_ctx_ref,
                   fcw_ref, fcb_ref,
                   out_ref, h_all_ref):
    T, BP, G4 = emb_ih_ref.shape            # G4 = 4*DEC
    _, N, ENC = feat_ref.shape
    A = aw_ref.shape[1]
    DEC = G4 // 4

    # ---- loop-invariant loads, hoisted out of the recurrence ----
    feats = feat_ref[...]                    # (BP, N, ENC)
    u_hs = u_hs_ref[...]                     # (BP, N, A)   U(features) + ub + wb
    w_cat = wcat_ref[...]                    # (DEC, 4*DEC + A)  = [whh | ww]
    aw_b = aw_ref[...].reshape(1, 1, A)      # A-linear weight as broadcast row
    ab = ab_ref[...]                         # (1, 1)
    wih_ctx = wih_ctx_ref[...]               # (ENC, 4*DEC) context half of W_ih

    def step(t, carry):
        h, c = carry
        # ---- single fused MXU call for both h-projections ----
        hw = jnp.dot(h, w_cat, preferred_element_type=jnp.float32)   # (BP, 4*DEC+A)
        gates_h = hw[:, :G4]                                         # h @ whh
        w_ah = hw[:, G4:]                                            # h @ ww

        # ---------------- Attention (all biases pre-folded) ----------------
        # TODO(synk): on v6e/v7x this tanh can run in bf16 for ~2x EUP throughput.
        combined = jnp.tanh(u_hs + w_ah[:, None, :])                  # (BP, N, A)
        scores = jnp.sum(combined * aw_b, axis=-1) + ab               # (BP, N)
        scores = scores - jnp.max(scores, axis=1, keepdims=True)
        e = jnp.exp(scores)
        alpha = e * pl.reciprocal(jnp.sum(e, axis=1, keepdims=True), approx=True)
        context = jnp.sum(feats * alpha[:, :, None], axis=1)          # (BP, ENC)

        # ---- LSTMCell (embedding half + b_ih + b_hh precomputed) ----
        gates = (emb_ih_ref[t]                                        # (BP, 4*DEC)
                 + jnp.dot(context, wih_ctx, preferred_element_type=jnp.float32)
                 + gates_h)
        # 2 full-width activation pushes instead of 4 quarter-width ones.
        sg = jax.nn.sigmoid(gates)
        th = jnp.tanh(gates)
        i_g = sg[:, 0 * DEC:1 * DEC]
        f_g = sg[:, 1 * DEC:2 * DEC]
        g_g = th[:, 2 * DEC:3 * DEC]
        o_g = sg[:, 3 * DEC:4 * DEC]
        c_new = f_g * c + i_g * g_g
        h_new = o_g * jnp.tanh(c_new)

        row = pl.multiple_of(t * BP, 8)                               # aligned store
        h_all_ref[pl.ds(row, BP), :] = h_new
        return (h_new, c_new)

    h0 = jnp.zeros((BP, DEC), jnp.float32)
    c0 = jnp.zeros((BP, DEC), jnp.float32)
    unroll = T if T <= 16 else 4
    jax.lax.fori_loop(0, T, step, (h0, c0), unroll=unroll)

    # ---- fc head (Linear with BatchNorm folded in), batched over all steps ----
    out_ref[...] = (jnp.dot(h_all_ref[...], fcw_ref[...],
                            preferred_element_type=jnp.float32)
                    + fcb_ref[...])


def bahdanau_decoder_pallas(captions, encoder_out, params):
    """captions: (B, T) int32; encoder_out: (B, N, ENC).  Returns (B, T, V)."""
    B, T = captions.shape
    _, N, ENC = encoder_out.shape
    E = params["embedding"].shape[1]
    V = params["fc_w"].shape[1]
    DEC = params["whh"].shape[0]

    encoder_out = encoder_out.astype(jnp.float32)

    # ---- non-recurrent pre-computation in plain XLA (hoisted out of kernel) ----
    emb = jnp.take(params["embedding"], captions, axis=0)                  # (B, T, E)
    emb_tbe = jnp.transpose(emb, (1, 0, 2)).astype(jnp.float32)            # (T, B, E)
    wih = params["wih"]
    # Embedding half of the LSTM input projection for ALL timesteps, with both
    # time-invariant LSTM biases (b_ih + b_hh) folded in.
    emb_ih = (jnp.einsum("tbe,eg->tbg", emb_tbe, wih[:E],
                         preferred_element_type=jnp.float32)
              + params["bih"] + params["bhh"])                             # (T, B, 4*DEC)
    wih_ctx = wih[E:]                                                      # (ENC, 4*DEC)
    # Encoder projection U(features) with BOTH attention biases folded in.
    u_hs = (jnp.einsum("bne,ea->bna", encoder_out, params["uw"],
                       preferred_element_type=jnp.float32)
            + params["ub"] + params["wb"])                                 # (B, N, A)
    # Fused h-projection weight: [whh | ww], whh first so the split lands on
    # the 4*DEC lane boundary.
    w_cat = jnp.concatenate([params["whh"], params["ww"]], axis=1)         # (DEC, 4*DEC+A)
    aw_row = jnp.transpose(params["aw"])                                   # (1, A)
    # Fold BatchNorm1d (eval, fresh running stats) into the fc weights.
    bn_scale = params["bn_gamma"] / jnp.sqrt(1.0 + 1e-5)                   # (1, V)
    fc_w = params["fc_w"] * bn_scale                                       # (DEC, V)
    fc_b = params["fc_b"] * bn_scale + params["bn_beta"]                   # (1, V)

    # Pad batch to a multiple of 8 sublanes: aligned per-step h store and
    # aligned M blocks for every in-loop matmul.  Pad rows stay exactly 0.
    BP = ((B + 7) // 8) * 8
    pad = BP - B
    feats = encoder_out
    if pad:
        emb_ih = jnp.pad(emb_ih, ((0, 0), (0, pad), (0, 0)))
        u_hs = jnp.pad(u_hs, ((0, pad), (0, 0), (0, 0)))
        feats = jnp.pad(feats, ((0, pad), (0, 0), (0, 0)))

    args = (emb_ih, u_hs, feats, w_cat, aw_row, params["ab"], wih_ctx, fc_w, fc_b)

    # Single invocation, no grid: whole arrays resident in VMEM, single-buffered
    # (no pointless double buffering of the invariant inputs).
    out = pl.pallas_call(
        decoder_kernel,
        out_shape=jax.ShapeDtypeStruct((T * BP, V), jnp.float32),
        scratch_shapes=[pltpu.VMEM((T * BP, DEC), jnp.float32)],
        compiler_params=pltpu.CompilerParams(vmem_limit_bytes=32 * 1024 * 1024),
    )(*args)

    # TODO(synk): this transpose is an extra HBM pass at real sizes; keep the
    # output time-major if the consumer can take (T, B, V).
    out = out.reshape(T, BP, V)[:, :B]                                     # drop pad rows
    return jnp.transpose(out, (1, 0, 2))                                   # (B, T, V)


def reference_decoder(captions, encoder_out, params):
    """Pure-JAX reference matching the PyTorch forward (eval mode)."""
    B, T = captions.shape
    DEC = params["whh"].shape[0]
    h = jnp.zeros((B, DEC), jnp.float32)
    c = jnp.zeros((B, DEC), jnp.float32)
    outs = []
    for t in range(T):
        emb = params["embedding"][captions[:, t]]
        u_hs = encoder_out @ params["uw"] + params["ub"]
        w_ah = h @ params["ww"] + params["wb"]
        combined = jnp.tanh(u_hs + w_ah[:, None, :])
        scores = (combined @ params["aw"] + params["ab"])[..., 0]
        alpha = jax.nn.softmax(scores, axis=1)
        context = jnp.sum(encoder_out * alpha[:, :, None], axis=1)
        x = jnp.concatenate([emb, context], axis=1)
        gates = x @ params["wih"] + params["bih"] + h @ params["whh"] + params["bhh"]
        i_g = jax.nn.sigmoid(gates[:, 0 * DEC:1 * DEC])
        f_g = jax.nn.sigmoid(gates[:, 1 * DEC:2 * DEC])
        g_g = jnp.tanh(gates[:, 2 * DEC:3 * DEC])
        o_g = jax.nn.sigmoid(gates[:, 3 * DEC:4 * DEC])
        c = f_g * c + i_g * g_g
        h = o_g * jnp.tanh(c)
        logits = h @ params["fc_w"] + params["fc_b"]
        bn = logits * (params["bn_gamma"] / jnp.sqrt(1.0 + 1e-5)) + params["bn_beta"]
        outs.append(bn[:, None, :])
    return jnp.concatenate(outs, axis=1)


if __name__ == "__main__":
    # Small, module-consistent shapes.  encoder_dim == decoder_dim is required
    # by the module's init_hidden_state.
    B, T, N = 4, 8, 16
    EMBED, ENC, DEC, ATT, VOCAB = 32, 32, 32, 32, 128

    key = jax.random.PRNGKey(0)
    ks = jax.random.split(key, 16)

    def rn(k, shape, scale=0.1):
        return (scale * jax.random.normal(k, shape)).astype(jnp.float32)

    params = {
        "embedding": rn(ks[0], (VOCAB, EMBED)),
        # Attention (weights stored as (in, out))
        "uw": rn(ks[1], (ENC, ATT)),  "ub": rn(ks[2], (1, ATT)),
        "ww": rn(ks[3], (DEC, ATT)),  "wb": rn(ks[4], (1, ATT)),
        "aw": rn(ks[5], (ATT, 1)),    "ab": rn(ks[6], (1, 1)),
        # LSTMCell (gate order i, f, g, o)
        "wih": rn(ks[7], (EMBED + ENC, 4 * DEC)), "bih": rn(ks[8], (1, 4 * DEC)),
        "whh": rn(ks[9], (DEC, 4 * DEC)),         "bhh": rn(ks[10], (1, 4 * DEC)),
        # fc head: Linear + BatchNorm1d (eval mode, fresh running stats)
        "fc_w": rn(ks[11], (DEC, VOCAB)), "fc_b": rn(ks[12], (1, VOCAB)),
        "bn_gamma": jnp.ones((1, VOCAB), jnp.float32),
        "bn_beta": jnp.zeros((1, VOCAB), jnp.float32),
    }

    captions = jax.random.randint(ks[13], (B, T), 0, VOCAB, dtype=jnp.int32)
    encoder_out = rn(ks[14], (B, N, ENC), scale=1.0)

    out = bahdanau_decoder_pallas(captions, encoder_out, params)
    out = jax.block_until_ready(out)
    assert out.shape == (B, T, VOCAB), out.shape

    ref = reference_decoder(captions, encoder_out, params)
    # Tolerance accounts for pl.reciprocal(approx=True) in the softmax.
    assert jnp.allclose(out, ref, atol=2e-3, rtol=2e-3), \
        float(jnp.max(jnp.abs(out - ref)))

    print("KERNEL_OK")
</pallas_src>

<mosaic_0001>
module attributes {stable_mosaic.version = 11 : i64} {
  func.func @decoder_kernel(%arg0: memref<8x8x128xf32, #tpu.memory_space<vmem>>, %arg1: memref<8x16x32xf32, #tpu.memory_space<vmem>>, %arg2: memref<8x16x32xf32, #tpu.memory_space<vmem>>, %arg3: memref<32x160xf32, #tpu.memory_space<vmem>>, %arg4: memref<1x32xf32, #tpu.memory_space<vmem>>, %arg5: memref<1x1xf32, #tpu.memory_space<vmem>>, %arg6: memref<32x128xf32, #tpu.memory_space<vmem>>, %arg7: memref<32x128xf32, #tpu.memory_space<vmem>>, %arg8: memref<1x128xf32, #tpu.memory_space<vmem>>, %arg9: memref<64x128xf32, #tpu.memory_space<vmem>>, %arg10: memref<64x32xf32, #tpu.memory_space<vmem>>) attributes {dimension_semantics = [], scalar_prefetch = 0 : i64, scratch_operands = 1 : i64, tpu.core_type = #tpu.core_type<tc>} {
    %c0 = arith.constant 0 : index
    %c0_0 = arith.constant 0 : index
    %c0_1 = arith.constant 0 : index
    %0 = vector.load %arg2[%c0, %c0_0, %c0_1] : memref<8x16x32xf32, #tpu.memory_space<vmem>>, vector<8x16x32xf32>
    %c0_2 = arith.constant 0 : index
    %c0_3 = arith.constant 0 : index
    %c0_4 = arith.constant 0 : index
    %1 = vector.load %arg1[%c0_2, %c0_3, %c0_4] : memref<8x16x32xf32, #tpu.memory_space<vmem>>, vector<8x16x32xf32>
    %c0_5 = arith.constant 0 : index
    %c0_6 = arith.constant 0 : index
    %2 = vector.load %arg3[%c0_5, %c0_6] : memref<32x160xf32, #tpu.memory_space<vmem>>, vector<32x160xf32>
    %c0_7 = arith.constant 0 : index
    %c0_8 = arith.constant 0 : index
    %3 = vector.load %arg4[%c0_7, %c0_8] : memref<1x32xf32, #tpu.memory_space<vmem>>, vector<1x32xf32>
    %4 = vector.shape_cast %3 : vector<1x32xf32> to vector<1x1x32xf32>
    %c0_9 = arith.constant 0 : index
    %c0_10 = arith.constant 0 : index
    %5 = vector.load %arg5[%c0_9, %c0_10] : memref<1x1xf32, #tpu.memory_space<vmem>>, vector<1x1xf32>
    %c0_11 = arith.constant 0 : index
    %c0_12 = arith.constant 0 : index
    %6 = vector.load %arg6[%c0_11, %c0_12] : memref<32x128xf32, #tpu.memory_space<vmem>>, vector<32x128xf32>
    %cst = arith.constant 0.000000e+00 : f32
    %7 = vector.broadcast %cst : f32 to vector<8x32xf32>
    %cst_13 = arith.constant 0.000000e+00 : f32
    %8 = vector.broadcast %cst_13 : f32 to vector<8x32xf32>
    %c0_i32 = arith.constant 0 : i32
    %cst_14 = arith.constant dense<0.000000e+00> : vector<8x160xf32>
    %9 = tpu.matmul %7, %2, %cst_14 {dimension_numbers = #tpu.dot_dimension_numbers<[1], [0], [0], [1], [0, 0, 1, 1], [], []>} : vector<8x32xf32>, vector<32x160xf32>, vector<8x160xf32> -> vector<8x160xf32>
    %10 = vector.extract_strided_slice %9 {offsets = [0, 0], sizes = [8, 128], strides = [1, 1]} : vector<8x160xf32> to vector<8x128xf32>
    %11 = vector.extract_strided_slice %9 {offsets = [0, 128], sizes = [8, 32], strides = [1, 1]} : vector<8x160xf32> to vector<8x32xf32>
    %12 = vector.shape_cast %11 : vector<8x32xf32> to vector<8x1x32xf32>
    %13 = vector.broadcast %12 : vector<8x1x32xf32> to vector<8x16x32xf32>
    %14 = arith.addf %1, %13 : vector<8x16x32xf32>
    %15 = math.tanh %14 : vector<8x16x32xf32>
    %16 = vector.broadcast %4 : vector<1x1x32xf32> to vector<8x16x32xf32>
    %17 = arith.mulf %15, %16 : vector<8x16x32xf32>
    %cst_15 = arith.constant dense<0.000000e+00> : vector<8x16xf32>
    %18 = vector.multi_reduction <add>, %17, %cst_15 [2] : vector<8x16x32xf32> to vector<8x16xf32>
    %19 = vector.broadcast %5 : vector<1x1xf32> to vector<8x16xf32>
    %20 = arith.addf %18, %19 : vector<8x16xf32>
    %cst_16 = arith.constant dense<0xFF800000> : vector<8xf32>
    %21 = vector.multi_reduction <maximumf>, %20, %cst_16 [1] : vector<8x16xf32> to vector<8xf32>
    %22 = vector.shape_cast %21 : vector<8xf32> to vector<8x1xf32>
    %23 = vector.broadcast %22 : vector<8x1xf32> to vector<8x16xf32>
    %24 = arith.subf %20, %23 : vector<8x16xf32>
    %25 = math.exp %24 : vector<8x16xf32>
    %cst_17 = arith.constant dense<0.000000e+00> : vector<8xf32>
    %26 = vector.multi_reduction <add>, %25, %cst_17 [1] : vector<8x16xf32> to vector<8xf32>
    %27 = vector.shape_cast %26 : vector<8xf32> to vector<8x1xf32>
    %28 = tpu.reciprocal %27 {approx = true} : vector<8x1xf32> -> vector<8x1xf32>
    %29 = vector.broadcast %28 : vector<8x1xf32> to vector<8x16xf32>
    %30 = arith.mulf %25, %29 : vector<8x16xf32>
    %31 = vector.shape_cast %30 : vector<8x16xf32> to vector<8x16x1xf32>
    %32 = vector.broadcast %31 : vector<8x16x1xf32> to vector<8x16x32xf32>
    %33 = arith.mulf %0, %32 : vector<8x16x32xf32>
    %cst_18 = arith.constant dense<0.000000e+00> : vector<8x32xf32>
    %34 = vector.multi_reduction <add>, %33, %cst_18 [1] : vector<8x16x32xf32> to vector<8x32xf32>
    %35 = arith.index_cast %c0_i32 : i32 to index
    %c0_19 = arith.constant 0 : index
    %c0_20 = arith.constant 0 : index
    %36 = vector.load %arg0[%35, %c0_19, %c0_20] : memref<8x8x128xf32, #tpu.memory_space<vmem>>, vector<1x8x128xf32>
    %37 = vector.shape_cast %36 : vector<1x8x128xf32> to vector<8x128xf32>
    %cst_21 = arith.constant dense<0.000000e+00> : vector<8x128xf32>
    %38 = tpu.matmul %34, %6, %cst_21 {dimension_numbers = #tpu.dot_dimension_numbers<[1], [0], [0], [1], [0, 0, 1, 1], [], []>} : vector<8x32xf32>, vector<32x128xf32>, vector<8x128xf32> -> vector<8x128xf32>
    %39 = arith.addf %37, %38 : vector<8x128xf32>
    %40 = arith.addf %39, %10 : vector<8x128xf32>
    %41 = arith.negf %40 : vector<8x128xf32>
    %42 = math.exp %41 : vector<8x128xf32>
    %cst_22 = arith.constant 1.000000e+00 : f32
    %43 = vector.broadcast %cst_22 : f32 to vector<8x128xf32>
    %44 = arith.addf %43, %42 : vector<8x128xf32>
    %45 = arith.divf %43, %44 : vector<8x128xf32>
    %46 = math.tanh %40 : vector<8x128xf32>
    %47 = vector.extract_strided_slice %45 {offsets = [0, 0], sizes = [8, 32], strides = [1, 1]} : vector<8x128xf32> to vector<8x32xf32>
    %48 = vector.extract_strided_slice %45 {offsets = [0, 32], sizes = [8, 32], strides = [1, 1]} : vector<8x128xf32> to vector<8x32xf32>
    %49 = vector.extract_strided_slice %46 {offsets = [0, 64], sizes = [8, 32], strides = [1, 1]} : vector<8x128xf32> to vector<8x32xf32>
    %50 = vector.extract_strided_slice %45 {offsets = [0, 96], sizes = [8, 32], strides = [1, 1]} : vector<8x128xf32> to vector<8x32xf32>
    %51 = arith.mulf %48, %8 : vector<8x32xf32>
    %52 = arith.mulf %47, %49 : vector<8x32xf32>
    %53 = arith.addf %51, %52 : vector<8x32xf32>
    %54 = math.tanh %53 : vector<8x32xf32>
    %55 = arith.mulf %50, %54 : vector<8x32xf32>
    %c8_i32 = arith.constant 8 : i32
    %56 = arith.muli %c0_i32, %c8_i32 : i32
    %57 = tpu.assume_multiple %56, 8 : i32
    %58 = arith.index_cast %57 : i32 to index
    %c0_23 = arith.constant 0 : index
    %59 = vector.load %arg10[%58, %c0_23] : memref<64x32xf32, #tpu.memory_space<vmem>>, vector<8x32xf32>
    tpu.vector_store %arg10[%58, %c0_23], %55 {strides = array<i32>} : memref<64x32xf32, #tpu.memory_space<vmem>>, vector<8x32xf32>,
    %c1_i32 = arith.constant 1 : i32
    %cst_24 = arith.constant dense<0.000000e+00> : vector<8x160xf32>
    %60 = tpu.matmul %55, %2, %cst_24 {dimension_numbers = #tpu.dot_dimension_numbers<[1], [0], [0], [1], [0, 0, 1, 1], [], []>} : vector<8x32xf32>, vector<32x160xf32>, vector<8x160xf32> -> vector<8x160xf32>
    %61 = vector.extract_strided_slice %60 {offsets = [0, 0], sizes = [8, 128], strides = [1, 1]} : vector<8x160xf32> to vector<8x128xf32>
    %62 = vector.extract_strided_slice %60 {offsets = [0, 128], sizes = [8, 32], strides = [1, 1]} : vector<8x160xf32> to vector<8x32xf32>
    %63 = vector.shape_cast %62 : vector<8x32xf32> to vector<8x1x32xf32>
    %64 = vector.broadcast %63 : vector<8x1x32xf32> to vector<8x16x32xf32>
    %65 = arith.addf %1, %64 : vector<8x16x32xf32>
    %66 = math.tanh %65 : vector<8x16x32xf32>
    %67 = vector.broadcast %4 : vector<1x1x32xf32> to vector<8x16x32xf32>
    %68 = arith.mulf %66, %67 : vector<8x16x32xf32>
    %cst_25 = arith.constant dense<0.000000e+00> : vector<8x16xf32>
    %69 = vector.multi_reduction <add>, %68, %cst_25 [2] : vector<8x16x32xf32> to vector<8x16xf32>
    %70 = vector.broadcast %5 : vector<1x1xf32> to vector<8x16xf32>
    %71 = arith.addf %69, %70 : vector<8x16xf32>
    %cst_26 = arith.constant dense<0xFF800000> : vector<8xf32>
    %72 = vector.multi_reduction <maximumf>, %71, %cst_26 [1] : vector<8x16xf32> to vector<8xf32>
    %73 = vector.shape_cast %72 : vector<8xf32> to vector<8x1xf32>
    %74 = vector.broadcast %73 : vector<8x1xf32> to vector<8x16xf32>
    %75 = arith.subf %71, %74 : vector<8x16xf32>
    %76 = math.exp %75 : vector<8x16xf32>
    %cst_27 = arith.constant dense<0.000000e+00> : vector<8xf32>
    %77 = vector.multi_reduction <add>, %76, %cst_27 [1] : vector<8x16xf32> to vector<8xf32>
    %78 = vector.shape_cast %77 : vector<8xf32> to vector<8x1xf32>
    %79 = tpu.reciprocal %78 {approx = true} : vector<8x1xf32> -> vector<8x1xf32>
    %80 = vector.broadcast %79 : vector<8x1xf32> to vector<8x16xf32>
    %81 = arith.mulf %76, %80 : vector<8x16xf32>
    %82 = vector.shape_cast %81 : vector<8x16xf32> to vector<8x16x1xf32>
    %83 = vector.broadcast %82 : vector<8x16x1xf32> to vector<8x16x32xf32>
    %84 = arith.mulf %0, %83 : vector<8x16x32xf32>
    %cst_28 = arith.constant dense<0.000000e+00> : vector<8x32xf32>
    %85 = vector.multi_reduction <add>, %84, %cst_28 [1] : vector<8x16x32xf32> to vector<8x32xf32>
    %86 = arith.index_cast %c1_i32 : i32 to index
    %c0_29 = arith.constant 0 : index
    %c0_30 = arith.constant 0 : index
    %87 = vector.load %arg0[%86, %c0_29, %c0_30] : memref<8x8x128xf32, #tpu.memory_space<vmem>>, vector<1x8x128xf32>
    %88 = vector.shape_cast %87 : vector<1x8x128xf32> to vector<8x128xf32>
    %cst_31 = arith.constant dense<0.000000e+00> : vector<8x128xf32>
    %89 = tpu.matmul %85, %6, %cst_31 {dimension_numbers = #tpu.dot_dimension_numbers<[1], [0], [0], [1], [0, 0, 1, 1], [], []>} : vector<8x32xf32>, vector<32x128xf32>, vector<8x128xf32> -> vector<8x128xf32>
    %90 = arith.addf %88, %89 : vector<8x128xf32>
    %91 = arith.addf %90, %61 : vector<8x128xf32>
    %92 = arith.negf %91 : vector<8x128xf32>
    %93 = math.exp %92 : vector<8x128xf32>
    %cst_32 = arith.constant 1.000000e+00 : f32
    %94 = vector.broadcast %cst_32 : f32 to vector<8x128xf32>
    %95 = arith.addf %94, %93 : vector<8x128xf32>
    %96 = arith.divf %94, %95 : vector<8x128xf32>
    %97 = math.tanh %91 : vector<8x128xf32>
    %98 = vector.extract_strided_slice %96 {offsets = [0, 0], sizes = [8, 32], strides = [1, 1]} : vector<8x128xf32> to vector<8x32xf32>
    %99 = vector.extract_strided_slice %96 {offsets = [0, 32], sizes = [8, 32], strides = [1, 1]} : vector<8x128xf32> to vector<8x32xf32>
    %100 = vector.extract_strided_slice %97 {offsets = [0, 64], sizes = [8, 32], strides = [1, 1]} : vector<8x128xf32> to vector<8x32xf32>
    %101 = vector.extract_strided_slice %96 {offsets = [0, 96], sizes = [8, 32], strides = [1, 1]} : vector<8x128xf32> to vector<8x32xf32>
    %102 = arith.mulf %99, %53 : vector<8x32xf32>
    %103 = arith.mulf %98, %100 : vector<8x32xf32>
    %104 = arith.addf %102, %103 : vector<8x32xf32>
    %105 = math.tanh %104 : vector<8x32xf32>
    %106 = arith.mulf %101, %105 : vector<8x32xf32>
    %c8_i32_33 = arith.constant 8 : i32
    %107 = arith.muli %c1_i32, %c8_i32_33 : i32
    %108 = tpu.assume_multiple %107, 8 : i32
    %109 = arith.index_cast %108 : i32 to index
    %c0_34 = arith.constant 0 : index
    %110 = vector.load %arg10[%109, %c0_34] : memref<64x32xf32, #tpu.memory_space<vmem>>, vector<8x32xf32>
    tpu.vector_store %arg10[%109, %c0_34], %106 {strides = array<i32>} : memref<64x32xf32, #tpu.memory_space<vmem>>, vector<8x32xf32>,
    %c2_i32 = arith.constant 2 : i32
    %cst_35 = arith.constant dense<0.000000e+00> : vector<8x160xf32>
    %111 = tpu.matmul %106, %2, %cst_35 {dimension_numbers = #tpu.dot_dimension_numbers<[1], [0], [0], [1], [0, 0, 1, 1], [], []>} : vector<8x32xf32>, vector<32x160xf32>, vector<8x160xf32> -> vector<8x160xf32>
    %112 = vector.extract_strided_slice %111 {offsets = [0, 0], sizes = [8, 128], strides = [1, 1]} : vector<8x160xf32> to vector<8x128xf32>
    %113 = vector.extract_strided_slice %111 {offsets = [0, 128], sizes = [8, 32], strides = [1, 1]} : vector<8x160xf32> to vector<8x32xf32>
    %114 = vector.shape_cast %113 : vector<8x32xf32> to vector<8x1x32xf32>
    %115 = vector.broadcast %114 : vector<8x1x32xf32> to vector<8x16x32xf32>
    %116 = arith.addf %1, %115 : vector<8x16x32xf32>
    %117 = math.tanh %116 : vector<8x16x32xf32>
    %118 = vector.broadcast %4 : vector<1x1x32xf32> to vector<8x16x32xf32>
    %119 = arith.mulf %117, %118 : vector<8x16x32xf32>
    %cst_36 = arith.constant dense<0.000000e+00> : vector<8x16xf32>
    %120 = vector.multi_reduction <add>, %119, %cst_36 [2] : vector<8x16x32xf32> to vector<8x16xf32>
    %121 = vector.broadcast %5 : vector<1x1xf32> to vector<8x16xf32>
    %122 = arith.addf %120, %121 : vector<8x16xf32>
    %cst_37 = arith.constant dense<0xFF800000> : vector<8xf32>
    %123 = vector.multi_reduction <maximumf>, %122, %cst_37 [1] : vector<8x16xf32> to vector<8xf32>
    %124 = vector.shape_cast %123 : vector<8xf32> to vector<8x1xf32>
    %125 = vector.broadcast %124 : vector<8x1xf32> to vector<8x16xf32>
    %126 = arith.subf %122, %125 : vector<8x16xf32>
    %127 = math.exp %126 : vector<8x16xf32>
    %cst_38 = arith.constant dense<0.000000e+00> : vector<8xf32>
    %128 = vector.multi_reduction <add>, %127, %cst_38 [1] : vector<8x16xf32> to vector<8xf32>
    %129 = vector.shape_cast %128 : vector<8xf32> to vector<8x1xf32>
    %130 = tpu.reciprocal %129 {approx = true} : vector<8x1xf32> -> vector<8x1xf32>
    %131 = vector.broadcast %130 : vector<8x1xf32> to vector<8x16xf32>
    %132 = arith.mulf %127, %131 : vector<8x16xf32>
    %133 = vector.shape_cast %132 : vector<8x16xf32> to vector<8x16x1xf32>
    %134 = vector.broadcast %133 : vector<8x16x1xf32> to vector<8x16x32xf32>
    %135 = arith.mulf %0, %134 : vector<8x16x32xf32>
    %cst_39 = arith.constant dense<0.000000e+00> : vector<8x32xf32>
    %136 = vector.multi_reduction <add>, %135, %cst_39 [1] : vector<8x16x32xf32> to vector<8x32xf32>
    %137 = arith.index_cast %c2_i32 : i32 to index
    %c0_40 = arith.constant 0 : index
    %c0_41 = arith.constant 0 : index
    %138 = vector.load %arg0[%137, %c0_40, %c0_41] : memref<8x8x128xf32, #tpu.memory_space<vmem>>, vector<1x8x128xf32>
    %139 = vector.shape_cast %138 : vector<1x8x128xf32> to vector<8x128xf32>
    %cst_42 = arith.constant dense<0.000000e+00> : vector<8x128xf32>
    %140 = tpu.matmul %136, %6, %cst_42 {dimension_numbers = #tpu.dot_dimension_numbers<[1], [0], [0], [1], [0, 0, 1, 1], [], []>} : vector<8x32xf32>, vector<32x128xf32>, vector<8x128xf32> -> vector<8x128xf32>
    %141 = arith.addf %139, %140 : vector<8x128xf32>
    %142 = arith.addf %141, %112 : vector<8x128xf32>
    %143 = arith.negf %142 : vector<8x128xf32>
    %144 = math.exp %143 : vector<8x128xf32>
    %cst_43 = arith.constant 1.000000e+00 : f32
    %145 = vector.broadcast %cst_43 : f32 to vector<8x128xf32>
    %146 = arith.addf %145, %144 : vector<8x128xf32>
    %147 = arith.divf %145, %146 : vector<8x128xf32>
    %148 = math.tanh %142 : vector<8x128xf32>
    %149 = vector.extract_strided_slice %147 {offsets = [0, 0], sizes = [8, 32], strides = [1, 1]} : vector<8x128xf32> to vector<8x32xf32>
    %150 = vector.extract_strided_slice %147 {offsets = [0, 32], sizes = [8, 32], strides = [1, 1]} : vector<8x128xf32> to vector<8x32xf32>
    %151 = vector.extract_strided_slice %148 {offsets = [0, 64], sizes = [8, 32], strides = [1, 1]} : vector<8x128xf32> to vector<8x32xf32>
    %152 = vector.extract_strided_slice %147 {offsets = [0, 96], sizes = [8, 32], strides = [1, 1]} : vector<8x128xf32> to vector<8x32xf32>
    %153 = arith.mulf %150, %104 : vector<8x32xf32>
    %154 = arith.mulf %149, %151 : vector<8x32xf32>
    %155 = arith.addf %153, %154 : vector<8x32xf32>
    %156 = math.tanh %155 : vector<8x32xf32>
    %157 = arith.mulf %152, %156 : vector<8x32xf32>
    %c8_i32_44 = arith.constant 8 : i32
    %158 = arith.muli %c2_i32, %c8_i32_44 : i32
    %159 = tpu.assume_multiple %158, 8 : i32
    %160 = arith.index_cast %159 : i32 to index
    %c0_45 = arith.constant 0 : index
    %161 = vector.load %arg10[%160, %c0_45] : memref<64x32xf32, #tpu.memory_space<vmem>>, vector<8x32xf32>
    tpu.vector_store %arg10[%160, %c0_45], %157 {strides = array<i32>} : memref<64x32xf32, #tpu.memory_space<vmem>>, vector<8x32xf32>,
    %c3_i32 = arith.constant 3 : i32
    %cst_46 = arith.constant dense<0.000000e+00> : vector<8x160xf32>
    %162 = tpu.matmul %157, %2, %cst_46 {dimension_numbers = #tpu.dot_dimension_numbers<[1], [0], [0], [1], [0, 0, 1, 1], [], []>} : vector<8x32xf32>, vector<32x160xf32>, vector<8x160xf32> -> vector<8x160xf32>
    %163 = vector.extract_strided_slice %162 {offsets = [0, 0], sizes = [8, 128], strides = [1, 1]} : vector<8x160xf32> to vector<8x128xf32>
    %164 = vector.extract_strided_slice %162 {offsets = [0, 128], sizes = [8, 32], strides = [1, 1]} : vector<8x160xf32> to vector<8x32xf32>
    %165 = vector.shape_cast %164 : vector<8x32xf32> to vector<8x1x32xf32>
    %166 = vector.broadcast %165 : vector<8x1x32xf32> to vector<8x16x32xf32>
    %167 = arith.addf %1, %166 : vector<8x16x32xf32>
    %168 = math.tanh %167 : vector<8x16x32xf32>
    %169 = vector.broadcast %4 : vector<1x1x32xf32> to vector<8x16x32xf32>
    %170 = arith.mulf %168, %169 : vector<8x16x32xf32>
    %cst_47 = arith.constant dense<0.000000e+00> : vector<8x16xf32>
    %171 = vector.multi_reduction <add>, %170, %cst_47 [2] : vector<8x16x32xf32> to vector<8x16xf32>
    %172 = vector.broadcast %5 : vector<1x1xf32> to vector<8x16xf32>
    %173 = arith.addf %171, %172 : vector<8x16xf32>
    %cst_48 = arith.constant dense<0xFF800000> : vector<8xf32>
    %174 = vector.multi_reduction <maximumf>, %173, %cst_48 [1] : vector<8x16xf32> to vector<8xf32>
    %175 = vector.shape_cast %174 : vector<8xf32> to vector<8x1xf32>
    %176 = vector.broadcast %175 : vector<8x1xf32> to vector<8x16xf32>
    %177 = arith.subf %173, %176 : vector<8x16xf32>
    %178 = math.exp %177 : vector<8x16xf32>
    %cst_49 = arith.constant dense<0.000000e+00> : vector<8xf32>
    %179 = vector.multi_reduction <add>, %178, %cst_49 [1] : vector<8x16xf32> to vector<8xf32>
    %180 = vector.shape_cast %179 : vector<8xf32> to vector<8x1xf32>
    %181 = tpu.reciprocal %180 {approx = true} : vector<8x1xf32> -> vector<8x1xf32>
    %182 = vector.broadcast %181 : vector<8x1xf32> to vector<8x16xf32>
    %183 = arith.mulf %178, %182 : vector<8x16xf32>
    %184 = vector.shape_cast %183 : vector<8x16xf32> to vector<8x16x1xf32>
    %185 = vector.broadcast %184 : vector<8x16x1xf32> to vector<8x16x32xf32>
    %186 = arith.mulf %0, %185 : vector<8x16x32xf32>
    %cst_50 = arith.constant dense<0.000000e+00> : vector<8x32xf32>
    %187 = vector.multi_reduction <add>, %186, %cst_50 [1] : vector<8x16x32xf32> to vector<8x32xf32>
    %188 = arith.index_cast %c3_i32 : i32 to index
    %c0_51 = arith.constant 0 : index
    %c0_52 = arith.constant 0 : index
    %189 = vector.load %arg0[%188, %c0_51, %c0_52] : memref<8x8x128xf32, #tpu.memory_space<vmem>>, vector<1x8x128xf32>
    %190 = vector.shape_cast %189 : vector<1x8x128xf32> to vector<8x128xf32>
    %cst_53 = arith.constant dense<0.000000e+00> : vector<8x128xf32>
    %191 = tpu.matmul %187, %6, %cst_53 {dimension_numbers = #tpu.dot_dimension_numbers<[1], [0], [0], [1], [0, 0, 1, 1], [], []>} : vector<8x32xf32>, vector<32x128xf32>, vector<8x128xf32> -> vector<8x128xf32>
    %192 = arith.addf %190, %191 : vector<8x128xf32>
    %193 = arith.addf %192, %163 : vector<8x128xf32>
    %194 = arith.negf %193 : vector<8x128xf32>
    %195 = math.exp %194 : vector<8x128xf32>
    %cst_54 = arith.constant 1.000000e+00 : f32
    %196 = vector.broadcast %cst_54 : f32 to vector<8x128xf32>
    %197 = arith.addf %196, %195 : vector<8x128xf32>
    %198 = arith.divf %196, %197 : vector<8x128xf32>
    %199 = math.tanh %193 : vector<8x128xf32>
    %200 = vector.extract_strided_slice %198 {offsets = [0, 0], sizes = [8, 32], strides = [1, 1]} : vector<8x128xf32> to vector<8x32xf32>
    %201 = vector.extract_strided_slice %198 {offsets = [0, 32], sizes = [8, 32], strides = [1, 1]} : vector<8x128xf32> to vector<8x32xf32>
    %202 = vector.extract_strided_slice %199 {offsets = [0, 64], sizes = [8, 32], strides = [1, 1]} : vector<8x128xf32> to vector<8x32xf32>
    %203 = vector.extract_strided_slice %198 {offsets = [0, 96], sizes = [8, 32], strides = [1, 1]} : vector<8x128xf32> to vector<8x32xf32>
    %204 = arith.mulf %201, %155 : vector<8x32xf32>
    %205 = arith.mulf %200, %202 : vector<8x32xf32>
    %206 = arith.addf %204, %205 : vector<8x32xf32>
    %207 = math.tanh %206 : vector<8x32xf32>
    %208 = arith.mulf %203, %207 : vector<8x32xf32>
    %c8_i32_55 = arith.constant 8 : i32
    %209 = arith.muli %c3_i32, %c8_i32_55 : i32
    %210 = tpu.assume_multiple %209, 8 : i32
    %211 = arith.index_cast %210 : i32 to index
    %c0_56 = arith.constant 0 : index
    %212 = vector.load %arg10[%211, %c0_56] : memref<64x32xf32, #tpu.memory_space<vmem>>, vector<8x32xf32>
    tpu.vector_store %arg10[%211, %c0_56], %208 {strides = array<i32>} : memref<64x32xf32, #tpu.memory_space<vmem>>, vector<8x32xf32>,
    %c4_i32 = arith.constant 4 : i32
    %cst_57 = arith.constant dense<0.000000e+00> : vector<8x160xf32>
    %213 = tpu.matmul %208, %2, %cst_57 {dimension_numbers = #tpu.dot_dimension_numbers<[1], [0], [0], [1], [0, 0, 1, 1], [], []>} : vector<8x32xf32>, vector<32x160xf32>, vector<8x160xf32> -> vector<8x160xf32>
    %214 = vector.extract_strided_slice %213 {offsets = [0, 0], sizes = [8, 128], strides = [1, 1]} : vector<8x160xf32> to vector<8x128xf32>
    %215 = vector.extract_strided_slice %213 {offsets = [0, 128], sizes = [8, 32], strides = [1, 1]} : vector<8x160xf32> to vector<8x32xf32>
    %216 = vector.shape_cast %215 : vector<8x32xf32> to vector<8x1x32xf32>
    %217 = vector.broadcast %216 : vector<8x1x32xf32> to vector<8x16x32xf32>
    %218 = arith.addf %1, %217 : vector<8x16x32xf32>
    %219 = math.tanh %218 : vector<8x16x32xf32>
    %220 = vector.broadcast %4 : vector<1x1x32xf32> to vector<8x16x32xf32>
    %221 = arith.mulf %219, %220 : vector<8x16x32xf32>
    %cst_58 = arith.constant dense<0.000000e+00> : vector<8x16xf32>
    %222 = vector.multi_reduction <add>, %221, %cst_58 [2] : vector<8x16x32xf32> to vector<8x16xf32>
    %223 = vector.broadcast %5 : vector<1x1xf32> to vector<8x16xf32>
    %224 = arith.addf %222, %223 : vector<8x16xf32>
    %cst_59 = arith.constant dense<0xFF800000> : vector<8xf32>
    %225 = vector.multi_reduction <maximumf>, %224, %cst_59 [1] : vector<8x16xf32> to vector<8xf32>
    %226 = vector.shape_cast %225 : vector<8xf32> to vector<8x1xf32>
    %227 = vector.broadcast %226 : vector<8x1xf32> to vector<8x16xf32>
    %228 = arith.subf %224, %227 : vector<8x16xf32>
    %229 = math.exp %228 : vector<8x16xf32>
    %cst_60 = arith.constant dense<0.000000e+00> : vector<8xf32>
    %230 = vector.multi_reduction <add>, %229, %cst_60 [1] : vector<8x16xf32> to vector<8xf32>
    %231 = vector.shape_cast %230 : vector<8xf32> to vector<8x1xf32>
    %232 = tpu.reciprocal %231 {approx = true} : vector<8x1xf32> -> vector<8x1xf32>
    %233 = vector.broadcast %232 : vector<8x1xf32> to vector<8x16xf32>
    %234 = arith.mulf %229, %233 : vector<8x16xf32>
    %235 = vector.shape_cast %234 : vector<8x16xf32> to vector<8x16x1xf32>
    %236 = vector.broadcast %235 : vector<8x16x1xf32> to vector<8x16x32xf32>
    %237 = arith.mulf %0, %236 : vector<8x16x32xf32>
    %cst_61 = arith.constant dense<0.000000e+00> : vector<8x32xf32>
    %238 = vector.multi_reduction <add>, %237, %cst_61 [1] : vector<8x16x32xf32> to vector<8x32xf32>
    %239 = arith.index_cast %c4_i32 : i32 to index
    %c0_62 = arith.constant 0 : index
    %c0_63 = arith.constant 0 : index
    %240 = vector.load %arg0[%239, %c0_62, %c0_63] : memref<8x8x128xf32, #tpu.memory_space<vmem>>, vector<1x8x128xf32>
    %241 = vector.shape_cast %240 : vector<1x8x128xf32> to vector<8x128xf32>
    %cst_64 = arith.constant dense<0.000000e+00> : vector<8x128xf32>
    %242 = tpu.matmul %238, %6, %cst_64 {dimension_numbers = #tpu.dot_dimension_numbers<[1], [0], [0], [1], [0, 0, 1, 1], [], []>} : vector<8x32xf32>, vector<32x128xf32>, vector<8x128xf32> -> vector<8x128xf32>
    %243 = arith.addf %241, %242 : vector<8x128xf32>
    %244 = arith.addf %243, %214 : vector<8x128xf32>
    %245 = arith.negf %244 : vector<8x128xf32>
    %246 = math.exp %245 : vector<8x128xf32>
    %cst_65 = arith.constant 1.000000e+00 : f32
    %247 = vector.broadcast %cst_65 : f32 to vector<8x128xf32>
    %248 = arith.addf %247, %246 : vector<8x128xf32>
    %249 = arith.divf %247, %248 : vector<8x128xf32>
    %250 = math.tanh %244 : vector<8x128xf32>
    %251 = vector.extract_strided_slice %249 {offsets = [0, 0], sizes = [8, 32], strides = [1, 1]} : vector<8x128xf32> to vector<8x32xf32>
    %252 = vector.extract_strided_slice %249 {offsets = [0, 32], sizes = [8, 32], strides = [1, 1]} : vector<8x128xf32> to vector<8x32xf32>
    %253 = vector.extract_strided_slice %250 {offsets = [0, 64], sizes = [8, 32], strides = [1, 1]} : vector<8x128xf32> to vector<8x32xf32>
    %254 = vector.extract_strided_slice %249 {offsets = [0, 96], sizes = [8, 32], strides = [1, 1]} : vector<8x128xf32> to vector<8x32xf32>
    %255 = arith.mulf %252, %206 : vector<8x32xf32>
    %256 = arith.mulf %251, %253 : vector<8x32xf32>
    %257 = arith.addf %255, %256 : vector<8x32xf32>
    %258 = math.tanh %257 : vector<8x32xf32>
    %259 = arith.mulf %254, %258 : vector<8x32xf32>
    %c8_i32_66 = arith.constant 8 : i32
    %260 = arith.muli %c4_i32, %c8_i32_66 : i32
    %261 = tpu.assume_multiple %260, 8 : i32
    %262 = arith.index_cast %261 : i32 to index
    %c0_67 = arith.constant 0 : index
    %263 = vector.load %arg10[%262, %c0_67] : memref<64x32xf32, #tpu.memory_space<vmem>>, vector<8x32xf32>
    tpu.vector_store %arg10[%262, %c0_67], %259 {strides = array<i32>} : memref<64x32xf32, #tpu.memory_space<vmem>>, vector<8x32xf32>,
    %c5_i32 = arith.constant 5 : i32
    %cst_68 = arith.constant dense<0.000000e+00> : vector<8x160xf32>
    %264 = tpu.matmul %259, %2, %cst_68 {dimension_numbers = #tpu.dot_dimension_numbers<[1], [0], [0], [1], [0, 0, 1, 1], [], []>} : vector<8x32xf32>, vector<32x160xf32>, vector<8x160xf32> -> vector<8x160xf32>
    %265 = vector.extract_strided_slice %264 {offsets = [0, 0], sizes = [8, 128], strides = [1, 1]} : vector<8x160xf32> to vector<8x128xf32>
    %266 = vector.extract_strided_slice %264 {offsets = [0, 128], sizes = [8, 32], strides = [1, 1]} : vector<8x160xf32> to vector<8x32xf32>
    %267 = vector.shape_cast %266 : vector<8x32xf32> to vector<8x1x32xf32>
    %268 = vector.broadcast %267 : vector<8x1x32xf32> to vector<8x16x32xf32>
    %269 = arith.addf %1, %268 : vector<8x16x32xf32>
    %270 = math.tanh %269 : vector<8x16x32xf32>
    %271 = vector.broadcast %4 : vector<1x1x32xf32> to vector<8x16x32xf32>
    %272 = arith.mulf %270, %271 : vector<8x16x32xf32>
    %cst_69 = arith.constant dense<0.000000e+00> : vector<8x16xf32>
    %273 = vector.multi_reduction <add>, %272, %cst_69 [2] : vector<8x16x32xf32> to vector<8x16xf32>
    %274 = vector.broadcast %5 : vector<1x1xf32> to vector<8x16xf32>
    %275 = arith.addf %273, %274 : vector<8x16xf32>
    %cst_70 = arith.constant dense<0xFF800000> : vector<8xf32>
    %276 = vector.multi_reduction <maximumf>, %275, %cst_70 [1] : vector<8x16xf32> to vector<8xf32>
    %277 = vector.shape_cast %276 : vector<8xf32> to vector<8x1xf32>
    %278 = vector.broadcast %277 : vector<8x1xf32> to vector<8x16xf32>
    %279 = arith.subf %275, %278 : vector<8x16xf32>
    %280 = math.exp %279 : vector<8x16xf32>
    %cst_71 = arith.constant dense<0.000000e+00> : vector<8xf32>
    %281 = vector.multi_reduction <add>, %280, %cst_71 [1] : vector<8x16xf32> to vector<8xf32>
    %282 = vector.shape_cast %281 : vector<8xf32> to vector<8x1xf32>
    %283 = tpu.reciprocal %282 {approx = true} : vector<8x1xf32> -> vector<8x1xf32>
    %284 = vector.broadcast %283 : vector<8x1xf32> to vector<8x16xf32>
    %285 = arith.mulf %280, %284 : vector<8x16xf32>
    %286 = vector.shape_cast %285 : vector<8x16xf32> to vector<8x16x1xf32>
    %287 = vector.broadcast %286 : vector<8x16x1xf32> to vector<8x16x32xf32>
    %288 = arith.mulf %0, %287 : vector<8x16x32xf32>
    %cst_72 = arith.constant dense<0.000000e+00> : vector<8x32xf32>
    %289 = vector.multi_reduction <add>, %288, %cst_72 [1] : vector<8x16x32xf32> to vector<8x32xf32>
    %290 = arith.index_cast %c5_i32 : i32 to index
    %c0_73 = arith.constant 0 : index
    %c0_74 = arith.constant 0 : index
    %291 = vector.load %arg0[%290, %c0_73, %c0_74] : memref<8x8x128xf32, #tpu.memory_space<vmem>>, vector<1x8x128xf32>
    %292 = vector.shape_cast %291 : vector<1x8x128xf32> to vector<8x128xf32>
    %cst_75 = arith.constant dense<0.000000e+00> : vector<8x128xf32>
    %293 = tpu.matmul %289, %6, %cst_75 {dimension_numbers = #tpu.dot_dimension_numbers<[1], [0], [0], [1], [0, 0, 1, 1], [], []>} : vector<8x32xf32>, vector<32x128xf32>, vector<8x128xf32> -> vector<8x128xf32>
    %294 = arith.addf %292, %293 : vector<8x128xf32>
    %295 = arith.addf %294, %265 : vector<8x128xf32>
    %296 = arith.negf %295 : vector<8x128xf32>
    %297 = math.exp %296 : vector<8x128xf32>
    %cst_76 = arith.constant 1.000000e+00 : f32
    %298 = vector.broadcast %cst_76 : f32 to vector<8x128xf32>
    %299 = arith.addf %298, %297 : vector<8x128xf32>
    %300 = arith.divf %298, %299 : vector<8x128xf32>
    %301 = math.tanh %295 : vector<8x128xf32>
    %302 = vector.extract_strided_slice %300 {offsets = [0, 0], sizes = [8, 32], strides = [1, 1]} : vector<8x128xf32> to vector<8x32xf32>
    %303 = vector.extract_strided_slice %300 {offsets = [0, 32], sizes = [8, 32], strides = [1, 1]} : vector<8x128xf32> to vector<8x32xf32>
    %304 = vector.extract_strided_slice %301 {offsets = [0, 64], sizes = [8, 32], strides = [1, 1]} : vector<8x128xf32> to vector<8x32xf32>
    %305 = vector.extract_strided_slice %300 {offsets = [0, 96], sizes = [8, 32], strides = [1, 1]} : vector<8x128xf32> to vector<8x32xf32>
    %306 = arith.mulf %303, %257 : vector<8x32xf32>
    %307 = arith.mulf %302, %304 : vector<8x32xf32>
    %308 = arith.addf %306, %307 : vector<8x32xf32>
    %309 = math.tanh %308 : vector<8x32xf32>
    %310 = arith.mulf %305, %309 : vector<8x32xf32>
    %c8_i32_77 = arith.constant 8 : i32
    %311 = arith.muli %c5_i32, %c8_i32_77 : i32
    %312 = tpu.assume_multiple %311, 8 : i32
    %313 = arith.index_cast %312 : i32 to index
    %c0_78 = arith.constant 0 : index
    %314 = vector.load %arg10[%313, %c0_78] : memref<64x32xf32, #tpu.memory_space<vmem>>, vector<8x32xf32>
    tpu.vector_store %arg10[%313, %c0_78], %310 {strides = array<i32>} : memref<64x32xf32, #tpu.memory_space<vmem>>, vector<8x32xf32>,
    %c6_i32 = arith.constant 6 : i32
    %cst_79 = arith.constant dense<0.000000e+00> : vector<8x160xf32>
    %315 = tpu.matmul %310, %2, %cst_79 {dimension_numbers = #tpu.dot_dimension_numbers<[1], [0], [0], [1], [0, 0, 1, 1], [], []>} : vector<8x32xf32>, vector<32x160xf32>, vector<8x160xf32> -> vector<8x160xf32>
    %316 = vector.extract_strided_slice %315 {offsets = [0, 0], sizes = [8, 128], strides = [1, 1]} : vector<8x160xf32> to vector<8x128xf32>
    %317 = vector.extract_strided_slice %315 {offsets = [0, 128], sizes = [8, 32], strides = [1, 1]} : vector<8x160xf32> to vector<8x32xf32>
    %318 = vector.shape_cast %317 : vector<8x32xf32> to vector<8x1x32xf32>
    %319 = vector.broadcast %318 : vector<8x1x32xf32> to vector<8x16x32xf32>
    %320 = arith.addf %1, %319 : vector<8x16x32xf32>
    %321 = math.tanh %320 : vector<8x16x32xf32>
    %322 = vector.broadcast %4 : vector<1x1x32xf32> to vector<8x16x32xf32>
    %323 = arith.mulf %321, %322 : vector<8x16x32xf32>
    %cst_80 = arith.constant dense<0.000000e+00> : vector<8x16xf32>
    %324 = vector.multi_reduction <add>, %323, %cst_80 [2] : vector<8x16x32xf32> to vector<8x16xf32>
    %325 = vector.broadcast %5 : vector<1x1xf32> to vector<8x16xf32>
    %326 = arith.addf %324, %325 : vector<8x16xf32>
    %cst_81 = arith.constant dense<0xFF800000> : vector<8xf32>
    %327 = vector.multi_reduction <maximumf>, %326, %cst_81 [1] : vector<8x16xf32> to vector<8xf32>
    %328 = vector.shape_cast %327 : vector<8xf32> to vector<8x1xf32>
    %329 = vector.broadcast %328 : vector<8x1xf32> to vector<8x16xf32>
    %330 = arith.subf %326, %329 : vector<8x16xf32>
    %331 = math.exp %330 : vector<8x16xf32>
    %cst_82 = arith.constant dense<0.000000e+00> : vector<8xf32>
    %332 = vector.multi_reduction <add>, %331, %cst_82 [1] : vector<8x16xf32> to vector<8xf32>
    %333 = vector.shape_cast %332 : vector<8xf32> to vector<8x1xf32>
    %334 = tpu.reciprocal %333 {approx = true} : vector<8x1xf32> -> vector<8x1xf32>
    %335 = vector.broadcast %334 : vector<8x1xf32> to vector<8x16xf32>
    %336 = arith.mulf %331, %335 : vector<8x16xf32>
    %337 = vector.shape_cast %336 : vector<8x16xf32> to vector<8x16x1xf32>
    %338 = vector.broadcast %337 : vector<8x16x1xf32> to vector<8x16x32xf32>
    %339 = arith.mulf %0, %338 : vector<8x16x32xf32>
    %cst_83 = arith.constant dense<0.000000e+00> : vector<8x32xf32>
    %340 = vector.multi_reduction <add>, %339, %cst_83 [1] : vector<8x16x32xf32> to vector<8x32xf32>
    %341 = arith.index_cast %c6_i32 : i32 to index
    %c0_84 = arith.constant 0 : index
    %c0_85 = arith.constant 0 : index
    %342 = vector.load %arg0[%341, %c0_84, %c0_85] : memref<8x8x128xf32, #tpu.memory_space<vmem>>, vector<1x8x128xf32>
    %343 = vector.shape_cast %342 : vector<1x8x128xf32> to vector<8x128xf32>
    %cst_86 = arith.constant dense<0.000000e+00> : vector<8x128xf32>
    %344 = tpu.matmul %340, %6, %cst_86 {dimension_numbers = #tpu.dot_dimension_numbers<[1], [0], [0], [1], [0, 0, 1, 1], [], []>} : vector<8x32xf32>, vector<32x128xf32>, vector<8x128xf32> -> vector<8x128xf32>
    %345 = arith.addf %343, %344 : vector<8x128xf32>
    %346 = arith.addf %345, %316 : vector<8x128xf32>
    %347 = arith.negf %346 : vector<8x128xf32>
    %348 = math.exp %347 : vector<8x128xf32>
    %cst_87 = arith.constant 1.000000e+00 : f32
    %349 = vector.broadcast %cst_87 : f32 to vector<8x128xf32>
    %350 = arith.addf %349, %348 : vector<8x128xf32>
    %351 = arith.divf %349, %350 : vector<8x128xf32>
    %352 = math.tanh %346 : vector<8x128xf32>
    %353 = vector.extract_strided_slice %351 {offsets = [0, 0], sizes = [8, 32], strides = [1, 1]} : vector<8x128xf32> to vector<8x32xf32>
    %354 = vector.extract_strided_slice %351 {offsets = [0, 32], sizes = [8, 32], strides = [1, 1]} : vector<8x128xf32> to vector<8x32xf32>
    %355 = vector.extract_strided_slice %352 {offsets = [0, 64], sizes = [8, 32], strides = [1, 1]} : vector<8x128xf32> to vector<8x32xf32>
    %356 = vector.extract_strided_slice %351 {offsets = [0, 96], sizes = [8, 32], strides = [1, 1]} : vector<8x128xf32> to vector<8x32xf32>
    %357 = arith.mulf %354, %308 : vector<8x32xf32>
    %358 = arith.mulf %353, %355 : vector<8x32xf32>
    %359 = arith.addf %357, %358 : vector<8x32xf32>
    %360 = math.tanh %359 : vector<8x32xf32>
    %361 = arith.mulf %356, %360 : vector<8x32xf32>
    %c8_i32_88 = arith.constant 8 : i32
    %362 = arith.muli %c6_i32, %c8_i32_88 : i32
    %363 = tpu.assume_multiple %362, 8 : i32
    %364 = arith.index_cast %363 : i32 to index
    %c0_89 = arith.constant 0 : index
    %365 = vector.load %arg10[%364, %c0_89] : memref<64x32xf32, #tpu.memory_space<vmem>>, vector<8x32xf32>
    tpu.vector_store %arg10[%364, %c0_89], %361 {strides = array<i32>} : memref<64x32xf32, #tpu.memory_space<vmem>>, vector<8x32xf32>,
    %c7_i32 = arith.constant 7 : i32
    %cst_90 = arith.constant dense<0.000000e+00> : vector<8x160xf32>
    %366 = tpu.matmul %361, %2, %cst_90 {dimension_numbers = #tpu.dot_dimension_numbers<[1], [0], [0], [1], [0, 0, 1, 1], [], []>} : vector<8x32xf32>, vector<32x160xf32>, vector<8x160xf32> -> vector<8x160xf32>
    %367 = vector.extract_strided_slice %366 {offsets = [0, 0], sizes = [8, 128], strides = [1, 1]} : vector<8x160xf32> to vector<8x128xf32>
    %368 = vector.extract_strided_slice %366 {offsets = [0, 128], sizes = [8, 32], strides = [1, 1]} : vector<8x160xf32> to vector<8x32xf32>
    %369 = vector.shape_cast %368 : vector<8x32xf32> to vector<8x1x32xf32>
    %370 = vector.broadcast %369 : vector<8x1x32xf32> to vector<8x16x32xf32>
    %371 = arith.addf %1, %370 : vector<8x16x32xf32>
    %372 = math.tanh %371 : vector<8x16x32xf32>
    %373 = vector.broadcast %4 : vector<1x1x32xf32> to vector<8x16x32xf32>
    %374 = arith.mulf %372, %373 : vector<8x16x32xf32>
    %cst_91 = arith.constant dense<0.000000e+00> : vector<8x16xf32>
    %375 = vector.multi_reduction <add>, %374, %cst_91 [2] : vector<8x16x32xf32> to vector<8x16xf32>
    %376 = vector.broadcast %5 : vector<1x1xf32> to vector<8x16xf32>
    %377 = arith.addf %375, %376 : vector<8x16xf32>
    %cst_92 = arith.constant dense<0xFF800000> : vector<8xf32>
    %378 = vector.multi_reduction <maximumf>, %377, %cst_92 [1] : vector<8x16xf32> to vector<8xf32>
    %379 = vector.shape_cast %378 : vector<8xf32> to vector<8x1xf32>
    %380 = vector.broadcast %379 : vector<8x1xf32> to vector<8x16xf32>
    %381 = arith.subf %377, %380 : vector<8x16xf32>
    %382 = math.exp %381 : vector<8x16xf32>
    %cst_93 = arith.constant dense<0.000000e+00> : vector<8xf32>
    %383 = vector.multi_reduction <add>, %382, %cst_93 [1] : vector<8x16xf32> to vector<8xf32>
    %384 = vector.shape_cast %383 : vector<8xf32> to vector<8x1xf32>
    %385 = tpu.reciprocal %384 {approx = true} : vector<8x1xf32> -> vector<8x1xf32>
    %386 = vector.broadcast %385 : vector<8x1xf32> to vector<8x16xf32>
    %387 = arith.mulf %382, %386 : vector<8x16xf32>
    %388 = vector.shape_cast %387 : vector<8x16xf32> to vector<8x16x1xf32>
    %389 = vector.broadcast %388 : vector<8x16x1xf32> to vector<8x16x32xf32>
    %390 = arith.mulf %0, %389 : vector<8x16x32xf32>
    %cst_94 = arith.constant dense<0.000000e+00> : vector<8x32xf32>
    %391 = vector.multi_reduction <add>, %390, %cst_94 [1] : vector<8x16x32xf32> to vector<8x32xf32>
    %392 = arith.index_cast %c7_i32 : i32 to index
    %c0_95 = arith.constant 0 : index
    %c0_96 = arith.constant 0 : index
    %393 = vector.load %arg0[%392, %c0_95, %c0_96] : memref<8x8x128xf32, #tpu.memory_space<vmem>>, vector<1x8x128xf32>
    %394 = vector.shape_cast %393 : vector<1x8x128xf32> to vector<8x128xf32>
    %cst_97 = arith.constant dense<0.000000e+00> : vector<8x128xf32>
    %395 = tpu.matmul %391, %6, %cst_97 {dimension_numbers = #tpu.dot_dimension_numbers<[1], [0], [0], [1], [0, 0, 1, 1], [], []>} : vector<8x32xf32>, vector<32x128xf32>, vector<8x128xf32> -> vector<8x128xf32>
    %396 = arith.addf %394, %395 : vector<8x128xf32>
    %397 = arith.addf %396, %367 : vector<8x128xf32>
    %398 = arith.negf %397 : vector<8x128xf32>
    %399 = math.exp %398 : vector<8x128xf32>
    %cst_98 = arith.constant 1.000000e+00 : f32
    %400 = vector.broadcast %cst_98 : f32 to vector<8x128xf32>
    %401 = arith.addf %400, %399 : vector<8x128xf32>
    %402 = arith.divf %400, %401 : vector<8x128xf32>
    %403 = math.tanh %397 : vector<8x128xf32>
    %404 = vector.extract_strided_slice %402 {offsets = [0, 0], sizes = [8, 32], strides = [1, 1]} : vector<8x128xf32> to vector<8x32xf32>
    %405 = vector.extract_strided_slice %402 {offsets = [0, 32], sizes = [8, 32], strides = [1, 1]} : vector<8x128xf32> to vector<8x32xf32>
    %406 = vector.extract_strided_slice %403 {offsets = [0, 64], sizes = [8, 32], strides = [1, 1]} : vector<8x128xf32> to vector<8x32xf32>
    %407 = vector.extract_strided_slice %402 {offsets = [0, 96], sizes = [8, 32], strides = [1, 1]} : vector<8x128xf32> to vector<8x32xf32>
    %408 = arith.mulf %405, %359 : vector<8x32xf32>
    %409 = arith.mulf %404, %406 : vector<8x32xf32>
    %410 = arith.addf %408, %409 : vector<8x32xf32>
    %411 = math.tanh %410 : vector<8x32xf32>
    %412 = arith.mulf %407, %411 : vector<8x32xf32>
    %c8_i32_99 = arith.constant 8 : i32
    %413 = arith.muli %c7_i32, %c8_i32_99 : i32
    %414 = tpu.assume_multiple %413, 8 : i32
    %415 = arith.index_cast %414 : i32 to index
    %c0_100 = arith.constant 0 : index
    %416 = vector.load %arg10[%415, %c0_100] : memref<64x32xf32, #tpu.memory_space<vmem>>, vector<8x32xf32>
    tpu.vector_store %arg10[%415, %c0_100], %412 {strides = array<i32>} : memref<64x32xf32, #tpu.memory_space<vmem>>, vector<8x32xf32>,
    %c8_i32_101 = arith.constant 8 : i32
    %c0_102 = arith.constant 0 : index
    %c0_103 = arith.constant 0 : index
    %417 = vector.load %arg10[%c0_102, %c0_103] : memref<64x32xf32, #tpu.memory_space<vmem>>, vector<64x32xf32>
    %c0_104 = arith.constant 0 : index
    %c0_105 = arith.constant 0 : index
    %418 = vector.load %arg7[%c0_104, %c0_105] : memref<32x128xf32, #tpu.memory_space<vmem>>, vector<32x128xf32>
    %cst_106 = arith.constant dense<0.000000e+00> : vector<64x128xf32>
    %419 = tpu.matmul %417, %418, %cst_106 {dimension_numbers = #tpu.dot_dimension_numbers<[1], [0], [0], [1], [0, 0, 1, 1], [], []>} : vector<64x32xf32>, vector<32x128xf32>, vector<64x128xf32> -> vector<64x128xf32>
    %c0_107 = arith.constant 0 : index
    %c0_108 = arith.constant 0 : index
    %420 = vector.load %arg8[%c0_107, %c0_108] : memref<1x128xf32, #tpu.memory_space<vmem>>, vector<1x128xf32>
    %421 = vector.broadcast %420 : vector<1x128xf32> to vector<64x128xf32>
    %422 = arith.addf %419, %421 : vector<64x128xf32>
    %c0_109 = arith.constant 0 : index
    %c0_110 = arith.constant 0 : index
    %423 = vector.load %arg9[%c0_109, %c0_110] : memref<64x128xf32, #tpu.memory_space<vmem>>, vector<64x128xf32>
    tpu.vector_store %arg9[%c0_109, %c0_110], %422 {strides = array<i32>} : memref<64x128xf32, #tpu.memory_space<vmem>>, vector<64x128xf32>,
    return
  }
}

</mosaic_0001>

<bundles_post_ra>
// kernel: tpu_custom_call.1
= control target key start
LH: loop header
LB: loop body
LE: loop exit
PB: predicated region body
PF: predicated region fallthrough
CT: control target
= control target key end

     0   :  { %s12204_s0 = inlined_call_operand.hbm [shape: f32[8,8,128], index: 0, kind: input, shape index: {}]   ;;  %s12205_s1 = inlined_call_operand.hbm [shape: f32[8,16,32], index: 1, kind: input, shape index: {}]   ;;  %s12206_s2 = inlined_call_operand.hbm [shape: f32[8,16,32], index: 2, kind: input, shape index: {}]   ;;  %s12207_s3 = inlined_call_operand.hbm [shape: f32[32,160], index: 3, kind: input, shape index: {}]   ;;  %s12208_s4 = inlined_call_operand.vmem [shape: f32[1,32], index: 4, kind: input, shape index: {}]   ;;  %s12209_s5 = inlined_call_operand.<no memory space> [shape: f32[1,1], index: 5, kind: input, shape index: {}]   ;;  %s12210_s6 = inlined_call_operand.hbm [shape: f32[32,128], index: 6, kind: input, shape index: {}]   ;;  %s12211_s7 = inlined_call_operand.hbm [shape: f32[32,128], index: 7, kind: input, shape index: {}]   ;;  %s12212_s8 = inlined_call_operand.vmem [shape: f32[1,128], index: 8, kind: input, shape index: {}]   ;;  %s12213_s9 = inlined_call_operand.hbm [shape: f32[64,128], index: 9, kind: output, shape index: {}]  }
   0x1   :  { %v14_v0 = vstv %s12209_s5 }
   0x2   :  { %15 = vst [vmem:[#allocation3] sm:$0x1] %v14_v0 }
   0x3   :  { %16 = vsyncpa [#allocation5], 0 }
   0x4   :  { %17 = vsyncpa [#allocation8], 0 }
   0x5   :  { %18 = vsyncpa [#allocation11], 0 }
   0x6   :  { %19 = vsyncpa [#allocation14], 0 }
   0x7   :  { %20 = vsyncpa [#allocation6], 0  ;;  %s9324_s11 = smov [#allocation7]   ;;  %s9325_s13 = smov [#allocation10]  }
   0x8   :  { %s38_s12 = sshll.u32 %s9324_s11, 4  ;;  %s62_s14 = sshll.u32 %s9325_s13, 4  ;;  %s39_s12 = int_to_ptr.vmem [resolvable:$true] %s38_s12  ;;  %s9395_s14 = int_to_ptr.vmem [resolvable:$true] %s62_s14 }
   0x9   :  { %s9160_s17 = scalar_lea.hbm %s12205_s1, 2048 }
   0xa   :  { %p9161_p0 = scmp.ne.s32.totalorder %s12205_s1, %s9160_s17  ;;  %p9164_p1 = scmp.lt.u32.totalorder %s9160_s17, %s12205_s1 }
   0xc   :  { %p9166_p2 = pnand %p9164_p1, %p9161_p0 }
   0xe   :  { %9169 = shalt.err (!%p9166_p2)
}
   0xf   :  { %s9170_s21 = scalar_lea.vmem %s39_s12, 2048  ;;  %p9175_p4 = scmp.lt.s32.totalorder %s39_s12, %s39_s12 }
  0x10   :  { %p9171_p3 = scmp.ne.s32.totalorder %s39_s12, %s9170_s21  ;;  %p9176_p5 = scmp.lt.s32.totalorder %s9170_s21, %s9170_s21 }
  0x12   :  { %p9177_p6 = por %p9176_p5, %p9175_p4 }
  0x14   :  { %p9178_p7 = pnand %p9177_p6, %p9171_p3 }
  0x16   :  { %9181 = shalt.err (!%p9178_p7)
}
  0x17   :  { %s9326_s22 = smov 128   ;;  %s9327_s23 = smov 8  }
  0x18   :  { %44 = dma.hbm_to_vmem [thread:$0]  %s12205_s1, 2048, %s39_s12, [#allocation8], %s9326_s22, %s9326_s22, %s9327_s23  }
  0x19   :  { %s9182_s28 = scalar_lea.hbm %s12207_s3, 1024 }
  0x1a   :  { %p9183_p8 = scmp.ne.s32.totalorder %s12207_s3, %s9182_s28  ;;  %p9186_p9 = scmp.lt.u32.totalorder %s9182_s28, %s12207_s3 }
  0x1c   :  { %p9188_p10 = pnand %p9186_p9, %p9183_p8 }
  0x1e   :  { %9191 = shalt.err (!%p9188_p10)
}
  0x1f   :  { %s9192_s13 = scalar_lea.vmem %s9395_s14, 1024  ;;  %p9197_p12 = scmp.lt.s32.totalorder %s9395_s14, %s9395_s14 }
  0x20   :  { %p9193_p11 = scmp.ne.s32.totalorder %s9395_s14, %s9192_s13  ;;  %p9198_p13 = scmp.lt.s32.totalorder %s9192_s13, %s9192_s13 }
  0x22   :  { %p9199_p0 = por %p9198_p13, %p9197_p12 }
  0x24   :  { %p9200_p1 = pnand %p9199_p0, %p9193_p11 }
  0x26   :  { %9203 = shalt.err (!%p9200_p1)
}
  0x27   :  { %s9328_s1 = smov 256   ;;  %s9329_s12 = smov 16  }
  0x28   :  { %68 = dma.hbm_to_vmem [thread:$0]  %s12207_s3, 1024, %s9395_s14, [#allocation11], %s9328_s1, %s9328_s1, %s9329_s12  }
  0x29   :  { %s9330_s17 = smov [#allocation4]   ;;  %s9331_s19 = smov [#allocation9]  }
  0x2a   :  { %s26_s18 = sshll.u32 %s9330_s17, 4  ;;  %s50_s5 = sshll.u32 %s9331_s19, 4  ;;  %s27_s18 = int_to_ptr.vmem [resolvable:$true] %s26_s18  ;;  %s9429_s5 = int_to_ptr.vmem [resolvable:$true] %s50_s5 }
  0x2b   :  { %s9204_s24 = scalar_lea.hbm %s12204_s0, 1024 }
  0x2c   :  { %p9205_p2 = scmp.ne.s32.totalorder %s12204_s0, %s9204_s24  ;;  %p9208_p3 = scmp.lt.u32.totalorder %s9204_s24, %s12204_s0 }
  0x2e   :  { %p9210_p4 = pnand %p9208_p3, %p9205_p2 }
  0x30   :  { %9213 = shalt.err (!%p9210_p4)
}
  0x31   :  { %s9214_s3 = scalar_lea.vmem %s27_s18, 1024  ;;  %p9219_p6 = scmp.lt.s32.totalorder %s27_s18, %s27_s18 }
  0x32   :  { %p9215_p5 = scmp.ne.s32.totalorder %s27_s18, %s9214_s3  ;;  %p9220_p7 = scmp.lt.s32.totalorder %s9214_s3, %s9214_s3 }
  0x34   :  { %p9221_p8 = por %p9220_p7, %p9219_p6 }
  0x36   :  { %p9222_p9 = pnand %p9221_p8, %p9215_p5 }
  0x38   :  { %9225 = shalt.err (!%p9222_p9)
}
  0x39   :  { %32 = dma.hbm_to_vmem [thread:$0]  %s12204_s0, 1024, %s27_s18, [#allocation5], %s9326_s22, %s9326_s22, %s9327_s23  }
  0x3a   :  { %s9226_s11 = scalar_lea.hbm %s12206_s2, 2048 }
  0x3b   :  { %p9227_p10 = scmp.ne.s32.totalorder %s12206_s2, %s9226_s11  ;;  %p9230_p11 = scmp.lt.u32.totalorder %s9226_s11, %s12206_s2 }
  0x3d   :  { %p9232_p12 = pnand %p9230_p11, %p9227_p10 }
  0x3f   :  { %9235 = shalt.err (!%p9232_p12)
}
  0x40   :  { %s9236_s16 = scalar_lea.vmem %s9429_s5, 2048  ;;  %p9241_p0 = scmp.lt.s32.totalorder %s9429_s5, %s9429_s5 }
  0x41   :  { %p9237_p13 = scmp.ne.s32.totalorder %s9429_s5, %s9236_s16  ;;  %p9242_p1 = scmp.lt.s32.totalorder %s9236_s16, %s9236_s16 }
  0x43   :  { %p9243_p2 = por %p9242_p1, %p9241_p0 }
  0x45   :  { %p9244_p3 = pnand %p9243_p2, %p9237_p13 }
  0x47   :  { %9247 = shalt.err (!%p9244_p3)
}
  0x48   :  { %56 = dma.hbm_to_vmem [thread:$0]  %s12206_s2, 2048, %s9429_s5, [#allocation8], %s9326_s22, %s9326_s22, %s9327_s23  }
  0x49   :  { %s9332_s18 = smov [#allocation12]   ;;  %s9333_s20 = smov [#allocation13]  }
  0x4a   :  { %s78_s19 = sshll.u32 %s9332_s18, 4  ;;  %s90_s21 = sshll.u32 %s9333_s20, 4  ;;  %s79_s19 = int_to_ptr.vmem [resolvable:$true] %s78_s19  ;;  %s9466_s21 = int_to_ptr.vmem [resolvable:$true] %s90_s21 }
  0x4b   :  { %s9248_s26 = scalar_lea.hbm %s12210_s6, 512 }
  0x4c   :  { %p9249_p4 = scmp.ne.s32.totalorder %s12210_s6, %s9248_s26  ;;  %p9252_p5 = scmp.lt.u32.totalorder %s9248_s26, %s12210_s6 }
  0x4e   :  { %p9254_p6 = pnand %p9252_p5, %p9249_p4 }
  0x50   :  { %9257 = shalt.err (!%p9254_p6)
}
  0x51   :  { %s9258_s2 = scalar_lea.vmem %s79_s19, 512  ;;  %p9263_p8 = scmp.lt.s32.totalorder %s79_s19, %s79_s19 }
  0x52   :  { %p9259_p7 = scmp.ne.s32.totalorder %s79_s19, %s9258_s2  ;;  %p9264_p9 = scmp.lt.s32.totalorder %s9258_s2, %s9258_s2 }
  0x54   :  { %p9265_p10 = por %p9264_p9, %p9263_p8 }
  0x56   :  { %p9266_p11 = pnand %p9265_p10, %p9259_p7 }
  0x58   :  { %9269 = shalt.err (!%p9266_p11)
}
  0x59   :  { %84 = dma.hbm_to_vmem [thread:$0]  %s12210_s6, 512, %s79_s19, [#allocation11], %s9326_s22, %s9326_s22, %s9327_s23  }
  0x5a   :  { %s9270_s11 = scalar_lea.hbm %s12211_s7, 512 }
  0x5b   :  { %p9271_p12 = scmp.ne.s32.totalorder %s12211_s7, %s9270_s11  ;;  %p9274_p13 = scmp.lt.u32.totalorder %s9270_s11, %s12211_s7 }
  0x5d   :  { %p9276_p0 = pnand %p9274_p13, %p9271_p12 }
  0x5f   :  { %9279 = shalt.err (!%p9276_p0)
}
  0x60   :  { %s9280_s16 = scalar_lea.vmem %s9466_s21, 512  ;;  %p9285_p2 = scmp.lt.s32.totalorder %s9466_s21, %s9466_s21 }
  0x61   :  { %p9281_p1 = scmp.ne.s32.totalorder %s9466_s21, %s9280_s16  ;;  %p9286_p3 = scmp.lt.s32.totalorder %s9280_s16, %s9280_s16 }
  0x63   :  { %p9287_p4 = por %p9286_p3, %p9285_p2 }
  0x65   :  { %p9288_p5 = pnand %p9287_p4, %p9281_p1 }
  0x67   :  { %9291 = shalt.err (!%p9288_p5)
}
  0x68   :  { %96 = dma.hbm_to_vmem [thread:$0]  %s12211_s7, 512, %s9466_s21, [#allocation14], %s9326_s22, %s9326_s22, %s9327_s23  }
  0x69   :  { %9314 = dma.done.wait [#allocation5], 1024  }
  0x6a   :  { %9315 = vsyncadd [#allocation5], 4294966272 }
  0x6b   :  { %9316 = dma.done.wait [#allocation8], 4096  }
  0x6c   :  { %9317 = vsyncadd [#allocation8], 4294963200 }
  0x6d   :  { %9318 = dma.done.wait [#allocation11], 1536  }
  0x6e   :  { %9319 = vsyncadd [#allocation11], 4294965760 }
  0x6f   :  { %9320 = dma.done.wait [#allocation14], 512  }
  0x70   :  { %9321 = vsyncadd [#allocation14], 4294966784  ;;  %v12216_v1 = vmov 0.0   ;;  %v150_v2 = vld [vmem:[#allocation10 + $0x8] sm:$0xff]  ;;  %v152_v3 = vld [vmem:[#allocation10 + $0x18] sm:$0xff]  ;;  %v9335_v14 = vmov 0   ;;  %v243_v17 = vlaneseq }
  0x71   :  { %231 = vmatprep.mubr.f32.mxu1 %v12216_v1  ;;  %1213 = vmatprep.mubr.f32.mxu0 %v12216_v1  ;;  %v149_v4 = vld [vmem:[#allocation10] sm:$0xff]  ;;  %v9505_v5 = vpack.c.bf16 %v152_v3, %v150_v2  ;;  %v151_v6 = vld [vmem:[#allocation10 + $0x10] sm:$0xff]  ;;  %v154_v7 = vld [vmem:[#allocation10 + $0x28] sm:$0xff]  ;;  %v9336_v15 = vmov 1966171168   ;;  %vm163_vm0 = vcmask 261120  }
  0x72   :  { %v156_v8 = vld [vmem:[#allocation10 + $0x38] sm:$0xff]  ;;  %v9507_v9 = vpack.c.bf16 %v151_v6, %v149_v4  ;;  %v153_v11 = vld [vmem:[#allocation10 + $0x20] sm:$0xff]  ;;  %v155_v12 = vld [vmem:[#allocation10 + $0x30] sm:$0xff]  ;;  %8354 = vset.pattern.permute.xlu0 %v9335_v14  ;;  %8355 = vset.pattern.permute.xlu1 %v9335_v14  ;;  %v241_v16 = vunpack.c.l.s4 %v9336_v15  ;;  %v9524_v19 = vshrl.u32 %v243_v17, 7  ;;  %vm482_vm1 = vcmask 130112   ;;  %s9339_s18 = smov 64  }
  0x73   :  { %v9509_v10 = vpack.c.bf16 %v156_v8, %v154_v7  ;;  %8217 = vmatprep.subr.bf16.mxu1 %v9505_v5  ;;  %8231 = vmatprep.subr.bf16.mxu0 %v9505_v5  ;;  %v9514_v13 = vpack.c.bf16 %v155_v12, %v153_v11  ;;  %v133_v31 = vld [vmem:[#allocation7] sm:$0xff]  ;;  %v134_v33 = vld [vmem:[#allocation7 + $0x8] sm:$0xff]  ;;  %v135_v35 = vld [vmem:[#allocation7 + $0x10] sm:$0xff]  ;;  %vm547_vm2 = vcmask 1041409   ;;  %vm549_vm3 = vcmask 1042434   ;;  %s9340_s19 = smov 32  }
  0x74   :  { %8219 = vmatpush1.bf16.msra.mxu1 %v9507_v9  ;;  %8233 = vmatpush1.bf16.msra.mxu0 %v9507_v9  ;;  %v242_v18 = vunpack.c.0.s8 %v241_v16  ;;  %v9533_v25 = vsub.s32 0, %v9524_v19  ;;  %v136_v36 = vld [vmem:[#allocation7 + $0x18] sm:$0xff]  ;;  %v137_v40 = vld [vmem:[#allocation7 + $0x20] sm:$0xff]  ;;  %v138_v43 = vld [vmem:[#allocation7 + $0x28] sm:$0xff]  ;;  %vm551_vm4 = vcmask 1043459   ;;  %vm553_vm5 = vcmask 1044484  }
  0x75   :  { %8221 = vmatprep.subr.bf16.mxu1 %v9509_v10  ;;  %8235 = vmatprep.subr.bf16.mxu0 %v9509_v10  ;;  %v141_v49 = vld [vmem:[#allocation7 + $0x40] sm:$0xff]  ;;  %v142_v51 = vld [vmem:[#allocation7 + $0x48] sm:$0xff]  ;;  %v139_v55 = vld [vmem:[#allocation7 + $0x30] sm:$0xff]  ;;  %vm555_vm6 = vcmask 1045509   ;;  %vm557_vm7 = vcmask 1046534   ;;  %vm559_vm8 = vcmask 1047559  }
  0x76   :  { %v9527_v20 = vsub.s32 %v242_v18, %v9524_v19  ;;  %v140_v57 = vld [vmem:[#allocation7 + $0x38] sm:$0xff]  ;;  %v143_v62 = vld [vmem:[#allocation7 + $0x50] sm:$0xff]  ;;  %v145_v14 = vld [vmem:[#allocation7 + $0x60] sm:$0xff]  ;;  %vm562_vm9 = vcmask 130048   ;;  %vm9338_vm10 = vmmov 0  }
  0x77   :  { %v9549_v61 = vld [vmem:[%s12208_s4] ss:$0 sm:$0xff] }
  0x78   :  { %8223 = vmatpush1.bf16.msra.mxu1 %v9514_v13  ;;  %8237 = vmatpush1.bf16.msra.mxu0 %v9514_v13  ;;  %v144_v3 = vld [vmem:[#allocation7 + $0x58] sm:$0xff] }
  0x79   :  { %8245 = vmatprep.subr.bf16.mxu0 %v9505_v5 }
  0x7b   :  { %232 = vmatmul.mubr.f32.vlgmr.msra.gmra.mrb[0].mxu1 %v12216_v1 }
  0x7c   :  { %8116 = vmatprep.mubr.msk.f32.mxu1 %vm9338_vm10, %v12216_v1 }
 0x14e   :  { %v9529_v21 = vpop.f32.mrb[0].mxu1 }
 0x14f   :  { %v235_v22 = vpop.f32.mrb[1].mxu1 }
 0x150   :  { %v239_v23 = vcombine.high %v235_v22, %v235_v22  ;;  %v246_v24 = vrot.slane %v235_v22, %v9527_v20 }
 0x152   :  { %v254_v26 = vcombine.high %v246_v24, %v246_v24  ;;  %v262_v27 = vrot.slane %v246_v24, %v9527_v20  ;;  %v253_v28 = vrot.slane %v239_v23, %v9527_v20  ;;  %v146_v24 = vld [vmem:[#allocation7 + $0x68] sm:$0xff] }
 0x154   :  { %v276_v29 = vrot.slane %v254_v26, %v9527_v20  ;;  %v284_v30 = vcombine.high %v262_v27, %v262_v27  ;;  %v291_v32 = vrot.slane %v262_v27, %v9533_v25  ;;  %v269_v37 = vrot.slane %v253_v28, %v9527_v20 }
 0x155   :  { %v255_v44 = vcombine.high %v253_v28, %v253_v28 }
 0x156   :  { %v295_v34 = vrot.slane %v276_v29, %v9533_v25  ;;  %v299_v38 = vrot.slane %v284_v30, %v9533_v25  ;;  %v328_v39 = vadd.f32 %v291_v32, %v133_v31  ;;  %v329_v41 = vadd.f32 %v291_v32, %v134_v33  ;;  %v147_v31 = vld [vmem:[#allocation7 + $0x70] sm:$0xff] }
 0x157   :  { %v286_v46 = vcombine.high %v276_v29, %v276_v29  ;;  %v307_v47 = vrot.slane %v269_v37, %v9533_v25  ;;  %v283_v52 = vrot.slane %v255_v44, %v9527_v20  ;;  %v285_v58 = vcombine.high %v269_v37, %v269_v37 }
 0x158   :  { %v330_v42 = vadd.f32 %v295_v34, %v135_v35  ;;  %v331_v45 = vadd.f32 %v295_v34, %v136_v36  ;;  %v332_v48 = vadd.f32 %v299_v38, %v137_v40  ;;  %8356 = vtanh.f32 %v328_v39  ;;  %v148_v36 = vld [vmem:[#allocation7 + $0x78] sm:$0xff] }
 0x159   :  { %8358 = vtanh.f32 %v329_v41  ;;  %v333_v50 = vadd.f32 %v299_v38, %v138_v43  ;;  %v303_v53 = vrot.slane %v286_v46, %v9533_v25  ;;  %v336_v54 = vadd.f32 %v307_v47, %v141_v49 }
 0x15a   :  { %8360 = vtanh.f32 %v330_v42  ;;  %v337_v56 = vadd.f32 %v307_v47, %v142_v51  ;;  %v311_v59 = vrot.slane %v283_v52, %v9533_v25  ;;  %v287_v7 = vcombine.high %v283_v52, %v283_v52 }
 0x15b   :  { %8362 = vtanh.f32 %v331_v45  ;;  %v334_v60 = vadd.f32 %v303_v53, %v139_v55  ;;  %v335_v0 = vadd.f32 %v303_v53, %v140_v57  ;;  %v315_v8 = vrot.slane %v285_v58, %v9533_v25 }
 0x15c   :  { %8364 = vtanh.f32 %v332_v48  ;;  %v338_v11 = vadd.f32 %v311_v59, %v143_v62  ;;  %v339_v23 = vadd.f32 %v311_v59, %v144_v3  ;;  %v319_v29 = vrot.slane %v287_v7, %v9533_v25 }
 0x15d   :  { %8366 = vtanh.f32 %v333_v50  ;;  %v340_v30 = vadd.f32 %v315_v8, %v145_v14  ;;  %v341_v35 = vadd.f32 %v315_v8, %v146_v24  ;;  %v8023_v14 = vld [vmem:[#allocation3] ss:$0 sm:$0xff] }
 0x15e   :  { %8368 = vtanh.f32 %v336_v54  ;;  %v342_v40 = vadd.f32 %v319_v29, %v147_v31  ;;  %v343_v44 = vadd.f32 %v319_v29, %v148_v36  ;;  %v472_v31 = vand.u32 127, %v243_v17 }
 0x15f   :  { %8370 = vtanh.f32 %v337_v56 }
 0x160   :  { %8372 = vtanh.f32 %v334_v60  ;;  %v9587_v36 = vsub.s32 %v472_v31, %v9524_v19 }
 0x161   :  { %8374 = vtanh.f32 %v335_v0 }
 0x162   :  { %v8357_v63 = vpop.eup %8356  ;;  %8376 = vtanh.f32 %v338_v11 }
 0x163   :  { %v8359_v2 = vpop.eup %8358  ;;  %v366_v4 = vmul.f32 %v8357_v63, %v9549_v61  ;;  %8378 = vtanh.f32 %v339_v23 }
 0x164   :  { %v8361_v6 = vpop.eup %8360  ;;  %v367_v18 = vmul.f32 %v8359_v2, %v9549_v61  ;;  %8380 = vtanh.f32 %v340_v30 }
 0x165   :  { %v8363_v12 = vpop.eup %8362  ;;  %v382_v15 = vsel %vm163_vm0, %v366_v4, 0.0  ;;  %v368_v16 = vmul.f32 %v8361_v6, %v9549_v61  ;;  %8382 = vtanh.f32 %v341_v35 }
 0x166   :  { %v8365_v22 = vpop.eup %8364  ;;  %383 = vadd.xlane.f32.xlu0 %v382_v15  ;;  %v369_v27 = vmul.f32 %v8363_v12, %v9549_v61  ;;  %v385_v32 = vsel %vm163_vm0, %v367_v18, 0.0  ;;  %8384 = vtanh.f32 %v342_v40 }
 0x167   :  { %v388_v26 = vsel %vm163_vm0, %v368_v16, 0.0  ;;  %v8367_v28 = vpop.eup %8366  ;;  %v370_v33 = vmul.f32 %v8365_v22, %v9549_v61  ;;  %8386 = vtanh.f32 %v343_v44 }
 0x168   :  { %389 = vadd.xlane.f32.xlu1 %v388_v26  ;;  %v8369_v34 = vpop.eup %8368  ;;  %v391_v37 = vsel %vm163_vm0, %v369_v27, 0.0  ;;  %v371_v38 = vmul.f32 %v8367_v28, %v9549_v61 }
 0x169   :  { %v8371_v39 = vpop.eup %8370  ;;  %v394_v41 = vsel %vm163_vm0, %v370_v33, 0.0  ;;  %v374_v42 = vmul.f32 %v8369_v34, %v9549_v61  ;;  %v477_v33 = vadd.s32 4294967288, %v472_v31 }
 0x16a   :  { %386 = vadd.xlane.f32.xlu0 %v385_v32  ;;  %v8373_v43 = vpop.eup %8372  ;;  %v397_v45 = vsel %vm163_vm0, %v371_v38, 0.0  ;;  %v375_v46 = vmul.f32 %v8371_v39, %v9549_v61 }
 0x16b   :  { %v8375_v47 = vpop.eup %8374  ;;  %v406_v48 = vsel %vm163_vm0, %v374_v42, 0.0  ;;  %v372_v49 = vmul.f32 %v8373_v43, %v9549_v61 }
 0x16c   :  { %392 = vadd.xlane.f32.xlu1 %v391_v37  ;;  %v8377_v50 = vpop.eup %8376  ;;  %v409_v51 = vsel %vm163_vm0, %v375_v46, 0.0  ;;  %v373_v52 = vmul.f32 %v8375_v47, %v9549_v61  ;;  %v9590_v37 = vsub.s32 %v477_v33, %v9524_v19  ;;  %v9691_v33 = vsub.s32 3, %v9524_v19 }
 0x16d   :  { %v8379_v53 = vpop.eup %8378  ;;  %v400_v54 = vsel %vm163_vm0, %v372_v49, 0.0  ;;  %v376_v55 = vmul.f32 %v8377_v50, %v9549_v61 }
 0x16e   :  { %395 = vadd.xlane.f32.xlu0 %v394_v41  ;;  %v8381_v56 = vpop.eup %8380  ;;  %v403_v57 = vsel %vm163_vm0, %v373_v52, 0.0  ;;  %v377_v58 = vmul.f32 %v8379_v53, %v9549_v61 }
 0x16f   :  { %v8383_v59 = vpop.eup %8382  ;;  %v412_v60 = vsel %vm163_vm0, %v376_v55, 0.0  ;;  %v378_v62 = vmul.f32 %v8381_v56, %v9549_v61 }
 0x170   :  { %398 = vadd.xlane.f32.xlu1 %v397_v45  ;;  %v8385_v63 = vpop.eup %8384  ;;  %v415_v0 = vsel %vm163_vm0, %v377_v58, 0.0  ;;  %v379_v2 = vmul.f32 %v8383_v59, %v9549_v61 }
 0x171   :  { %v8387_v3 = vpop.eup %8386  ;;  %v418_v4 = vsel %vm163_vm0, %v378_v62, 0.0  ;;  %v380_v6 = vmul.f32 %v8385_v63, %v9549_v61 }
 0x172   :  { %407 = vadd.xlane.f32.xlu0 %v406_v48  ;;  %v421_v7 = vsel %vm163_vm0, %v379_v2, 0.0  ;;  %v381_v8 = vmul.f32 %v8387_v3, %v9549_v61 }
 0x173   :  { %v424_v11 = vsel %vm163_vm0, %v380_v6, 0.0 }
 0x174   :  { %410 = vadd.xlane.f32.xlu1 %v409_v51  ;;  %v427_v12 = vsel %vm163_vm0, %v381_v8, 0.0 }
 0x176   :  { %401 = vadd.xlane.f32.xlu0 %v400_v54 }
 0x178   :  { %404 = vadd.xlane.f32.xlu1 %v403_v57 }
 0x17a   :  { %413 = vadd.xlane.f32.xlu0 %v412_v60 }
 0x17c   :  { %416 = vadd.xlane.f32.xlu1 %v415_v0 }
 0x17e   :  { %419 = vadd.xlane.f32.xlu0 %v418_v4 }
 0x180   :  { %422 = vadd.xlane.f32.xlu1 %v421_v7 }
 0x182   :  { %425 = vadd.xlane.f32.xlu0 %v424_v11 }
 0x184   :  { %428 = vadd.xlane.f32.xlu1 %v427_v12 }
 0x198   :  { %436 = vperm.xlu0 %8354, %v8023_v14  }
 0x1f3   :  { %v384_v15 = vpop.xlane.xlu0 %383 }
 0x1f5   :  { %v390_v16 = vpop.xlane.xlu1 %389 }
 0x1f7   :  { %v387_v18 = vpop.xlane.xlu0 %386 }
 0x1f9   :  { %v393_v22 = vpop.xlane.xlu1 %392 }
 0x1fb   :  { %v396_v23 = vpop.xlane.xlu0 %395 }
 0x1fd   :  { %v399_v24 = vpop.xlane.xlu1 %398 }
 0x1ff   :  { %v408_v26 = vpop.xlane.xlu0 %407 }
 0x201   :  { %v411_v28 = vpop.xlane.xlu1 %410 }
 0x203   :  { %v402_v27 = vpop.xlane.xlu0 %401 }
 0x205   :  { %v405_v61 = vpop.xlane.xlu1 %404 }
 0x207   :  { %v414_v29 = vpop.xlane.xlu0 %413 }
 0x209   :  { %v417_v32 = vpop.xlane.xlu1 %416 }
 0x20b   :  { %v420_v30 = vpop.xlane.xlu0 %419 }
 0x20d   :  { %v423_v35 = vpop.xlane.xlu1 %422 }
 0x20f   :  { %v426_v34 = vpop.xlane.xlu0 %425 }
 0x211   :  { %v429_v52 = vpop.xlane.xlu1 %428 }
 0x217   :  { %v9592_v38 = vpop.permute.xlu0 %436 }
 0x218   :  { %12224 = vst [vmem:[#allocation21_spill] sm:$0xff] %v9592_v38  ;;  %v9595_v39 = vadd.f32 %v9592_v38, %v384_v15  ;;  %v9598_v40 = vadd.f32 %v9592_v38, %v387_v18  ;;  %v9601_v17 = vadd.f32 %v9592_v38, %v390_v16  ;;  %v9604_v41 = vadd.f32 %v9592_v38, %v393_v22 }
 0x219   :  { %v9607_v42 = vadd.f32 %v9592_v38, %v396_v23  ;;  %v9610_v43 = vadd.f32 %v9592_v38, %v399_v24  ;;  %v9613_v44 = vadd.f32 %v9592_v38, %v402_v27  ;;  %v9616_v45 = vadd.f32 %v9592_v38, %v405_v61 }
 0x21a   :  { %v9619_v46 = vadd.f32 %v9592_v38, %v408_v26  ;;  %v9622_v47 = vadd.f32 %v9592_v38, %v411_v28  ;;  %v9625_v48 = vadd.f32 %v9592_v38, %v414_v29  ;;  %v9628_v49 = vadd.f32 %v9592_v38, %v417_v32 }
 0x21b   :  { %v9631_v50 = vadd.f32 %v9592_v38, %v420_v30  ;;  %v9634_v51 = vadd.f32 %v9592_v38, %v423_v35  ;;  %v476_v53 = vrot.slane %v9595_v39, %v9587_v36  ;;  %v481_v54 = vrot.slane %v9598_v40, %v9590_v37 }
 0x21c   :  { %v487_v55 = vrot.slane %v9601_v17, %v9587_v36  ;;  %v491_v56 = vrot.slane %v9604_v41, %v9590_v37  ;;  %v9645_v57 = vadd.f32 %v9592_v38, %v426_v34  ;;  %v9648_v58 = vadd.f32 %v9592_v38, %v429_v52 }
 0x21d   :  { %v496_v59 = vrot.slane %v9607_v42, %v9587_v36  ;;  %v500_v60 = vrot.slane %v9610_v43, %v9590_v37  ;;  %v483_v62 = vsel %vm482_vm1, %v481_v54, %v476_v53  ;;  %v505_v0 = vrot.slane %v9613_v44, %v9587_v36 }
 0x21e   :  { %v492_v63 = vsel %vm482_vm1, %v491_v56, %v487_v55  ;;  %v509_v2 = vrot.slane %v9616_v45, %v9590_v37  ;;  %v514_v4 = vrot.slane %v9619_v46, %v9587_v36  ;;  %v518_v6 = vrot.slane %v9622_v47, %v9590_v37 }
 0x21f   :  { %v501_v3 = vsel %vm482_vm1, %v500_v60, %v496_v59  ;;  %v523_v7 = vrot.slane %v9625_v48, %v9587_v36  ;;  %v527_v8 = vrot.slane %v9628_v49, %v9590_v37  ;;  %v532_v11 = vrot.slane %v9631_v50, %v9587_v36 }
 0x220   :  { %v536_v12 = vrot.slane %v9634_v51, %v9590_v37  ;;  %v548_v14 = vsel %vm547_vm2, %v492_v63, %v483_v62  ;;  %v510_v15 = vsel %vm482_vm1, %v509_v2, %v505_v0  ;;  %v541_v16 = vrot.slane %v9645_v57, %v9587_v36 }
 0x221   :  { %v545_v18 = vrot.slane %v9648_v58, %v9590_v37  ;;  %v550_v22 = vsel %vm549_vm3, %v501_v3, %v548_v14  ;;  %v519_v23 = vsel %vm482_vm1, %v518_v6, %v514_v4  ;;  %v528_v26 = vsel %vm482_vm1, %v527_v8, %v523_v7 }
 0x222   :  { %v552_v24 = vsel %vm551_vm4, %v510_v15, %v550_v22  ;;  %v537_v28 = vsel %vm482_vm1, %v536_v12, %v532_v11  ;;  %v9694_v34 = vsub.s32 4, %v9524_v19  ;;  %v9697_v35 = vsub.s32 5, %v9524_v19 }
 0x223   :  { %v554_v27 = vsel %vm553_vm5, %v519_v23, %v552_v24  ;;  %v546_v61 = vsel %vm482_vm1, %v545_v18, %v541_v16  ;;  %v9700_v52 = vsub.s32 1, %v9524_v19  ;;  %v9706_v59 = vsub.s32 6, %v9524_v19 }
 0x224   :  { %v556_v29 = vsel %vm555_vm6, %v528_v26, %v554_v27  ;;  %v9717_v7 = vsub.s32 7, %v9524_v19 }
 0x225   :  { %v558_v30 = vsel %vm557_vm7, %v537_v28, %v556_v29 }
 0x226   :  { %v560_v31 = vsel %vm559_vm8, %v546_v61, %v558_v30 }
 0x227   :  { %v563_v32 = vsel %vm562_vm9, %v560_v31, -inf }
 0x228   :  { %564 = vmax.xlane.f32.xlu1 %v563_v32 }
 0x2b5   :  { %v565_v53 = vpop.xlane.xlu1 %564 }
 0x2b6   :  { %v570_v54 = vrot.slane %v565_v53, %v9533_v25  ;;  %v582_v55 = vrot.slane %v565_v53, %v9691_v33  ;;  %v586_v56 = vrot.slane %v565_v53, %v9694_v34  ;;  %v9709_v60 = vrot.slane %v565_v53, %v9697_v35 }
 0x2b7   :  { %v574_v0 = vrot.slane %v565_v53, %v9700_v52  ;;  %v9720_v8 = vrot.slane %v565_v53, %v9706_v59  ;;  %v598_v12 = vrot.slane %v565_v53, %v9717_v7 }
 0x2b8   :  { %v614_v62 = vsub.f32 %v9616_v45, %v582_v55  ;;  %v607_v63 = vsub.f32 %v9595_v39, %v570_v54  ;;  %v616_v2 = vsub.f32 %v9622_v47, %v586_v56  ;;  %v608_v3 = vsub.f32 %v9598_v40, %v570_v54 }
 0x2b9   :  { %v618_v45 = vsub.f32 %v9628_v49, %v9709_v60  ;;  %v9725_v39 = vsub.s32 2, %v9524_v19  ;;  %v609_v40 = vsub.f32 %v9601_v17, %v574_v0  ;;  %v620_v15 = vsub.f32 %v9634_v51, %v9720_v8 }
 0x2ba   :  { %v637_v4 = vmul.f32 1.442695, %v614_v62  ;;  %v623_v6 = vmul.f32 1.442695, %v607_v63  ;;  %v641_v11 = vmul.f32 1.442695, %v616_v2  ;;  %v610_v49 = vsub.f32 %v9604_v41, %v574_v0 }
 0x2bb   :  { %v625_v47 = vmul.f32 1.442695, %v608_v3  ;;  %v645_v14 = vmul.f32 1.442695, %v618_v45  ;;  %v578_v16 = vrot.slane %v565_v53, %v9725_v39  ;;  %v627_v18 = vmul.f32 1.442695, %v609_v40 }
 0x2bc   :  { %8388 = vpow2.f32 %v637_v4  ;;  %v649_v19 = vmul.f32 1.442695, %v620_v15  ;;  %v622_v22 = vsub.f32 %v9648_v58, %v598_v12  ;;  %v629_v23 = vmul.f32 1.442695, %v610_v49 }
 0x2bd   :  { %8390 = vpow2.f32 %v623_v6  ;;  %v611_v17 = vsub.f32 %v9607_v42, %v578_v16  ;;  %v612_v27 = vsub.f32 %v9610_v43, %v578_v16  ;;  %v613_v29 = vsub.f32 %v9613_v44, %v582_v55 }
 0x2be   :  { %8392 = vpow2.f32 %v641_v11  ;;  %v653_v51 = vmul.f32 1.442695, %v622_v22  ;;  %v615_v31 = vsub.f32 %v9619_v46, %v586_v56  ;;  %v617_v54 = vsub.f32 %v9625_v48, %v9709_v60 }
 0x2bf   :  { %8394 = vpow2.f32 %v625_v47  ;;  %v631_v41 = vmul.f32 1.442695, %v611_v17  ;;  %v633_v42 = vmul.f32 1.442695, %v612_v27  ;;  %v635_v43 = vmul.f32 1.442695, %v613_v29 }
 0x2c0   :  { %8396 = vpow2.f32 %v645_v14  ;;  %v639_v44 = vmul.f32 1.442695, %v615_v31  ;;  %v643_v46 = vmul.f32 1.442695, %v617_v54  ;;  %v619_v56 = vsub.f32 %v9631_v50, %v9720_v8 }
 0x2c1   :  { %8398 = vpow2.f32 %v627_v18  ;;  %v621_v48 = vsub.f32 %v9645_v57, %v598_v12 }
 0x2c2   :  { %8400 = vpow2.f32 %v649_v19  ;;  %v647_v0 = vmul.f32 1.442695, %v619_v56 }
 0x2c3   :  { %8402 = vpow2.f32 %v629_v23  ;;  %v651_v2 = vmul.f32 1.442695, %v621_v48 }
 0x2c4   :  { %8404 = vpow2.f32 %v653_v51 }
 0x2c5   :  { %8406 = vpow2.f32 %v631_v41 }
 0x2c6   :  { %v9735_v24 = vpop.eup %8388  ;;  %8408 = vpow2.f32 %v633_v42 }
 0x2c7   :  { %v9737_v26 = vpop.eup %8390  ;;  %693 = vperm.xlu0 %8354, %v9735_v24   ;;  %8410 = vpow2.f32 %v635_v43 }
 0x2c8   :  { %672 = vperm.xlu1 %8355, %v9737_v26   ;;  %v9742_v28 = vpop.eup %8392  ;;  %8412 = vpow2.f32 %v639_v44 }
 0x2c9   :  { %v9744_v58 = vpop.eup %8394  ;;  %8414 = vpow2.f32 %v643_v46 }
 0x2ca   :  { %v9749_v61 = vpop.eup %8396  ;;  %8416 = vpow2.f32 %v647_v0 }
 0x2cb   :  { %699 = vperm.xlu0 %8354, %v9742_v28   ;;  %v9751_v30 = vpop.eup %8398  ;;  %8418 = vpow2.f32 %v651_v2 }
 0x2cc   :  { %675 = vperm.xlu1 %8355, %v9744_v58   ;;  %v9756_v32 = vpop.eup %8400 }
 0x2cd   :  { %v9758_v53 = vpop.eup %8402 }
 0x2ce   :  { %v9764_v55 = vpop.eup %8404 }
 0x2cf   :  { %705 = vperm.xlu0 %8354, %v9749_v61   ;;  %v9766_v62 = vpop.eup %8406 }
 0x2d0   :  { %678 = vperm.xlu1 %8355, %v9751_v30   ;;  %v9772_v63 = vpop.eup %8408 }
 0x2d1   :  { %v9776_v60 = vpop.eup %8410 }
 0x2d2   :  { %v9779_v3 = vpop.eup %8412 }
 0x2d3   :  { %711 = vperm.xlu0 %8354, %v9756_v32   ;;  %v9782_v50 = vpop.eup %8414 }
 0x2d4   :  { %681 = vperm.xlu1 %8355, %v9758_v53   ;;  %v9785_v4 = vpop.eup %8416 }
 0x2d5   :  { %v8419_v57 = vpop.eup %8418 }
 0x2d7   :  { %717 = vperm.xlu0 %8354, %v9764_v55  }
 0x2d8   :  { %684 = vperm.xlu1 %8355, %v9766_v62  }
 0x2dc   :  { %687 = vperm.xlu1 %8355, %v9772_v63  }
 0x2e0   :  { %690 = vperm.xlu1 %8355, %v9776_v60  }
 0x2e4   :  { %696 = vperm.xlu1 %8355, %v9779_v3  }
 0x2e8   :  { %702 = vperm.xlu1 %8355, %v9782_v50  }
 0x2ec   :  { %708 = vperm.xlu1 %8355, %v9785_v4  }
 0x2f0   :  { %714 = vperm.xlu1 %8355, %v8419_v57  }
 0x346   :  { %v694_v47 = vpop.permute.xlu0 %693 }
 0x347   :  { %v673_v6 = vpop.permute.xlu1 %672  ;;  %v753_v29 = vrot.slane %v694_v47, %v9590_v37 }
 0x348   :  { %v722_v43 = vrot.slane %v673_v6, %v9587_v36 }
 0x34a   :  { %v700_v12 = vpop.permute.xlu0 %699 }
 0x34b   :  { %v676_v8 = vpop.permute.xlu1 %675  ;;  %v762_v54 = vrot.slane %v700_v12, %v9590_v37 }
 0x34c   :  { %v726_v17 = vrot.slane %v676_v8, %v9590_v37 }
 0x34e   :  { %v706_v16 = vpop.permute.xlu0 %705  ;;  %v727_v0 = vsel %vm482_vm1, %v726_v17, %v722_v43 }
 0x34f   :  { %v679_v11 = vpop.permute.xlu1 %678  ;;  %v771_v48 = vrot.slane %v706_v16, %v9590_v37 }
 0x350   :  { %v731_v51 = vrot.slane %v679_v11, %v9587_v36 }
 0x352   :  { %v712_v19 = vpop.permute.xlu0 %711 }
 0x353   :  { %v682_v45 = vpop.permute.xlu1 %681  ;;  %v780_v11 = vrot.slane %v712_v19, %v9590_v37 }
 0x354   :  { %v735_v49 = vrot.slane %v682_v45, %v9590_v37 }
 0x356   :  { %v736_v31 = vsel %vm482_vm1, %v735_v49, %v731_v51  ;;  %v718_v45 = vpop.permute.xlu0 %717 }
 0x357   :  { %v685_v40 = vpop.permute.xlu1 %684  ;;  %v791_v6 = vsel %vm547_vm2, %v736_v31, %v727_v0 }
 0x358   :  { %v740_v27 = vrot.slane %v685_v40, %v9587_v36 }
 0x35b   :  { %v688_v14 = vpop.permute.xlu1 %687 }
 0x35c   :  { %v744_v22 = vrot.slane %v688_v14, %v9590_v37 }
 0x35e   :  { %v745_v46 = vsel %vm482_vm1, %v744_v22, %v740_v27 }
 0x35f   :  { %v691_v15 = vpop.permute.xlu1 %690  ;;  %v792_v40 = vsel %vm549_vm3, %v745_v46, %v791_v6 }
 0x360   :  { %v749_v41 = vrot.slane %v691_v15, %v9587_v36 }
 0x362   :  { %v754_v2 = vsel %vm482_vm1, %v753_v29, %v749_v41 }
 0x363   :  { %v697_v18 = vpop.permute.xlu1 %696  ;;  %v793_v14 = vsel %vm551_vm4, %v754_v2, %v792_v40  ;;  %v161_v40 = vld [vmem:[#allocation12 + $0x10] sm:$0xff] }
 0x364   :  { %v758_v42 = vrot.slane %v697_v18, %v9587_v36  ;;  %v789_v18 = vrot.slane %v718_v45, %v9590_v37 }
 0x366   :  { %v763_v47 = vsel %vm482_vm1, %v762_v54, %v758_v42 }
 0x367   :  { %v703_v23 = vpop.permute.xlu1 %702  ;;  %v794_v19 = vsel %vm553_vm5, %v763_v47, %v793_v14  ;;  %v160_v47 = vld [vmem:[#allocation12 + $0x8] sm:$0xff] }
 0x368   :  { %v767_v44 = vrot.slane %v703_v23, %v9587_v36 }
 0x36a   :  { %v772_v12 = vsel %vm482_vm1, %v771_v48, %v767_v44 }
 0x36b   :  { %v709_v56 = vpop.permute.xlu1 %708  ;;  %v795_v22 = vsel %vm555_vm6, %v772_v12, %v794_v19  ;;  %v12214_v12 = vmov 0.0|0.0   ;;  %v120_v19 = vld [vmem:[#allocation9 + $0x18] sm:$0xff] }
 0x36c   :  { %v776_v8 = vrot.slane %v709_v56, %v9587_v36  ;;  %8224 = vmatprep.subr.bf16.mxu1 %v12214_v12 }
 0x36e   :  { %v781_v16 = vsel %vm482_vm1, %v780_v11, %v776_v8 }
 0x36f   :  { %v715_v15 = vpop.permute.xlu1 %714  ;;  %v796_v17 = vsel %vm557_vm7, %v781_v16, %v795_v22  ;;  %v122_v22 = vld [vmem:[#allocation9 + $0x28] sm:$0xff] }
 0x370   :  { %v785_v49 = vrot.slane %v715_v15, %v9587_v36 }
 0x372   :  { %v790_v23 = vsel %vm482_vm1, %v789_v18, %v785_v49 }
 0x373   :  { %v797_v51 = vsel %vm559_vm8, %v790_v23, %v796_v17  ;;  %v118_v23 = vld [vmem:[#allocation9 + $0x8] sm:$0xff]  ;;  %v119_v17 = vld [vmem:[#allocation9 + $0x10] sm:$0xff] }
 0x374   :  { %v799_v41 = vsel %vm562_vm9, %v797_v51, 0.0 }
 0x375   :  { %800 = vadd.xlane.f32.xlu1 %v799_v41  ;;  %v124_v41 = vld [vmem:[#allocation9 + $0x38] sm:$0xff] }
 0x402   :  { %v801_v27 = vpop.xlane.xlu1 %800 }
 0x403   :  { %8420 = vrcp.f32 %v801_v27 }
 0x40d   :  { %v8421_v42 = vpop.eup %8420 }
 0x40e   :  { %v823_v29 = vrot.slane %v8421_v42, %v9694_v34  ;;  %v807_v43 = vrot.slane %v8421_v42, %v9533_v25  ;;  %v835_v54 = vrot.slane %v8421_v42, %v9717_v7  ;;  %v811_v0 = vrot.slane %v8421_v42, %v9700_v52 }
 0x410   :  { %v853_v31 = vmul.f32 %v9742_v28, %v823_v29  ;;  %v844_v44 = vmul.f32 %v9737_v26, %v807_v43  ;;  %v858_v46 = vmul.f32 %v8419_v57, %v835_v54  ;;  %v845_v56 = vmul.f32 %v9744_v58, %v807_v43 }
 0x411   :  { %v846_v48 = vmul.f32 %v9751_v30, %v811_v0  ;;  %v847_v2 = vmul.f32 %v9758_v53, %v811_v0  ;;  %v815_v28 = vrot.slane %v8421_v42, %v9725_v39  ;;  %v819_v57 = vrot.slane %v8421_v42, %v9691_v33 }
 0x412   :  { %907 = vperm.xlu1 %8355, %v853_v31   ;;  %862 = vperm.xlu0 %8354, %v844_v44   ;;  %v852_v30 = vmul.f32 %v9779_v3, %v823_v29  ;;  %v827_v53 = vrot.slane %v8421_v42, %v9697_v35  ;;  %v159_v3 = vld [vmem:[#allocation12] sm:$0xff]  ;;  %v123_v31 = vld [vmem:[#allocation9 + $0x30] sm:$0xff] }
 0x413   :  { %v848_v26 = vmul.f32 %v9766_v62, %v815_v28  ;;  %v849_v8 = vmul.f32 %v9772_v63, %v815_v28  ;;  %v850_v58 = vmul.f32 %v9776_v60, %v819_v57  ;;  %v851_v11 = vmul.f32 %v9735_v24, %v819_v57  ;;  %v117_v29 = vld [vmem:[#allocation9] sm:$0xff] }
 0x414   :  { %v854_v6 = vmul.f32 %v9782_v50, %v827_v53  ;;  %v855_v62 = vmul.f32 %v9749_v61, %v827_v53  ;;  %v831_v63 = vrot.slane %v8421_v42, %v9706_v59  ;;  %v859_v24 = vmul.f32 %v9764_v55, %v835_v54  ;;  %v162_v61 = vld [vmem:[#allocation12 + $0x18] sm:$0xff]  ;;  %v121_v42 = vld [vmem:[#allocation9 + $0x20] sm:$0xff] }
 0x415   :  { %v9844_v50 = vpack.c.bf16 %v160_v47, %v159_v3  ;;  %v125_v44 = vld [vmem:[#allocation9 + $0x40] sm:$0xff]  ;;  %v127_v3 = vld [vmem:[#allocation9 + $0x50] sm:$0xff] }
 0x416   :  { %932 = vperm.xlu1 %8355, %v858_v46   ;;  %867 = vperm.xlu0 %8354, %v845_v56   ;;  %v856_v45 = vmul.f32 %v9785_v4, %v831_v63  ;;  %v857_v60 = vmul.f32 %v9756_v32, %v831_v63  ;;  %v9849_v32 = vpack.c.bf16 %v162_v61, %v161_v40  ;;  %v126_v46 = vld [vmem:[#allocation9 + $0x48] sm:$0xff] }
 0x417   :  { %8226 = vmatpush3.bf16.msra.mxu1 %v9844_v50 }
 0x418   :  { %8227 = vmatprep.subr.bf16.mxu1 %v12214_v12 }
 0x41a   :  { %872 = vperm.xlu0 %8354, %v846_v48  }
 0x41b   :  { %8229 = vmatpush3.bf16.msra.mxu1 %v9849_v32 }
 0x41c   :  { %8238 = vmatprep.subr.bf16.mxu1 %v12214_v12 }
 0x41e   :  { %877 = vperm.xlu0 %8354, %v847_v2  }
 0x422   :  { %882 = vperm.xlu0 %8354, %v848_v26  }
 0x426   :  { %887 = vperm.xlu0 %8354, %v849_v8  }
 0x42a   :  { %892 = vperm.xlu0 %8354, %v850_v58  }
 0x42e   :  { %897 = vperm.xlu0 %8354, %v851_v11  }
 0x432   :  { %902 = vperm.xlu0 %8354, %v852_v30  }
 0x436   :  { %912 = vperm.xlu0 %8354, %v854_v6  }
 0x43a   :  { %917 = vperm.xlu0 %8354, %v855_v62  }
 0x43e   :  { %922 = vperm.xlu0 %8354, %v856_v45  }
 0x442   :  { %927 = vperm.xlu0 %8354, %v857_v60  }
 0x446   :  { %937 = vperm.xlu0 %8354, %v859_v24  }
 0x491   :  { %v863_v55 = vpop.permute.xlu0 %862  ;;  %v908_v54 = vpop.permute.xlu1 %907 }
 0x492   :  { %v940_v26 = vmul.f32 %v863_v55, %v117_v29  ;;  %v949_v11 = vmul.f32 %v908_v54, %v126_v46 }
 0x494   :  { %v956_v47 = vsel %vm163_vm0, %v940_v26, 0.0  ;;  %v993_v55 = vsel %vm163_vm0, %v949_v11, 0.0 }
 0x495   :  { %v868_v4 = vpop.permute.xlu0 %867  ;;  %v933_v26 = vpop.permute.xlu1 %932 }
 0x496   :  { %v941_v56 = vmul.f32 %v868_v4, %v118_v23 }
 0x498   :  { %v957_v53 = vsel %vm163_vm0, %v941_v56, 0.0 }
 0x499   :  { %v873_v14 = vpop.permute.xlu0 %872  ;;  %v958_v4 = vadd.f32 %v957_v53, %v956_v47 }
 0x49a   :  { %v942_v0 = vmul.f32 %v873_v14, %v119_v17 }
 0x49b   :  { %v959_v17 = vrot.slane %v958_v4, 4 }
 0x49c   :  { %v965_v6 = vsel %vm163_vm0, %v942_v0, 0.0 }
 0x49d   :  { %v878_v15 = vpop.permute.xlu0 %877  ;;  %v960_v46 = vadd.f32 %v959_v17, %v958_v4 }
 0x49e   :  { %v943_v27 = vmul.f32 %v878_v15, %v120_v19  ;;  %v128_v15 = vld [vmem:[#allocation9 + $0x58] sm:$0xff] }
 0x4a0   :  { %v966_v8 = vsel %vm163_vm0, %v943_v27, 0.0 }
 0x4a1   :  { %v883_v16 = vpop.permute.xlu0 %882  ;;  %v967_v63 = vadd.f32 %v966_v8, %v965_v6  ;;  %v131_v8 = vld [vmem:[#allocation9 + $0x70] sm:$0xff]  ;;  %v961_v6 = vrot.slane %v960_v46, 2 }
 0x4a2   :  { %v944_v2 = vmul.f32 %v883_v16, %v121_v42 }
 0x4a4   :  { %v974_v45 = vsel %vm163_vm0, %v944_v2, 0.0 }
 0x4a5   :  { %v888_v18 = vpop.permute.xlu0 %887 }
 0x4a6   :  { %v945_v43 = vmul.f32 %v888_v18, %v122_v22 }
 0x4a8   :  { %v975_v30 = vsel %vm163_vm0, %v945_v43, 0.0 }
 0x4a9   :  { %v893_v49 = vpop.permute.xlu0 %892  ;;  %v976_v40 = vadd.f32 %v975_v30, %v974_v45  ;;  %v954_v45 = vmul.f32 %v933_v26, %v131_v8 }
 0x4aa   :  { %v946_v57 = vmul.f32 %v893_v49, %v123_v31  ;;  %v968_v49 = vrot.slane %v967_v63, 4 }
 0x4ab   :  { %v977_v22 = vrot.slane %v976_v40, 4 }
 0x4ac   :  { %v983_v61 = vsel %vm163_vm0, %v946_v57, 0.0  ;;  %v969_v29 = vadd.f32 %v968_v49, %v967_v63  ;;  %v132_v63 = vld [vmem:[#allocation9 + $0x78] sm:$0xff]  ;;  %v1019_v49 = vsel %vm163_vm0, %v954_v45, 0.0 }
 0x4ad   :  { %v898_v51 = vpop.permute.xlu0 %897  ;;  %v978_v54 = vadd.f32 %v977_v22, %v976_v40 }
 0x4ae   :  { %v947_v48 = vmul.f32 %v898_v51, %v124_v41  ;;  %v970_v57 = vrot.slane %v969_v29, 2 }
 0x4af   :  { %v979_v30 = vrot.slane %v978_v54, 2 }
 0x4b0   :  { %v984_v62 = vsel %vm163_vm0, %v947_v48, 0.0  ;;  %v130_v48 = vld [vmem:[#allocation9 + $0x68] sm:$0xff]  ;;  %v971_v47 = vadd.f32 %v970_v57, %v969_v29 }
 0x4b1   :  { %v903_v28 = vpop.permute.xlu0 %902  ;;  %v985_v14 = vadd.f32 %v984_v62, %v983_v61  ;;  %v980_v4 = vadd.f32 %v979_v30, %v978_v54 }
 0x4b2   :  { %v948_v58 = vmul.f32 %v903_v28, %v125_v44  ;;  %v129_v44 = vld [vmem:[#allocation9 + $0x60] sm:$0xff] }
 0x4b3   :  { %v986_v51 = vrot.slane %v985_v14, 4 }
 0x4b4   :  { %v992_v60 = vsel %vm163_vm0, %v948_v58, 0.0 }
 0x4b5   :  { %v913_v24 = vpop.permute.xlu0 %912  ;;  %v994_v16 = vadd.f32 %v993_v55, %v992_v60  ;;  %v987_v56 = vadd.f32 %v986_v51, %v985_v14 }
 0x4b6   :  { %v950_v18 = vmul.f32 %v913_v24, %v127_v3 }
 0x4b7   :  { %v995_v41 = vrot.slane %v994_v16, 4  ;;  %v988_v62 = vrot.slane %v987_v56, 2 }
 0x4b8   :  { %v1001_v27 = vsel %vm163_vm0, %v950_v18, 0.0 }
 0x4b9   :  { %v918_v19 = vpop.permute.xlu0 %917  ;;  %v996_v2 = vadd.f32 %v995_v41, %v994_v16  ;;  %v989_v16 = vadd.f32 %v988_v62, %v987_v56 }
 0x4ba   :  { %v951_v23 = vmul.f32 %v918_v19, %v128_v15  ;;  %v962_v15 = vadd.f32 %v961_v6, %v960_v46 }
 0x4bb   :  { %v997_v60 = vrot.slane %v996_v2, 2  ;;  %v990_v29 = vrot.slane %v989_v16, 1 }
 0x4bc   :  { %v1002_v42 = vsel %vm163_vm0, %v951_v23, 0.0  ;;  %v972_v23 = vrot.slane %v971_v47, 1 }
 0x4bd   :  { %v1003_v43 = vadd.f32 %v1002_v42, %v1001_v27  ;;  %v923_v31 = vpop.permute.xlu0 %922  ;;  %v998_v19 = vadd.f32 %v997_v60, %v996_v2  ;;  %v981_v27 = vrot.slane %v980_v4, 1  ;;  %v963_v42 = vrot.slane %v962_v15, 1 }
 0x4be   :  { %v952_v28 = vmul.f32 %v923_v31, %v129_v44  ;;  %v973_v54 = vadd.f32 %v972_v23, %v971_v47  ;;  %v991_v26 = vadd.f32 %v990_v29, %v989_v16 }
 0x4bf   :  { %v1004_v0 = vrot.slane %v1003_v43, 4  ;;  %v999_v44 = vrot.slane %v998_v19, 1 }
 0x4c0   :  { %v1010_v24 = vsel %vm163_vm0, %v952_v28, 0.0  ;;  %v964_v28 = vadd.f32 %v963_v42, %v962_v15 }
 0x4c1   :  { %v1005_v58 = vadd.f32 %v1004_v0, %v1003_v43  ;;  %v928_v11 = vpop.permute.xlu0 %927  ;;  %v1000_v57 = vadd.f32 %v999_v44, %v998_v19 }
 0x4c2   :  { %v953_v53 = vmul.f32 %v928_v11, %v130_v48  ;;  %v982_v48 = vadd.f32 %v981_v27, %v980_v4 }
 0x4c3   :  { %v1006_v40 = vrot.slane %v1005_v58, 2 }
 0x4c4   :  { %v1011_v3 = vsel %vm163_vm0, %v953_v53, 0.0 }
 0x4c5   :  { %v1012_v61 = vadd.f32 %v1011_v3, %v1010_v24  ;;  %v938_v55 = vpop.permute.xlu0 %937  ;;  %v1007_v17 = vadd.f32 %v1006_v40, %v1005_v58  ;;  %v1037_v58 = vsel %vm547_vm2, %v973_v54, %v964_v28  ;;  %v1028_v40 = vld [vmem:[#allocation4] sm:$0xff] }
 0x4c6   :  { %v955_v14 = vmul.f32 %v938_v55, %v132_v63  ;;  %v1038_v53 = vsel %vm549_vm3, %v982_v48, %v1037_v58  ;;  %v8948_v58 = vld [vmem:[#allocation7] sm:$0xff] }
 0x4c7   :  { %v1013_v18 = vrot.slane %v1012_v61, 4  ;;  %v1008_v0 = vrot.slane %v1007_v17, 1  ;;  %v1039_v63 = vsel %vm551_vm4, %v991_v26, %v1038_v53 }
 0x4c8   :  { %v1020_v22 = vsel %vm163_vm0, %v955_v14, 0.0  ;;  %v1040_v45 = vsel %vm553_vm5, %v1000_v57, %v1039_v63 }
 0x4c9   :  { %v1014_v51 = vadd.f32 %v1013_v18, %v1012_v61  ;;  %v1021_v41 = vadd.f32 %v1020_v22, %v1019_v49  ;;  %v1009_v11 = vadd.f32 %v1008_v0, %v1007_v17 }
 0x4cb   :  { %v1015_v43 = vrot.slane %v1014_v51, 2  ;;  %v1022_v31 = vrot.slane %v1021_v41, 4  ;;  %v1041_v24 = vsel %vm555_vm6, %v1009_v11, %v1040_v45  ;;  %v8951_v45 = vld [vmem:[#allocation7 + $0x18] sm:$0xff] }
 0x4cd   :  { %v1016_v46 = vadd.f32 %v1015_v43, %v1014_v51  ;;  %v1023_v56 = vadd.f32 %v1022_v31, %v1021_v41 }
 0x4cf   :  { %v1017_v2 = vrot.slane %v1016_v46, 1  ;;  %v1024_v8 = vrot.slane %v1023_v56, 2 }
 0x4d1   :  { %v1025_v30 = vadd.f32 %v1024_v8, %v1023_v56  ;;  %v1018_v6 = vadd.f32 %v1017_v2, %v1016_v46 }
 0x4d3   :  { %v1026_v62 = vrot.slane %v1025_v30, 1  ;;  %v1042_v3 = vsel %vm557_vm7, %v1018_v6, %v1041_v24  ;;  %v8950_v6 = vld [vmem:[#allocation7 + $0x10] sm:$0xff] }
 0x4d5   :  { %v1027_v60 = vadd.f32 %v1026_v62, %v1025_v30  ;;  %v8949_v30 = vld [vmem:[#allocation7 + $0x8] sm:$0xff] }
 0x4d7   :  { %v1043_v47 = vsel %vm559_vm8, %v1027_v60, %v1042_v3 }
 0x4d8   :  { %8117 = vmatmul.mubr.msk.f32.vlgmr.msra.gmra.mrb[2].mxu1 %vm163_vm0, %v1043_v47  ;;  %v8952_v47 = vld [vmem:[#allocation7 + $0x20] sm:$0xff] }
 0x4d9   :  { %8240 = vmatpush3.bf16.msra.mxu1 %v9844_v50  ;;  %8127 = vmatprep.mubr.msk.f32.mxu1 %vm9338_vm10, %v12216_v1 }
 0x4da   :  { %8241 = vmatprep.subr.bf16.mxu1 %v12214_v12 }
 0x4dd   :  { %8243 = vmatpush3.bf16.msra.mxu1 %v9849_v32 }
 0x4de   :  { %8252 = vmatprep.subr.bf16.mxu1 %v12214_v12 }
 0x5ab   :  { %v1112_v61 = vpop.f32.mrb[2].mxu1 }
 0x5ac   :  { %v1116_v55 = vadd.f32 %v1112_v61, %v1028_v40  ;;  %v8118_v4 = vpop.f32.mrb[3].mxu1  ;;  %v8953_v61 = vld [vmem:[#allocation7 + $0x28] sm:$0xff] }
 0x5ae   :  { %v1117_v14 = vadd.f32 %v1116_v55, %v9529_v21 }
 0x5b0   :  { %8422 = vtanh.f32 %v1117_v14  ;;  %v8025_v16 = vmul.f32 -1.442695, %v1117_v14 }
 0x5b2   :  { %8424 = vpow2.f32 %v8025_v16 }
 0x5ba   :  { %v8423_v15 = vpop.eup %8422 }
 0x5bb   :  { %1127 = vrot.lane.b32.xlu1 %v8423_v15, %s9339_s18  ;;  %v8954_v15 = vld [vmem:[#allocation7 + $0x40] sm:$0xff] }
 0x5bc   :  { %v8425_v18 = vpop.eup %8424 }
 0x5bd   :  { %v1121_v49 = vadd.f32 1.0, %v8425_v18  ;;  %v8955_v18 = vld [vmem:[#allocation7 + $0x48] sm:$0xff] }
 0x5bf   :  { %8426 = vrcp.f32 %v1121_v49 }
 0x5c9   :  { %v8427_v19 = vpop.eup %8426 }
 0x5ca   :  { %v1125_v17 = vmul.f32 0.0, %v8427_v19 }
 0x62d   :  { %v1128_v22 = vpop.permute.xlu1 %1127 }
 0x62e   :  { %v1130_v23 = vmul.f32 %v8427_v19, %v1128_v22 }
 0x630   :  { %1132 = vrot.lane.b32.xlu0 %v1130_v23, %s9340_s19  ;;  %v8956_v23 = vld [vmem:[#allocation7 + $0x38] sm:$0xff] }
 0x6a2   :  { %v1133_v51 = vpop.permute.xlu0 %1132 }
 0x6a3   :  { %v9887_v41 = vadd.f32 %v1133_v51, %v1125_v17  ;;  %v8957_v51 = vld [vmem:[#allocation7 + $0x30] sm:$0xff] }
 0x6a5   :  { %8428 = vtanh.f32 %v9887_v41 }
 0x6af   :  { %v8429_v21 = vpop.eup %8428 }
 0x6b0   :  { %1138 = vrot.lane.b32.xlu1 %v8429_v21, %s9339_s18 }
 0x722   :  { %v1139_v27 = vpop.permute.xlu1 %1138 }
 0x723   :  { %v1141_v42 = vmul.f32 %v8427_v19, %v1139_v27 }
 0x725   :  { %1143 = vrot.lane.b32.xlu0 %v1141_v42, %s9340_s19 }
 0x797   :  { %v1144_v29 = vpop.permute.xlu0 %1143 }
 0x798   :  { %1146 = vst.msk [vmem:[#allocation2] sm:$0xff] %vm163_vm0, %v1144_v29  ;;  %8026 = vmatmul.mubr.msk.f32.vlgmr.msra.gmra.mrb[0].mxu0 %vm163_vm0, %v1144_v29 }
 0x799   :  { %8247 = vmatpush1.bf16.msra.mxu0 %v9507_v9  ;;  %2170 = vmatprep.mubr.f32.mxu0 %v12216_v1 }
 0x79a   :  { %8249 = vmatprep.subr.bf16.mxu0 %v9509_v10 }
 0x79d   :  { %8251 = vmatpush1.bf16.msra.mxu0 %v9514_v13 }
 0x79e   :  { %8259 = vmatprep.subr.bf16.mxu0 %v9505_v5 }
 0x86b   :  { %v9899_v43 = vpop.f32.mrb[0].mxu0 }
 0x86c   :  { %v1217_v31 = vpop.f32.mrb[1].mxu0 }
 0x86d   :  { %v1221_v44 = vcombine.high %v1217_v31, %v1217_v31  ;;  %v1228_v54 = vrot.slane %v1217_v31, %v9527_v20  ;;  %v9916_v31 = vld [vmem:[%s12208_s4] ss:$0 sm:$0xff] }
 0x86f   :  { %v1236_v0 = vcombine.high %v1228_v54, %v1228_v54  ;;  %v1244_v46 = vrot.slane %v1228_v54, %v9527_v20  ;;  %v1235_v56 = vrot.slane %v1221_v44, %v9527_v20 }
 0x871   :  { %v1258_v48 = vrot.slane %v1236_v0, %v9527_v20  ;;  %v1266_v28 = vcombine.high %v1244_v46, %v1244_v46  ;;  %v1273_v26 = vrot.slane %v1244_v46, %v9533_v25  ;;  %v1251_v8 = vrot.slane %v1235_v56, %v9527_v20  ;;  %v8959_v46 = vld [vmem:[#allocation7 + $0x58] sm:$0xff] }
 0x872   :  { %v1237_v63 = vcombine.high %v1235_v56, %v1235_v56 }
 0x873   :  { %v1277_v2 = vrot.slane %v1258_v48, %v9533_v25  ;;  %v1281_v57 = vrot.slane %v1266_v28, %v9533_v25  ;;  %v1310_v11 = vadd.f32 %v8948_v58, %v1273_v26  ;;  %v1311_v53 = vadd.f32 %v8949_v30, %v1273_v26  ;;  %v9921_v26 = vld [vmem:[#allocation7 + $0x50] sm:$0xff] }
 0x874   :  { %v1268_v24 = vcombine.high %v1258_v48, %v1258_v48  ;;  %v1289_v3 = vrot.slane %v1251_v8, %v9533_v25  ;;  %v1265_v4 = vrot.slane %v1237_v63, %v9527_v20  ;;  %v1267_v19 = vcombine.high %v1251_v8, %v1251_v8 }
 0x875   :  { %v1312_v62 = vadd.f32 %v8950_v6, %v1277_v2  ;;  %v1313_v60 = vadd.f32 %v8951_v45, %v1277_v2  ;;  %v1314_v40 = vadd.f32 %v8952_v47, %v1281_v57  ;;  %8430 = vtanh.f32 %v1310_v11  ;;  %v9929_v45 = vld [vmem:[#allocation7 + $0x60] sm:$0xff] }
 0x876   :  { %v1315_v55 = vadd.f32 %v8953_v61, %v1281_v57  ;;  %8432 = vtanh.f32 %v1311_v53  ;;  %v1285_v14 = vrot.slane %v1268_v24, %v9533_v25  ;;  %v1318_v16 = vadd.f32 %v8954_v15, %v1289_v3  ;;  %v9936_v15 = vld [vmem:[#allocation7 + $0x70] sm:$0xff] }
 0x877   :  { %8434 = vtanh.f32 %v1312_v62  ;;  %v1319_v49 = vadd.f32 %v8955_v18, %v1289_v3  ;;  %v1293_v22 = vrot.slane %v1265_v4, %v9533_v25  ;;  %v1269_v29 = vcombine.high %v1265_v4, %v1265_v4  ;;  %v8961_v62 = vld [vmem:[#allocation7 + $0x68] sm:$0xff]  ;;  %v8963_v4 = vld [vmem:[#allocation7 + $0x78] sm:$0xff] }
 0x878   :  { %8436 = vtanh.f32 %v1313_v60  ;;  %v1317_v17 = vadd.f32 %v8956_v23, %v1285_v14  ;;  %v1316_v21 = vadd.f32 %v8957_v51, %v1285_v14  ;;  %v1297_v0 = vrot.slane %v1267_v19, %v9533_v25 }
 0x879   :  { %8438 = vtanh.f32 %v1314_v40  ;;  %v1321_v56 = vadd.f32 %v8959_v46, %v1293_v22  ;;  %v1320_v2 = vadd.f32 %v9921_v26, %v1293_v22  ;;  %v1301_v6 = vrot.slane %v1269_v29, %v9533_v25 }
 0x87a   :  { %8440 = vtanh.f32 %v1315_v55  ;;  %v1323_v63 = vadd.f32 %v8961_v62, %v1297_v0  ;;  %v1322_v60 = vadd.f32 %v9929_v45, %v1297_v0 }
 0x87b   :  { %8442 = vtanh.f32 %v1318_v16  ;;  %v1325_v14 = vadd.f32 %v8963_v4, %v1301_v6  ;;  %v1324_v16 = vadd.f32 %v9936_v15, %v1301_v6 }
 0x87c   :  { %8444 = vtanh.f32 %v1319_v49 }
 0x87d   :  { %8446 = vtanh.f32 %v1317_v17 }
 0x87e   :  { %8448 = vtanh.f32 %v1316_v21 }
 0x87f   :  { %v8431_v27 = vpop.eup %8430  ;;  %8450 = vtanh.f32 %v1321_v56 }
 0x880   :  { %v8433_v42 = vpop.eup %8432  ;;  %v1342_v44 = vmul.f32 %v9916_v31, %v8431_v27  ;;  %8452 = vtanh.f32 %v1320_v2 }
 0x881   :  { %v8435_v54 = vpop.eup %8434  ;;  %v1343_v48 = vmul.f32 %v9916_v31, %v8433_v42  ;;  %8454 = vtanh.f32 %v1323_v63 }
 0x882   :  { %v8437_v28 = vpop.eup %8436  ;;  %v1358_v8 = vsel %vm163_vm0, %v1342_v44, 0.0  ;;  %v1344_v30 = vmul.f32 %v9916_v31, %v8435_v54  ;;  %8456 = vtanh.f32 %v1322_v60 }
 0x883   :  { %v8439_v57 = vpop.eup %8438  ;;  %v1361_v58 = vsel %vm163_vm0, %v1343_v48, 0.0  ;;  %1359 = vadd.xlane.f32.xlu1 %v1358_v8  ;;  %v1345_v11 = vmul.f32 %v9916_v31, %v8437_v28  ;;  %8458 = vtanh.f32 %v1325_v14 }
 0x884   :  { %v8441_v53 = vpop.eup %8440  ;;  %1362 = vadd.xlane.f32.xlu0 %v1361_v58  ;;  %v1364_v40 = vsel %vm163_vm0, %v1344_v30, 0.0  ;;  %v1346_v61 = vmul.f32 %v9916_v31, %v8439_v57  ;;  %8460 = vtanh.f32 %v1324_v16 }
 0x885   :  { %v1367_v24 = vsel %vm163_vm0, %v1345_v11, 0.0  ;;  %v1347_v3 = vmul.f32 %v9916_v31, %v8441_v53  ;;  %v8443_v47 = vpop.eup %8442 }
 0x886   :  { %v8445_v55 = vpop.eup %8444  ;;  %v1370_v22 = vsel %vm163_vm0, %v1346_v61, 0.0  ;;  %v1350_v23 = vmul.f32 %v9916_v31, %v8443_v47 }
 0x887   :  { %1368 = vadd.xlane.f32.xlu1 %v1367_v24  ;;  %v1373_v18 = vsel %vm163_vm0, %v1347_v3, 0.0  ;;  %v1351_v49 = vmul.f32 %v9916_v31, %v8445_v55  ;;  %v8447_v19 = vpop.eup %8446 }
 0x888   :  { %1365 = vadd.xlane.f32.xlu0 %v1364_v40  ;;  %v8449_v17 = vpop.eup %8448  ;;  %v1349_v21 = vmul.f32 %v9916_v31, %v8447_v19  ;;  %v1382_v42 = vsel %vm163_vm0, %v1350_v23, 0.0 }
 0x889   :  { %v1385_v51 = vsel %vm163_vm0, %v1351_v49, 0.0  ;;  %v8451_v27 = vpop.eup %8450  ;;  %v1348_v29 = vmul.f32 %v9916_v31, %v8449_v17 }
 0x88a   :  { %v8453_v44 = vpop.eup %8452  ;;  %v1379_v54 = vsel %vm163_vm0, %v1349_v21, 0.0  ;;  %v1353_v0 = vmul.f32 %v9916_v31, %v8451_v27 }
 0x88b   :  { %1374 = vadd.xlane.f32.xlu1 %v1373_v18  ;;  %v8455_v46 = vpop.eup %8454  ;;  %v1376_v56 = vsel %vm163_vm0, %v1348_v29, 0.0  ;;  %v1352_v48 = vmul.f32 %v9916_v31, %v8453_v44 }
 0x88c   :  { %1371 = vadd.xlane.f32.xlu0 %v1370_v22  ;;  %v8457_v28 = vpop.eup %8456  ;;  %v1391_v2 = vsel %vm163_vm0, %v1353_v0, 0.0  ;;  %v1355_v8 = vmul.f32 %v9916_v31, %v8455_v46 }
 0x88d   :  { %v8459_v57 = vpop.eup %8458  ;;  %v1388_v58 = vsel %vm163_vm0, %v1352_v48, 0.0  ;;  %v1354_v11 = vmul.f32 %v9916_v31, %v8457_v28 }
 0x88e   :  { %v8461_v30 = vpop.eup %8460  ;;  %v1397_v53 = vsel %vm163_vm0, %v1355_v8, 0.0  ;;  %v1357_v6 = vmul.f32 %v9916_v31, %v8459_v57 }
 0x88f   :  { %1386 = vadd.xlane.f32.xlu1 %v1385_v51  ;;  %v1394_v62 = vsel %vm163_vm0, %v1354_v11, 0.0  ;;  %v1356_v63 = vmul.f32 %v9916_v31, %v8461_v30 }
 0x890   :  { %1383 = vadd.xlane.f32.xlu0 %v1382_v42  ;;  %v1403_v60 = vsel %vm163_vm0, %v1357_v6, 0.0 }
 0x891   :  { %v1400_v24 = vsel %vm163_vm0, %v1356_v63, 0.0 }
 0x893   :  { %1380 = vadd.xlane.f32.xlu1 %v1379_v54 }
 0x894   :  { %1377 = vadd.xlane.f32.xlu0 %v1376_v56 }
 0x897   :  { %1392 = vadd.xlane.f32.xlu1 %v1391_v2 }
 0x898   :  { %1389 = vadd.xlane.f32.xlu0 %v1388_v58 }
 0x89b   :  { %1398 = vadd.xlane.f32.xlu1 %v1397_v53 }
 0x89c   :  { %1395 = vadd.xlane.f32.xlu0 %v1394_v62 }
 0x89f   :  { %1404 = vadd.xlane.f32.xlu1 %v1403_v60 }
 0x8a0   :  { %1401 = vadd.xlane.f32.xlu0 %v1400_v24 }
 0x910   :  { %v1360_v3 = vpop.xlane.xlu1 %1359 }
 0x911   :  { %v1363_v47 = vpop.xlane.xlu0 %1362  ;;  %v9971_v22 = vadd.f32 %v1360_v3, %v9592_v38 }
 0x912   :  { %v9968_v19 = vadd.f32 %v1363_v47, %v9592_v38 }
 0x913   :  { %v1441_v0 = vrot.slane %v9971_v22, %v9587_v36 }
 0x914   :  { %v1369_v40 = vpop.xlane.xlu1 %1368  ;;  %v1445_v54 = vrot.slane %v9968_v19, %v9590_v37 }
 0x915   :  { %v1366_v61 = vpop.xlane.xlu0 %1365  ;;  %v9962_v18 = vadd.f32 %v1369_v40, %v9592_v38 }
 0x916   :  { %v9965_v31 = vadd.f32 %v1366_v61, %v9592_v38  ;;  %v1446_v6 = vsel %vm482_vm1, %v1445_v54, %v1441_v0 }
 0x917   :  { %v1454_v42 = vrot.slane %v9962_v18, %v9590_v37 }
 0x918   :  { %v1375_v55 = vpop.xlane.xlu1 %1374  ;;  %v1450_v29 = vrot.slane %v9965_v31, %v9587_v36 }
 0x919   :  { %v1372_v4 = vpop.xlane.xlu0 %1371  ;;  %v9974_v23 = vadd.f32 %v1375_v55, %v9592_v38 }
 0x91a   :  { %v9977_v17 = vadd.f32 %v1372_v4, %v9592_v38  ;;  %v1455_v30 = vsel %vm482_vm1, %v1454_v42, %v1450_v29 }
 0x91b   :  { %v1463_v46 = vrot.slane %v9974_v23, %v9590_v37  ;;  %v1510_v61 = vsel %vm547_vm2, %v1455_v30, %v1446_v6 }
 0x91c   :  { %v1387_v14 = vpop.xlane.xlu1 %1386  ;;  %v1459_v56 = vrot.slane %v9977_v17, %v9587_v36 }
 0x91d   :  { %v1384_v16 = vpop.xlane.xlu0 %1383  ;;  %v10008_v58 = vadd.f32 %v1387_v14, %v9592_v38 }
 0x91e   :  { %v1414_v11 = vadd.f32 %v1384_v16, %v9592_v38  ;;  %v1464_v62 = vsel %vm482_vm1, %v1463_v46, %v1459_v56 }
 0x91f   :  { %v1481_v55 = vrot.slane %v10008_v58, %v9590_v37  ;;  %v1511_v16 = vsel %vm549_vm3, %v1464_v62, %v1510_v61 }
 0x920   :  { %v1381_v49 = vpop.xlane.xlu1 %1380  ;;  %v1477_v4 = vrot.slane %v1414_v11, %v9587_v36 }
 0x921   :  { %v1378_v51 = vpop.xlane.xlu0 %1377  ;;  %v9980_v21 = vadd.f32 %v1381_v49, %v9592_v38 }
 0x922   :  { %v9983_v27 = vadd.f32 %v1378_v51, %v9592_v38  ;;  %v1482_v46 = vsel %vm482_vm1, %v1481_v55, %v1477_v4 }
 0x923   :  { %v1472_v28 = vrot.slane %v9980_v21, %v9590_v37 }
 0x924   :  { %v1393_v44 = vpop.xlane.xlu1 %1392  ;;  %v1468_v2 = vrot.slane %v9983_v27, %v9587_v36 }
 0x925   :  { %v1390_v48 = vpop.xlane.xlu0 %1389  ;;  %v10002_v8 = vadd.f32 %v1393_v44, %v9592_v38 }
 0x926   :  { %v10005_v57 = vadd.f32 %v1390_v48, %v9592_v38  ;;  %v1473_v24 = vsel %vm482_vm1, %v1472_v28, %v1468_v2 }
 0x927   :  { %v1490_v3 = vrot.slane %v10002_v8, %v9590_v37  ;;  %v1512_v44 = vsel %vm551_vm4, %v1473_v24, %v1511_v16 }
 0x928   :  { %v1399_v53 = vpop.xlane.xlu1 %1398  ;;  %v1486_v47 = vrot.slane %v10005_v57, %v9587_v36  ;;  %v1513_v2 = vsel %vm553_vm5, %v1482_v46, %v1512_v44 }
 0x929   :  { %v10015_v63 = vadd.f32 %v1399_v53, %v9592_v38  ;;  %v1396_v60 = vpop.xlane.xlu0 %1395 }
 0x92a   :  { %v10023_v40 = vadd.f32 %v1396_v60, %v9592_v38  ;;  %v1491_v0 = vsel %vm482_vm1, %v1490_v3, %v1486_v47 }
 0x92b   :  { %v1499_v14 = vrot.slane %v10015_v63, %v9590_v37  ;;  %v1514_v30 = vsel %vm555_vm6, %v1491_v0, %v1513_v2 }
 0x92c   :  { %v1495_v49 = vrot.slane %v10023_v40, %v9587_v36  ;;  %v1405_v51 = vpop.xlane.xlu1 %1404 }
 0x92d   :  { %v10035_v42 = vadd.f32 %v1405_v51, %v9592_v38  ;;  %v1402_v29 = vpop.xlane.xlu0 %1401 }
 0x92e   :  { %v10039_v54 = vadd.f32 %v1402_v29, %v9592_v38  ;;  %v1500_v48 = vsel %vm482_vm1, %v1499_v14, %v1495_v49 }
 0x92f   :  { %v1508_v56 = vrot.slane %v10035_v42, %v9590_v37  ;;  %v1515_v6 = vsel %vm557_vm7, %v1500_v48, %v1514_v30 }
 0x930   :  { %v1504_v28 = vrot.slane %v10039_v54, %v9587_v36 }
 0x932   :  { %v1509_v53 = vsel %vm482_vm1, %v1508_v56, %v1504_v28 }
 0x933   :  { %v1516_v62 = vsel %vm559_vm8, %v1509_v53, %v1515_v6 }
 0x934   :  { %v1518_v60 = vsel %vm562_vm9, %v1516_v62, -inf }
 0x935   :  { %1519 = vmax.xlane.f32.xlu0 %v1518_v60 }
 0x9c2   :  { %v1520_v24 = vpop.xlane.xlu0 %1519 }
 0x9c3   :  { %v1525_v3 = vrot.slane %v1520_v24, %v9533_v25  ;;  %v1529_v47 = vrot.slane %v1520_v24, %v9700_v52  ;;  %v1533_v61 = vrot.slane %v1520_v24, %v9725_v39  ;;  %v1537_v55 = vrot.slane %v1520_v24, %v9691_v33 }
 0x9c4   :  { %v1541_v44 = vrot.slane %v1520_v24, %v9694_v34  ;;  %v1549_v2 = vrot.slane %v1520_v24, %v9706_v59 }
 0x9c5   :  { %v1563_v4 = vsub.f32 %v9968_v19, %v1525_v3  ;;  %v1562_v14 = vsub.f32 %v9971_v22, %v1525_v3  ;;  %v1566_v16 = vsub.f32 %v9977_v17, %v1533_v61  ;;  %v1564_v49 = vsub.f32 %v9965_v31, %v1529_v47 }
 0x9c6   :  { %v1568_v46 = vsub.f32 %v9983_v27, %v1537_v55  ;;  %v1565_v48 = vsub.f32 %v9962_v18, %v1529_v47  ;;  %v1545_v19 = vrot.slane %v1520_v24, %v9697_v35  ;;  %v1570_v28 = vsub.f32 %v1414_v11, %v1541_v44 }
 0x9c7   :  { %v1580_v51 = vmul.f32 1.442695, %v1563_v4  ;;  %v1578_v29 = vmul.f32 1.442695, %v1562_v14  ;;  %v1586_v0 = vmul.f32 1.442695, %v1566_v16  ;;  %v1567_v31 = vsub.f32 %v9974_v23, %v1533_v61 }
 0x9c8   :  { %v1582_v56 = vmul.f32 1.442695, %v1564_v49  ;;  %v1590_v22 = vmul.f32 1.442695, %v1568_v46  ;;  %v1584_v17 = vmul.f32 1.442695, %v1565_v48  ;;  %v1572_v53 = vsub.f32 %v10005_v57, %v1545_v19 }
 0x9c9   :  { %8462 = vpow2.f32 %v1580_v51  ;;  %v1594_v30 = vmul.f32 1.442695, %v1570_v28  ;;  %v1588_v27 = vmul.f32 1.442695, %v1567_v31  ;;  %v1569_v6 = vsub.f32 %v9980_v21, %v1537_v55 }
 0x9ca   :  { %8464 = vpow2.f32 %v1578_v29  ;;  %v1553_v11 = vrot.slane %v1520_v24, %v9717_v7  ;;  %v1598_v23 = vmul.f32 1.442695, %v1572_v53  ;;  %v1574_v60 = vsub.f32 %v10023_v40, %v1549_v2 }
 0x9cb   :  { %8466 = vpow2.f32 %v1586_v0  ;;  %v1592_v57 = vmul.f32 1.442695, %v1569_v6  ;;  %v1571_v3 = vsub.f32 %v10008_v58, %v1541_v44  ;;  %v1573_v40 = vsub.f32 %v10002_v8, %v1545_v19 }
 0x9cc   :  { %8468 = vpow2.f32 %v1582_v56  ;;  %v1602_v24 = vmul.f32 1.442695, %v1574_v60  ;;  %v1576_v61 = vsub.f32 %v10039_v54, %v1553_v11  ;;  %v1575_v49 = vsub.f32 %v10015_v63, %v1549_v2 }
 0x9cd   :  { %8470 = vpow2.f32 %v1590_v22  ;;  %v1596_v55 = vmul.f32 1.442695, %v1571_v3  ;;  %v1600_v16 = vmul.f32 1.442695, %v1573_v40  ;;  %v1577_v29 = vsub.f32 %v10035_v42, %v1553_v11 }
 0x9ce   :  { %8472 = vpow2.f32 %v1584_v17  ;;  %v1606_v58 = vmul.f32 1.442695, %v1576_v61  ;;  %v1604_v8 = vmul.f32 1.442695, %v1575_v49 }
 0x9cf   :  { %8474 = vpow2.f32 %v1594_v30  ;;  %v1608_v63 = vmul.f32 1.442695, %v1577_v29 }
 0x9d0   :  { %8476 = vpow2.f32 %v1588_v27 }
 0x9d1   :  { %8478 = vpow2.f32 %v1598_v23 }
 0x9d2   :  { %8480 = vpow2.f32 %v1592_v57 }
 0x9d3   :  { %v10070_v18 = vpop.eup %8462  ;;  %8482 = vpow2.f32 %v1602_v24 }
 0x9d4   :  { %v10072_v62 = vpop.eup %8464  ;;  %1630 = vperm.xlu0 %8354, %v10070_v18   ;;  %8484 = vpow2.f32 %v1596_v55 }
 0x9d5   :  { %1627 = vperm.xlu1 %8355, %v10072_v62   ;;  %v10079_v47 = vpop.eup %8466  ;;  %8486 = vpow2.f32 %v1606_v58 }
 0x9d6   :  { %v10081_v21 = vpop.eup %8468  ;;  %8488 = vpow2.f32 %v1600_v16 }
 0x9d7   :  { %v10087_v4 = vpop.eup %8470  ;;  %8490 = vpow2.f32 %v1604_v8 }
 0x9d8   :  { %1639 = vperm.xlu0 %8354, %v10079_v47   ;;  %v10089_v14 = vpop.eup %8472  ;;  %8492 = vpow2.f32 %v1608_v63 }
 0x9d9   :  { %1633 = vperm.xlu1 %8355, %v10081_v21   ;;  %v10094_v51 = vpop.eup %8474 }
 0x9da   :  { %v10096_v54 = vpop.eup %8476 }
 0x9db   :  { %v10101_v44 = vpop.eup %8478 }
 0x9dc   :  { %1645 = vperm.xlu0 %8354, %v10087_v4   ;;  %v10103_v0 = vpop.eup %8480 }
 0x9dd   :  { %1636 = vperm.xlu1 %8355, %v10089_v14   ;;  %v10107_v46 = vpop.eup %8482 }
 0x9de   :  { %v10109_v56 = vpop.eup %8484 }
 0x9df   :  { %v10113_v42 = vpop.eup %8486 }
 0x9e0   :  { %1651 = vperm.xlu0 %8354, %v10094_v51   ;;  %v10115_v48 = vpop.eup %8488 }
 0x9e1   :  { %1642 = vperm.xlu1 %8355, %v10096_v54   ;;  %v10119_v19 = vpop.eup %8490 }
 0x9e2   :  { %v10122_v22 = vpop.eup %8492 }
 0x9e4   :  { %1657 = vperm.xlu0 %8354, %v10101_v44  }
 0x9e5   :  { %1648 = vperm.xlu1 %8355, %v10103_v0  }
 0x9e8   :  { %1663 = vperm.xlu0 %8354, %v10107_v46  }
 0x9e9   :  { %1654 = vperm.xlu1 %8355, %v10109_v56  }
 0x9ec   :  { %1669 = vperm.xlu0 %8354, %v10113_v42  }
 0x9ed   :  { %1660 = vperm.xlu1 %8355, %v10115_v48  }
 0x9f1   :  { %1666 = vperm.xlu1 %8355, %v10119_v19  }
 0x9f5   :  { %1672 = vperm.xlu1 %8355, %v10122_v22  }
 0xa53   :  { %v1631_v28 = vpop.permute.xlu0 %1630 }
 0xa54   :  { %v1628_v17 = vpop.permute.xlu1 %1627  ;;  %v1681_v55 = vrot.slane %v1631_v28, %v9590_v37 }
 0xa55   :  { %v1677_v40 = vrot.slane %v1628_v17, %v9587_v36 }
 0xa57   :  { %v1640_v31 = vpop.permute.xlu0 %1639  ;;  %v1682_v17 = vsel %vm482_vm1, %v1681_v55, %v1677_v40 }
 0xa58   :  { %v1634_v2 = vpop.permute.xlu1 %1633  ;;  %v1695_v49 = vrot.slane %v1640_v31, %v9587_v36 }
 0xa59   :  { %v1686_v58 = vrot.slane %v1634_v2, %v9587_v36 }
 0xa5b   :  { %v1646_v30 = vpop.permute.xlu0 %1645 }
 0xa5c   :  { %v1637_v53 = vpop.permute.xlu1 %1636  ;;  %v1704_v29 = vrot.slane %v1646_v30, %v9587_v36 }
 0xa5d   :  { %v1690_v57 = vrot.slane %v1637_v53, %v9590_v37 }
 0xa5f   :  { %v1652_v27 = vpop.permute.xlu0 %1651  ;;  %v1691_v63 = vsel %vm482_vm1, %v1690_v57, %v1686_v58 }
 0xa60   :  { %v1643_v6 = vpop.permute.xlu1 %1642 }
 0xa61   :  { %v1699_v3 = vrot.slane %v1643_v6, %v9590_v37  ;;  %v1713_v6 = vrot.slane %v1652_v27, %v9587_v36 }
 0xa63   :  { %v1658_v23 = vpop.permute.xlu0 %1657  ;;  %v1700_v28 = vsel %vm482_vm1, %v1699_v3, %v1695_v49 }
 0xa64   :  { %v1649_v11 = vpop.permute.xlu1 %1648  ;;  %v1722_v2 = vrot.slane %v1658_v23, %v9587_v36 }
 0xa65   :  { %v1708_v16 = vrot.slane %v1649_v11, %v9590_v37 }
 0xa67   :  { %v1664_v24 = vpop.permute.xlu0 %1663  ;;  %v1709_v11 = vsel %vm482_vm1, %v1708_v16, %v1704_v29 }
 0xa68   :  { %v1655_v60 = vpop.permute.xlu1 %1654  ;;  %v1731_v30 = vrot.slane %v1664_v24, %v9587_v36 }
 0xa69   :  { %v1717_v8 = vrot.slane %v1655_v60, %v9590_v37  ;;  %v1746_v60 = vsel %vm547_vm2, %v1691_v63, %v1682_v17 }
 0xa6a   :  { %v1747_v27 = vsel %vm549_vm3, %v1700_v28, %v1746_v60 }
 0xa6b   :  { %v1718_v57 = vsel %vm482_vm1, %v1717_v8, %v1713_v6  ;;  %v1748_v58 = vsel %vm551_vm4, %v1709_v11, %v1747_v27 }
 0xa6c   :  { %v1661_v61 = vpop.permute.xlu1 %1660  ;;  %v1749_v16 = vsel %vm553_vm5, %v1718_v57, %v1748_v58 }
 0xa6d   :  { %v1726_v53 = vrot.slane %v1661_v61, %v9590_v37  ;;  %v1670_v61 = vpop.permute.xlu0 %1669 }
 0xa6e   :  { %v1740_v40 = vrot.slane %v1670_v61, %v9587_v36 }
 0xa6f   :  { %v1727_v3 = vsel %vm482_vm1, %v1726_v53, %v1722_v2 }
 0xa70   :  { %v1667_v12 = vpop.permute.xlu1 %1666  ;;  %v1750_v24 = vsel %vm555_vm6, %v1727_v3, %v1749_v16 }
 0xa71   :  { %v1735_v31 = vrot.slane %v1667_v12, %v9590_v37 }
 0xa73   :  { %v1736_v23 = vsel %vm482_vm1, %v1735_v31, %v1731_v30 }
 0xa74   :  { %v1673_v55 = vpop.permute.xlu1 %1672  ;;  %v1751_v8 = vsel %vm557_vm7, %v1736_v23, %v1750_v24 }
 0xa75   :  { %v1744_v12 = vrot.slane %v1673_v55, %v9590_v37 }
 0xa77   :  { %v1745_v49 = vsel %vm482_vm1, %v1744_v12, %v1740_v40 }
 0xa78   :  { %v1752_v29 = vsel %vm559_vm8, %v1745_v49, %v1751_v8  ;;  %v8965_v8 = vld [vmem:[#allocation9 + $0x18] sm:$0xff] }
 0xa79   :  { %v1754_v63 = vsel %vm562_vm9, %v1752_v29, 0.0 }
 0xa7a   :  { %1755 = vadd.xlane.f32.xlu0 %v1754_v63  ;;  %v8966_v63 = vld [vmem:[#allocation9 + $0x28] sm:$0xff] }
 0xb07   :  { %v1756_v53 = vpop.xlane.xlu0 %1755 }
 0xb08   :  { %8494 = vrcp.f32 %v1756_v53 }
 0xb12   :  { %v8495_v6 = vpop.eup %8494 }
 0xb13   :  { %v1778_v28 = vrot.slane %v8495_v6, %v9694_v34  ;;  %v1762_v17 = vrot.slane %v8495_v6, %v9533_v25  ;;  %v1790_v31 = vrot.slane %v8495_v6, %v9717_v7  ;;  %v1766_v57 = vrot.slane %v8495_v6, %v9700_v52 }
 0xb15   :  { %v1807_v2 = vmul.f32 %v10094_v51, %v1778_v28  ;;  %v1799_v11 = vmul.f32 %v10072_v62, %v1762_v17  ;;  %v1813_v60 = vmul.f32 %v10113_v42, %v1790_v31  ;;  %v1800_v30 = vmul.f32 %v10070_v18, %v1762_v17 }
 0xb16   :  { %v1801_v61 = vmul.f32 %v10081_v21, %v1766_v57  ;;  %v1802_v27 = vmul.f32 %v10089_v14, %v1766_v57  ;;  %v1770_v51 = vrot.slane %v8495_v6, %v9725_v39  ;;  %v1774_v42 = vrot.slane %v8495_v6, %v9691_v33 }
 0xb17   :  { %1857 = vperm.xlu0 %8354, %v1807_v2   ;;  %1817 = vperm.xlu1 %8355, %v1799_v11   ;;  %v1808_v21 = vmul.f32 %v10109_v56, %v1778_v28  ;;  %v1782_v14 = vrot.slane %v8495_v6, %v9697_v35  ;;  %v8969_v2 = vld [vmem:[#allocation9 + $0x38] sm:$0xff]  ;;  %v8970_v11 = vld [vmem:[#allocation9 + $0x20] sm:$0xff] }
 0xb18   :  { %v1803_v62 = vmul.f32 %v10079_v47, %v1770_v51  ;;  %v1804_v3 = vmul.f32 %v10096_v54, %v1770_v51  ;;  %v1805_v18 = vmul.f32 %v10087_v4, %v1774_v42  ;;  %v1806_v58 = vmul.f32 %v10103_v0, %v1774_v42  ;;  %v8974_v42 = vld [vmem:[#allocation9 + $0x40] sm:$0xff] }
 0xb19   :  { %v1809_v55 = vmul.f32 %v10101_v44, %v1782_v14  ;;  %v1810_v47 = vmul.f32 %v10115_v48, %v1782_v14  ;;  %v1786_v54 = vrot.slane %v8495_v6, %v9706_v59  ;;  %v1814_v0 = vmul.f32 %v10122_v22, %v1790_v31  ;;  %v8967_v6 = vld [vmem:[#allocation9 + $0x8] sm:$0xff] }
 0xb1b   :  { %1887 = vperm.xlu0 %8354, %v1813_v60   ;;  %1822 = vperm.xlu1 %8355, %v1800_v30   ;;  %v1811_v23 = vmul.f32 %v10107_v46, %v1786_v54  ;;  %v1812_v4 = vmul.f32 %v10119_v19, %v1786_v54  ;;  %v8968_v19 = vld [vmem:[#allocation9 + $0x10] sm:$0xff]  ;;  %v8971_v30 = vld [vmem:[#allocation9] sm:$0xff] }
 0xb1f   :  { %1827 = vperm.xlu1 %8355, %v1801_v61  }
 0xb23   :  { %1832 = vperm.xlu1 %8355, %v1802_v27   ;;  %v8972_v27 = vld [vmem:[#allocation9 + $0x30] sm:$0xff] }
 0xb27   :  { %1837 = vperm.xlu1 %8355, %v1803_v62   ;;  %v8973_v62 = vld [vmem:[#allocation9 + $0x48] sm:$0xff] }
 0xb2b   :  { %1842 = vperm.xlu1 %8355, %v1804_v3  }
 0xb2f   :  { %1847 = vperm.xlu1 %8355, %v1805_v18  }
 0xb33   :  { %1852 = vperm.xlu1 %8355, %v1806_v58  }
 0xb37   :  { %1862 = vperm.xlu1 %8355, %v1808_v21  }
 0xb3b   :  { %1867 = vperm.xlu1 %8355, %v1809_v55  }
 0xb3f   :  { %1872 = vperm.xlu1 %8355, %v1810_v47  }
 0xb43   :  { %1877 = vperm.xlu1 %8355, %v1811_v23  }
 0xb47   :  { %1882 = vperm.xlu1 %8355, %v1812_v4  }
 0xb4b   :  { %1892 = vperm.xlu1 %8355, %v1814_v0  }
 0xb96   :  { %v1818_v56 = vpop.permute.xlu1 %1817  ;;  %v1858_v46 = vpop.permute.xlu0 %1857 }
 0xb97   :  { %v1895_v57 = vmul.f32 %v8971_v30, %v1818_v56  ;;  %v1903_v18 = vmul.f32 %v8974_v42, %v1858_v46 }
 0xb99   :  { %v1911_v0 = vsel %vm163_vm0, %v1895_v57, 0.0 }
 0xb9a   :  { %v1823_v40 = vpop.permute.xlu1 %1822 }
 0xb9b   :  { %v1896_v28 = vmul.f32 %v8967_v6, %v1823_v40 }
 0xb9d   :  { %v1912_v21 = vsel %vm163_vm0, %v1896_v28, 0.0 }
 0xb9e   :  { %v1828_v12 = vpop.permute.xlu1 %1827 }
 0xb9f   :  { %v1897_v17 = vmul.f32 %v8968_v19, %v1828_v12  ;;  %v1947_v12 = vsel %vm163_vm0, %v1903_v18, 0.0 }
 0xba1   :  { %v1920_v14 = vsel %vm163_vm0, %v1897_v17, 0.0 }
 0xba2   :  { %v1833_v16 = vpop.permute.xlu1 %1832 }
 0xba3   :  { %v1898_v29 = vmul.f32 %v8965_v8, %v1833_v16  ;;  %v1913_v16 = vadd.f32 %v1912_v21, %v1911_v0 }
 0xba5   :  { %v1921_v61 = vsel %vm163_vm0, %v1898_v29, 0.0  ;;  %v1914_v6 = vrot.slane %v1913_v16, 4 }
 0xba6   :  { %v1838_v44 = vpop.permute.xlu1 %1837  ;;  %v1922_v47 = vadd.f32 %v1921_v61, %v1920_v14  ;;  %v8978_v14 = vld [vmem:[#allocation9 + $0x68] sm:$0xff] }
 0xba7   :  { %v1899_v31 = vmul.f32 %v8970_v11, %v1838_v44  ;;  %v1915_v30 = vadd.f32 %v1914_v6, %v1913_v16 }
 0xba8   :  { %v1923_v8 = vrot.slane %v1922_v47, 4 }
 0xba9   :  { %v1929_v54 = vsel %vm163_vm0, %v1899_v31, 0.0 }
 0xbaa   :  { %v1843_v24 = vpop.permute.xlu1 %1842 }
 0xbab   :  { %v1900_v53 = vmul.f32 %v8966_v63, %v1843_v24 }
 0xbad   :  { %v1930_v58 = vsel %vm163_vm0, %v1900_v53, 0.0  ;;  %v8976_v53 = vld [vmem:[#allocation9 + $0x58] sm:$0xff] }
 0xbae   :  { %v1848_v49 = vpop.permute.xlu1 %1847  ;;  %v1931_v56 = vadd.f32 %v1930_v58, %v1929_v54  ;;  %v1916_v54 = vrot.slane %v1915_v30, 2 }
 0xbaf   :  { %v1901_v51 = vmul.f32 %v8972_v27, %v1848_v49  ;;  %v8975_v49 = vld [vmem:[#allocation9 + $0x50] sm:$0xff] }
 0xbb0   :  { %v1932_v63 = vrot.slane %v1931_v56, 4 }
 0xbb1   :  { %v1938_v40 = vsel %vm163_vm0, %v1901_v51, 0.0  ;;  %v8977_v51 = vld [vmem:[#allocation9 + $0x60] sm:$0xff] }
 0xbb2   :  { %v1853_v48 = vpop.permute.xlu1 %1852 }
 0xbb3   :  { %v1902_v22 = vmul.f32 %v8969_v2, %v1853_v48 }
 0xbb5   :  { %v1939_v55 = vsel %vm163_vm0, %v1902_v22, 0.0  ;;  %v1924_v22 = vadd.f32 %v1923_v8, %v1922_v47 }
 0xbb6   :  { %v1863_v60 = vpop.permute.xlu1 %1862  ;;  %v1940_v44 = vadd.f32 %v1939_v55, %v1938_v40 }
 0xbb7   :  { %v1904_v3 = vmul.f32 %v8973_v62, %v1863_v60  ;;  %v1933_v60 = vadd.f32 %v1932_v63, %v1931_v56  ;;  %v1925_v42 = vrot.slane %v1924_v22, 2 }
 0xbb8   :  { %v1941_v28 = vrot.slane %v1940_v44, 4 }
 0xbb9   :  { %v1948_v23 = vsel %vm163_vm0, %v1904_v3, 0.0  ;;  %v1888_v3 = vpop.permute.xlu0 %1887  ;;  %v1934_v21 = vrot.slane %v1933_v60, 2 }
 0xbba   :  { %v1868_v4 = vpop.permute.xlu1 %1867  ;;  %v1949_v24 = vadd.f32 %v1948_v23, %v1947_v12  ;;  %v1942_v57 = vadd.f32 %v1941_v28, %v1940_v44  ;;  %v1926_v12 = vadd.f32 %v1925_v42, %v1924_v22 }
 0xbbb   :  { %v1905_v48 = vmul.f32 %v8975_v49, %v1868_v4  ;;  %v8979_v4 = vld [vmem:[#allocation9 + $0x70] sm:$0xff]  ;;  %v1935_v49 = vadd.f32 %v1934_v21, %v1933_v60 }
 0xbbc   :  { %v1950_v19 = vrot.slane %v1949_v24, 4  ;;  %v1943_v23 = vrot.slane %v1942_v57, 2  ;;  %v1909_v47 = vmul.f32 %v8979_v4, %v1888_v3 }
 0xbbd   :  { %v1956_v17 = vsel %vm163_vm0, %v1905_v48, 0.0  ;;  %v8980_v48 = vld [vmem:[#allocation9 + $0x78] sm:$0xff] }
 0xbbe   :  { %v1873_v29 = vpop.permute.xlu1 %1872  ;;  %v1951_v27 = vadd.f32 %v1950_v19, %v1949_v24  ;;  %v1944_v63 = vadd.f32 %v1943_v23, %v1942_v57  ;;  %v1927_v19 = vrot.slane %v1926_v12, 1 }
 0xbbf   :  { %v1906_v46 = vmul.f32 %v8976_v53, %v1873_v29  ;;  %v1917_v29 = vadd.f32 %v1916_v54, %v1915_v30 }
 0xbc0   :  { %v1952_v0 = vrot.slane %v1951_v27, 2  ;;  %v1928_v3 = vadd.f32 %v1927_v19, %v1926_v12 }
 0xbc1   :  { %v1957_v2 = vsel %vm163_vm0, %v1906_v46, 0.0  ;;  %v1974_v46 = vsel %vm163_vm0, %v1909_v47, 0.0  ;;  %v1918_v22 = vrot.slane %v1917_v29, 1 }
 0xbc2   :  { %v1958_v11 = vadd.f32 %v1957_v2, %v1956_v17  ;;  %v1878_v31 = vpop.permute.xlu1 %1877  ;;  %v1953_v6 = vadd.f32 %v1952_v0, %v1951_v27 }
 0xbc3   :  { %v1907_v62 = vmul.f32 %v8977_v51, %v1878_v31  ;;  %v1936_v31 = vrot.slane %v1935_v49, 1  ;;  %v1919_v21 = vadd.f32 %v1918_v22, %v1917_v29 }
 0xbc4   :  { %v1959_v61 = vrot.slane %v1958_v11, 4  ;;  %v1954_v60 = vrot.slane %v1953_v6, 1 }
 0xbc5   :  { %v1965_v56 = vsel %vm163_vm0, %v1907_v62, 0.0 }
 0xbc6   :  { %v1960_v18 = vadd.f32 %v1959_v61, %v1958_v11  ;;  %v1883_v58 = vpop.permute.xlu1 %1882  ;;  %v1945_v61 = vrot.slane %v1944_v63, 1  ;;  %v1955_v54 = vadd.f32 %v1954_v60, %v1953_v6 }
 0xbc7   :  { %v1908_v55 = vmul.f32 %v8978_v14, %v1883_v58  ;;  %v1937_v58 = vadd.f32 %v1936_v31, %v1935_v49 }
 0xbc8   :  { %v1961_v16 = vrot.slane %v1960_v18, 2  ;;  %v1946_v14 = vadd.f32 %v1945_v61, %v1944_v63 }
 0xbc9   :  { %v1966_v40 = vsel %vm163_vm0, %v1908_v55, 0.0 }
 0xbca   :  { %v1967_v44 = vadd.f32 %v1966_v40, %v1965_v56  ;;  %v1893_v24 = vpop.permute.xlu1 %1892  ;;  %v1962_v17 = vadd.f32 %v1961_v16, %v1960_v18  ;;  %v1993_v18 = vsel %vm547_vm2, %v1928_v3, %v1919_v21 }
 0xbcb   :  { %v1910_v8 = vmul.f32 %v8980_v48, %v1893_v24  ;;  %v1994_v47 = vsel %vm549_vm3, %v1937_v58, %v1993_v18  ;;  %v12225_v48 = vmov 0.0|0.0  }
 0xbcc   :  { %v1968_v53 = vrot.slane %v1967_v44, 4  ;;  %v1963_v42 = vrot.slane %v1962_v17, 1  ;;  %v1995_v40 = vsel %vm551_vm4, %v1946_v14, %v1994_v47  ;;  %v8981_v47 = vld [vmem:[#allocation7] sm:$0xff] }
 0xbcd   :  { %v1975_v28 = vsel %vm163_vm0, %v1910_v8, 0.0  ;;  %v1996_v12 = vsel %vm553_vm5, %v1955_v54, %v1995_v40  ;;  %v1984_v8 = vld [vmem:[#allocation4 + $0x8] sm:$0xff] }
 0xbce   :  { %v1969_v2 = vadd.f32 %v1968_v53, %v1967_v44  ;;  %v1976_v11 = vadd.f32 %v1975_v28, %v1974_v46  ;;  %v1964_v23 = vadd.f32 %v1963_v42, %v1962_v17 }
 0xbd0   :  { %v1970_v51 = vrot.slane %v1969_v2, 2  ;;  %v1977_v62 = vrot.slane %v1976_v11, 4  ;;  %v1997_v44 = vsel %vm555_vm6, %v1964_v23, %v1996_v12  ;;  %v8982_v12 = vld [vmem:[#allocation7 + $0x8] sm:$0xff] }
 0xbd2   :  { %v1971_v30 = vadd.f32 %v1970_v51, %v1969_v2  ;;  %v1978_v57 = vadd.f32 %v1977_v62, %v1976_v11 }
 0xbd4   :  { %v1972_v27 = vrot.slane %v1971_v30, 1  ;;  %v1979_v55 = vrot.slane %v1978_v57, 2 }
 0xbd6   :  { %v1980_v4 = vadd.f32 %v1979_v55, %v1978_v57  ;;  %v1973_v0 = vadd.f32 %v1972_v27, %v1971_v30 }
 0xbd8   :  { %v1981_v56 = vrot.slane %v1980_v4, 1  ;;  %v1998_v24 = vsel %vm557_vm7, %v1973_v0, %v1997_v44  ;;  %v8983_v44 = vld [vmem:[#allocation7 + $0x10] sm:$0xff] }
 0xbda   :  { %v1982_v16 = vadd.f32 %v1981_v56, %v1980_v4 }
 0xbdc   :  { %v1999_v49 = vsel %vm559_vm8, %v1982_v16, %v1998_v24 }
 0xbdd   :  { %8128 = vmatmul.mubr.msk.f32.vlgmr.msra.gmra.mrb[4].mxu1 %vm163_vm0, %v1999_v49  ;;  %v8984_v49 = vld [vmem:[#allocation7 + $0x18] sm:$0xff] }
 0xbde   :  { %8254 = vmatpush3.bf16.msra.mxu1 %v9844_v50  ;;  %8138 = vmatprep.mubr.msk.f32.mxu1 %vm9338_vm10, %v12216_v1 }
 0xbdf   :  { %8255 = vmatprep.subr.bf16.mxu1 %v12225_v48 }
 0xbe2   :  { %8257 = vmatpush3.bf16.msra.mxu1 %v9849_v32 }
 0xbe3   :  { %8266 = vmatprep.subr.bf16.mxu1 %v12225_v48 }
 0xcb0   :  { %v2068_v29 = vpop.f32.mrb[4].mxu1 }
 0xcb1   :  { %v2072_v63 = vadd.f32 %v2068_v29, %v1984_v8  ;;  %v8129_v53 = vpop.f32.mrb[5].mxu1 }
 0xcb3   :  { %v2073_v46 = vadd.f32 %v2072_v63, %v9899_v43  ;;  %v8985_v63 = vld [vmem:[#allocation7 + $0x20] sm:$0xff] }
 0xcb5   :  { %8496 = vtanh.f32 %v2073_v46  ;;  %v8028_v28 = vmul.f32 -1.442695, %v2073_v46 }
 0xcb7   :  { %8498 = vpow2.f32 %v8028_v28  ;;  %v8986_v28 = vld [vmem:[#allocation7 + $0x28] sm:$0xff] }
 0xcbf   :  { %v8497_v6 = vpop.eup %8496 }
 0xcc0   :  { %2083 = vrot.lane.b32.xlu0 %v8497_v6, %s9339_s18 }
 0xcc1   :  { %v8499_v19 = vpop.eup %8498 }
 0xcc2   :  { %v2077_v17 = vadd.f32 1.0, %v8499_v19 }
 0xcc4   :  { %8500 = vrcp.f32 %v2077_v17  ;;  %v8987_v17 = vld [vmem:[#allocation7 + $0x40] sm:$0xff] }
 0xcce   :  { %v8501_v2 = vpop.eup %8500 }
 0xccf   :  { %v2081_v22 = vmul.f32 %v8501_v2, %v9887_v41 }
 0xd32   :  { %v2084_v11 = vpop.permute.xlu0 %2083 }
 0xd33   :  { %v2086_v31 = vmul.f32 %v8501_v2, %v2084_v11 }
 0xd35   :  { %2088 = vrot.lane.b32.xlu1 %v2086_v31, %s9340_s19 }
 0xda7   :  { %v2089_v61 = vpop.permute.xlu1 %2088 }
 0xda8   :  { %v10215_v51 = vadd.f32 %v2089_v61, %v2081_v22  ;;  %v8988_v22 = vld [vmem:[#allocation7 + $0x30] sm:$0xff] }
 0xdaa   :  { %8502 = vtanh.f32 %v10215_v51 }
 0xdb4   :  { %v8503_v43 = vpop.eup %8502 }
 0xdb5   :  { %2094 = vrot.lane.b32.xlu0 %v8503_v43, %s9339_s18 }
 0xe27   :  { %v2095_v62 = vpop.permute.xlu0 %2094 }
 0xe28   :  { %v2097_v60 = vmul.f32 %v8501_v2, %v2095_v62  ;;  %v10241_v62 = vld [vmem:[#allocation7 + $0x48] sm:$0xff] }
 0xe2a   :  { %2099 = vrot.lane.b32.xlu1 %v2097_v60, %s9340_s19 }
 0xe9c   :  { %v2100_v3 = vpop.permute.xlu1 %2099 }
 0xe9d   :  { %2103 = vst.msk [vmem:[#allocation2 + $0x8] sm:$0xff] %vm163_vm0, %v2100_v3  ;;  %8029 = vmatmul.mubr.msk.f32.vlgmr.msra.gmra.mrb[2].mxu0 %vm163_vm0, %v2100_v3 }
 0xe9e   :  { %8261 = vmatpush1.bf16.msra.mxu0 %v9507_v9  ;;  %3127 = vmatprep.mubr.f32.mxu0 %v12216_v1 }
 0xe9f   :  { %8263 = vmatprep.subr.bf16.mxu0 %v9509_v10 }
 0xea2   :  { %8265 = vmatpush1.bf16.msra.mxu0 %v9514_v13 }
 0xea3   :  { %8273 = vmatprep.subr.bf16.mxu0 %v9505_v5 }
 0xf70   :  { %v10227_v41 = vpop.f32.mrb[2].mxu0 }
 0xf71   :  { %v2174_v42 = vpop.f32.mrb[3].mxu0 }
 0xf72   :  { %v2178_v30 = vcombine.high %v2174_v42, %v2174_v42  ;;  %v2185_v57 = vrot.slane %v2174_v42, %v9527_v20 }
 0xf74   :  { %v2193_v58 = vcombine.high %v2185_v57, %v2185_v57  ;;  %v2201_v21 = vrot.slane %v2185_v57, %v9527_v20  ;;  %v2192_v14 = vrot.slane %v2178_v30, %v9527_v20 }
 0xf76   :  { %v2215_v27 = vrot.slane %v2193_v58, %v9527_v20  ;;  %v2223_v55 = vcombine.high %v2201_v21, %v2201_v21  ;;  %v2230_v54 = vrot.slane %v2201_v21, %v9533_v25  ;;  %v2208_v23 = vrot.slane %v2192_v14, %v9527_v20  ;;  %v10249_v58 = vld [vmem:[%s12208_s4] ss:$0 sm:$0xff] }
 0xf77   :  { %v2194_v56 = vcombine.high %v2192_v14, %v2192_v14 }
 0xf78   :  { %v2234_v18 = vrot.slane %v2215_v27, %v9533_v25  ;;  %v2238_v4 = vrot.slane %v2223_v55, %v9533_v25  ;;  %v2267_v0 = vadd.f32 %v8981_v47, %v2230_v54  ;;  %v2225_v40 = vcombine.high %v2215_v27, %v2215_v27  ;;  %v10253_v55 = vld [vmem:[#allocation7 + $0x38] sm:$0xff] }
 0xf79   :  { %v2268_v16 = vadd.f32 %v8982_v12, %v2230_v54  ;;  %v2246_v29 = vrot.slane %v2208_v23, %v9533_v25  ;;  %v2222_v46 = vrot.slane %v2194_v56, %v9527_v20  ;;  %v2224_v11 = vcombine.high %v2208_v23, %v2208_v23  ;;  %v10262_v12 = vld [vmem:[#allocation7 + $0x58] sm:$0xff] }
 0xf7a   :  { %v2269_v24 = vadd.f32 %v8983_v44, %v2234_v18  ;;  %v2270_v8 = vadd.f32 %v8984_v49, %v2234_v18  ;;  %v2271_v53 = vadd.f32 %v8985_v63, %v2238_v4  ;;  %8504 = vtanh.f32 %v2267_v0 }
 0xf7b   :  { %v2242_v6 = vrot.slane %v2225_v40, %v9533_v25  ;;  %8506 = vtanh.f32 %v2268_v16  ;;  %v2272_v19 = vadd.f32 %v8986_v28, %v2238_v4  ;;  %v2275_v2 = vadd.f32 %v8987_v17, %v2246_v29 }
 0xf7c   :  { %8508 = vtanh.f32 %v2269_v24  ;;  %v2250_v31 = vrot.slane %v2222_v46, %v9533_v25  ;;  %v2226_v43 = vcombine.high %v2222_v46, %v2222_v46  ;;  %v2276_v60 = vadd.f32 %v10241_v62, %v2246_v29  ;;  %v10270_v46 = vld [vmem:[#allocation7 + $0x68] sm:$0xff] }
 0xf7d   :  { %8510 = vtanh.f32 %v2270_v8  ;;  %v2273_v61 = vadd.f32 %v8988_v22, %v2242_v6  ;;  %v2254_v3 = vrot.slane %v2224_v11, %v9533_v25  ;;  %v2274_v54 = vadd.f32 %v10253_v55, %v2242_v6 }
 0xf7e   :  { %8512 = vtanh.f32 %v2271_v53  ;;  %v2277_v42 = vadd.f32 %v9921_v26, %v2250_v31  ;;  %v2258_v27 = vrot.slane %v2226_v43, %v9533_v25  ;;  %v2278_v16 = vadd.f32 %v10262_v12, %v2250_v31  ;;  %v10277_v31 = vld [vmem:[#allocation7 + $0x78] sm:$0xff] }
 0xf7f   :  { %8514 = vtanh.f32 %v2272_v19  ;;  %v2279_v23 = vadd.f32 %v9929_v45, %v2254_v3  ;;  %v2280_v6 = vadd.f32 %v10270_v46, %v2254_v3 }
 0xf80   :  { %8516 = vtanh.f32 %v2275_v2  ;;  %v2281_v45 = vadd.f32 %v9936_v15, %v2258_v27  ;;  %v2282_v22 = vadd.f32 %v10277_v31, %v2258_v27 }
 0xf81   :  { %8518 = vtanh.f32 %v2273_v61 }
 0xf82   :  { %8520 = vtanh.f32 %v2276_v60 }
 0xf83   :  { %8522 = vtanh.f32 %v2277_v42 }
 0xf84   :  { %v8505_v30 = vpop.eup %8504  ;;  %8524 = vtanh.f32 %v2274_v54 }
 0xf85   :  { %v8507_v57 = vpop.eup %8506  ;;  %v2299_v21 = vmul.f32 %v10249_v58, %v8505_v30  ;;  %8526 = vtanh.f32 %v2279_v23 }
 0xf86   :  { %v8509_v14 = vpop.eup %8508  ;;  %v2300_v26 = vmul.f32 %v10249_v58, %v8507_v57  ;;  %8528 = vtanh.f32 %v2278_v16 }
 0xf87   :  { %v8511_v18 = vpop.eup %8510  ;;  %v2315_v4 = vsel %vm163_vm0, %v2299_v21, 0.0  ;;  %v2301_v47 = vmul.f32 %v10249_v58, %v8509_v14  ;;  %8530 = vtanh.f32 %v2281_v45 }
 0xf88   :  { %v8513_v0 = vpop.eup %8512  ;;  %v2318_v56 = vsel %vm163_vm0, %v2300_v26, 0.0  ;;  %2316 = vadd.xlane.f32.xlu0 %v2315_v4  ;;  %v2302_v49 = vmul.f32 %v10249_v58, %v8511_v18  ;;  %8532 = vtanh.f32 %v2280_v6 }
 0xf89   :  { %2319 = vadd.xlane.f32.xlu1 %v2318_v56  ;;  %v2303_v40 = vmul.f32 %v10249_v58, %v8513_v0  ;;  %v8515_v44 = vpop.eup %8514  ;;  %v2321_v24 = vsel %vm163_vm0, %v2301_v47, 0.0  ;;  %8534 = vtanh.f32 %v2282_v22 }
 0xf8a   :  { %v8517_v8 = vpop.eup %8516  ;;  %v2324_v15 = vsel %vm163_vm0, %v2302_v49, 0.0  ;;  %v2304_v28 = vmul.f32 %v10249_v58, %v8515_v44 }
 0xf8b   :  { %v2327_v29 = vsel %vm163_vm0, %v2303_v40, 0.0  ;;  %v8519_v63 = vpop.eup %8518  ;;  %v2307_v53 = vmul.f32 %v10249_v58, %v8517_v8 }
 0xf8c   :  { %2322 = vadd.xlane.f32.xlu0 %v2321_v24  ;;  %v8521_v19 = vpop.eup %8520  ;;  %v2305_v2 = vmul.f32 %v10249_v58, %v8519_v63  ;;  %v2330_v61 = vsel %vm163_vm0, %v2304_v28, 0.0 }
 0xf8d   :  { %2328 = vadd.xlane.f32.xlu1 %v2327_v29  ;;  %v2339_v17 = vsel %vm163_vm0, %v2307_v53, 0.0  ;;  %v8523_v11 = vpop.eup %8522  ;;  %v2308_v43 = vmul.f32 %v10249_v58, %v8521_v19 }
 0xf8e   :  { %v8525_v60 = vpop.eup %8524  ;;  %v2333_v3 = vsel %vm163_vm0, %v2305_v2, 0.0  ;;  %v2309_v42 = vmul.f32 %v10249_v58, %v8523_v11 }
 0xf8f   :  { %v8527_v30 = vpop.eup %8526  ;;  %v2342_v57 = vsel %vm163_vm0, %v2308_v43, 0.0  ;;  %v2306_v21 = vmul.f32 %v10249_v58, %v8525_v60 }
 0xf90   :  { %2325 = vadd.xlane.f32.xlu0 %v2324_v15  ;;  %v8529_v14 = vpop.eup %8528  ;;  %v2345_v27 = vsel %vm163_vm0, %v2309_v42, 0.0  ;;  %v2311_v54 = vmul.f32 %v10249_v58, %v8527_v30 }
 0xf91   :  { %2340 = vadd.xlane.f32.xlu1 %v2339_v17  ;;  %v8531_v26 = vpop.eup %8530  ;;  %v2336_v18 = vsel %vm163_vm0, %v2306_v21, 0.0  ;;  %v2310_v23 = vmul.f32 %v10249_v58, %v8529_v14 }
 0xf92   :  { %v8533_v4 = vpop.eup %8532  ;;  %v2351_v47 = vsel %vm163_vm0, %v2311_v54, 0.0  ;;  %v2313_v0 = vmul.f32 %v10249_v58, %v8531_v26 }
 0xf93   :  { %v2348_v56 = vsel %vm163_vm0, %v2310_v23, 0.0  ;;  %v2312_v40 = vmul.f32 %v10249_v58, %v8533_v4  ;;  %v8535_v16 = vpop.eup %8534 }
 0xf94   :  { %2331 = vadd.xlane.f32.xlu0 %v2330_v61  ;;  %v2357_v44 = vsel %vm163_vm0, %v2313_v0, 0.0  ;;  %v2314_v24 = vmul.f32 %v10249_v58, %v8535_v16 }
 0xf95   :  { %2334 = vadd.xlane.f32.xlu1 %v2333_v3  ;;  %v2354_v45 = vsel %vm163_vm0, %v2312_v40, 0.0 }
 0xf96   :  { %v2360_v49 = vsel %vm163_vm0, %v2314_v24, 0.0 }
 0xf98   :  { %2343 = vadd.xlane.f32.xlu0 %v2342_v57 }
 0xf99   :  { %2346 = vadd.xlane.f32.xlu1 %v2345_v27 }
 0xf9c   :  { %2337 = vadd.xlane.f32.xlu0 %v2336_v18 }
 0xf9d   :  { %2352 = vadd.xlane.f32.xlu1 %v2351_v47 }
 0xfa0   :  { %2349 = vadd.xlane.f32.xlu0 %v2348_v56 }
 0xfa1   :  { %2358 = vadd.xlane.f32.xlu1 %v2357_v44 }
 0xfa4   :  { %2355 = vadd.xlane.f32.xlu0 %v2354_v45 }
 0xfa8   :  { %2361 = vadd.xlane.f32.xlu0 %v2360_v49 }
0x1015   :  { %v2317_v8 = vpop.xlane.xlu0 %2316 }
0x1016   :  { %v2320_v29 = vpop.xlane.xlu1 %2319  ;;  %v2363_v22 = vadd.f32 %v2317_v8, %v9592_v38 }
0x1017   :  { %v2364_v43 = vadd.f32 %v2320_v29, %v9592_v38 }
0x1018   :  { %v2398_v14 = vrot.slane %v2363_v22, %v9587_v36 }
0x1019   :  { %v2323_v63 = vpop.xlane.xlu0 %2322  ;;  %v2402_v26 = vrot.slane %v2364_v43, %v9590_v37 }
0x101a   :  { %v2329_v53 = vpop.xlane.xlu1 %2328  ;;  %v10307_v60 = vadd.f32 %v2323_v63, %v9592_v38 }
0x101b   :  { %v10313_v42 = vadd.f32 %v2329_v53, %v9592_v38  ;;  %v2403_v29 = vsel %vm482_vm1, %v2402_v26, %v2398_v14 }
0x101c   :  { %v2407_v18 = vrot.slane %v10307_v60, %v9587_v36 }
0x101d   :  { %v2326_v6 = vpop.xlane.xlu0 %2325  ;;  %v2416_v47 = vrot.slane %v10313_v42, %v9587_v36 }
0x101e   :  { %v2341_v15 = vpop.xlane.xlu1 %2340  ;;  %v10299_v11 = vadd.f32 %v2326_v6, %v9592_v38 }
0x101f   :  { %v10343_v44 = vadd.f32 %v2341_v15, %v9592_v38 }
0x1020   :  { %v2411_v57 = vrot.slane %v10299_v11, %v9590_v37 }
0x1021   :  { %v2332_v28 = vpop.xlane.xlu0 %2331 }
0x1022   :  { %v2335_v19 = vpop.xlane.xlu1 %2334  ;;  %v10303_v58 = vadd.f32 %v2332_v28, %v9592_v38  ;;  %v2412_v56 = vsel %vm482_vm1, %v2411_v57, %v2407_v18 }
0x1023   :  { %v10318_v21 = vadd.f32 %v2335_v19, %v9592_v38  ;;  %v2467_v15 = vsel %vm547_vm2, %v2412_v56, %v2403_v29 }
0x1024   :  { %v2420_v27 = vrot.slane %v10303_v58, %v9590_v37 }
0x1025   :  { %v2344_v17 = vpop.xlane.xlu0 %2343  ;;  %v2425_v40 = vrot.slane %v10318_v21, %v9587_v36 }
0x1026   :  { %v2347_v2 = vpop.xlane.xlu1 %2346  ;;  %v10334_v0 = vadd.f32 %v2344_v17, %v9592_v38  ;;  %v2421_v45 = vsel %vm482_vm1, %v2420_v27, %v2416_v47 }
0x1027   :  { %v10340_v16 = vadd.f32 %v2347_v2, %v9592_v38  ;;  %v2468_v19 = vsel %vm549_vm3, %v2421_v45, %v2467_v15 }
0x1028   :  { %v2438_v28 = vrot.slane %v10334_v0, %v9590_v37 }
0x1029   :  { %v2338_v61 = vpop.xlane.xlu0 %2337  ;;  %v2443_v17 = vrot.slane %v10340_v16, %v9587_v36 }
0x102a   :  { %v10310_v3 = vadd.f32 %v2338_v61, %v9592_v38  ;;  %v2353_v30 = vpop.xlane.xlu1 %2352 }
0x102b   :  { %v10347_v24 = vadd.f32 %v2353_v30, %v9592_v38  ;;  %v2434_v30 = vrot.slane %v10343_v44, %v9587_v36 }
0x102c   :  { %v2429_v23 = vrot.slane %v10310_v3, %v9590_v37 }
0x102d   :  { %v2350_v54 = vpop.xlane.xlu0 %2349  ;;  %v2452_v14 = vrot.slane %v10347_v24, %v9587_v36  ;;  %v2439_v18 = vsel %vm482_vm1, %v2438_v28, %v2434_v30 }
0x102e   :  { %v10329_v4 = vadd.f32 %v2350_v54, %v9592_v38  ;;  %v2359_v49 = vpop.xlane.xlu1 %2358  ;;  %v2430_v63 = vsel %vm482_vm1, %v2429_v23, %v2425_v40 }
0x102f   :  { %v10363_v2 = vadd.f32 %v2359_v49, %v9592_v38  ;;  %v2469_v57 = vsel %vm551_vm4, %v2430_v63, %v2468_v19 }
0x1030   :  { %v2447_v53 = vrot.slane %v10329_v4, %v9590_v37  ;;  %v2470_v40 = vsel %vm553_vm5, %v2439_v18, %v2469_v57 }
0x1031   :  { %v2356_v8 = vpop.xlane.xlu0 %2355  ;;  %v2461_v47 = vrot.slane %v10363_v2, %v9587_v36 }
0x1032   :  { %v10354_v6 = vadd.f32 %v2356_v8, %v9592_v38  ;;  %v2448_v54 = vsel %vm482_vm1, %v2447_v53, %v2443_v17 }
0x1033   :  { %v2471_v45 = vsel %vm555_vm6, %v2448_v54, %v2470_v40 }
0x1034   :  { %v2456_v61 = vrot.slane %v10354_v6, %v9590_v37 }
0x1035   :  { %v2362_v27 = vpop.xlane.xlu0 %2361 }
0x1036   :  { %v10374_v26 = vadd.f32 %v2362_v27, %v9592_v38  ;;  %v2457_v23 = vsel %vm482_vm1, %v2456_v61, %v2452_v14 }
0x1037   :  { %v2472_v8 = vsel %vm557_vm7, %v2457_v23, %v2471_v45 }
0x1038   :  { %v2465_v56 = vrot.slane %v10374_v26, %v9590_v37 }
0x103a   :  { %v2466_v49 = vsel %vm482_vm1, %v2465_v56, %v2461_v47 }
0x103b   :  { %v2473_v29 = vsel %vm559_vm8, %v2466_v49, %v2472_v8 }
0x103c   :  { %v2475_v63 = vsel %vm562_vm9, %v2473_v29, -inf }
0x103d   :  { %2476 = vmax.xlane.f32.xlu1 %v2475_v63 }
0x10ca   :  { %v2477_v53 = vpop.xlane.xlu1 %2476 }
0x10cb   :  { %v2482_v15 = vrot.slane %v2477_v53, %v9533_v25  ;;  %v2486_v28 = vrot.slane %v2477_v53, %v9700_v52  ;;  %v2490_v61 = vrot.slane %v2477_v53, %v9725_v39  ;;  %v2494_v54 = vrot.slane %v2477_v53, %v9691_v33 }
0x10cc   :  { %v2502_v45 = vrot.slane %v2477_v53, %v9697_v35 }
0x10cd   :  { %v2519_v19 = vsub.f32 %v2363_v22, %v2482_v15  ;;  %v2520_v17 = vsub.f32 %v2364_v43, %v2482_v15  ;;  %v2522_v30 = vsub.f32 %v10299_v11, %v2486_v28  ;;  %v2521_v57 = vsub.f32 %v10307_v60, %v2486_v28 }
0x10ce   :  { %v2524_v18 = vsub.f32 %v10303_v58, %v2490_v61  ;;  %v2523_v47 = vsub.f32 %v10313_v42, %v2490_v61  ;;  %v2498_v22 = vrot.slane %v2477_v53, %v9694_v34  ;;  %v2526_v43 = vsub.f32 %v10310_v3, %v2494_v54 }
0x10cf   :  { %v2535_v14 = vmul.f32 1.442695, %v2519_v19  ;;  %v2537_v27 = vmul.f32 1.442695, %v2520_v17  ;;  %v2541_v23 = vmul.f32 1.442695, %v2522_v30  ;;  %v2525_v60 = vsub.f32 %v10318_v21, %v2494_v54 }
0x10d0   :  { %v2539_v56 = vmul.f32 1.442695, %v2521_v57  ;;  %v2545_v11 = vmul.f32 1.442695, %v2524_v18  ;;  %v2543_v40 = vmul.f32 1.442695, %v2523_v47  ;;  %v2528_v58 = vsub.f32 %v10334_v0, %v2498_v22 }
0x10d1   :  { %8536 = vpow2.f32 %v2535_v14  ;;  %v2549_v49 = vmul.f32 1.442695, %v2526_v43  ;;  %v2527_v42 = vsub.f32 %v10343_v44, %v2498_v22  ;;  %v2547_v8 = vmul.f32 1.442695, %v2525_v60 }
0x10d2   :  { %8538 = vpow2.f32 %v2537_v27  ;;  %v2506_v3 = vrot.slane %v2477_v53, %v9706_v59  ;;  %v2530_v21 = vsub.f32 %v10329_v4, %v2502_v45  ;;  %v2553_v15 = vmul.f32 1.442695, %v2528_v58 }
0x10d3   :  { %8540 = vpow2.f32 %v2541_v23  ;;  %v2529_v0 = vsub.f32 %v10340_v16, %v2502_v45  ;;  %v2551_v44 = vmul.f32 1.442695, %v2527_v42  ;;  %v2510_v17 = vrot.slane %v2477_v53, %v9717_v7 }
0x10d4   :  { %8542 = vpow2.f32 %v2539_v56  ;;  %v2532_v61 = vsub.f32 %v10354_v6, %v2506_v3  ;;  %v2557_v4 = vmul.f32 1.442695, %v2530_v21  ;;  %v2531_v30 = vsub.f32 %v10347_v24, %v2506_v3 }
0x10d5   :  { %8544 = vpow2.f32 %v2545_v11  ;;  %v2555_v16 = vmul.f32 1.442695, %v2529_v0  ;;  %v2534_v27 = vsub.f32 %v10374_v26, %v2510_v17  ;;  %v2533_v6 = vsub.f32 %v10363_v2, %v2510_v17 }
0x10d6   :  { %8546 = vpow2.f32 %v2543_v40  ;;  %v2561_v53 = vmul.f32 1.442695, %v2532_v61  ;;  %v2559_v54 = vmul.f32 1.442695, %v2531_v30 }
0x10d7   :  { %8548 = vpow2.f32 %v2549_v49  ;;  %v2565_v23 = vmul.f32 1.442695, %v2534_v27  ;;  %v2563_v26 = vmul.f32 1.442695, %v2533_v6 }
0x10d8   :  { %8550 = vpow2.f32 %v2547_v8 }
0x10d9   :  { %8552 = vpow2.f32 %v2553_v15 }
0x10da   :  { %8554 = vpow2.f32 %v2551_v44 }
0x10db   :  { %v10402_v29 = vpop.eup %8536  ;;  %8556 = vpow2.f32 %v2557_v4 }
0x10dc   :  { %v10404_v63 = vpop.eup %8538  ;;  %2584 = vperm.xlu0 %8354, %v10402_v29   ;;  %8558 = vpow2.f32 %v2555_v16 }
0x10dd   :  { %2587 = vperm.xlu1 %8355, %v10404_v63   ;;  %v10411_v28 = vpop.eup %8540  ;;  %8560 = vpow2.f32 %v2561_v53 }
0x10de   :  { %v10413_v19 = vpop.eup %8542  ;;  %8562 = vpow2.f32 %v2559_v54 }
0x10df   :  { %v10420_v57 = vpop.eup %8544  ;;  %8564 = vpow2.f32 %v2565_v23 }
0x10e0   :  { %2593 = vperm.xlu0 %8354, %v10411_v28   ;;  %v10422_v14 = vpop.eup %8546  ;;  %8566 = vpow2.f32 %v2563_v26 }
0x10e1   :  { %2590 = vperm.xlu1 %8355, %v10413_v19   ;;  %v10428_v18 = vpop.eup %8548 }
0x10e2   :  { %v10430_v24 = vpop.eup %8550 }
0x10e3   :  { %v10434_v47 = vpop.eup %8552 }
0x10e4   :  { %2599 = vperm.xlu0 %8354, %v10420_v57   ;;  %v10436_v56 = vpop.eup %8554 }
0x10e5   :  { %2596 = vperm.xlu1 %8355, %v10422_v14   ;;  %v10440_v2 = vpop.eup %8556 }
0x10e6   :  { %v10442_v22 = vpop.eup %8558 }
0x10e7   :  { %v10446_v43 = vpop.eup %8560 }
0x10e8   :  { %2605 = vperm.xlu0 %8354, %v10428_v18   ;;  %v10448_v11 = vpop.eup %8562 }
0x10e9   :  { %2602 = vperm.xlu1 %8355, %v10430_v24   ;;  %v10452_v60 = vpop.eup %8564 }
0x10ea   :  { %v8567_v40 = vpop.eup %8566 }
0x10ec   :  { %2611 = vperm.xlu0 %8354, %v10434_v47  }
0x10ed   :  { %2608 = vperm.xlu1 %8355, %v10436_v56  }
0x10f0   :  { %2617 = vperm.xlu0 %8354, %v10440_v2  }
0x10f1   :  { %2614 = vperm.xlu1 %8355, %v10442_v22  }
0x10f4   :  { %2623 = vperm.xlu0 %8354, %v10446_v43  }
0x10f5   :  { %2620 = vperm.xlu1 %8355, %v10448_v11  }
0x10f8   :  { %2629 = vperm.xlu0 %8354, %v10452_v60  }
0x10f9   :  { %2626 = vperm.xlu1 %8355, %v8567_v40  }
0x115b   :  { %v2585_v45 = vpop.permute.xlu0 %2584 }
0x115c   :  { %v2588_v58 = vpop.permute.xlu1 %2587  ;;  %v2634_v6 = vrot.slane %v2585_v45, %v9587_v36 }
0x115d   :  { %v2638_v53 = vrot.slane %v2588_v58, %v9590_v37 }
0x115f   :  { %v2594_v49 = vpop.permute.xlu0 %2593 }
0x1160   :  { %v2591_v42 = vpop.permute.xlu1 %2590  ;;  %v2647_v61 = vrot.slane %v2594_v49, %v9590_v37 }
0x1161   :  { %v2643_v17 = vrot.slane %v2591_v42, %v9587_v36 }
0x1163   :  { %v2600_v8 = vpop.permute.xlu0 %2599  ;;  %v2648_v49 = vsel %vm482_vm1, %v2647_v61, %v2643_v17 }
0x1164   :  { %v2597_v3 = vpop.permute.xlu1 %2596  ;;  %v2656_v16 = vrot.slane %v2600_v8, %v9590_v37 }
0x1165   :  { %v2652_v30 = vrot.slane %v2597_v3, %v9587_v36 }
0x1167   :  { %v2606_v21 = vpop.permute.xlu0 %2605  ;;  %v2657_v38 = vsel %vm482_vm1, %v2656_v16, %v2652_v30 }
0x1168   :  { %v2603_v15 = vpop.permute.xlu1 %2602  ;;  %v2665_v23 = vrot.slane %v2606_v21, %v9590_v37 }
0x1169   :  { %v2661_v54 = vrot.slane %v2603_v15, %v9587_v36  ;;  %v2639_v15 = vsel %vm482_vm1, %v2638_v53, %v2634_v6 }
0x116b   :  { %v2612_v0 = vpop.permute.xlu0 %2611  ;;  %v2666_v21 = vsel %vm482_vm1, %v2665_v23, %v2661_v54 }
0x116c   :  { %v2609_v44 = vpop.permute.xlu1 %2608  ;;  %v2674_v42 = vrot.slane %v2612_v0, %v9590_v37  ;;  %v2703_v0 = vsel %vm547_vm2, %v2648_v49, %v2639_v15 }
0x116d   :  { %v2670_v26 = vrot.slane %v2609_v44, %v9587_v36  ;;  %v2704_v61 = vsel %vm549_vm3, %v2657_v38, %v2703_v0 }
0x116e   :  { %v2705_v30 = vsel %vm551_vm4, %v2666_v21, %v2704_v61 }
0x116f   :  { %v2618_v4 = vpop.permute.xlu0 %2617  ;;  %v2675_v17 = vsel %vm482_vm1, %v2674_v42, %v2670_v26 }
0x1170   :  { %v2615_v27 = vpop.permute.xlu1 %2614  ;;  %v2683_v3 = vrot.slane %v2618_v4, %v9590_v37  ;;  %v2706_v6 = vsel %vm553_vm5, %v2675_v17, %v2705_v30 }
0x1171   :  { %v2679_v1 = vrot.slane %v2615_v27, %v9587_v36 }
0x1173   :  { %v2624_v8 = vpop.permute.xlu0 %2623  ;;  %v2684_v4 = vsel %vm482_vm1, %v2683_v3, %v2679_v1 }
0x1174   :  { %v2621_v58 = vpop.permute.xlu1 %2620  ;;  %v2692_v45 = vrot.slane %v2624_v8, %v9590_v37  ;;  %v2707_v23 = vsel %vm555_vm6, %v2684_v4, %v2706_v6 }
0x1175   :  { %v2688_v44 = vrot.slane %v2621_v58, %v9587_v36 }
0x1177   :  { %v2630_v27 = vpop.permute.xlu0 %2629  ;;  %v2693_v16 = vsel %vm482_vm1, %v2692_v45, %v2688_v44 }
0x1178   :  { %v2627_v8 = vpop.permute.xlu1 %2626  ;;  %v2701_v53 = vrot.slane %v2630_v27, %v9590_v37  ;;  %v2708_v38 = vsel %vm557_vm7, %v2693_v16, %v2707_v23 }
0x1179   :  { %v2697_v54 = vrot.slane %v2627_v8, %v9587_v36 }
0x117b   :  { %v2702_v26 = vsel %vm482_vm1, %v2701_v53, %v2697_v54 }
0x117c   :  { %v2709_v1 = vsel %vm559_vm8, %v2702_v26, %v2708_v38 }
0x117d   :  { %v2711_v42 = vsel %vm562_vm9, %v2709_v1, 0.0  ;;  %v8995_v1 = vld [vmem:[#allocation9 + $0x18] sm:$0xff] }
0x117e   :  { %2712 = vadd.xlane.f32.xlu1 %v2711_v42 }
0x120b   :  { %v2713_v49 = vpop.xlane.xlu1 %2712 }
0x120c   :  { %8568 = vrcp.f32 %v2713_v49  ;;  %v8996_v49 = vld [vmem:[#allocation9 + $0x28] sm:$0xff] }
0x1216   :  { %v8569_v3 = vpop.eup %8568 }
0x1217   :  { %v2735_v58 = vrot.slane %v8569_v3, %v9694_v34  ;;  %v2719_v45 = vrot.slane %v8569_v3, %v9533_v25  ;;  %v2747_v44 = vrot.slane %v8569_v3, %v9717_v7  ;;  %v2723_v61 = vrot.slane %v8569_v3, %v9700_v52 }
0x1219   :  { %v2765_v15 = vmul.f32 %v10434_v47, %v2735_v58  ;;  %v2756_v21 = vmul.f32 %v10402_v29, %v2719_v45  ;;  %v2770_v0 = vmul.f32 %v8567_v40, %v2747_v44  ;;  %v2757_v17 = vmul.f32 %v10404_v63, %v2719_v45 }
0x121a   :  { %v2758_v4 = vmul.f32 %v10413_v19, %v2723_v61  ;;  %v2759_v27 = vmul.f32 %v10411_v28, %v2723_v61  ;;  %v2727_v47 = vrot.slane %v8569_v3, %v9725_v39  ;;  %v2731_v40 = vrot.slane %v8569_v3, %v9691_v33  ;;  %v9001_v61 = vld [vmem:[#allocation9] sm:$0xff] }
0x121b   :  { %2819 = vperm.xlu1 %8355, %v2765_v15   ;;  %2774 = vperm.xlu0 %8354, %v2756_v21   ;;  %v2764_v19 = vmul.f32 %v10436_v56, %v2735_v58  ;;  %v2739_v28 = vrot.slane %v8569_v3, %v9697_v35  ;;  %v8997_v58 = vld [vmem:[#allocation9 + $0x8] sm:$0xff]  ;;  %v8999_v21 = vld [vmem:[#allocation9 + $0x38] sm:$0xff] }
0x121c   :  { %v2760_v29 = vmul.f32 %v10422_v14, %v2727_v47  ;;  %v2761_v30 = vmul.f32 %v10420_v57, %v2727_v47  ;;  %v2762_v63 = vmul.f32 %v10430_v24, %v2731_v40  ;;  %v2763_v16 = vmul.f32 %v10428_v18, %v2731_v40  ;;  %v9002_v47 = vld [vmem:[#allocation9 + $0x30] sm:$0xff] }
0x121d   :  { %v2766_v8 = vmul.f32 %v10442_v22, %v2739_v28  ;;  %v2767_v14 = vmul.f32 %v10440_v2, %v2739_v28  ;;  %v2743_v57 = vrot.slane %v8569_v3, %v9706_v59  ;;  %v2771_v18 = vmul.f32 %v10452_v60, %v2747_v44  ;;  %v9000_v44 = vld [vmem:[#allocation9 + $0x20] sm:$0xff] }
0x121f   :  { %2844 = vperm.xlu1 %8355, %v2770_v0   ;;  %2779 = vperm.xlu0 %8354, %v2757_v17   ;;  %v2768_v53 = vmul.f32 %v10448_v11, %v2743_v57  ;;  %v2769_v24 = vmul.f32 %v10446_v43, %v2743_v57  ;;  %v8998_v43 = vld [vmem:[#allocation9 + $0x10] sm:$0xff] }
0x1223   :  { %2784 = vperm.xlu0 %8354, %v2758_v4  }
0x1227   :  { %2789 = vperm.xlu0 %8354, %v2759_v27  }
0x122b   :  { %2794 = vperm.xlu0 %8354, %v2760_v29  }
0x122f   :  { %2799 = vperm.xlu0 %8354, %v2761_v30   ;;  %v9003_v30 = vld [vmem:[#allocation9 + $0x40] sm:$0xff] }
0x1233   :  { %2804 = vperm.xlu0 %8354, %v2762_v63   ;;  %v9004_v63 = vld [vmem:[#allocation9 + $0x48] sm:$0xff] }
0x1237   :  { %2809 = vperm.xlu0 %8354, %v2763_v16  }
0x123b   :  { %2814 = vperm.xlu0 %8354, %v2764_v19  }
0x123f   :  { %2824 = vperm.xlu0 %8354, %v2766_v8  }
0x1243   :  { %2829 = vperm.xlu0 %8354, %v2767_v14  }
0x1247   :  { %2834 = vperm.xlu0 %8354, %v2768_v53  }
0x124b   :  { %2839 = vperm.xlu0 %8354, %v2769_v24  }
0x124f   :  { %2849 = vperm.xlu0 %8354, %v2771_v18  }
0x129a   :  { %v2775_v56 = vpop.permute.xlu0 %2774  ;;  %v2820_v11 = vpop.permute.xlu1 %2819 }
0x129b   :  { %v2852_v4 = vmul.f32 %v9001_v61, %v2775_v56  ;;  %v2861_v16 = vmul.f32 %v9004_v63, %v2820_v11  ;;  %v9006_v11 = vld [vmem:[#allocation9 + $0x58] sm:$0xff] }
0x129d   :  { %v2868_v56 = vsel %vm163_vm0, %v2852_v4, 0.0 }
0x129e   :  { %v2780_v6 = vpop.permute.xlu0 %2779  ;;  %v2845_v63 = vpop.permute.xlu1 %2844 }
0x129f   :  { %v2853_v45 = vmul.f32 %v8997_v58, %v2780_v6 }
0x12a1   :  { %v2869_v28 = vsel %vm163_vm0, %v2853_v45, 0.0 }
0x12a2   :  { %v2785_v54 = vpop.permute.xlu0 %2784 }
0x12a3   :  { %v2854_v15 = vmul.f32 %v8998_v43, %v2785_v54 }
0x12a5   :  { %v2877_v8 = vsel %vm163_vm0, %v2854_v15, 0.0 }
0x12a6   :  { %v2790_v23 = vpop.permute.xlu0 %2789 }
0x12a7   :  { %v2855_v42 = vmul.f32 %v8995_v1, %v2790_v23  ;;  %v2905_v23 = vsel %vm163_vm0, %v2861_v16, 0.0 }
0x12a9   :  { %v2878_v27 = vsel %vm163_vm0, %v2855_v42, 0.0 }
0x12aa   :  { %v2795_v22 = vpop.permute.xlu0 %2794  ;;  %v2879_v57 = vadd.f32 %v2878_v27, %v2877_v8 }
0x12ab   :  { %v2856_v0 = vmul.f32 %v9000_v44, %v2795_v22  ;;  %v2870_v22 = vadd.f32 %v2869_v28, %v2868_v56  ;;  %v9009_v56 = vld [vmem:[#allocation9 + $0x70] sm:$0xff] }
0x12ac   :  { %v2880_v42 = vrot.slane %v2879_v57, 4 }
0x12ad   :  { %v2886_v53 = vsel %vm163_vm0, %v2856_v0, 0.0  ;;  %v2871_v45 = vrot.slane %v2870_v22, 4 }
0x12ae   :  { %v2800_v26 = vpop.permute.xlu0 %2799  ;;  %v2881_v44 = vadd.f32 %v2880_v42, %v2879_v57  ;;  %v2866_v57 = vmul.f32 %v9009_v56, %v2845_v63  ;;  %v9010_v42 = vld [vmem:[#allocation9 + $0x78] sm:$0xff] }
0x12af   :  { %v2857_v3 = vmul.f32 %v8996_v49, %v2800_v26  ;;  %v2872_v4 = vadd.f32 %v2871_v45, %v2870_v22 }
0x12b0   :  { %v2882_v16 = vrot.slane %v2881_v44, 2  ;;  %v2931_v45 = vsel %vm163_vm0, %v2866_v57, 0.0 }
0x12b1   :  { %v2887_v19 = vsel %vm163_vm0, %v2857_v3, 0.0 }
0x12b2   :  { %v2805_v38 = vpop.permute.xlu0 %2804  ;;  %v2888_v6 = vadd.f32 %v2887_v19, %v2886_v53  ;;  %v2883_v22 = vadd.f32 %v2882_v16, %v2881_v44 }
0x12b3   :  { %v2858_v29 = vmul.f32 %v9002_v47, %v2805_v38 }
0x12b4   :  { %v2889_v3 = vrot.slane %v2888_v6, 4 }
0x12b5   :  { %v2895_v54 = vsel %vm163_vm0, %v2858_v29, 0.0 }
0x12b6   :  { %v2810_v2 = vpop.permute.xlu0 %2809  ;;  %v2890_v61 = vadd.f32 %v2889_v3, %v2888_v6 }
0x12b7   :  { %v2859_v60 = vmul.f32 %v8999_v21, %v2810_v2  ;;  %v9005_v2 = vld [vmem:[#allocation9 + $0x50] sm:$0xff] }
0x12b8   :  { %v2891_v8 = vrot.slane %v2890_v61, 2 }
0x12b9   :  { %v2896_v14 = vsel %vm163_vm0, %v2859_v60, 0.0 }
0x12ba   :  { %v2815_v17 = vpop.permute.xlu0 %2814  ;;  %v2897_v26 = vadd.f32 %v2896_v14, %v2895_v54  ;;  %v9008_v14 = vld [vmem:[#allocation9 + $0x68] sm:$0xff] }
0x12bb   :  { %v2860_v40 = vmul.f32 %v9003_v30, %v2815_v17  ;;  %v9007_v30 = vld [vmem:[#allocation9 + $0x60] sm:$0xff] }
0x12bc   :  { %v2898_v43 = vrot.slane %v2897_v26, 4 }
0x12bd   :  { %v2904_v24 = vsel %vm163_vm0, %v2860_v40, 0.0 }
0x12be   :  { %v2825_v18 = vpop.permute.xlu0 %2824  ;;  %v2906_v38 = vadd.f32 %v2905_v23, %v2904_v24  ;;  %v2899_v27 = vadd.f32 %v2898_v43, %v2897_v26  ;;  %v2873_v24 = vrot.slane %v2872_v4, 2 }
0x12bf   :  { %v2862_v1 = vmul.f32 %v9005_v2, %v2825_v18 }
0x12c0   :  { %v2907_v15 = vrot.slane %v2906_v38, 4  ;;  %v2900_v18 = vrot.slane %v2899_v27, 2  ;;  %v2874_v3 = vadd.f32 %v2873_v24, %v2872_v4 }
0x12c1   :  { %v2913_v21 = vsel %vm163_vm0, %v2862_v1, 0.0  ;;  %v2892_v1 = vadd.f32 %v2891_v8, %v2890_v61 }
0x12c2   :  { %v2830_v49 = vpop.permute.xlu0 %2829  ;;  %v2908_v29 = vadd.f32 %v2907_v15, %v2906_v38  ;;  %v2875_v44 = vrot.slane %v2874_v3, 1 }
0x12c3   :  { %v2863_v58 = vmul.f32 %v9006_v11, %v2830_v49  ;;  %v2901_v11 = vadd.f32 %v2900_v18, %v2899_v27 }
0x12c4   :  { %v2909_v54 = vrot.slane %v2908_v29, 2 }
0x12c5   :  { %v2914_v60 = vsel %vm163_vm0, %v2863_v58, 0.0 }
0x12c6   :  { %v2915_v0 = vadd.f32 %v2914_v60, %v2913_v21  ;;  %v2835_v17 = vpop.permute.xlu0 %2834  ;;  %v2910_v43 = vadd.f32 %v2909_v54, %v2908_v29  ;;  %v2884_v21 = vrot.slane %v2883_v22, 1 }
0x12c7   :  { %v2864_v40 = vmul.f32 %v9007_v30, %v2835_v17  ;;  %v2902_v30 = vrot.slane %v2901_v11, 1 }
0x12c8   :  { %v2916_v47 = vrot.slane %v2915_v0, 4  ;;  %v2911_v61 = vrot.slane %v2910_v43, 1  ;;  %v2885_v16 = vadd.f32 %v2884_v21, %v2883_v22 }
0x12c9   :  { %v2922_v6 = vsel %vm163_vm0, %v2864_v40, 0.0 }
0x12ca   :  { %v2917_v19 = vadd.f32 %v2916_v47, %v2915_v0  ;;  %v2840_v28 = vpop.permute.xlu0 %2839  ;;  %v2893_v47 = vrot.slane %v2892_v1, 1  ;;  %v2912_v18 = vadd.f32 %v2911_v61, %v2910_v43 }
0x12cb   :  { %v2865_v53 = vmul.f32 %v9008_v14, %v2840_v28  ;;  %v2876_v14 = vadd.f32 %v2875_v44, %v2874_v3  ;;  %v2941_v3 = vld [vmem:[#allocation4 + $0x10] sm:$0xff] }
0x12cc   :  { %v2918_v26 = vrot.slane %v2917_v19, 2  ;;  %v2894_v8 = vadd.f32 %v2893_v47, %v2892_v1 }
0x12cd   :  { %v2923_v23 = vsel %vm163_vm0, %v2865_v53, 0.0  ;;  %v2903_v53 = vadd.f32 %v2902_v30, %v2901_v11 }
0x12ce   :  { %v2924_v38 = vadd.f32 %v2923_v23, %v2922_v6  ;;  %v2850_v2 = vpop.permute.xlu0 %2849  ;;  %v2919_v60 = vadd.f32 %v2918_v26, %v2917_v19  ;;  %v2950_v19 = vsel %vm547_vm2, %v2885_v16, %v2876_v14 }
0x12cf   :  { %v2867_v49 = vmul.f32 %v9010_v42, %v2850_v2  ;;  %v2951_v54 = vsel %vm549_vm3, %v2894_v8, %v2950_v19 }
0x12d0   :  { %v2925_v58 = vrot.slane %v2924_v38, 4  ;;  %v2920_v28 = vrot.slane %v2919_v60, 1  ;;  %v2952_v26 = vsel %vm551_vm4, %v2903_v53, %v2951_v54 }
0x12d1   :  { %v2932_v15 = vsel %vm163_vm0, %v2867_v49, 0.0  ;;  %v2953_v22 = vsel %vm553_vm5, %v2912_v18, %v2952_v26  ;;  %v12226_v49 = vmov 0.0   ;;  %v9012_v26 = vld [vmem:[#allocation7 + $0x8] sm:$0xff] }
0x12d2   :  { %v2926_v0 = vadd.f32 %v2925_v58, %v2924_v38  ;;  %v2933_v17 = vadd.f32 %v2932_v15, %v2931_v45  ;;  %v2921_v56 = vadd.f32 %v2920_v28, %v2919_v60 }
0x12d4   :  { %v2927_v40 = vrot.slane %v2926_v0, 2  ;;  %v2934_v63 = vrot.slane %v2933_v17, 4  ;;  %v2954_v2 = vsel %vm555_vm6, %v2921_v56, %v2953_v22 }
0x12d6   :  { %v2928_v4 = vadd.f32 %v2927_v40, %v2926_v0  ;;  %v2935_v27 = vadd.f32 %v2934_v63, %v2933_v17 }
0x12d8   :  { %v2929_v29 = vrot.slane %v2928_v4, 1  ;;  %v2936_v24 = vrot.slane %v2935_v27, 2 }
0x12da   :  { %v2937_v57 = vadd.f32 %v2936_v24, %v2935_v27  ;;  %v2930_v6 = vadd.f32 %v2929_v29, %v2928_v4 }
0x12dc   :  { %v2938_v23 = vrot.slane %v2937_v57, 1  ;;  %v2955_v1 = vsel %vm557_vm7, %v2930_v6, %v2954_v2  ;;  %v9011_v6 = vld [vmem:[#allocation7] sm:$0xff] }
0x12de   :  { %v2939_v38 = vadd.f32 %v2938_v23, %v2937_v57 }
0x12e0   :  { %v2956_v42 = vsel %vm559_vm8, %v2939_v38, %v2955_v1  ;;  %v9013_v38 = vld [vmem:[#allocation7 + $0x10] sm:$0xff] }
0x12e1   :  { %8139 = vmatmul.mubr.msk.f32.vlgmr.msra.gmra.mrb[6].mxu1 %vm163_vm0, %v2956_v42  ;;  %v9014_v42 = vld [vmem:[#allocation7 + $0x18] sm:$0xff] }
0x12e2   :  { %8268 = vmatpush3.bf16.msra.mxu1 %v9844_v50  ;;  %8149 = vmatprep.mubr.msk.f32.mxu1 %vm9338_vm10, %v12226_v49 }
0x12e3   :  { %8269 = vmatprep.subr.bf16.mxu1 %v12225_v48 }
0x12e6   :  { %8271 = vmatpush3.bf16.msra.mxu1 %v9849_v32 }
0x12e7   :  { %8280 = vmatprep.subr.bf16.mxu1 %v12225_v48 }
0x13b4   :  { %v3025_v11 = vpop.f32.mrb[6].mxu1 }
0x13b5   :  { %v3029_v58 = vadd.f32 %v3025_v11, %v2941_v3  ;;  %v8140_v45 = vpop.f32.mrb[7].mxu1 }
0x13b6   :  { %v9015_v45 = vld [vmem:[#allocation7 + $0x20] sm:$0xff] }
0x13b7   :  { %v3030_v43 = vadd.f32 %v3029_v58, %v10227_v41 }
0x13b9   :  { %8570 = vtanh.f32 %v3030_v43  ;;  %v8031_v21 = vmul.f32 -1.442695, %v3030_v43 }
0x13bb   :  { %8572 = vpow2.f32 %v8031_v21 }
0x13c3   :  { %v8571_v15 = vpop.eup %8570 }
0x13c4   :  { %3040 = vrot.lane.b32.xlu1 %v8571_v15, %s9339_s18  ;;  %v9016_v15 = vld [vmem:[#allocation7 + $0x28] sm:$0xff] }
0x13c5   :  { %v8573_v60 = vpop.eup %8572 }
0x13c6   :  { %v3034_v0 = vadd.f32 1.0, %v8573_v60 }
0x13c8   :  { %8574 = vrcp.f32 %v3034_v0 }
0x13d2   :  { %v8575_v17 = vpop.eup %8574 }
0x13d3   :  { %v3038_v30 = vmul.f32 %v8575_v17, %v10215_v51 }
0x1436   :  { %v3041_v47 = vpop.permute.xlu1 %3040 }
0x1437   :  { %v3043_v44 = vmul.f32 %v8575_v17, %v3041_v47 }
0x1439   :  { %3045 = vrot.lane.b32.xlu0 %v3043_v44, %s9340_s19 }
0x14ab   :  { %v3046_v40 = vpop.permute.xlu0 %3045 }
0x14ac   :  { %v10544_v63 = vadd.f32 %v3046_v40, %v3038_v30 }
0x14ae   :  { %8576 = vtanh.f32 %v10544_v63 }
0x14b8   :  { %v8577_v41 = vpop.eup %8576 }
0x14b9   :  { %3051 = vrot.lane.b32.xlu1 %v8577_v41, %s9339_s18 }
0x152b   :  { %v3052_v61 = vpop.permute.xlu1 %3051 }
0x152c   :  { %v3054_v16 = vmul.f32 %v8575_v17, %v3052_v61  ;;  %v9017_v17 = vld [vmem:[#allocation7 + $0x40] sm:$0xff]  ;;  %v9018_v61 = vld [vmem:[#allocation7 + $0x30] sm:$0xff] }
0x152e   :  { %3056 = vrot.lane.b32.xlu0 %v3054_v16, %s9340_s19 }
0x15a0   :  { %v3057_v28 = vpop.permute.xlu0 %3056 }
0x15a1   :  { %3060 = vst.msk [vmem:[#allocation2 + $0x10] sm:$0xff] %vm163_vm0, %v3057_v28  ;;  %8032 = vmatmul.mubr.msk.f32.vlgmr.msra.gmra.mrb[4].mxu0 %vm163_vm0, %v3057_v28 }
0x15a2   :  { %8275 = vmatpush1.bf16.msra.mxu0 %v9507_v9  ;;  %4084 = vmatprep.mubr.f32.mxu0 %v12226_v49 }
0x15a3   :  { %8277 = vmatprep.subr.bf16.mxu0 %v9509_v10 }
0x15a6   :  { %8279 = vmatpush1.bf16.msra.mxu0 %v9514_v13 }
0x15a7   :  { %8287 = vmatprep.subr.bf16.mxu0 %v9505_v5 }
0x1674   :  { %v10556_v51 = vpop.f32.mrb[4].mxu0 }
0x1675   :  { %v3131_v4 = vpop.f32.mrb[5].mxu0 }
0x1676   :  { %v3135_v27 = vcombine.high %v3131_v4, %v3131_v4  ;;  %v3142_v8 = vrot.slane %v3131_v4, %v9527_v20 }
0x1678   :  { %v3150_v14 = vcombine.high %v3142_v8, %v3142_v8  ;;  %v3158_v53 = vrot.slane %v3142_v8, %v9527_v20  ;;  %v3149_v29 = vrot.slane %v3135_v27, %v9527_v20  ;;  %v10575_v8 = vld [vmem:[%s12208_s4] ss:$0 sm:$0xff] }
0x167a   :  { %v3172_v24 = vrot.slane %v3150_v14, %v9527_v20  ;;  %v3180_v18 = vcombine.high %v3158_v53, %v3158_v53  ;;  %v3187_v19 = vrot.slane %v3158_v53, %v9533_v25  ;;  %v3165_v57 = vrot.slane %v3149_v29, %v9527_v20 }
0x167b   :  { %v3151_v1 = vcombine.high %v3149_v29, %v3149_v29 }
0x167c   :  { %v3191_v56 = vrot.slane %v3172_v24, %v9533_v25  ;;  %v3195_v54 = vrot.slane %v3180_v18, %v9533_v25  ;;  %v3224_v23 = vadd.f32 %v9011_v6, %v3187_v19  ;;  %v3225_v22 = vadd.f32 %v9012_v26, %v3187_v19  ;;  %v10581_v18 = vld [vmem:[#allocation7 + $0x50] sm:$0xff] }
0x167d   :  { %v3182_v11 = vcombine.high %v3172_v24, %v3172_v24  ;;  %v3203_v58 = vrot.slane %v3165_v57, %v9533_v25  ;;  %v3179_v60 = vrot.slane %v3151_v1, %v9527_v20  ;;  %v3181_v30 = vcombine.high %v3165_v57, %v3165_v57 }
0x167e   :  { %v3226_v2 = vadd.f32 %v9013_v38, %v3191_v56  ;;  %v3227_v3 = vadd.f32 %v9014_v42, %v3191_v56  ;;  %v3228_v43 = vadd.f32 %v9015_v45, %v3195_v54  ;;  %8578 = vtanh.f32 %v3224_v23  ;;  %v10590_v38 = vld [vmem:[#allocation7 + $0x60] sm:$0xff] }
0x167f   :  { %v3229_v21 = vadd.f32 %v9016_v15, %v3195_v54  ;;  %8580 = vtanh.f32 %v3225_v22  ;;  %v3199_v0 = vrot.slane %v3182_v11, %v9533_v25  ;;  %v3232_v47 = vadd.f32 %v9017_v17, %v3203_v58 }
0x1680   :  { %8582 = vtanh.f32 %v3226_v2  ;;  %v3233_v44 = vadd.f32 %v10241_v62, %v3203_v58  ;;  %v3207_v40 = vrot.slane %v3179_v60, %v9533_v25  ;;  %v3183_v27 = vcombine.high %v3179_v60, %v3179_v60 }
0x1681   :  { %8584 = vtanh.f32 %v3227_v3  ;;  %v3231_v41 = vadd.f32 %v10253_v55, %v3199_v0  ;;  %v3230_v16 = vadd.f32 %v9018_v61, %v3199_v0  ;;  %v3211_v53 = vrot.slane %v3181_v30, %v9533_v25 }
0x1682   :  { %8586 = vtanh.f32 %v3228_v43  ;;  %v3235_v29 = vadd.f32 %v10262_v12, %v3207_v40  ;;  %v3234_v19 = vadd.f32 %v10581_v18, %v3207_v40  ;;  %v3215_v26 = vrot.slane %v3183_v27, %v9533_v25  ;;  %v10598_v43 = vld [vmem:[#allocation7 + $0x70] sm:$0xff] }
0x1683   :  { %8588 = vtanh.f32 %v3229_v21  ;;  %v3237_v22 = vadd.f32 %v10270_v46, %v3211_v53  ;;  %v3236_v2 = vadd.f32 %v10590_v38, %v3211_v53 }
0x1684   :  { %8590 = vtanh.f32 %v3232_v47  ;;  %v3239_v46 = vadd.f32 %v10277_v31, %v3215_v26  ;;  %v3238_v15 = vadd.f32 %v10598_v43, %v3215_v26 }
0x1685   :  { %8592 = vtanh.f32 %v3233_v44 }
0x1686   :  { %8594 = vtanh.f32 %v3231_v41 }
0x1687   :  { %8596 = vtanh.f32 %v3230_v16 }
0x1688   :  { %v8579_v28 = vpop.eup %8578  ;;  %8598 = vtanh.f32 %v3235_v29 }
0x1689   :  { %v8581_v4 = vpop.eup %8580  ;;  %v3256_v62 = vmul.f32 %v10575_v8, %v8579_v28  ;;  %8600 = vtanh.f32 %v3234_v19 }
0x168a   :  { %v8583_v14 = vpop.eup %8582  ;;  %v3257_v55 = vmul.f32 %v10575_v8, %v8581_v4  ;;  %8602 = vtanh.f32 %v3237_v22 }
0x168b   :  { %v8585_v24 = vpop.eup %8584  ;;  %v3272_v56 = vsel %vm163_vm0, %v3256_v62, 0.0  ;;  %v3258_v23 = vmul.f32 %v10575_v8, %v8583_v14  ;;  %8604 = vtanh.f32 %v3236_v2 }
0x168c   :  { %v8587_v57 = vpop.eup %8586  ;;  %v3275_v54 = vsel %vm163_vm0, %v3257_v55, 0.0  ;;  %3273 = vadd.xlane.f32.xlu1 %v3272_v56  ;;  %v3259_v6 = vmul.f32 %v10575_v8, %v8585_v24  ;;  %8606 = vtanh.f32 %v3239_v46 }
0x168d   :  { %v8589_v12 = vpop.eup %8588  ;;  %3276 = vadd.xlane.f32.xlu0 %v3275_v54  ;;  %v3278_v11 = vsel %vm163_vm0, %v3258_v23, 0.0  ;;  %v3260_v58 = vmul.f32 %v10575_v8, %v8587_v57  ;;  %8608 = vtanh.f32 %v3238_v15  ;;  %v12227_v15 = vld [vmem:[#allocation21_spill] sm:$0xff] }
0x168e   :  { %v3281_v1 = vsel %vm163_vm0, %v3259_v6, 0.0  ;;  %v3261_v42 = vmul.f32 %v10575_v8, %v8589_v12  ;;  %v8591_v3 = vpop.eup %8590 }
0x168f   :  { %v8593_v45 = vpop.eup %8592  ;;  %v3284_v17 = vsel %vm163_vm0, %v3260_v58, 0.0  ;;  %v3264_v47 = vmul.f32 %v10575_v8, %v8591_v3 }
0x1690   :  { %3282 = vadd.xlane.f32.xlu1 %v3281_v1  ;;  %v3287_v21 = vsel %vm163_vm0, %v3261_v42, 0.0  ;;  %v3265_v60 = vmul.f32 %v10575_v8, %v8593_v45  ;;  %v8595_v0 = vpop.eup %8594 }
0x1691   :  { %3279 = vadd.xlane.f32.xlu0 %v3278_v11  ;;  %v8597_v44 = vpop.eup %8596  ;;  %v3263_v30 = vmul.f32 %v10575_v8, %v8595_v0  ;;  %v3296_v41 = vsel %vm163_vm0, %v3264_v47, 0.0 }
0x1692   :  { %v3299_v31 = vsel %vm163_vm0, %v3265_v60, 0.0  ;;  %v8599_v40 = vpop.eup %8598  ;;  %v3262_v61 = vmul.f32 %v10575_v8, %v8597_v44 }
0x1693   :  { %v8601_v16 = vpop.eup %8600  ;;  %v3293_v28 = vsel %vm163_vm0, %v3263_v30, 0.0  ;;  %v3267_v4 = vmul.f32 %v10575_v8, %v8599_v40 }
0x1694   :  { %3288 = vadd.xlane.f32.xlu1 %v3287_v21  ;;  %v8603_v27 = vpop.eup %8602  ;;  %v3290_v62 = vsel %vm163_vm0, %v3262_v61, 0.0  ;;  %v3266_v14 = vmul.f32 %v10575_v8, %v8601_v16 }
0x1695   :  { %3285 = vadd.xlane.f32.xlu0 %v3284_v17  ;;  %v8605_v53 = vpop.eup %8604  ;;  %v3305_v29 = vsel %vm163_vm0, %v3267_v4, 0.0  ;;  %v3269_v55 = vmul.f32 %v10575_v8, %v8603_v27 }
0x1696   :  { %v8607_v24 = vpop.eup %8606  ;;  %v3302_v19 = vsel %vm163_vm0, %v3266_v14, 0.0  ;;  %v3268_v56 = vmul.f32 %v10575_v8, %v8605_v53 }
0x1697   :  { %v8609_v57 = vpop.eup %8608  ;;  %v3311_v54 = vsel %vm163_vm0, %v3269_v55, 0.0  ;;  %v3271_v6 = vmul.f32 %v10575_v8, %v8607_v24 }
0x1698   :  { %3300 = vadd.xlane.f32.xlu1 %v3299_v31  ;;  %v3308_v23 = vsel %vm163_vm0, %v3268_v56, 0.0  ;;  %v3270_v12 = vmul.f32 %v10575_v8, %v8609_v57 }
0x1699   :  { %3297 = vadd.xlane.f32.xlu0 %v3296_v41  ;;  %v3317_v26 = vsel %vm163_vm0, %v3271_v6, 0.0 }
0x169a   :  { %v3314_v22 = vsel %vm163_vm0, %v3270_v12, 0.0 }
0x169c   :  { %3294 = vadd.xlane.f32.xlu1 %v3293_v28 }
0x169d   :  { %3291 = vadd.xlane.f32.xlu0 %v3290_v62 }
0x16a0   :  { %3306 = vadd.xlane.f32.xlu1 %v3305_v29 }
0x16a1   :  { %3303 = vadd.xlane.f32.xlu0 %v3302_v19 }
0x16a4   :  { %3312 = vadd.xlane.f32.xlu1 %v3311_v54 }
0x16a5   :  { %3309 = vadd.xlane.f32.xlu0 %v3308_v23 }
0x16a8   :  { %3318 = vadd.xlane.f32.xlu1 %v3317_v26 }
0x16a9   :  { %3315 = vadd.xlane.f32.xlu0 %v3314_v22 }
0x1719   :  { %v3274_v2 = vpop.xlane.xlu1 %3273 }
0x171a   :  { %v3277_v1 = vpop.xlane.xlu0 %3276  ;;  %v3320_v17 = vadd.f32 %v3274_v2, %v12227_v15 }
0x171b   :  { %v10630_v0 = vadd.f32 %v3277_v1, %v12227_v15 }
0x171c   :  { %v3355_v4 = vrot.slane %v3320_v17, %v9587_v36 }
0x171d   :  { %v3283_v42 = vpop.xlane.xlu1 %3282  ;;  %v3359_v28 = vrot.slane %v10630_v0, %v9590_v37 }
0x171e   :  { %v3280_v3 = vpop.xlane.xlu0 %3279  ;;  %v10624_v21 = vadd.f32 %v3283_v42, %v12227_v15 }
0x171f   :  { %v10627_v8 = vadd.f32 %v3280_v3, %v12227_v15  ;;  %v3360_v6 = vsel %vm482_vm1, %v3359_v28, %v3355_v4 }
0x1720   :  { %v3368_v41 = vrot.slane %v10624_v21, %v9590_v37 }
0x1721   :  { %v3289_v11 = vpop.xlane.xlu1 %3288  ;;  %v3364_v61 = vrot.slane %v10627_v8, %v9587_v36 }
0x1722   :  { %v3286_v58 = vpop.xlane.xlu0 %3285  ;;  %v10634_v47 = vadd.f32 %v3289_v11, %v12227_v15 }
0x1723   :  { %v10637_v44 = vadd.f32 %v3286_v58, %v12227_v15  ;;  %v3369_v57 = vsel %vm482_vm1, %v3368_v41, %v3364_v61 }
0x1724   :  { %v3377_v27 = vrot.slane %v10634_v47, %v9590_v37  ;;  %v3424_v3 = vsel %vm547_vm2, %v3369_v57, %v3360_v6 }
0x1725   :  { %v3301_v45 = vpop.xlane.xlu1 %3300  ;;  %v3373_v62 = vrot.slane %v10637_v44, %v9587_v36 }
0x1726   :  { %v3298_v46 = vpop.xlane.xlu0 %3297  ;;  %v10667_v19 = vadd.f32 %v3301_v45, %v12227_v15 }
0x1727   :  { %v10670_v56 = vadd.f32 %v3298_v46, %v12227_v15  ;;  %v3378_v23 = vsel %vm482_vm1, %v3377_v27, %v3373_v62 }
0x1728   :  { %v3395_v11 = vrot.slane %v10667_v19, %v9590_v37  ;;  %v3425_v46 = vsel %vm549_vm3, %v3378_v23, %v3424_v3 }
0x1729   :  { %v3295_v60 = vpop.xlane.xlu1 %3294  ;;  %v3391_v58 = vrot.slane %v10670_v56, %v9587_v36 }
0x172a   :  { %v3292_v31 = vpop.xlane.xlu0 %3291  ;;  %v10640_v30 = vadd.f32 %v3295_v60, %v12227_v15 }
0x172b   :  { %v10643_v40 = vadd.f32 %v3292_v31, %v12227_v15  ;;  %v3396_v27 = vsel %vm482_vm1, %v3395_v11, %v3391_v58 }
0x172c   :  { %v3386_v53 = vrot.slane %v10640_v30, %v9590_v37 }
0x172d   :  { %v3307_v16 = vpop.xlane.xlu1 %3306  ;;  %v3382_v29 = vrot.slane %v10643_v40, %v9587_v36 }
0x172e   :  { %v3304_v14 = vpop.xlane.xlu0 %3303  ;;  %v10661_v55 = vadd.f32 %v3307_v16, %v12227_v15 }
0x172f   :  { %v10664_v24 = vadd.f32 %v3304_v14, %v12227_v15  ;;  %v3387_v22 = vsel %vm482_vm1, %v3386_v53, %v3382_v29 }
0x1730   :  { %v3404_v2 = vrot.slane %v10661_v55, %v9590_v37  ;;  %v3426_v41 = vsel %vm551_vm4, %v3387_v22, %v3425_v46 }
0x1731   :  { %v3313_v54 = vpop.xlane.xlu1 %3312  ;;  %v3400_v1 = vrot.slane %v10664_v24, %v9587_v36  ;;  %v3427_v29 = vsel %vm553_vm5, %v3396_v27, %v3426_v41 }
0x1732   :  { %v10676_v12 = vadd.f32 %v3313_v54, %v12227_v15  ;;  %v3310_v26 = vpop.xlane.xlu0 %3309 }
0x1733   :  { %v10684_v42 = vadd.f32 %v3310_v26, %v12227_v15  ;;  %v3405_v28 = vsel %vm482_vm1, %v3404_v2, %v3400_v1 }
0x1734   :  { %v3413_v45 = vrot.slane %v10676_v12, %v9590_v37  ;;  %v3428_v57 = vsel %vm555_vm6, %v3405_v28, %v3427_v29 }
0x1735   :  { %v3409_v60 = vrot.slane %v10684_v42, %v9587_v36  ;;  %v3319_v31 = vpop.xlane.xlu1 %3318 }
0x1736   :  { %v10698_v61 = vadd.f32 %v3319_v31, %v12227_v15  ;;  %v3316_v16 = vpop.xlane.xlu0 %3315 }
0x1737   :  { %v10702_v4 = vadd.f32 %v3316_v16, %v12227_v15  ;;  %v3414_v14 = vsel %vm482_vm1, %v3413_v45, %v3409_v60 }
0x1738   :  { %v3422_v62 = vrot.slane %v10698_v61, %v9590_v37  ;;  %v3429_v6 = vsel %vm557_vm7, %v3414_v14, %v3428_v57 }
0x1739   :  { %v3418_v53 = vrot.slane %v10702_v4, %v9587_v36 }
0x173b   :  { %v3423_v54 = vsel %vm482_vm1, %v3422_v62, %v3418_v53 }
0x173c   :  { %v3430_v23 = vsel %vm559_vm8, %v3423_v54, %v3429_v6 }
0x173d   :  { %v3432_v26 = vsel %vm562_vm9, %v3430_v23, -inf }
0x173e   :  { %3433 = vmax.xlane.f32.xlu0 %v3432_v26 }
0x17cb   :  { %v3434_v22 = vpop.xlane.xlu0 %3433 }
0x17cc   :  { %v3439_v2 = vrot.slane %v3434_v22, %v9533_v25  ;;  %v3443_v1 = vrot.slane %v3434_v22, %v9700_v52  ;;  %v3447_v3 = vrot.slane %v3434_v22, %v9725_v39  ;;  %v3451_v46 = vrot.slane %v3434_v22, %v9691_v33 }
0x17cd   :  { %v3455_v27 = vrot.slane %v3434_v22, %v9694_v34  ;;  %v3459_v14 = vrot.slane %v3434_v22, %v9697_v35  ;;  %v3463_v57 = vrot.slane %v3434_v22, %v9706_v59 }
0x17ce   :  { %v3476_v11 = vsub.f32 %v3320_v17, %v3439_v2  ;;  %v3477_v58 = vsub.f32 %v10630_v0, %v3439_v2  ;;  %v3478_v45 = vsub.f32 %v10627_v8, %v3443_v1  ;;  %v3480_v60 = vsub.f32 %v10637_v44, %v3447_v3 }
0x17cf   :  { %v3479_v16 = vsub.f32 %v10624_v21, %v3443_v1  ;;  %v3482_v62 = vsub.f32 %v10643_v40, %v3451_v46  ;;  %v3481_v0 = vsub.f32 %v10634_v47, %v3447_v3  ;;  %v3484_v44 = vsub.f32 %v10670_v56, %v3455_v27 }
0x17d0   :  { %v3492_v31 = vmul.f32 1.442695, %v3476_v11  ;;  %v3494_v41 = vmul.f32 1.442695, %v3477_v58  ;;  %v3496_v28 = vmul.f32 1.442695, %v3478_v45  ;;  %v3483_v21 = vsub.f32 %v10640_v30, %v3451_v46 }
0x17d1   :  { %v3500_v17 = vmul.f32 1.442695, %v3480_v60  ;;  %v3498_v8 = vmul.f32 1.442695, %v3479_v16  ;;  %v3504_v53 = vmul.f32 1.442695, %v3482_v62  ;;  %v3486_v40 = vsub.f32 %v10664_v24, %v3459_v14 }
0x17d2   :  { %8610 = vpow2.f32 %v3492_v31  ;;  %v3502_v29 = vmul.f32 1.442695, %v3481_v0  ;;  %v3508_v54 = vmul.f32 1.442695, %v3484_v44  ;;  %v3485_v56 = vsub.f32 %v10667_v19, %v3455_v27 }
0x17d3   :  { %8612 = vpow2.f32 %v3494_v41  ;;  %v3506_v23 = vmul.f32 1.442695, %v3483_v21  ;;  %v3467_v30 = vrot.slane %v3434_v22, %v9717_v7  ;;  %v3488_v26 = vsub.f32 %v10684_v42, %v3463_v57 }
0x17d4   :  { %8614 = vpow2.f32 %v3496_v28  ;;  %v3512_v24 = vmul.f32 1.442695, %v3486_v40  ;;  %v3487_v3 = vsub.f32 %v10661_v55, %v3459_v14  ;;  %v3510_v19 = vmul.f32 1.442695, %v3485_v56 }
0x17d5   :  { %8616 = vpow2.f32 %v3500_v17  ;;  %v3490_v11 = vsub.f32 %v10702_v4, %v3467_v30  ;;  %v3516_v22 = vmul.f32 1.442695, %v3488_v26  ;;  %v3489_v45 = vsub.f32 %v10676_v12, %v3463_v57 }
0x17d6   :  { %8618 = vpow2.f32 %v3498_v8  ;;  %v3514_v46 = vmul.f32 1.442695, %v3487_v3  ;;  %v3491_v4 = vsub.f32 %v10698_v61, %v3467_v30 }
0x17d7   :  { %8620 = vpow2.f32 %v3504_v53  ;;  %v3520_v55 = vmul.f32 1.442695, %v3490_v11  ;;  %v3518_v41 = vmul.f32 1.442695, %v3489_v45 }
0x17d8   :  { %8622 = vpow2.f32 %v3502_v29  ;;  %v3522_v28 = vmul.f32 1.442695, %v3491_v4 }
0x17d9   :  { %8624 = vpow2.f32 %v3508_v54 }
0x17da   :  { %8626 = vpow2.f32 %v3506_v23 }
0x17db   :  { %8628 = vpow2.f32 %v3512_v24 }
0x17dc   :  { %v10732_v6 = vpop.eup %8610  ;;  %8630 = vpow2.f32 %v3510_v19 }
0x17dd   :  { %v10734_v47 = vpop.eup %8612  ;;  %3541 = vperm.xlu1 %8355, %v10732_v6   ;;  %8632 = vpow2.f32 %v3516_v22 }
0x17de   :  { %3544 = vperm.xlu0 %8354, %v10734_v47   ;;  %v10741_v2 = vpop.eup %8614  ;;  %8634 = vpow2.f32 %v3514_v46 }
0x17df   :  { %v10743_v1 = vpop.eup %8616  ;;  %8636 = vpow2.f32 %v3520_v55 }
0x17e0   :  { %v10749_v58 = vpop.eup %8618  ;;  %8638 = vpow2.f32 %v3518_v41 }
0x17e1   :  { %3547 = vperm.xlu1 %8355, %v10741_v2   ;;  %v10751_v42 = vpop.eup %8620  ;;  %8640 = vpow2.f32 %v3522_v28 }
0x17e2   :  { %3553 = vperm.xlu0 %8354, %v10743_v1   ;;  %v10756_v60 = vpop.eup %8622 }
0x17e3   :  { %v10758_v31 = vpop.eup %8624 }
0x17e4   :  { %v10763_v12 = vpop.eup %8626 }
0x17e5   :  { %3550 = vperm.xlu1 %8355, %v10749_v58   ;;  %v10765_v16 = vpop.eup %8628 }
0x17e6   :  { %3559 = vperm.xlu0 %8354, %v10751_v42   ;;  %v10769_v27 = vpop.eup %8630 }
0x17e7   :  { %v10771_v62 = vpop.eup %8632 }
0x17e8   :  { %v10775_v61 = vpop.eup %8634 }
0x17e9   :  { %3556 = vperm.xlu1 %8355, %v10756_v60   ;;  %v10777_v17 = vpop.eup %8636 }
0x17ea   :  { %3565 = vperm.xlu0 %8354, %v10758_v31   ;;  %v10781_v0 = vpop.eup %8638 }
0x17eb   :  { %v10784_v8 = vpop.eup %8640 }
0x17ed   :  { %3562 = vperm.xlu1 %8355, %v10763_v12  }
0x17ee   :  { %3571 = vperm.xlu0 %8354, %v10765_v16  }
0x17f1   :  { %3568 = vperm.xlu1 %8355, %v10769_v27  }
0x17f2   :  { %3577 = vperm.xlu0 %8354, %v10771_v62  }
0x17f5   :  { %3574 = vperm.xlu1 %8355, %v10775_v61  }
0x17f6   :  { %3583 = vperm.xlu0 %8354, %v10777_v17  }
0x17f9   :  { %3580 = vperm.xlu1 %8355, %v10781_v0  }
0x17fd   :  { %3586 = vperm.xlu1 %8355, %v10784_v8  }
0x185c   :  { %v3542_v14 = vpop.permute.xlu1 %3541 }
0x185d   :  { %v3545_v44 = vpop.permute.xlu0 %3544  ;;  %v3591_v22 = vrot.slane %v3542_v14, %v9587_v36 }
0x185e   :  { %v3595_v11 = vrot.slane %v3545_v44, %v9590_v37 }
0x1860   :  { %v3548_v53 = vpop.permute.xlu1 %3547  ;;  %v3596_v14 = vsel %vm482_vm1, %v3595_v11, %v3591_v22 }
0x1861   :  { %v3554_v21 = vpop.permute.xlu0 %3553  ;;  %v3600_v45 = vrot.slane %v3548_v53, %v9587_v36 }
0x1862   :  { %v3609_v55 = vrot.slane %v3554_v21, %v9587_v36 }
0x1864   :  { %v3551_v29 = vpop.permute.xlu1 %3550 }
0x1865   :  { %v3560_v57 = vpop.permute.xlu0 %3559  ;;  %v3604_v26 = vrot.slane %v3551_v29, %v9590_v37 }
0x1866   :  { %v3618_v41 = vrot.slane %v3560_v57, %v9587_v36 }
0x1867   :  { %v3605_v28 = vsel %vm482_vm1, %v3604_v26, %v3600_v45 }
0x1868   :  { %v3557_v40 = vpop.permute.xlu1 %3556 }
0x1869   :  { %v3566_v54 = vpop.permute.xlu0 %3565  ;;  %v3613_v24 = vrot.slane %v3557_v40, %v9590_v37 }
0x186a   :  { %v3627_v40 = vrot.slane %v3566_v54, %v9587_v36 }
0x186b   :  { %v3614_v44 = vsel %vm482_vm1, %v3613_v24, %v3609_v55 }
0x186c   :  { %v3563_v56 = vpop.permute.xlu1 %3562 }
0x186d   :  { %v3572_v23 = vpop.permute.xlu0 %3571  ;;  %v3622_v46 = vrot.slane %v3563_v56, %v9590_v37 }
0x186e   :  { %v3636_v53 = vrot.slane %v3572_v23, %v9587_v36 }
0x186f   :  { %v3623_v56 = vsel %vm482_vm1, %v3622_v46, %v3618_v41 }
0x1870   :  { %v3569_v30 = vpop.permute.xlu1 %3568 }
0x1871   :  { %v3578_v3 = vpop.permute.xlu0 %3577  ;;  %v3631_v4 = vrot.slane %v3569_v30, %v9590_v37  ;;  %v3660_v30 = vsel %vm547_vm2, %v3605_v28, %v3596_v14 }
0x1872   :  { %v3645_v57 = vrot.slane %v3578_v3, %v9587_v36  ;;  %v3661_v54 = vsel %vm549_vm3, %v3614_v44, %v3660_v30 }
0x1873   :  { %v3632_v26 = vsel %vm482_vm1, %v3631_v4, %v3627_v40  ;;  %v3662_v45 = vsel %vm551_vm4, %v3623_v56, %v3661_v54 }
0x1874   :  { %v3575_v19 = vpop.permute.xlu1 %3574  ;;  %v3663_v22 = vsel %vm553_vm5, %v3632_v26, %v3662_v45 }
0x1875   :  { %v3640_v29 = vrot.slane %v3575_v19, %v9590_v37  ;;  %v3584_v19 = vpop.permute.xlu0 %3583 }
0x1877   :  { %v3641_v24 = vsel %vm482_vm1, %v3640_v29, %v3636_v53 }
0x1878   :  { %v3581_v15 = vpop.permute.xlu1 %3580  ;;  %v3664_v3 = vsel %vm555_vm6, %v3641_v24, %v3663_v22 }
0x1879   :  { %v3649_v21 = vrot.slane %v3581_v15, %v9590_v37  ;;  %v3654_v15 = vrot.slane %v3584_v19, %v9587_v36 }
0x187b   :  { %v3650_v11 = vsel %vm482_vm1, %v3649_v21, %v3645_v57 }
0x187c   :  { %v3587_v23 = vpop.permute.xlu1 %3586  ;;  %v3665_v4 = vsel %vm557_vm7, %v3650_v11, %v3664_v3 }
0x187d   :  { %v3658_v46 = vrot.slane %v3587_v23, %v9590_v37 }
0x187f   :  { %v3659_v55 = vsel %vm482_vm1, %v3658_v46, %v3654_v15 }
0x1880   :  { %v3666_v41 = vsel %vm559_vm8, %v3659_v55, %v3665_v4  ;;  %v9023_v4 = vld [vmem:[#allocation9 + $0x18] sm:$0xff] }
0x1881   :  { %v3668_v28 = vsel %vm562_vm9, %v3666_v41, 0.0 }
0x1882   :  { %3669 = vadd.xlane.f32.xlu0 %v3668_v28  ;;  %v9024_v28 = vld [vmem:[#allocation9 + $0x28] sm:$0xff] }
0x190f   :  { %v3670_v29 = vpop.xlane.xlu0 %3669 }
0x1910   :  { %8642 = vrcp.f32 %v3670_v29 }
0x191a   :  { %v8643_v40 = vpop.eup %8642 }
0x191b   :  { %v3692_v44 = vrot.slane %v8643_v40, %v9694_v34  ;;  %v3676_v14 = vrot.slane %v8643_v40, %v9533_v25  ;;  %v3704_v21 = vrot.slane %v8643_v40, %v9717_v7  ;;  %v3680_v26 = vrot.slane %v8643_v40, %v9700_v52 }
0x191d   :  { %v3721_v53 = vmul.f32 %v10758_v31, %v3692_v44  ;;  %v3713_v56 = vmul.f32 %v10732_v6, %v3676_v14  ;;  %v3727_v30 = vmul.f32 %v10777_v17, %v3704_v21  ;;  %v3714_v57 = vmul.f32 %v10734_v47, %v3676_v14 }
0x191e   :  { %v3715_v19 = vmul.f32 %v10741_v2, %v3680_v26  ;;  %v3716_v54 = vmul.f32 %v10749_v58, %v3680_v26  ;;  %v3684_v31 = vrot.slane %v8643_v40, %v9725_v39  ;;  %v3688_v17 = vrot.slane %v8643_v40, %v9691_v33 }
0x191f   :  { %3771 = vperm.xlu0 %8354, %v3721_v53   ;;  %3731 = vperm.xlu1 %8355, %v3713_v56   ;;  %v3722_v2 = vmul.f32 %v10769_v27, %v3692_v44  ;;  %v3696_v58 = vrot.slane %v8643_v40, %v9697_v35  ;;  %v9027_v53 = vld [vmem:[#allocation9 + $0x38] sm:$0xff]  ;;  %v9028_v56 = vld [vmem:[#allocation9 + $0x20] sm:$0xff] }
0x1920   :  { %v3717_v6 = vmul.f32 %v10743_v1, %v3684_v31  ;;  %v3718_v24 = vmul.f32 %v10756_v60, %v3684_v31  ;;  %v3719_v47 = vmul.f32 %v10751_v42, %v3688_v17  ;;  %v3720_v45 = vmul.f32 %v10763_v12, %v3688_v17  ;;  %v9032_v17 = vld [vmem:[#allocation9 + $0x40] sm:$0xff] }
0x1921   :  { %v3723_v11 = vmul.f32 %v10765_v16, %v3696_v58  ;;  %v3724_v1 = vmul.f32 %v10775_v61, %v3696_v58  ;;  %v3700_v60 = vrot.slane %v8643_v40, %v9706_v59  ;;  %v3728_v12 = vmul.f32 %v10784_v8, %v3704_v21  ;;  %v9025_v40 = vld [vmem:[#allocation9 + $0x8] sm:$0xff] }
0x1923   :  { %3801 = vperm.xlu0 %8354, %v3727_v30   ;;  %3736 = vperm.xlu1 %8355, %v3714_v57   ;;  %v3725_v23 = vmul.f32 %v10771_v62, %v3700_v60  ;;  %v3726_v42 = vmul.f32 %v10781_v0, %v3700_v60  ;;  %v9026_v0 = vld [vmem:[#allocation9 + $0x10] sm:$0xff]  ;;  %v9029_v57 = vld [vmem:[#allocation9] sm:$0xff] }
0x1927   :  { %3741 = vperm.xlu1 %8355, %v3715_v19  }
0x192b   :  { %3746 = vperm.xlu1 %8355, %v3716_v54   ;;  %v9030_v54 = vld [vmem:[#allocation9 + $0x30] sm:$0xff] }
0x192f   :  { %3751 = vperm.xlu1 %8355, %v3717_v6   ;;  %v9031_v6 = vld [vmem:[#allocation9 + $0x48] sm:$0xff] }
0x1933   :  { %3756 = vperm.xlu1 %8355, %v3718_v24  }
0x1937   :  { %3761 = vperm.xlu1 %8355, %v3719_v47  }
0x193b   :  { %3766 = vperm.xlu1 %8355, %v3720_v45  }
0x193f   :  { %3776 = vperm.xlu1 %8355, %v3722_v2  }
0x1943   :  { %3781 = vperm.xlu1 %8355, %v3723_v11  }
0x1947   :  { %3786 = vperm.xlu1 %8355, %v3724_v1  }
0x194b   :  { %3791 = vperm.xlu1 %8355, %v3725_v23  }
0x194f   :  { %3796 = vperm.xlu1 %8355, %v3726_v42  }
0x1953   :  { %3806 = vperm.xlu1 %8355, %v3728_v12  }
0x199e   :  { %v3732_v27 = vpop.permute.xlu1 %3731  ;;  %v3772_v62 = vpop.permute.xlu0 %3771 }
0x199f   :  { %v3809_v26 = vmul.f32 %v9029_v57, %v3732_v27  ;;  %v3817_v47 = vmul.f32 %v9032_v17, %v3772_v62 }
0x19a1   :  { %v3825_v12 = vsel %vm163_vm0, %v3809_v26, 0.0 }
0x19a2   :  { %v3737_v22 = vpop.permute.xlu1 %3736 }
0x19a3   :  { %v3810_v44 = vmul.f32 %v9025_v40, %v3737_v22 }
0x19a5   :  { %v3826_v2 = vsel %vm163_vm0, %v3810_v44, 0.0 }
0x19a6   :  { %v3742_v15 = vpop.permute.xlu1 %3741 }
0x19a7   :  { %v3811_v14 = vmul.f32 %v9026_v0, %v3742_v15  ;;  %v3861_v15 = vsel %vm163_vm0, %v3817_v47, 0.0 }
0x19a9   :  { %v3834_v58 = vsel %vm163_vm0, %v3811_v14, 0.0 }
0x19aa   :  { %v3747_v46 = vpop.permute.xlu1 %3746 }
0x19ab   :  { %v3812_v41 = vmul.f32 %v9023_v4, %v3747_v46  ;;  %v3827_v46 = vadd.f32 %v3826_v2, %v3825_v12 }
0x19ad   :  { %v3835_v19 = vsel %vm163_vm0, %v3812_v41, 0.0  ;;  %v3828_v40 = vrot.slane %v3827_v46, 4 }
0x19ae   :  { %v3752_v16 = vpop.permute.xlu1 %3751  ;;  %v3836_v1 = vadd.f32 %v3835_v19, %v3834_v58  ;;  %v9036_v58 = vld [vmem:[#allocation9 + $0x68] sm:$0xff] }
0x19af   :  { %v3813_v21 = vmul.f32 %v9028_v56, %v3752_v16  ;;  %v3829_v57 = vadd.f32 %v3828_v40, %v3827_v46 }
0x19b0   :  { %v3837_v4 = vrot.slane %v3836_v1, 4 }
0x19b1   :  { %v3843_v60 = vsel %vm163_vm0, %v3813_v21, 0.0 }
0x19b2   :  { %v3757_v3 = vpop.permute.xlu1 %3756 }
0x19b3   :  { %v3814_v29 = vmul.f32 %v9024_v28, %v3757_v3 }
0x19b5   :  { %v3844_v45 = vsel %vm163_vm0, %v3814_v29, 0.0  ;;  %v9034_v29 = vld [vmem:[#allocation9 + $0x58] sm:$0xff] }
0x19b6   :  { %v3762_v55 = vpop.permute.xlu1 %3761  ;;  %v3845_v27 = vadd.f32 %v3844_v45, %v3843_v60  ;;  %v3830_v60 = vrot.slane %v3829_v57, 2 }
0x19b7   :  { %v3815_v31 = vmul.f32 %v9030_v54, %v3762_v55  ;;  %v9033_v55 = vld [vmem:[#allocation9 + $0x50] sm:$0xff] }
0x19b8   :  { %v3846_v28 = vrot.slane %v3845_v27, 4 }
0x19b9   :  { %v3852_v22 = vsel %vm163_vm0, %v3815_v31, 0.0  ;;  %v9035_v31 = vld [vmem:[#allocation9 + $0x60] sm:$0xff] }
0x19ba   :  { %v3767_v61 = vpop.permute.xlu1 %3766 }
0x19bb   :  { %v3816_v8 = vmul.f32 %v9027_v53, %v3767_v61 }
0x19bd   :  { %v3853_v11 = vsel %vm163_vm0, %v3816_v8, 0.0  ;;  %v3838_v8 = vadd.f32 %v3837_v4, %v3836_v1 }
0x19be   :  { %v3777_v30 = vpop.permute.xlu1 %3776  ;;  %v3854_v16 = vadd.f32 %v3853_v11, %v3852_v22 }
0x19bf   :  { %v3818_v24 = vmul.f32 %v9031_v6, %v3777_v30  ;;  %v3847_v30 = vadd.f32 %v3846_v28, %v3845_v27  ;;  %v3839_v17 = vrot.slane %v3838_v8, 2 }
0x19c0   :  { %v3855_v44 = vrot.slane %v3854_v16, 4 }
0x19c1   :  { %v3862_v23 = vsel %vm163_vm0, %v3818_v24, 0.0  ;;  %v3802_v24 = vpop.permute.xlu0 %3801  ;;  %v3848_v2 = vrot.slane %v3847_v30, 2 }
0x19c2   :  { %v3782_v42 = vpop.permute.xlu1 %3781  ;;  %v3863_v3 = vadd.f32 %v3862_v23, %v3861_v15  ;;  %v3856_v26 = vadd.f32 %v3855_v44, %v3854_v16  ;;  %v3840_v15 = vadd.f32 %v3839_v17, %v3838_v8 }
0x19c3   :  { %v3819_v61 = vmul.f32 %v9033_v55, %v3782_v42  ;;  %v9037_v42 = vld [vmem:[#allocation9 + $0x70] sm:$0xff]  ;;  %v3849_v55 = vadd.f32 %v3848_v2, %v3847_v30 }
0x19c4   :  { %v3864_v0 = vrot.slane %v3863_v3, 4  ;;  %v3857_v23 = vrot.slane %v3856_v26, 2  ;;  %v3823_v1 = vmul.f32 %v9037_v42, %v3802_v24 }
0x19c5   :  { %v3870_v14 = vsel %vm163_vm0, %v3819_v61, 0.0  ;;  %v9038_v61 = vld [vmem:[#allocation9 + $0x78] sm:$0xff] }
0x19c6   :  { %v3787_v41 = vpop.permute.xlu1 %3786  ;;  %v3865_v54 = vadd.f32 %v3864_v0, %v3863_v3  ;;  %v3858_v28 = vadd.f32 %v3857_v23, %v3856_v26  ;;  %v3841_v0 = vrot.slane %v3840_v15, 1 }
0x19c7   :  { %v3820_v62 = vmul.f32 %v9034_v29, %v3787_v41  ;;  %v3831_v41 = vadd.f32 %v3830_v60, %v3829_v57 }
0x19c8   :  { %v3866_v12 = vrot.slane %v3865_v54, 2  ;;  %v3842_v24 = vadd.f32 %v3841_v0, %v3840_v15 }
0x19c9   :  { %v3871_v53 = vsel %vm163_vm0, %v3820_v62, 0.0  ;;  %v3888_v62 = vsel %vm163_vm0, %v3823_v1, 0.0  ;;  %v3832_v8 = vrot.slane %v3831_v41, 1 }
0x19ca   :  { %v3872_v56 = vadd.f32 %v3871_v53, %v3870_v14  ;;  %v3792_v21 = vpop.permute.xlu1 %3791  ;;  %v3867_v40 = vadd.f32 %v3866_v12, %v3865_v54 }
0x19cb   :  { %v3821_v6 = vmul.f32 %v9035_v31, %v3792_v21  ;;  %v3850_v21 = vrot.slane %v3849_v55, 1  ;;  %v3833_v2 = vadd.f32 %v3832_v8, %v3831_v41 }
0x19cc   :  { %v3873_v19 = vrot.slane %v3872_v56, 4  ;;  %v3868_v30 = vrot.slane %v3867_v40, 1 }
0x19cd   :  { %v3879_v27 = vsel %vm163_vm0, %v3821_v6, 0.0 }
0x19ce   :  { %v3874_v47 = vadd.f32 %v3873_v19, %v3872_v56  ;;  %v3797_v45 = vpop.permute.xlu1 %3796  ;;  %v3859_v19 = vrot.slane %v3858_v28, 1  ;;  %v3869_v60 = vadd.f32 %v3868_v30, %v3867_v40 }
0x19cf   :  { %v3822_v11 = vmul.f32 %v9036_v58, %v3797_v45  ;;  %v3851_v45 = vadd.f32 %v3850_v21, %v3849_v55 }
0x19d0   :  { %v3875_v46 = vrot.slane %v3874_v47, 2  ;;  %v3860_v58 = vadd.f32 %v3859_v19, %v3858_v28 }
0x19d1   :  { %v3880_v22 = vsel %vm163_vm0, %v3822_v11, 0.0 }
0x19d2   :  { %v3881_v16 = vadd.f32 %v3880_v22, %v3879_v27  ;;  %v3807_v3 = vpop.permute.xlu1 %3806  ;;  %v3876_v14 = vadd.f32 %v3875_v46, %v3874_v47  ;;  %v3907_v47 = vsel %vm547_vm2, %v3842_v24, %v3833_v2 }
0x19d3   :  { %v3824_v4 = vmul.f32 %v9038_v61, %v3807_v3  ;;  %v3908_v1 = vsel %vm549_vm3, %v3851_v45, %v3907_v47  ;;  %v3898_v61 = vld [vmem:[#allocation4 + $0x18] sm:$0xff] }
0x19d4   :  { %v3882_v29 = vrot.slane %v3881_v16, 4  ;;  %v3877_v17 = vrot.slane %v3876_v14, 1  ;;  %v3909_v22 = vsel %vm551_vm4, %v3860_v58, %v3908_v1 }
0x19d5   :  { %v3889_v44 = vsel %vm163_vm0, %v3824_v4, 0.0  ;;  %v3910_v15 = vsel %vm553_vm5, %v3869_v60, %v3909_v22  ;;  %v9040_v22 = vld [vmem:[#allocation7 + $0x8] sm:$0xff] }
0x19d6   :  { %v3883_v53 = vadd.f32 %v3882_v29, %v3881_v16  ;;  %v3890_v56 = vadd.f32 %v3889_v44, %v3888_v62  ;;  %v3878_v23 = vadd.f32 %v3877_v17, %v3876_v14 }
0x19d8   :  { %v3884_v31 = vrot.slane %v3883_v53, 2  ;;  %v3891_v6 = vrot.slane %v3890_v56, 4  ;;  %v3911_v16 = vsel %vm555_vm6, %v3878_v23, %v3910_v15 }
0x19da   :  { %v3885_v57 = vadd.f32 %v3884_v31, %v3883_v53  ;;  %v3892_v26 = vadd.f32 %v3891_v6, %v3890_v56 }
0x19dc   :  { %v3886_v54 = vrot.slane %v3885_v57, 1  ;;  %v3893_v11 = vrot.slane %v3892_v26, 2 }
0x19de   :  { %v3894_v42 = vadd.f32 %v3893_v11, %v3892_v26  ;;  %v3887_v12 = vadd.f32 %v3886_v54, %v3885_v57 }
0x19e0   :  { %v3895_v27 = vrot.slane %v3894_v42, 1  ;;  %v3912_v3 = vsel %vm557_vm7, %v3887_v12, %v3911_v16 }
0x19e2   :  { %v3896_v46 = vadd.f32 %v3895_v27, %v3894_v42  ;;  %v9039_v42 = vld [vmem:[#allocation7] sm:$0xff] }
0x19e4   :  { %v3913_v55 = vsel %vm559_vm8, %v3896_v46, %v3912_v3  ;;  %v9041_v46 = vld [vmem:[#allocation7 + $0x10] sm:$0xff]  ;;  %v9042_v3 = vld [vmem:[#allocation7 + $0x18] sm:$0xff] }
0x19e5   :  { %8150 = vmatmul.mubr.msk.f32.vlgmr.msra.gmra.mrb[8].mxu1 %vm163_vm0, %v3913_v55 }
0x19e6   :  { %8282 = vmatpush3.bf16.msra.mxu1 %v9844_v50  ;;  %8160 = vmatprep.mubr.msk.f32.mxu1 %vm9338_vm10, %v12226_v49 }
0x19e7   :  { %8283 = vmatprep.subr.bf16.mxu1 %v12225_v48 }
0x19ea   :  { %8285 = vmatpush3.bf16.msra.mxu1 %v9849_v32 }
0x19eb   :  { %8294 = vmatprep.subr.bf16.mxu1 %v12225_v48 }
0x1ab8   :  { %v3982_v4 = vpop.f32.mrb[8].mxu1 }
0x1ab9   :  { %v3986_v41 = vadd.f32 %v3982_v4, %v3898_v61  ;;  %v8151_v28 = vpop.f32.mrb[9].mxu1  ;;  %v9043_v4 = vld [vmem:[#allocation7 + $0x20] sm:$0xff] }
0x1abb   :  { %v3987_v29 = vadd.f32 %v3986_v41, %v10556_v51 }
0x1abd   :  { %8644 = vtanh.f32 %v3987_v29  ;;  %v8034_v40 = vmul.f32 -1.442695, %v3987_v29 }
0x1abf   :  { %8646 = vpow2.f32 %v8034_v40 }
0x1ac7   :  { %v8645_v62 = vpop.eup %8644 }
0x1ac8   :  { %3997 = vrot.lane.b32.xlu0 %v8645_v62, %s9339_s18  ;;  %v9044_v62 = vld [vmem:[#allocation7 + $0x28] sm:$0xff] }
0x1ac9   :  { %v8647_v44 = vpop.eup %8646 }
0x1aca   :  { %v3991_v0 = vadd.f32 1.0, %v8647_v44  ;;  %v9045_v44 = vld [vmem:[#allocation7 + $0x40] sm:$0xff] }
0x1acc   :  { %8648 = vrcp.f32 %v3991_v0 }
0x1ad6   :  { %v8649_v14 = vpop.eup %8648 }
0x1ad7   :  { %v3995_v21 = vmul.f32 %v8649_v14, %v10544_v63 }
0x1b3a   :  { %v3998_v53 = vpop.permute.xlu0 %3997 }
0x1b3b   :  { %v4000_v56 = vmul.f32 %v8649_v14, %v3998_v53 }
0x1b3d   :  { %4002 = vrot.lane.b32.xlu1 %v4000_v56, %s9340_s19  ;;  %v9046_v56 = vld [vmem:[#allocation7 + $0x30] sm:$0xff] }
0x1baf   :  { %v4003_v8 = vpop.permute.xlu1 %4002 }
0x1bb0   :  { %v10877_v19 = vadd.f32 %v4003_v8, %v3995_v21 }
0x1bb2   :  { %8650 = vtanh.f32 %v10877_v19 }
0x1bbc   :  { %v8651_v51 = vpop.eup %8650 }
0x1bbd   :  { %4008 = vrot.lane.b32.xlu0 %v8651_v51, %s9339_s18  ;;  %v10903_v51 = vld [vmem:[#allocation7 + $0x48] sm:$0xff] }
0x1c2f   :  { %v4009_v31 = vpop.permute.xlu0 %4008 }
0x1c30   :  { %v4011_v6 = vmul.f32 %v8649_v14, %v4009_v31 }
0x1c32   :  { %4013 = vrot.lane.b32.xlu1 %v4011_v6, %s9340_s19 }
0x1ca4   :  { %v4014_v30 = vpop.permute.xlu1 %4013 }
0x1ca5   :  { %4017 = vst.msk [vmem:[#allocation2 + $0x18] sm:$0xff] %vm163_vm0, %v4014_v30  ;;  %8035 = vmatmul.mubr.msk.f32.vlgmr.msra.gmra.mrb[6].mxu0 %vm163_vm0, %v4014_v30 }
0x1ca6   :  { %8289 = vmatpush1.bf16.msra.mxu0 %v9507_v9  ;;  %5041 = vmatprep.mubr.f32.mxu0 %v12226_v49 }
0x1ca7   :  { %8291 = vmatprep.subr.bf16.mxu0 %v9509_v10 }
0x1caa   :  { %8293 = vmatpush1.bf16.msra.mxu0 %v9514_v13 }
0x1cab   :  { %8301 = vmatprep.subr.bf16.mxu0 %v9505_v5 }
0x1d78   :  { %v10889_v63 = vpop.f32.mrb[6].mxu0 }
0x1d79   :  { %v4088_v24 = vpop.f32.mrb[7].mxu0 }
0x1d7a   :  { %v4092_v17 = vcombine.high %v4088_v24, %v4088_v24  ;;  %v4099_v57 = vrot.slane %v4088_v24, %v9527_v20 }
0x1d7c   :  { %v4107_v26 = vcombine.high %v4099_v57, %v4099_v57  ;;  %v4115_v45 = vrot.slane %v4099_v57, %v9527_v20  ;;  %v4106_v2 = vrot.slane %v4092_v17, %v9527_v20  ;;  %v10911_v57 = vld [vmem:[%s12208_s4] ss:$0 sm:$0xff] }
0x1d7e   :  { %v4129_v58 = vrot.slane %v4107_v26, %v9527_v20  ;;  %v4137_v54 = vcombine.high %v4115_v45, %v4115_v45  ;;  %v4144_v11 = vrot.slane %v4115_v45, %v9533_v25  ;;  %v4122_v47 = vrot.slane %v4106_v2, %v9527_v20 }
0x1d7f   :  { %v4108_v12 = vcombine.high %v4106_v2, %v4106_v2 }
0x1d80   :  { %v4148_v60 = vrot.slane %v4129_v58, %v9533_v25  ;;  %v4152_v23 = vrot.slane %v4137_v54, %v9533_v25  ;;  %v4181_v1 = vadd.f32 %v9039_v42, %v4144_v11  ;;  %v4139_v27 = vcombine.high %v4129_v58, %v4129_v58  ;;  %v10915_v58 = vld [vmem:[#allocation7 + $0x38] sm:$0xff] }
0x1d81   :  { %v4182_v15 = vadd.f32 %v9040_v22, %v4144_v11  ;;  %v4160_v61 = vrot.slane %v4122_v47, %v9533_v25  ;;  %v4136_v28 = vrot.slane %v4108_v12, %v9527_v20  ;;  %v4138_v14 = vcombine.high %v4122_v47, %v4122_v47 }
0x1d82   :  { %v4183_v16 = vadd.f32 %v9041_v46, %v4148_v60  ;;  %v4184_v55 = vadd.f32 %v9042_v3, %v4148_v60  ;;  %v4185_v41 = vadd.f32 %v9043_v4, %v4152_v23  ;;  %8652 = vtanh.f32 %v4181_v1 }
0x1d83   :  { %v4156_v29 = vrot.slane %v4139_v27, %v9533_v25  ;;  %8654 = vtanh.f32 %v4182_v15  ;;  %v4186_v40 = vadd.f32 %v9044_v62, %v4152_v23  ;;  %v4189_v0 = vadd.f32 %v9045_v44, %v4160_v61  ;;  %v10924_v27 = vld [vmem:[#allocation7 + $0x58] sm:$0xff] }
0x1d84   :  { %8656 = vtanh.f32 %v4183_v16  ;;  %v4164_v53 = vrot.slane %v4136_v28, %v9533_v25  ;;  %v4140_v8 = vcombine.high %v4136_v28, %v4136_v28  ;;  %v4190_v31 = vadd.f32 %v10903_v51, %v4160_v61 }
0x1d85   :  { %8658 = vtanh.f32 %v4184_v55  ;;  %v4187_v21 = vadd.f32 %v9046_v56, %v4156_v29  ;;  %v4168_v6 = vrot.slane %v4138_v14, %v9533_v25  ;;  %v4188_v54 = vadd.f32 %v10915_v58, %v4156_v29  ;;  %v10939_v14 = vld [vmem:[#allocation7 + $0x78] sm:$0xff] }
0x1d86   :  { %8660 = vtanh.f32 %v4185_v41  ;;  %v4191_v30 = vadd.f32 %v10581_v18, %v4164_v53  ;;  %v4172_v2 = vrot.slane %v4140_v8, %v9533_v25  ;;  %v4192_v22 = vadd.f32 %v10924_v27, %v4164_v53  ;;  %v10932_v41 = vld [vmem:[#allocation7 + $0x68] sm:$0xff]  ;;  %12228 = vst [vmem:[#allocation22_spill] sm:$0xff] %v10939_v14 }
0x1d87   :  { %8662 = vtanh.f32 %v4186_v40  ;;  %v4193_v60 = vadd.f32 %v10590_v38, %v4168_v6  ;;  %v4194_v28 = vadd.f32 %v10932_v41, %v4168_v6 }
0x1d88   :  { %8664 = vtanh.f32 %v4189_v0  ;;  %v4195_v38 = vadd.f32 %v10598_v43, %v4172_v2  ;;  %v4196_v53 = vadd.f32 %v10939_v14, %v4172_v2 }
0x1d89   :  { %8666 = vtanh.f32 %v4187_v21 }
0x1d8a   :  { %8668 = vtanh.f32 %v4190_v31 }
0x1d8b   :  { %8670 = vtanh.f32 %v4191_v30 }
0x1d8c   :  { %v8653_v24 = vpop.eup %8652  ;;  %8672 = vtanh.f32 %v4188_v54 }
0x1d8d   :  { %v8655_v17 = vpop.eup %8654  ;;  %v4213_v26 = vmul.f32 %v10911_v57, %v8653_v24  ;;  %8674 = vtanh.f32 %v4193_v60 }
0x1d8e   :  { %v8657_v45 = vpop.eup %8656  ;;  %v4214_v18 = vmul.f32 %v10911_v57, %v8655_v17  ;;  %8676 = vtanh.f32 %v4192_v22 }
0x1d8f   :  { %v8659_v11 = vpop.eup %8658  ;;  %v4229_v47 = vsel %vm163_vm0, %v4213_v26, 0.0  ;;  %v4215_v23 = vmul.f32 %v10911_v57, %v8657_v45  ;;  %8678 = vtanh.f32 %v4195_v38 }
0x1d90   :  { %v8661_v42 = vpop.eup %8660  ;;  %v4232_v1 = vsel %vm163_vm0, %v4214_v18, 0.0  ;;  %4230 = vadd.xlane.f32.xlu0 %v4229_v47  ;;  %v4216_v16 = vmul.f32 %v10911_v57, %v8659_v11  ;;  %8680 = vtanh.f32 %v4194_v28 }
0x1d91   :  { %4233 = vadd.xlane.f32.xlu1 %v4232_v1  ;;  %v4217_v12 = vmul.f32 %v10911_v57, %v8661_v42  ;;  %v8663_v15 = vpop.eup %8662  ;;  %v4235_v46 = vsel %vm163_vm0, %v4215_v23, 0.0  ;;  %8682 = vtanh.f32 %v4196_v53 }
0x1d92   :  { %v8665_v3 = vpop.eup %8664  ;;  %v4238_v43 = vsel %vm163_vm0, %v4216_v16, 0.0  ;;  %v4218_v29 = vmul.f32 %v10911_v57, %v8663_v15 }
0x1d93   :  { %v4241_v55 = vsel %vm163_vm0, %v4217_v12, 0.0  ;;  %v8667_v61 = vpop.eup %8666  ;;  %v4221_v4 = vmul.f32 %v10911_v57, %v8665_v3 }
0x1d94   :  { %4236 = vadd.xlane.f32.xlu0 %v4235_v46  ;;  %v8669_v62 = vpop.eup %8668  ;;  %v4219_v44 = vmul.f32 %v10911_v57, %v8667_v61  ;;  %v4244_v56 = vsel %vm163_vm0, %v4218_v29, 0.0 }
0x1d95   :  { %4242 = vadd.xlane.f32.xlu1 %v4241_v55  ;;  %v4253_v40 = vsel %vm163_vm0, %v4221_v4, 0.0  ;;  %v8671_v0 = vpop.eup %8670  ;;  %v4222_v21 = vmul.f32 %v10911_v57, %v8669_v62 }
0x1d96   :  { %v8673_v8 = vpop.eup %8672  ;;  %v4247_v31 = vsel %vm163_vm0, %v4219_v44, 0.0  ;;  %v4223_v6 = vmul.f32 %v10911_v57, %v8671_v0  ;;  %v12229_v44 = vld [vmem:[#allocation21_spill] sm:$0xff] }
0x1d97   :  { %v8675_v30 = vpop.eup %8674  ;;  %v4256_v24 = vsel %vm163_vm0, %v4222_v21, 0.0  ;;  %v4220_v17 = vmul.f32 %v10911_v57, %v8673_v8 }
0x1d98   :  { %4239 = vadd.xlane.f32.xlu0 %v4238_v43  ;;  %v8677_v26 = vpop.eup %8676  ;;  %v4259_v45 = vsel %vm163_vm0, %v4223_v6, 0.0  ;;  %v4225_v2 = vmul.f32 %v10911_v57, %v8675_v30 }
0x1d99   :  { %4254 = vadd.xlane.f32.xlu1 %v4253_v40  ;;  %v8679_v54 = vpop.eup %8678  ;;  %v4250_v18 = vsel %vm163_vm0, %v4220_v17, 0.0  ;;  %v4224_v11 = vmul.f32 %v10911_v57, %v8677_v26 }
0x1d9a   :  { %v8681_v60 = vpop.eup %8680  ;;  %v4265_v47 = vsel %vm163_vm0, %v4225_v2, 0.0  ;;  %v4227_v23 = vmul.f32 %v10911_v57, %v8679_v54 }
0x1d9b   :  { %v4262_v42 = vsel %vm163_vm0, %v4224_v11, 0.0  ;;  %v4226_v1 = vmul.f32 %v10911_v57, %v8681_v60  ;;  %v8683_v12 = vpop.eup %8682 }
0x1d9c   :  { %4245 = vadd.xlane.f32.xlu0 %v4244_v56  ;;  %v4271_v22 = vsel %vm163_vm0, %v4227_v23, 0.0  ;;  %v4228_v38 = vmul.f32 %v10911_v57, %v8683_v12 }
0x1d9d   :  { %4248 = vadd.xlane.f32.xlu1 %v4247_v31  ;;  %v4268_v15 = vsel %vm163_vm0, %v4226_v1, 0.0 }
0x1d9e   :  { %v4274_v46 = vsel %vm163_vm0, %v4228_v38, 0.0 }
0x1da0   :  { %4257 = vadd.xlane.f32.xlu0 %v4256_v24 }
0x1da1   :  { %4260 = vadd.xlane.f32.xlu1 %v4259_v45 }
0x1da4   :  { %4251 = vadd.xlane.f32.xlu0 %v4250_v18 }
0x1da5   :  { %4266 = vadd.xlane.f32.xlu1 %v4265_v47 }
0x1da8   :  { %4263 = vadd.xlane.f32.xlu0 %v4262_v42 }
0x1da9   :  { %4272 = vadd.xlane.f32.xlu1 %v4271_v22 }
0x1dac   :  { %4269 = vadd.xlane.f32.xlu0 %v4268_v15 }
0x1db0   :  { %4275 = vadd.xlane.f32.xlu0 %v4274_v46 }
0x1e1d   :  { %v4231_v16 = vpop.xlane.xlu0 %4230 }
0x1e1e   :  { %v4234_v3 = vpop.xlane.xlu1 %4233  ;;  %v4277_v53 = vadd.f32 %v4231_v16, %v12229_v44 }
0x1e1f   :  { %v4278_v21 = vadd.f32 %v4234_v3, %v12229_v44 }
0x1e20   :  { %v4312_v26 = vrot.slane %v4277_v53, %v9587_v36 }
0x1e21   :  { %v4237_v55 = vpop.xlane.xlu0 %4236  ;;  %v4316_v54 = vrot.slane %v4278_v21, %v9590_v37 }
0x1e22   :  { %v4243_v61 = vpop.xlane.xlu1 %4242  ;;  %v10969_v8 = vadd.f32 %v4237_v55, %v12229_v44 }
0x1e23   :  { %v10975_v6 = vadd.f32 %v4243_v61, %v12229_v44  ;;  %v4317_v3 = vsel %vm482_vm1, %v4316_v54, %v4312_v26 }
0x1e24   :  { %v4321_v18 = vrot.slane %v10969_v8, %v9587_v36 }
0x1e25   :  { %v4240_v4 = vpop.xlane.xlu0 %4239  ;;  %v4330_v47 = vrot.slane %v10975_v6, %v9587_v36 }
0x1e26   :  { %v4255_v28 = vpop.xlane.xlu1 %4254  ;;  %v10961_v0 = vadd.f32 %v4240_v4, %v12229_v44 }
0x1e27   :  { %v11005_v22 = vadd.f32 %v4255_v28, %v12229_v44 }
0x1e28   :  { %v4325_v24 = vrot.slane %v10961_v0, %v9590_v37 }
0x1e29   :  { %v4246_v43 = vpop.xlane.xlu0 %4245 }
0x1e2a   :  { %v4249_v29 = vpop.xlane.xlu1 %4248  ;;  %v10965_v57 = vadd.f32 %v4246_v43, %v12229_v44  ;;  %v4326_v42 = vsel %vm482_vm1, %v4325_v24, %v4321_v18 }
0x1e2b   :  { %v10980_v17 = vadd.f32 %v4249_v29, %v12229_v44  ;;  %v4381_v28 = vsel %vm547_vm2, %v4326_v42, %v4317_v3 }
0x1e2c   :  { %v4334_v45 = vrot.slane %v10965_v57, %v9590_v37 }
0x1e2d   :  { %v4258_v62 = vpop.xlane.xlu0 %4257  ;;  %v4339_v1 = vrot.slane %v10980_v17, %v9587_v36 }
0x1e2e   :  { %v4261_v40 = vpop.xlane.xlu1 %4260  ;;  %v10996_v23 = vadd.f32 %v4258_v62, %v12229_v44  ;;  %v4335_v15 = vsel %vm482_vm1, %v4334_v45, %v4330_v47 }
0x1e2f   :  { %v11002_v12 = vadd.f32 %v4261_v40, %v12229_v44  ;;  %v4382_v29 = vsel %vm549_vm3, %v4335_v15, %v4381_v28 }
0x1e30   :  { %v4352_v43 = vrot.slane %v10996_v23, %v9590_v37 }
0x1e31   :  { %v4252_v56 = vpop.xlane.xlu0 %4251  ;;  %v4357_v62 = vrot.slane %v11002_v12, %v9587_v36 }
0x1e32   :  { %v10972_v31 = vadd.f32 %v4252_v56, %v12229_v44  ;;  %v4267_v30 = vpop.xlane.xlu1 %4266 }
0x1e33   :  { %v11009_v38 = vadd.f32 %v4267_v30, %v12229_v44  ;;  %v4348_v30 = vrot.slane %v11005_v22, %v9587_v36 }
0x1e34   :  { %v4343_v11 = vrot.slane %v10972_v31, %v9590_v37 }
0x1e35   :  { %v4264_v2 = vpop.xlane.xlu0 %4263  ;;  %v4366_v26 = vrot.slane %v11009_v38, %v9587_v36  ;;  %v4353_v18 = vsel %vm482_vm1, %v4352_v43, %v4348_v30 }
0x1e36   :  { %v10991_v60 = vadd.f32 %v4264_v2, %v12229_v44  ;;  %v4273_v46 = vpop.xlane.xlu1 %4272  ;;  %v4344_v55 = vsel %vm482_vm1, %v4343_v11, %v4339_v1 }
0x1e37   :  { %v11025_v40 = vadd.f32 %v4273_v46, %v12229_v44  ;;  %v4383_v24 = vsel %vm551_vm4, %v4344_v55, %v4382_v29 }
0x1e38   :  { %v4361_v61 = vrot.slane %v10991_v60, %v9590_v37  ;;  %v4384_v1 = vsel %vm553_vm5, %v4353_v18, %v4383_v24 }
0x1e39   :  { %v4270_v16 = vpop.xlane.xlu0 %4269  ;;  %v4375_v47 = vrot.slane %v11025_v40, %v9587_v36 }
0x1e3a   :  { %v11016_v4 = vadd.f32 %v4270_v16, %v12229_v44  ;;  %v4362_v2 = vsel %vm482_vm1, %v4361_v61, %v4357_v62 }
0x1e3b   :  { %v4385_v15 = vsel %vm555_vm6, %v4362_v2, %v4384_v1 }
0x1e3c   :  { %v4370_v56 = vrot.slane %v11016_v4, %v9590_v37 }
0x1e3d   :  { %v4276_v45 = vpop.xlane.xlu0 %4275 }
0x1e3e   :  { %v11036_v54 = vadd.f32 %v4276_v45, %v12229_v44  ;;  %v4371_v11 = vsel %vm482_vm1, %v4370_v56, %v4366_v26 }
0x1e3f   :  { %v4386_v16 = vsel %vm557_vm7, %v4371_v11, %v4385_v15 }
0x1e40   :  { %v4379_v42 = vrot.slane %v11036_v54, %v9590_v37 }
0x1e42   :  { %v4380_v46 = vsel %vm482_vm1, %v4379_v42, %v4375_v47 }
0x1e43   :  { %v4387_v3 = vsel %vm559_vm8, %v4380_v46, %v4386_v16 }
0x1e44   :  { %v4389_v55 = vsel %vm562_vm9, %v4387_v3, -inf }
0x1e45   :  { %4390 = vmax.xlane.f32.xlu1 %v4389_v55 }
0x1ed2   :  { %v4391_v61 = vpop.xlane.xlu1 %4390 }
0x1ed3   :  { %v4396_v28 = vrot.slane %v4391_v61, %v9533_v25  ;;  %v4400_v43 = vrot.slane %v4391_v61, %v9700_v52  ;;  %v4404_v56 = vrot.slane %v4391_v61, %v9725_v39  ;;  %v4408_v2 = vrot.slane %v4391_v61, %v9691_v33 }
0x1ed4   :  { %v4416_v15 = vrot.slane %v4391_v61, %v9697_v35 }
0x1ed5   :  { %v4433_v29 = vsub.f32 %v4277_v53, %v4396_v28  ;;  %v4434_v62 = vsub.f32 %v4278_v21, %v4396_v28  ;;  %v4436_v30 = vsub.f32 %v10961_v0, %v4400_v43  ;;  %v4435_v24 = vsub.f32 %v10969_v8, %v4400_v43 }
0x1ed6   :  { %v4438_v18 = vsub.f32 %v10965_v57, %v4404_v56  ;;  %v4437_v47 = vsub.f32 %v10975_v6, %v4404_v56  ;;  %v4412_v53 = vrot.slane %v4391_v61, %v9694_v34  ;;  %v4440_v21 = vsub.f32 %v10972_v31, %v4408_v2 }
0x1ed7   :  { %v4449_v26 = vmul.f32 1.442695, %v4433_v29  ;;  %v4451_v45 = vmul.f32 1.442695, %v4434_v62  ;;  %v4455_v11 = vmul.f32 1.442695, %v4436_v30  ;;  %v4439_v8 = vsub.f32 %v10980_v17, %v4408_v2 }
0x1ed8   :  { %v4453_v42 = vmul.f32 1.442695, %v4435_v24  ;;  %v4459_v0 = vmul.f32 1.442695, %v4438_v18  ;;  %v4457_v1 = vmul.f32 1.442695, %v4437_v47  ;;  %v4442_v57 = vsub.f32 %v10996_v23, %v4412_v53 }
0x1ed9   :  { %8684 = vpow2.f32 %v4449_v26  ;;  %v4463_v46 = vmul.f32 1.442695, %v4440_v21  ;;  %v4441_v6 = vsub.f32 %v11005_v22, %v4412_v53  ;;  %v4461_v16 = vmul.f32 1.442695, %v4439_v8 }
0x1eda   :  { %8686 = vpow2.f32 %v4451_v45  ;;  %v4420_v31 = vrot.slane %v4391_v61, %v9706_v59  ;;  %v4444_v17 = vsub.f32 %v10991_v60, %v4416_v15  ;;  %v4467_v28 = vmul.f32 1.442695, %v4442_v57 }
0x1edb   :  { %8688 = vpow2.f32 %v4455_v11  ;;  %v4443_v23 = vsub.f32 %v11002_v12, %v4416_v15  ;;  %v4465_v22 = vmul.f32 1.442695, %v4441_v6  ;;  %v4424_v62 = vrot.slane %v4391_v61, %v9717_v7 }
0x1edc   :  { %8690 = vpow2.f32 %v4453_v42  ;;  %v4446_v56 = vsub.f32 %v11016_v4, %v4420_v31  ;;  %v4471_v60 = vmul.f32 1.442695, %v4444_v17  ;;  %v4445_v30 = vsub.f32 %v11009_v38, %v4420_v31 }
0x1edd   :  { %8692 = vpow2.f32 %v4459_v0  ;;  %v4469_v12 = vmul.f32 1.442695, %v4443_v23  ;;  %v4448_v45 = vsub.f32 %v11036_v54, %v4424_v62  ;;  %v4447_v4 = vsub.f32 %v11025_v40, %v4424_v62 }
0x1ede   :  { %8694 = vpow2.f32 %v4457_v1  ;;  %v4475_v61 = vmul.f32 1.442695, %v4446_v56  ;;  %v4473_v2 = vmul.f32 1.442695, %v4445_v30 }
0x1edf   :  { %8696 = vpow2.f32 %v4463_v46  ;;  %v4479_v11 = vmul.f32 1.442695, %v4448_v45  ;;  %v4477_v54 = vmul.f32 1.442695, %v4447_v4 }
0x1ee0   :  { %8698 = vpow2.f32 %v4461_v16 }
0x1ee1   :  { %8700 = vpow2.f32 %v4467_v28 }
0x1ee2   :  { %8702 = vpow2.f32 %v4465_v22 }
0x1ee3   :  { %v11064_v3 = vpop.eup %8684  ;;  %8704 = vpow2.f32 %v4471_v60 }
0x1ee4   :  { %v11066_v55 = vpop.eup %8686  ;;  %4498 = vperm.xlu0 %8354, %v11064_v3   ;;  %8706 = vpow2.f32 %v4469_v12 }
0x1ee5   :  { %4501 = vperm.xlu1 %8355, %v11066_v55   ;;  %v11073_v43 = vpop.eup %8688  ;;  %8708 = vpow2.f32 %v4475_v61 }
0x1ee6   :  { %v11075_v29 = vpop.eup %8690  ;;  %8710 = vpow2.f32 %v4473_v2 }
0x1ee7   :  { %v11082_v24 = vpop.eup %8692  ;;  %8712 = vpow2.f32 %v4479_v11 }
0x1ee8   :  { %4507 = vperm.xlu0 %8354, %v11073_v43   ;;  %v11084_v26 = vpop.eup %8694  ;;  %8714 = vpow2.f32 %v4477_v54 }
0x1ee9   :  { %4504 = vperm.xlu1 %8355, %v11075_v29   ;;  %v11090_v18 = vpop.eup %8696 }
0x1eea   :  { %v11092_v38 = vpop.eup %8698 }
0x1eeb   :  { %v11096_v47 = vpop.eup %8700 }
0x1eec   :  { %4513 = vperm.xlu0 %8354, %v11082_v24   ;;  %v11098_v42 = vpop.eup %8702 }
0x1eed   :  { %4510 = vperm.xlu1 %8355, %v11084_v26   ;;  %v11102_v40 = vpop.eup %8704 }
0x1eee   :  { %v11104_v53 = vpop.eup %8706 }
0x1eef   :  { %v11108_v21 = vpop.eup %8708 }
0x1ef0   :  { %4519 = vperm.xlu0 %8354, %v11090_v18   ;;  %v11110_v0 = vpop.eup %8710 }
0x1ef1   :  { %4516 = vperm.xlu1 %8355, %v11092_v38   ;;  %v11114_v8 = vpop.eup %8712 }
0x1ef2   :  { %v8715_v1 = vpop.eup %8714 }
0x1ef4   :  { %4525 = vperm.xlu0 %8354, %v11096_v47  }
0x1ef5   :  { %4522 = vperm.xlu1 %8355, %v11098_v42  }
0x1ef8   :  { %4531 = vperm.xlu0 %8354, %v11102_v40  }
0x1ef9   :  { %4528 = vperm.xlu1 %8355, %v11104_v53  }
0x1efc   :  { %4537 = vperm.xlu0 %8354, %v11108_v21  }
0x1efd   :  { %4534 = vperm.xlu1 %8355, %v11110_v0  }
0x1f00   :  { %4543 = vperm.xlu0 %8354, %v11114_v8  }
0x1f01   :  { %4540 = vperm.xlu1 %8355, %v8715_v1  }
0x1f63   :  { %v4499_v15 = vpop.permute.xlu0 %4498 }
0x1f64   :  { %v4502_v57 = vpop.permute.xlu1 %4501  ;;  %v4548_v4 = vrot.slane %v4499_v15, %v9587_v36 }
0x1f65   :  { %v4552_v61 = vrot.slane %v4502_v57, %v9590_v37 }
0x1f67   :  { %v4508_v46 = vpop.permute.xlu0 %4507 }
0x1f68   :  { %v4505_v6 = vpop.permute.xlu1 %4504  ;;  %v4561_v56 = vrot.slane %v4508_v46, %v9590_v37 }
0x1f69   :  { %v4557_v62 = vrot.slane %v4505_v6, %v9587_v36 }
0x1f6b   :  { %v4514_v16 = vpop.permute.xlu0 %4513  ;;  %v4562_v46 = vsel %vm482_vm1, %v4561_v56, %v4557_v62 }
0x1f6c   :  { %v4511_v31 = vpop.permute.xlu1 %4510  ;;  %v4570_v12 = vrot.slane %v4514_v16, %v9590_v37 }
0x1f6d   :  { %v4566_v30 = vrot.slane %v4511_v31, %v9587_v36 }
0x1f6f   :  { %v4520_v17 = vpop.permute.xlu0 %4519  ;;  %v4571_v14 = vsel %vm482_vm1, %v4570_v12, %v4566_v30 }
0x1f70   :  { %v4517_v28 = vpop.permute.xlu1 %4516  ;;  %v4579_v11 = vrot.slane %v4520_v17, %v9590_v37 }
0x1f71   :  { %v4575_v2 = vrot.slane %v4517_v28, %v9587_v36  ;;  %v4553_v28 = vsel %vm482_vm1, %v4552_v61, %v4548_v4 }
0x1f73   :  { %v4526_v23 = vpop.permute.xlu0 %4525  ;;  %v4580_v17 = vsel %vm482_vm1, %v4579_v11, %v4575_v2 }
0x1f74   :  { %v4523_v22 = vpop.permute.xlu1 %4522  ;;  %v4588_v6 = vrot.slane %v4526_v23, %v9590_v37  ;;  %v4617_v23 = vsel %vm547_vm2, %v4562_v46, %v4553_v28 }
0x1f75   :  { %v4584_v54 = vrot.slane %v4523_v22, %v9587_v36  ;;  %v4618_v56 = vsel %vm549_vm3, %v4571_v14, %v4617_v23 }
0x1f76   :  { %v4619_v30 = vsel %vm551_vm4, %v4580_v17, %v4618_v56 }
0x1f77   :  { %v4532_v60 = vpop.permute.xlu0 %4531  ;;  %v4589_v62 = vsel %vm482_vm1, %v4588_v6, %v4584_v54 }
0x1f78   :  { %v4529_v45 = vpop.permute.xlu1 %4528  ;;  %v4597_v31 = vrot.slane %v4532_v60, %v9590_v37  ;;  %v4620_v4 = vsel %vm553_vm5, %v4589_v62, %v4619_v30 }
0x1f79   :  { %v4593_v44 = vrot.slane %v4529_v45, %v9587_v36 }
0x1f7b   :  { %v4538_v16 = vpop.permute.xlu0 %4537  ;;  %v4598_v60 = vsel %vm482_vm1, %v4597_v31, %v4593_v44 }
0x1f7c   :  { %v4535_v57 = vpop.permute.xlu1 %4534  ;;  %v4606_v15 = vrot.slane %v4538_v16, %v9590_v37  ;;  %v4621_v11 = vsel %vm555_vm6, %v4598_v60, %v4620_v4 }
0x1f7d   :  { %v4602_v22 = vrot.slane %v4535_v57, %v9587_v36 }
0x1f7f   :  { %v4544_v45 = vpop.permute.xlu0 %4543  ;;  %v4607_v12 = vsel %vm482_vm1, %v4606_v15, %v4602_v22 }
0x1f80   :  { %v4541_v16 = vpop.permute.xlu1 %4540  ;;  %v4615_v61 = vrot.slane %v4544_v45, %v9590_v37  ;;  %v4622_v14 = vsel %vm557_vm7, %v4607_v12, %v4621_v11 }
0x1f81   :  { %v4611_v2 = vrot.slane %v4541_v16, %v9587_v36 }
0x1f83   :  { %v4616_v54 = vsel %vm482_vm1, %v4615_v61, %v4611_v2 }
0x1f84   :  { %v4623_v44 = vsel %vm559_vm8, %v4616_v54, %v4622_v14 }
0x1f85   :  { %v4625_v6 = vsel %vm562_vm9, %v4623_v44, 0.0  ;;  %v9053_v44 = vld [vmem:[#allocation9 + $0x18] sm:$0xff] }
0x1f86   :  { %4626 = vadd.xlane.f32.xlu1 %v4625_v6 }
0x2013   :  { %v4627_v46 = vpop.xlane.xlu1 %4626 }
0x2014   :  { %8716 = vrcp.f32 %v4627_v46  ;;  %v9054_v46 = vld [vmem:[#allocation9 + $0x28] sm:$0xff] }
0x201e   :  { %v8717_v31 = vpop.eup %8716 }
0x201f   :  { %v4649_v57 = vrot.slane %v8717_v31, %v9694_v34  ;;  %v4633_v15 = vrot.slane %v8717_v31, %v9533_v25  ;;  %v4661_v22 = vrot.slane %v8717_v31, %v9717_v7  ;;  %v4637_v56 = vrot.slane %v8717_v31, %v9700_v52 }
0x2021   :  { %v4679_v28 = vmul.f32 %v11096_v47, %v4649_v57  ;;  %v4670_v17 = vmul.f32 %v11064_v3, %v4633_v15  ;;  %v4684_v23 = vmul.f32 %v8715_v1, %v4661_v22  ;;  %v4671_v62 = vmul.f32 %v11066_v55, %v4633_v15 }
0x2022   :  { %v4672_v60 = vmul.f32 %v11075_v29, %v4637_v56  ;;  %v4673_v45 = vmul.f32 %v11073_v43, %v4637_v56  ;;  %v4641_v47 = vrot.slane %v8717_v31, %v9725_v39  ;;  %v4645_v1 = vrot.slane %v8717_v31, %v9691_v33  ;;  %v9059_v56 = vld [vmem:[#allocation9] sm:$0xff] }
0x2023   :  { %4733 = vperm.xlu1 %8355, %v4679_v28   ;;  %4688 = vperm.xlu0 %8354, %v4670_v17   ;;  %v4678_v29 = vmul.f32 %v11098_v42, %v4649_v57  ;;  %v4653_v43 = vrot.slane %v8717_v31, %v9697_v35  ;;  %v9055_v57 = vld [vmem:[#allocation9 + $0x8] sm:$0xff]  ;;  %v9057_v17 = vld [vmem:[#allocation9 + $0x38] sm:$0xff] }
0x2024   :  { %v4674_v3 = vmul.f32 %v11084_v26, %v4641_v47  ;;  %v4675_v30 = vmul.f32 %v11082_v24, %v4641_v47  ;;  %v4676_v55 = vmul.f32 %v11092_v38, %v4645_v1  ;;  %v4677_v12 = vmul.f32 %v11090_v18, %v4645_v1  ;;  %v9060_v47 = vld [vmem:[#allocation9 + $0x30] sm:$0xff] }
0x2025   :  { %v4680_v16 = vmul.f32 %v11104_v53, %v4653_v43  ;;  %v4681_v26 = vmul.f32 %v11102_v40, %v4653_v43  ;;  %v4657_v24 = vrot.slane %v8717_v31, %v9706_v59  ;;  %v4685_v18 = vmul.f32 %v11114_v8, %v4661_v22  ;;  %v9058_v22 = vld [vmem:[#allocation9 + $0x20] sm:$0xff] }
0x2027   :  { %4758 = vperm.xlu1 %8355, %v4684_v23   ;;  %4693 = vperm.xlu0 %8354, %v4671_v62   ;;  %v4682_v61 = vmul.f32 %v11110_v0, %v4657_v24  ;;  %v4683_v38 = vmul.f32 %v11108_v21, %v4657_v24  ;;  %v9056_v21 = vld [vmem:[#allocation9 + $0x10] sm:$0xff] }
0x202b   :  { %4698 = vperm.xlu0 %8354, %v4672_v60  }
0x202f   :  { %4703 = vperm.xlu0 %8354, %v4673_v45  }
0x2033   :  { %4708 = vperm.xlu0 %8354, %v4674_v3  }
0x2037   :  { %4713 = vperm.xlu0 %8354, %v4675_v30   ;;  %v9061_v30 = vld [vmem:[#allocation9 + $0x40] sm:$0xff] }
0x203b   :  { %4718 = vperm.xlu0 %8354, %v4676_v55   ;;  %v9062_v55 = vld [vmem:[#allocation9 + $0x48] sm:$0xff] }
0x203f   :  { %4723 = vperm.xlu0 %8354, %v4677_v12  }
0x2043   :  { %4728 = vperm.xlu0 %8354, %v4678_v29  }
0x2047   :  { %4738 = vperm.xlu0 %8354, %v4680_v16  }
0x204b   :  { %4743 = vperm.xlu0 %8354, %v4681_v26  }
0x204f   :  { %4748 = vperm.xlu0 %8354, %v4682_v61  }
0x2053   :  { %4753 = vperm.xlu0 %8354, %v4683_v38  }
0x2057   :  { %4763 = vperm.xlu0 %8354, %v4685_v18  }
0x20a2   :  { %v4689_v42 = vpop.permute.xlu0 %4688  ;;  %v4734_v0 = vpop.permute.xlu1 %4733 }
0x20a3   :  { %v4766_v60 = vmul.f32 %v9059_v56, %v4689_v42  ;;  %v4775_v12 = vmul.f32 %v9062_v55, %v4734_v0  ;;  %v9064_v0 = vld [vmem:[#allocation9 + $0x58] sm:$0xff] }
0x20a5   :  { %v4782_v42 = vsel %vm163_vm0, %v4766_v60, 0.0 }
0x20a6   :  { %v4694_v4 = vpop.permute.xlu0 %4693  ;;  %v4759_v55 = vpop.permute.xlu1 %4758 }
0x20a7   :  { %v4767_v15 = vmul.f32 %v9055_v57, %v4694_v4 }
0x20a9   :  { %v4783_v43 = vsel %vm163_vm0, %v4767_v15, 0.0 }
0x20aa   :  { %v4699_v2 = vpop.permute.xlu0 %4698 }
0x20ab   :  { %v4768_v28 = vmul.f32 %v9056_v21, %v4699_v2 }
0x20ad   :  { %v4791_v16 = vsel %vm163_vm0, %v4768_v28, 0.0 }
0x20ae   :  { %v4704_v11 = vpop.permute.xlu0 %4703 }
0x20af   :  { %v4769_v6 = vmul.f32 %v9053_v44, %v4704_v11  ;;  %v4819_v11 = vsel %vm163_vm0, %v4775_v12, 0.0 }
0x20b1   :  { %v4792_v45 = vsel %vm163_vm0, %v4769_v6, 0.0 }
0x20b2   :  { %v4709_v53 = vpop.permute.xlu0 %4708  ;;  %v4793_v24 = vadd.f32 %v4792_v45, %v4791_v16 }
0x20b3   :  { %v4770_v23 = vmul.f32 %v9058_v22, %v4709_v53  ;;  %v4784_v53 = vadd.f32 %v4783_v43, %v4782_v42  ;;  %v9067_v42 = vld [vmem:[#allocation9 + $0x70] sm:$0xff] }
0x20b4   :  { %v4794_v6 = vrot.slane %v4793_v24, 4 }
0x20b5   :  { %v4800_v61 = vsel %vm163_vm0, %v4770_v23, 0.0  ;;  %v4785_v15 = vrot.slane %v4784_v53, 4 }
0x20b6   :  { %v4714_v54 = vpop.permute.xlu0 %4713  ;;  %v4795_v22 = vadd.f32 %v4794_v6, %v4793_v24  ;;  %v4780_v24 = vmul.f32 %v9067_v42, %v4759_v55  ;;  %v9068_v6 = vld [vmem:[#allocation9 + $0x78] sm:$0xff] }
0x20b7   :  { %v4771_v31 = vmul.f32 %v9054_v46, %v4714_v54  ;;  %v4786_v60 = vadd.f32 %v4785_v15, %v4784_v53 }
0x20b8   :  { %v4796_v12 = vrot.slane %v4795_v22, 2  ;;  %v4845_v15 = vsel %vm163_vm0, %v4780_v24, 0.0 }
0x20b9   :  { %v4801_v29 = vsel %vm163_vm0, %v4771_v31, 0.0 }
0x20ba   :  { %v4719_v14 = vpop.permute.xlu0 %4718  ;;  %v4802_v4 = vadd.f32 %v4801_v29, %v4800_v61  ;;  %v4797_v53 = vadd.f32 %v4796_v12, %v4795_v22 }
0x20bb   :  { %v4772_v3 = vmul.f32 %v9060_v47, %v4719_v14 }
0x20bc   :  { %v4803_v31 = vrot.slane %v4802_v4, 4 }
0x20bd   :  { %v4809_v2 = vsel %vm163_vm0, %v4772_v3, 0.0 }
0x20be   :  { %v4724_v40 = vpop.permute.xlu0 %4723  ;;  %v4804_v56 = vadd.f32 %v4803_v31, %v4802_v4 }
0x20bf   :  { %v4773_v8 = vmul.f32 %v9057_v17, %v4724_v40  ;;  %v9063_v40 = vld [vmem:[#allocation9 + $0x50] sm:$0xff] }
0x20c0   :  { %v4805_v16 = vrot.slane %v4804_v56, 2 }
0x20c1   :  { %v4810_v26 = vsel %vm163_vm0, %v4773_v8, 0.0 }
0x20c2   :  { %v4729_v62 = vpop.permute.xlu0 %4728  ;;  %v4811_v54 = vadd.f32 %v4810_v26, %v4809_v2  ;;  %v9066_v26 = vld [vmem:[#allocation9 + $0x68] sm:$0xff] }
0x20c3   :  { %v4774_v1 = vmul.f32 %v9061_v30, %v4729_v62  ;;  %v9065_v30 = vld [vmem:[#allocation9 + $0x60] sm:$0xff] }
0x20c4   :  { %v4812_v21 = vrot.slane %v4811_v54, 4 }
0x20c5   :  { %v4818_v38 = vsel %vm163_vm0, %v4774_v1, 0.0 }
0x20c6   :  { %v4739_v18 = vpop.permute.xlu0 %4738  ;;  %v4820_v14 = vadd.f32 %v4819_v11, %v4818_v38  ;;  %v4813_v45 = vadd.f32 %v4812_v21, %v4811_v54  ;;  %v4787_v38 = vrot.slane %v4786_v60, 2 }
0x20c7   :  { %v4776_v44 = vmul.f32 %v9063_v40, %v4739_v18 }
0x20c8   :  { %v4821_v28 = vrot.slane %v4820_v14, 4  ;;  %v4814_v18 = vrot.slane %v4813_v45, 2  ;;  %v4788_v31 = vadd.f32 %v4787_v38, %v4786_v60 }
0x20c9   :  { %v4827_v17 = vsel %vm163_vm0, %v4776_v44, 0.0  ;;  %v4806_v44 = vadd.f32 %v4805_v16, %v4804_v56 }
0x20ca   :  { %v4744_v46 = vpop.permute.xlu0 %4743  ;;  %v4822_v3 = vadd.f32 %v4821_v28, %v4820_v14  ;;  %v4789_v22 = vrot.slane %v4788_v31, 1 }
0x20cb   :  { %v4777_v57 = vmul.f32 %v9064_v0, %v4744_v46  ;;  %v4815_v0 = vadd.f32 %v4814_v18, %v4813_v45 }
0x20cc   :  { %v4823_v2 = vrot.slane %v4822_v3, 2 }
0x20cd   :  { %v4828_v8 = vsel %vm163_vm0, %v4777_v57, 0.0 }
0x20ce   :  { %v4829_v23 = vadd.f32 %v4828_v8, %v4827_v17  ;;  %v4749_v62 = vpop.permute.xlu0 %4748  ;;  %v4824_v21 = vadd.f32 %v4823_v2, %v4822_v3  ;;  %v4798_v17 = vrot.slane %v4797_v53, 1 }
0x20cf   :  { %v4778_v1 = vmul.f32 %v9065_v30, %v4749_v62  ;;  %v4816_v30 = vrot.slane %v4815_v0, 1 }
0x20d0   :  { %v4830_v47 = vrot.slane %v4829_v23, 4  ;;  %v4825_v56 = vrot.slane %v4824_v21, 1  ;;  %v4799_v12 = vadd.f32 %v4798_v17, %v4797_v53 }
0x20d1   :  { %v4836_v4 = vsel %vm163_vm0, %v4778_v1, 0.0 }
0x20d2   :  { %v4831_v29 = vadd.f32 %v4830_v47, %v4829_v23  ;;  %v4754_v43 = vpop.permute.xlu0 %4753  ;;  %v4807_v47 = vrot.slane %v4806_v44, 1  ;;  %v4826_v18 = vadd.f32 %v4825_v56, %v4824_v21 }
0x20d3   :  { %v4779_v61 = vmul.f32 %v9066_v26, %v4754_v43  ;;  %v4790_v26 = vadd.f32 %v4789_v22, %v4788_v31 }
0x20d4   :  { %v4832_v54 = vrot.slane %v4831_v29, 2  ;;  %v4808_v16 = vadd.f32 %v4807_v47, %v4806_v44 }
0x20d5   :  { %v4837_v11 = vsel %vm163_vm0, %v4779_v61, 0.0  ;;  %v4817_v61 = vadd.f32 %v4816_v30, %v4815_v0 }
0x20d6   :  { %v4838_v14 = vadd.f32 %v4837_v11, %v4836_v4  ;;  %v4764_v40 = vpop.permute.xlu0 %4763  ;;  %v4833_v8 = vadd.f32 %v4832_v54, %v4831_v29  ;;  %v4864_v29 = vsel %vm547_vm2, %v4799_v12, %v4790_v26 }
0x20d7   :  { %v4781_v46 = vmul.f32 %v9068_v6, %v4764_v40  ;;  %v4865_v2 = vsel %vm549_vm3, %v4808_v16, %v4864_v29 }
0x20d8   :  { %v4839_v57 = vrot.slane %v4838_v14, 4  ;;  %v4834_v43 = vrot.slane %v4833_v8, 1  ;;  %v4866_v54 = vsel %vm551_vm4, %v4817_v61, %v4865_v2 }
0x20d9   :  { %v4846_v28 = vsel %vm163_vm0, %v4781_v46, 0.0  ;;  %v4867_v53 = vsel %vm553_vm5, %v4826_v18, %v4866_v54  ;;  %v4855_v46 = vld [vmem:[#allocation4 + $0x20] sm:$0xff]  ;;  %v9071_v54 = vld [vmem:[#allocation7 + $0x10] sm:$0xff] }
0x20da   :  { %v4840_v23 = vadd.f32 %v4839_v57, %v4838_v14  ;;  %v4847_v62 = vadd.f32 %v4846_v28, %v4845_v15  ;;  %v4835_v42 = vadd.f32 %v4834_v43, %v4833_v8 }
0x20dc   :  { %v4841_v1 = vrot.slane %v4840_v23, 2  ;;  %v4848_v55 = vrot.slane %v4847_v62, 4  ;;  %v4868_v40 = vsel %vm555_vm6, %v4835_v42, %v4867_v53 }
0x20de   :  { %v4842_v60 = vadd.f32 %v4841_v1, %v4840_v23  ;;  %v4849_v45 = vadd.f32 %v4848_v55, %v4847_v62 }
0x20e0   :  { %v4843_v3 = vrot.slane %v4842_v60, 1  ;;  %v4850_v38 = vrot.slane %v4849_v45, 2 }
0x20e2   :  { %v4851_v24 = vadd.f32 %v4850_v38, %v4849_v45  ;;  %v4844_v4 = vadd.f32 %v4843_v3, %v4842_v60 }
0x20e4   :  { %v4852_v11 = vrot.slane %v4851_v24, 1  ;;  %v4869_v44 = vsel %vm557_vm7, %v4844_v4, %v4868_v40  ;;  %v9070_v4 = vld [vmem:[#allocation7 + $0x8] sm:$0xff]  ;;  %v9072_v40 = vld [vmem:[#allocation7 + $0x18] sm:$0xff] }
0x20e6   :  { %v4853_v14 = vadd.f32 %v4852_v11, %v4851_v24  ;;  %v9069_v24 = vld [vmem:[#allocation7] sm:$0xff] }
0x20e8   :  { %v4870_v6 = vsel %vm559_vm8, %v4853_v14, %v4869_v44 }
0x20e9   :  { %8161 = vmatmul.mubr.msk.f32.vlgmr.msra.gmra.mrb[10].mxu1 %vm163_vm0, %v4870_v6 }
0x20ea   :  { %8296 = vmatpush3.bf16.msra.mxu1 %v9844_v50  ;;  %8171 = vmatprep.mubr.msk.f32.mxu1 %vm9338_vm10, %v12226_v49 }
0x20eb   :  { %8297 = vmatprep.subr.bf16.mxu1 %v12225_v48 }
0x20ee   :  { %8299 = vmatpush3.bf16.msra.mxu1 %v9849_v32 }
0x20ef   :  { %8308 = vmatprep.subr.bf16.mxu1 %v12225_v48 }
0x21bc   :  { %v4939_v31 = vpop.f32.mrb[10].mxu1 }
0x21bd   :  { %v4943_v0 = vadd.f32 %v4939_v31, %v4855_v46  ;;  %v8162_v57 = vpop.f32.mrb[11].mxu1  ;;  %v9073_v31 = vld [vmem:[#allocation7 + $0x20] sm:$0xff] }
0x21be   :  { %v9074_v57 = vld [vmem:[#allocation7 + $0x28] sm:$0xff] }
0x21bf   :  { %v4944_v15 = vadd.f32 %v4943_v0, %v10889_v63 }
0x21c1   :  { %8718 = vtanh.f32 %v4944_v15  ;;  %v8037_v28 = vmul.f32 -1.442695, %v4944_v15 }
0x21c3   :  { %8720 = vpow2.f32 %v8037_v28 }
0x21cb   :  { %v8719_v21 = vpop.eup %8718 }
0x21cc   :  { %4954 = vrot.lane.b32.xlu1 %v8719_v21, %s9339_s18 }
0x21cd   :  { %v8721_v17 = vpop.eup %8720 }
0x21ce   :  { %v4948_v8 = vadd.f32 1.0, %v8721_v17  ;;  %v9075_v17 = vld [vmem:[#allocation7 + $0x40] sm:$0xff] }
0x21d0   :  { %8722 = vrcp.f32 %v4948_v8 }
0x21da   :  { %v8723_v23 = vpop.eup %8722 }
0x21db   :  { %v4952_v22 = vmul.f32 %v8723_v23, %v10877_v19 }
0x223e   :  { %v4955_v62 = vpop.permute.xlu1 %4954 }
0x223f   :  { %v4957_v47 = vmul.f32 %v8723_v23, %v4955_v62 }
0x2241   :  { %4959 = vrot.lane.b32.xlu0 %v4957_v47, %s9340_s19 }
0x22b3   :  { %v4960_v30 = vpop.permute.xlu0 %4959 }
0x22b4   :  { %v11206_v1 = vadd.f32 %v4960_v30, %v4952_v22  ;;  %v11234_v30 = vld [vmem:[#allocation7 + $0x30] sm:$0xff] }
0x22b6   :  { %8724 = vtanh.f32 %v11206_v1 }
0x22c0   :  { %v8725_v63 = vpop.eup %8724 }
0x22c1   :  { %4965 = vrot.lane.b32.xlu1 %v8725_v63, %s9339_s18 }
0x2333   :  { %v4966_v55 = vpop.permute.xlu1 %4965 }
0x2334   :  { %v4968_v56 = vmul.f32 %v8723_v23, %v4966_v55 }
0x2336   :  { %4970 = vrot.lane.b32.xlu0 %v4968_v56, %s9340_s19 }
0x23a8   :  { %v4971_v12 = vpop.permute.xlu0 %4970 }
0x23a9   :  { %4974 = vst.msk [vmem:[#allocation2 + $0x20] sm:$0xff] %vm163_vm0, %v4971_v12  ;;  %8038 = vmatmul.mubr.msk.f32.vlgmr.msra.gmra.mrb[8].mxu0 %vm163_vm0, %v4971_v12 }
0x23aa   :  { %8303 = vmatpush1.bf16.msra.mxu0 %v9507_v9  ;;  %5998 = vmatprep.mubr.f32.mxu0 %v12226_v49 }
0x23ab   :  { %8305 = vmatprep.subr.bf16.mxu0 %v9509_v10 }
0x23ae   :  { %8307 = vmatpush1.bf16.msra.mxu0 %v9514_v13 }
0x23af   :  { %8315 = vmatprep.subr.bf16.mxu0 %v9505_v5 }
0x247c   :  { %v11218_v19 = vpop.f32.mrb[8].mxu0 }
0x247d   :  { %v5045_v43 = vpop.f32.mrb[9].mxu0 }
0x247e   :  { %v5049_v60 = vcombine.high %v5045_v43, %v5045_v43  ;;  %v5056_v45 = vrot.slane %v5045_v43, %v9527_v20  ;;  %v11240_v43 = vld [vmem:[%s12208_s4] ss:$0 sm:$0xff] }
0x2480   :  { %v5064_v16 = vcombine.high %v5056_v45, %v5056_v45  ;;  %v5072_v26 = vrot.slane %v5056_v45, %v9527_v20  ;;  %v5063_v61 = vrot.slane %v5049_v60, %v9527_v20 }
0x2482   :  { %v5086_v3 = vrot.slane %v5064_v16, %v9527_v20  ;;  %v5094_v38 = vcombine.high %v5072_v26, %v5072_v26  ;;  %v5101_v18 = vrot.slane %v5072_v26, %v9533_v25  ;;  %v5079_v5 = vrot.slane %v5063_v61, %v9527_v20 }
0x2483   :  { %v5065_v14 = vcombine.high %v5063_v61, %v5063_v61  ;;  %v11246_v61 = vld [vmem:[#allocation7 + $0x50] sm:$0xff] }
0x2484   :  { %v5105_v29 = vrot.slane %v5086_v3, %v9533_v25  ;;  %v5109_v42 = vrot.slane %v5094_v38, %v9533_v25  ;;  %v5138_v2 = vadd.f32 %v9069_v24, %v5101_v18  ;;  %v5139_v11 = vadd.f32 %v9070_v4, %v5101_v18  ;;  %v11255_v4 = vld [vmem:[#allocation7 + $0x60] sm:$0xff] }
0x2485   :  { %v5096_v6 = vcombine.high %v5086_v3, %v5086_v3  ;;  %v5117_v46 = vrot.slane %v5079_v5, %v9533_v25  ;;  %v5093_v21 = vrot.slane %v5065_v14, %v9527_v20  ;;  %v5095_v62 = vcombine.high %v5079_v5, %v5079_v5 }
0x2486   :  { %v5140_v53 = vadd.f32 %v9071_v54, %v5105_v29  ;;  %v5141_v44 = vadd.f32 %v9072_v40, %v5105_v29  ;;  %v5142_v0 = vadd.f32 %v9073_v31, %v5109_v42  ;;  %8726 = vtanh.f32 %v5138_v2  ;;  %v11263_v31 = vld [vmem:[#allocation7 + $0x70] sm:$0xff] }
0x2487   :  { %v5143_v15 = vadd.f32 %v9074_v57, %v5109_v42  ;;  %8728 = vtanh.f32 %v5139_v11  ;;  %v5113_v28 = vrot.slane %v5096_v6, %v9533_v25  ;;  %v5146_v8 = vadd.f32 %v9075_v17, %v5117_v46 }
0x2488   :  { %8730 = vtanh.f32 %v5140_v53  ;;  %v5147_v23 = vadd.f32 %v10903_v51, %v5117_v46  ;;  %v5121_v47 = vrot.slane %v5093_v21, %v9533_v25  ;;  %v5097_v12 = vcombine.high %v5093_v21, %v5093_v21  ;;  %v12230_v46 = vld [vmem:[#allocation22_spill] sm:$0xff] }
0x2489   :  { %8732 = vtanh.f32 %v5141_v44  ;;  %v5145_v22 = vadd.f32 %v10915_v58, %v5113_v28  ;;  %v5144_v63 = vadd.f32 %v11234_v30, %v5113_v28  ;;  %v5125_v45 = vrot.slane %v5095_v62, %v9533_v25 }
0x248a   :  { %8734 = vtanh.f32 %v5142_v0  ;;  %v5149_v58 = vadd.f32 %v10924_v27, %v5121_v47  ;;  %v5148_v3 = vadd.f32 %v11246_v61, %v5121_v47  ;;  %v5129_v24 = vrot.slane %v5097_v12, %v9533_v25 }
0x248b   :  { %8736 = vtanh.f32 %v5143_v15  ;;  %v5151_v2 = vadd.f32 %v10932_v41, %v5125_v45  ;;  %v5150_v11 = vadd.f32 %v11255_v4, %v5125_v45 }
0x248c   :  { %8738 = vtanh.f32 %v5146_v8  ;;  %v5153_v41 = vadd.f32 %v12230_v46, %v5129_v24  ;;  %v5152_v0 = vadd.f32 %v11263_v31, %v5129_v24 }
0x248d   :  { %8740 = vtanh.f32 %v5147_v23 }
0x248e   :  { %8742 = vtanh.f32 %v5145_v22 }
0x248f   :  { %8744 = vtanh.f32 %v5144_v63 }
0x2490   :  { %v8727_v55 = vpop.eup %8726  ;;  %8746 = vtanh.f32 %v5149_v58 }
0x2491   :  { %v8729_v56 = vpop.eup %8728  ;;  %v5170_v51 = vmul.f32 %v11240_v43, %v8727_v55  ;;  %8748 = vtanh.f32 %v5148_v3 }
0x2492   :  { %v8731_v60 = vpop.eup %8730  ;;  %v5171_v16 = vmul.f32 %v11240_v43, %v8729_v56  ;;  %8750 = vtanh.f32 %v5151_v2 }
0x2493   :  { %v8733_v26 = vpop.eup %8732  ;;  %v5186_v38 = vsel %vm163_vm0, %v5170_v51, 0.0  ;;  %v5172_v42 = vmul.f32 %v11240_v43, %v8731_v60  ;;  %8752 = vtanh.f32 %v5150_v11 }
0x2494   :  { %v8735_v18 = vpop.eup %8734  ;;  %v5189_v29 = vsel %vm163_vm0, %v5171_v16, 0.0  ;;  %5187 = vadd.xlane.f32.xlu1 %v5186_v38  ;;  %v5173_v5 = vmul.f32 %v11240_v43, %v8733_v26  ;;  %8754 = vtanh.f32 %v5153_v41 }
0x2495   :  { %v8737_v27 = vpop.eup %8736  ;;  %5190 = vadd.xlane.f32.xlu0 %v5189_v29  ;;  %v5192_v40 = vsel %vm163_vm0, %v5172_v42, 0.0  ;;  %v5174_v44 = vmul.f32 %v11240_v43, %v8735_v18  ;;  %8756 = vtanh.f32 %v5152_v0  ;;  %v12231_v0 = vld [vmem:[#allocation21_spill] sm:$0xff] }
0x2496   :  { %v5195_v54 = vsel %vm163_vm0, %v5173_v5, 0.0  ;;  %v5175_v53 = vmul.f32 %v11240_v43, %v8737_v27  ;;  %v8739_v14 = vpop.eup %8738 }
0x2497   :  { %v8741_v6 = vpop.eup %8740  ;;  %v5198_v28 = vsel %vm163_vm0, %v5174_v44, 0.0  ;;  %v5178_v17 = vmul.f32 %v11240_v43, %v8739_v14 }
0x2498   :  { %5196 = vadd.xlane.f32.xlu1 %v5195_v54  ;;  %v5201_v57 = vsel %vm163_vm0, %v5175_v53, 0.0  ;;  %v5179_v15 = vmul.f32 %v11240_v43, %v8741_v6  ;;  %v8743_v21 = vpop.eup %8742 }
0x2499   :  { %5193 = vadd.xlane.f32.xlu0 %v5192_v40  ;;  %v8745_v8 = vpop.eup %8744  ;;  %v5177_v62 = vmul.f32 %v11240_v43, %v8743_v21  ;;  %v5210_v22 = vsel %vm163_vm0, %v5178_v17, 0.0 }
0x249a   :  { %v5213_v23 = vsel %vm163_vm0, %v5179_v15, 0.0  ;;  %v8747_v47 = vpop.eup %8746  ;;  %v5176_v63 = vmul.f32 %v11240_v43, %v8745_v8 }
0x249b   :  { %v8749_v55 = vpop.eup %8748  ;;  %v5207_v56 = vsel %vm163_vm0, %v5177_v62, 0.0  ;;  %v5181_v12 = vmul.f32 %v11240_v43, %v8747_v47 }
0x249c   :  { %5202 = vadd.xlane.f32.xlu1 %v5201_v57  ;;  %v8751_v51 = vpop.eup %8750  ;;  %v5204_v60 = vsel %vm163_vm0, %v5176_v63, 0.0  ;;  %v5180_v45 = vmul.f32 %v11240_v43, %v8749_v55 }
0x249d   :  { %5199 = vadd.xlane.f32.xlu0 %v5198_v28  ;;  %v8753_v58 = vpop.eup %8752  ;;  %v5219_v16 = vsel %vm163_vm0, %v5181_v12, 0.0  ;;  %v5183_v26 = vmul.f32 %v11240_v43, %v8751_v51 }
0x249e   :  { %v8755_v3 = vpop.eup %8754  ;;  %v5216_v38 = vsel %vm163_vm0, %v5180_v45, 0.0  ;;  %v5182_v18 = vmul.f32 %v11240_v43, %v8753_v58 }
0x249f   :  { %v8757_v29 = vpop.eup %8756  ;;  %v5225_v5 = vsel %vm163_vm0, %v5183_v26, 0.0  ;;  %v5185_v42 = vmul.f32 %v11240_v43, %v8755_v3 }
0x24a0   :  { %5214 = vadd.xlane.f32.xlu1 %v5213_v23  ;;  %v5222_v27 = vsel %vm163_vm0, %v5182_v18, 0.0  ;;  %v5184_v24 = vmul.f32 %v11240_v43, %v8757_v29 }
0x24a1   :  { %5211 = vadd.xlane.f32.xlu0 %v5210_v22  ;;  %v5231_v2 = vsel %vm163_vm0, %v5185_v42, 0.0 }
0x24a2   :  { %v5228_v11 = vsel %vm163_vm0, %v5184_v24, 0.0 }
0x24a4   :  { %5208 = vadd.xlane.f32.xlu1 %v5207_v56 }
0x24a5   :  { %5205 = vadd.xlane.f32.xlu0 %v5204_v60 }
0x24a8   :  { %5220 = vadd.xlane.f32.xlu1 %v5219_v16 }
0x24a9   :  { %5217 = vadd.xlane.f32.xlu0 %v5216_v38 }
0x24ac   :  { %5226 = vadd.xlane.f32.xlu1 %v5225_v5 }
0x24ad   :  { %5223 = vadd.xlane.f32.xlu0 %v5222_v27 }
0x24b0   :  { %5232 = vadd.xlane.f32.xlu1 %v5231_v2 }
0x24b1   :  { %5229 = vadd.xlane.f32.xlu0 %v5228_v11 }
0x2521   :  { %v5188_v54 = vpop.xlane.xlu1 %5187 }
0x2522   :  { %v5191_v53 = vpop.xlane.xlu0 %5190  ;;  %v5234_v28 = vadd.f32 %v5188_v54, %v12231_v0 }
0x2523   :  { %v11295_v21 = vadd.f32 %v5191_v53, %v12231_v0 }
0x2524   :  { %v5269_v12 = vrot.slane %v5234_v28, %v9587_v36 }
0x2525   :  { %v5197_v14 = vpop.xlane.xlu1 %5196  ;;  %v5273_v56 = vrot.slane %v11295_v21, %v9590_v37 }
0x2526   :  { %v5194_v40 = vpop.xlane.xlu0 %5193  ;;  %v11289_v57 = vadd.f32 %v5197_v14, %v12231_v0 }
0x2527   :  { %v11292_v43 = vadd.f32 %v5194_v40, %v12231_v0  ;;  %v5274_v42 = vsel %vm482_vm1, %v5273_v56, %v5269_v12 }
0x2528   :  { %v5282_v22 = vrot.slane %v11289_v57, %v9590_v37 }
0x2529   :  { %v5203_v44 = vpop.xlane.xlu1 %5202  ;;  %v5278_v63 = vrot.slane %v11292_v43, %v9587_v36 }
0x252a   :  { %v5200_v6 = vpop.xlane.xlu0 %5199  ;;  %v11299_v17 = vadd.f32 %v5203_v44, %v12231_v0 }
0x252b   :  { %v11302_v8 = vadd.f32 %v5200_v6, %v12231_v0  ;;  %v5283_v29 = vsel %vm482_vm1, %v5282_v22, %v5278_v63 }
0x252c   :  { %v5291_v51 = vrot.slane %v11299_v17, %v9590_v37  ;;  %v5338_v40 = vsel %vm547_vm2, %v5283_v29, %v5274_v42 }
0x252d   :  { %v5215_v46 = vpop.xlane.xlu1 %5214  ;;  %v5287_v60 = vrot.slane %v11302_v8, %v9587_v36 }
0x252e   :  { %v5212_v41 = vpop.xlane.xlu0 %5211  ;;  %v11332_v38 = vadd.f32 %v5215_v46, %v12231_v0 }
0x252f   :  { %v11335_v18 = vadd.f32 %v5212_v41, %v12231_v0  ;;  %v5292_v27 = vsel %vm482_vm1, %v5291_v51, %v5287_v60 }
0x2530   :  { %v5309_v44 = vrot.slane %v11332_v38, %v9590_v37  ;;  %v5339_v41 = vsel %vm549_vm3, %v5292_v27, %v5338_v40 }
0x2531   :  { %v5209_v15 = vpop.xlane.xlu1 %5208  ;;  %v5305_v6 = vrot.slane %v11335_v18, %v9587_v36 }
0x2532   :  { %v5206_v23 = vpop.xlane.xlu0 %5205  ;;  %v11305_v62 = vadd.f32 %v5209_v15, %v12231_v0 }
0x2533   :  { %v11308_v47 = vadd.f32 %v5206_v23, %v12231_v0  ;;  %v5310_v51 = vsel %vm482_vm1, %v5309_v44, %v5305_v6 }
0x2534   :  { %v5300_v58 = vrot.slane %v11305_v62, %v9590_v37 }
0x2535   :  { %v5221_v55 = vpop.xlane.xlu1 %5220  ;;  %v5296_v16 = vrot.slane %v11308_v47, %v9587_v36 }
0x2536   :  { %v5218_v45 = vpop.xlane.xlu0 %5217  ;;  %v11326_v26 = vadd.f32 %v5221_v55, %v12231_v0 }
0x2537   :  { %v11329_v3 = vadd.f32 %v5218_v45, %v12231_v0  ;;  %v5301_v11 = vsel %vm482_vm1, %v5300_v58, %v5296_v16 }
0x2538   :  { %v5318_v54 = vrot.slane %v11326_v26, %v9590_v37  ;;  %v5340_v22 = vsel %vm551_vm4, %v5301_v11, %v5339_v41 }
0x2539   :  { %v5227_v5 = vpop.xlane.xlu1 %5226  ;;  %v5314_v53 = vrot.slane %v11329_v3, %v9587_v36  ;;  %v5341_v16 = vsel %vm553_vm5, %v5310_v51, %v5340_v22 }
0x253a   :  { %v11341_v24 = vadd.f32 %v5227_v5, %v12231_v0  ;;  %v5224_v2 = vpop.xlane.xlu0 %5223 }
0x253b   :  { %v11349_v14 = vadd.f32 %v5224_v2, %v12231_v0  ;;  %v5319_v56 = vsel %vm482_vm1, %v5318_v54, %v5314_v53 }
0x253c   :  { %v5327_v46 = vrot.slane %v11341_v24, %v9590_v37  ;;  %v5342_v29 = vsel %vm555_vm6, %v5319_v56, %v5341_v16 }
0x253d   :  { %v5323_v15 = vrot.slane %v11349_v14, %v9587_v36  ;;  %v5233_v23 = vpop.xlane.xlu1 %5232 }
0x253e   :  { %v11363_v63 = vadd.f32 %v5233_v23, %v12231_v0  ;;  %v5230_v55 = vpop.xlane.xlu0 %5229 }
0x253f   :  { %v11367_v12 = vadd.f32 %v5230_v55, %v12231_v0  ;;  %v5328_v45 = vsel %vm482_vm1, %v5327_v46, %v5323_v15 }
0x2540   :  { %v5336_v60 = vrot.slane %v11363_v63, %v9590_v37  ;;  %v5343_v42 = vsel %vm557_vm7, %v5328_v45, %v5342_v29 }
0x2541   :  { %v5332_v58 = vrot.slane %v11367_v12, %v9587_v36 }
0x2543   :  { %v5337_v5 = vsel %vm482_vm1, %v5336_v60, %v5332_v58 }
0x2544   :  { %v5344_v27 = vsel %vm559_vm8, %v5337_v5, %v5343_v42 }
0x2545   :  { %v5346_v2 = vsel %vm562_vm9, %v5344_v27, -inf }
0x2546   :  { %5347 = vmax.xlane.f32.xlu0 %v5346_v2 }
0x25d3   :  { %v5348_v11 = vpop.xlane.xlu0 %5347 }
0x25d4   :  { %v5353_v54 = vrot.slane %v5348_v11, %v9533_v25  ;;  %v5357_v53 = vrot.slane %v5348_v11, %v9700_v52  ;;  %v5361_v40 = vrot.slane %v5348_v11, %v9725_v39  ;;  %v5365_v41 = vrot.slane %v5348_v11, %v9691_v33 }
0x25d5   :  { %v5369_v51 = vrot.slane %v5348_v11, %v9694_v34  ;;  %v5373_v45 = vrot.slane %v5348_v11, %v9697_v35  ;;  %v5377_v29 = vrot.slane %v5348_v11, %v9706_v59 }
0x25d6   :  { %v5390_v44 = vsub.f32 %v5234_v28, %v5353_v54  ;;  %v5391_v6 = vsub.f32 %v11295_v21, %v5353_v54  ;;  %v5392_v46 = vsub.f32 %v11292_v43, %v5357_v53  ;;  %v5394_v15 = vsub.f32 %v11302_v8, %v5361_v40 }
0x25d7   :  { %v5393_v55 = vsub.f32 %v11289_v57, %v5357_v53  ;;  %v5396_v60 = vsub.f32 %v11308_v47, %v5365_v41  ;;  %v5395_v21 = vsub.f32 %v11299_v17, %v5361_v40  ;;  %v5398_v8 = vsub.f32 %v11335_v18, %v5369_v51 }
0x25d8   :  { %v5406_v23 = vmul.f32 1.442695, %v5390_v44  ;;  %v5408_v22 = vmul.f32 1.442695, %v5391_v6  ;;  %v5410_v56 = vmul.f32 1.442695, %v5392_v46  ;;  %v5397_v57 = vsub.f32 %v11305_v62, %v5365_v41 }
0x25d9   :  { %v5414_v28 = vmul.f32 1.442695, %v5394_v15  ;;  %v5412_v43 = vmul.f32 1.442695, %v5393_v55  ;;  %v5418_v58 = vmul.f32 1.442695, %v5396_v60  ;;  %v5400_v47 = vsub.f32 %v11329_v3, %v5373_v45 }
0x25da   :  { %8758 = vpow2.f32 %v5406_v23  ;;  %v5416_v16 = vmul.f32 1.442695, %v5395_v21  ;;  %v5422_v5 = vmul.f32 1.442695, %v5398_v8  ;;  %v5399_v18 = vsub.f32 %v11332_v38, %v5369_v51 }
0x25db   :  { %8760 = vpow2.f32 %v5408_v22  ;;  %v5420_v27 = vmul.f32 1.442695, %v5397_v57  ;;  %v5381_v62 = vrot.slane %v5348_v11, %v9717_v7  ;;  %v5402_v2 = vsub.f32 %v11349_v14, %v5377_v29 }
0x25dc   :  { %8762 = vpow2.f32 %v5410_v56  ;;  %v5426_v3 = vmul.f32 1.442695, %v5400_v47  ;;  %v5401_v40 = vsub.f32 %v11326_v26, %v5373_v45  ;;  %v5424_v38 = vmul.f32 1.442695, %v5399_v18 }
0x25dd   :  { %8764 = vpow2.f32 %v5414_v28  ;;  %v5404_v44 = vsub.f32 %v11367_v12, %v5381_v62  ;;  %v5430_v11 = vmul.f32 1.442695, %v5402_v2  ;;  %v5403_v46 = vsub.f32 %v11341_v24, %v5377_v29 }
0x25de   :  { %8766 = vpow2.f32 %v5412_v43  ;;  %v5428_v41 = vmul.f32 1.442695, %v5401_v40  ;;  %v5405_v12 = vsub.f32 %v11363_v63, %v5381_v62 }
0x25df   :  { %8768 = vpow2.f32 %v5418_v58  ;;  %v5434_v26 = vmul.f32 1.442695, %v5404_v44  ;;  %v5432_v22 = vmul.f32 1.442695, %v5403_v46 }
0x25e0   :  { %8770 = vpow2.f32 %v5416_v16  ;;  %v5436_v56 = vmul.f32 1.442695, %v5405_v12 }
0x25e1   :  { %8772 = vpow2.f32 %v5422_v5 }
0x25e2   :  { %8774 = vpow2.f32 %v5420_v27 }
0x25e3   :  { %8776 = vpow2.f32 %v5426_v3 }
0x25e4   :  { %v11397_v42 = vpop.eup %8758  ;;  %8778 = vpow2.f32 %v5424_v38 }
0x25e5   :  { %v11399_v17 = vpop.eup %8760  ;;  %5455 = vperm.xlu1 %8355, %v11397_v42   ;;  %8780 = vpow2.f32 %v5430_v11 }
0x25e6   :  { %5458 = vperm.xlu0 %8354, %v11399_v17   ;;  %v11406_v54 = vpop.eup %8762  ;;  %8782 = vpow2.f32 %v5428_v41 }
0x25e7   :  { %v11408_v53 = vpop.eup %8764  ;;  %8784 = vpow2.f32 %v5434_v26 }
0x25e8   :  { %v11414_v6 = vpop.eup %8766  ;;  %8786 = vpow2.f32 %v5432_v22 }
0x25e9   :  { %5461 = vperm.xlu1 %8355, %v11406_v54   ;;  %v11416_v14 = vpop.eup %8768  ;;  %8788 = vpow2.f32 %v5436_v56 }
0x25ea   :  { %5467 = vperm.xlu0 %8354, %v11408_v53   ;;  %v11421_v15 = vpop.eup %8770 }
0x25eb   :  { %v11423_v23 = vpop.eup %8772 }
0x25ec   :  { %v11428_v24 = vpop.eup %8774 }
0x25ed   :  { %5464 = vperm.xlu1 %8355, %v11414_v6   ;;  %v11430_v55 = vpop.eup %8776 }
0x25ee   :  { %5473 = vperm.xlu0 %8354, %v11416_v14   ;;  %v11434_v51 = vpop.eup %8778 }
0x25ef   :  { %v11436_v60 = vpop.eup %8780 }
0x25f0   :  { %v11440_v63 = vpop.eup %8782 }
0x25f1   :  { %5470 = vperm.xlu1 %8355, %v11421_v15   ;;  %v11442_v28 = vpop.eup %8784 }
0x25f2   :  { %5479 = vperm.xlu0 %8354, %v11423_v23   ;;  %v11446_v21 = vpop.eup %8786 }
0x25f3   :  { %v11449_v43 = vpop.eup %8788 }
0x25f5   :  { %5476 = vperm.xlu1 %8355, %v11428_v24  }
0x25f6   :  { %5485 = vperm.xlu0 %8354, %v11430_v55  }
0x25f9   :  { %5482 = vperm.xlu1 %8355, %v11434_v51  }
0x25fa   :  { %5491 = vperm.xlu0 %8354, %v11436_v60  }
0x25fd   :  { %5488 = vperm.xlu1 %8355, %v11440_v63  }
0x25fe   :  { %5497 = vperm.xlu0 %8354, %v11442_v28  }
0x2601   :  { %5494 = vperm.xlu1 %8355, %v11446_v21  }
0x2605   :  { %5500 = vperm.xlu1 %8355, %v11449_v43  }
0x2664   :  { %v5456_v45 = vpop.permute.xlu1 %5455 }
0x2665   :  { %v5459_v8 = vpop.permute.xlu0 %5458  ;;  %v5505_v11 = vrot.slane %v5456_v45, %v9587_v36 }
0x2666   :  { %v5509_v44 = vrot.slane %v5459_v8, %v9590_v37 }
0x2668   :  { %v5462_v58 = vpop.permute.xlu1 %5461  ;;  %v5510_v45 = vsel %vm482_vm1, %v5509_v44, %v5505_v11 }
0x2669   :  { %v5468_v57 = vpop.permute.xlu0 %5467  ;;  %v5514_v46 = vrot.slane %v5462_v58, %v9587_v36 }
0x266a   :  { %v5523_v26 = vrot.slane %v5468_v57, %v9587_v36 }
0x266c   :  { %v5465_v16 = vpop.permute.xlu1 %5464 }
0x266d   :  { %v5474_v29 = vpop.permute.xlu0 %5473  ;;  %v5518_v2 = vrot.slane %v5465_v16, %v9590_v37 }
0x266e   :  { %v5532_v22 = vrot.slane %v5474_v29, %v9587_v36 }
0x266f   :  { %v5519_v56 = vsel %vm482_vm1, %v5518_v2, %v5514_v46 }
0x2670   :  { %v5471_v47 = vpop.permute.xlu1 %5470 }
0x2671   :  { %v5480_v5 = vpop.permute.xlu0 %5479  ;;  %v5527_v3 = vrot.slane %v5471_v47, %v9590_v37 }
0x2672   :  { %v5541_v47 = vrot.slane %v5480_v5, %v9587_v36 }
0x2673   :  { %v5528_v8 = vsel %vm482_vm1, %v5527_v3, %v5523_v26 }
0x2674   :  { %v5477_v18 = vpop.permute.xlu1 %5476 }
0x2675   :  { %v5486_v27 = vpop.permute.xlu0 %5485  ;;  %v5536_v41 = vrot.slane %v5477_v18, %v9590_v37 }
0x2676   :  { %v5550_v58 = vrot.slane %v5486_v27, %v9587_v36 }
0x2677   :  { %v5537_v18 = vsel %vm482_vm1, %v5536_v41, %v5532_v22 }
0x2678   :  { %v5483_v62 = vpop.permute.xlu1 %5482 }
0x2679   :  { %v5492_v40 = vpop.permute.xlu0 %5491  ;;  %v5545_v12 = vrot.slane %v5483_v62, %v9590_v37  ;;  %v5574_v62 = vsel %vm547_vm2, %v5519_v56, %v5510_v45 }
0x267a   :  { %v5559_v29 = vrot.slane %v5492_v40, %v9587_v36  ;;  %v5575_v5 = vsel %vm549_vm3, %v5528_v8, %v5574_v62 }
0x267b   :  { %v5546_v2 = vsel %vm482_vm1, %v5545_v12, %v5541_v47  ;;  %v5576_v46 = vsel %vm551_vm4, %v5537_v18, %v5575_v5 }
0x267c   :  { %v5489_v38 = vpop.permute.xlu1 %5488  ;;  %v5577_v11 = vsel %vm553_vm5, %v5546_v2, %v5576_v46 }
0x267d   :  { %v5554_v16 = vrot.slane %v5489_v38, %v9590_v37  ;;  %v5498_v38 = vpop.permute.xlu0 %5497 }
0x267f   :  { %v5555_v3 = vsel %vm482_vm1, %v5554_v16, %v5550_v58 }
0x2680   :  { %v5495_v0 = vpop.permute.xlu1 %5494  ;;  %v5578_v40 = vsel %vm555_vm6, %v5555_v3, %v5577_v11 }
0x2681   :  { %v5563_v57 = vrot.slane %v5495_v0, %v9590_v37  ;;  %v5568_v0 = vrot.slane %v5498_v38, %v9587_v36 }
0x2683   :  { %v5564_v44 = vsel %vm482_vm1, %v5563_v57, %v5559_v29 }
0x2684   :  { %v5501_v27 = vpop.permute.xlu1 %5500  ;;  %v5579_v12 = vsel %vm557_vm7, %v5564_v44, %v5578_v40 }
0x2685   :  { %v5572_v41 = vrot.slane %v5501_v27, %v9590_v37 }
0x2687   :  { %v5573_v26 = vsel %vm482_vm1, %v5572_v41, %v5568_v0 }
0x2688   :  { %v5580_v22 = vsel %vm559_vm8, %v5573_v26, %v5579_v12  ;;  %v9081_v12 = vld [vmem:[#allocation9 + $0x18] sm:$0xff] }
0x2689   :  { %v5582_v56 = vsel %vm562_vm9, %v5580_v22, 0.0 }
0x268a   :  { %5583 = vadd.xlane.f32.xlu0 %v5582_v56  ;;  %v9082_v56 = vld [vmem:[#allocation9 + $0x28] sm:$0xff] }
0x2717   :  { %v5584_v16 = vpop.xlane.xlu0 %5583 }
0x2718   :  { %8790 = vrcp.f32 %v5584_v16 }
0x2722   :  { %v8791_v47 = vpop.eup %8790 }
0x2723   :  { %v5606_v8 = vrot.slane %v8791_v47, %v9694_v34  ;;  %v5590_v45 = vrot.slane %v8791_v47, %v9533_v25  ;;  %v5618_v57 = vrot.slane %v8791_v47, %v9717_v7  ;;  %v5594_v2 = vrot.slane %v8791_v47, %v9700_v52 }
0x2725   :  { %v5635_v58 = vmul.f32 %v11423_v23, %v5606_v8  ;;  %v5627_v18 = vmul.f32 %v11397_v42, %v5590_v45  ;;  %v5641_v62 = vmul.f32 %v11442_v28, %v5618_v57  ;;  %v5628_v29 = vmul.f32 %v11399_v17, %v5590_v45 }
0x2726   :  { %v5629_v38 = vmul.f32 %v11406_v54, %v5594_v2  ;;  %v5630_v5 = vmul.f32 %v11414_v6, %v5594_v2  ;;  %v5598_v23 = vrot.slane %v8791_v47, %v9725_v39  ;;  %v5602_v28 = vrot.slane %v8791_v47, %v9691_v33 }
0x2727   :  { %5685 = vperm.xlu0 %8354, %v5635_v58   ;;  %5645 = vperm.xlu1 %8355, %v5627_v18   ;;  %v5636_v54 = vmul.f32 %v11434_v51, %v5606_v8  ;;  %v5610_v6 = vrot.slane %v8791_v47, %v9697_v35  ;;  %v9085_v58 = vld [vmem:[#allocation9 + $0x38] sm:$0xff]  ;;  %v9086_v18 = vld [vmem:[#allocation9 + $0x20] sm:$0xff] }
0x2728   :  { %v5631_v42 = vmul.f32 %v11408_v53, %v5598_v23  ;;  %v5632_v3 = vmul.f32 %v11421_v15, %v5598_v23  ;;  %v5633_v17 = vmul.f32 %v11416_v14, %v5602_v28  ;;  %v5634_v46 = vmul.f32 %v11428_v24, %v5602_v28  ;;  %v9090_v28 = vld [vmem:[#allocation9 + $0x40] sm:$0xff] }
0x2729   :  { %v5637_v44 = vmul.f32 %v11430_v55, %v5610_v6  ;;  %v5638_v53 = vmul.f32 %v11440_v63, %v5610_v6  ;;  %v5614_v15 = vrot.slane %v8791_v47, %v9706_v59  ;;  %v5642_v24 = vmul.f32 %v11449_v43, %v5618_v57  ;;  %v9083_v47 = vld [vmem:[#allocation9 + $0x8] sm:$0xff] }
0x272b   :  { %5715 = vperm.xlu0 %8354, %v5641_v62   ;;  %5650 = vperm.xlu1 %8355, %v5628_v29   ;;  %v5639_v27 = vmul.f32 %v11436_v60, %v5614_v15  ;;  %v5640_v14 = vmul.f32 %v11446_v21, %v5614_v15  ;;  %v9084_v21 = vld [vmem:[#allocation9 + $0x10] sm:$0xff]  ;;  %v9087_v29 = vld [vmem:[#allocation9] sm:$0xff] }
0x272f   :  { %5655 = vperm.xlu1 %8355, %v5629_v38  }
0x2733   :  { %5660 = vperm.xlu1 %8355, %v5630_v5   ;;  %v9088_v5 = vld [vmem:[#allocation9 + $0x30] sm:$0xff] }
0x2737   :  { %5665 = vperm.xlu1 %8355, %v5631_v42   ;;  %v9089_v42 = vld [vmem:[#allocation9 + $0x48] sm:$0xff] }
0x273b   :  { %5670 = vperm.xlu1 %8355, %v5632_v3  }
0x273f   :  { %5675 = vperm.xlu1 %8355, %v5633_v17  }
0x2743   :  { %5680 = vperm.xlu1 %8355, %v5634_v46  }
0x2747   :  { %5690 = vperm.xlu1 %8355, %v5636_v54  }
0x274b   :  { %5695 = vperm.xlu1 %8355, %v5637_v44  }
0x274f   :  { %5700 = vperm.xlu1 %8355, %v5638_v53  }
0x2753   :  { %5705 = vperm.xlu1 %8355, %v5639_v27  }
0x2757   :  { %5710 = vperm.xlu1 %8355, %v5640_v14  }
0x275b   :  { %5720 = vperm.xlu1 %8355, %v5642_v24  }
0x27a6   :  { %v5646_v51 = vpop.permute.xlu1 %5645  ;;  %v5686_v60 = vpop.permute.xlu0 %5685 }
0x27a7   :  { %v5723_v2 = vmul.f32 %v9087_v29, %v5646_v51  ;;  %v5731_v17 = vmul.f32 %v9090_v28, %v5686_v60 }
0x27a9   :  { %v5739_v24 = vsel %vm163_vm0, %v5723_v2, 0.0 }
0x27aa   :  { %v5651_v11 = vpop.permute.xlu1 %5650 }
0x27ab   :  { %v5724_v8 = vmul.f32 %v9083_v47, %v5651_v11 }
0x27ad   :  { %v5740_v54 = vsel %vm163_vm0, %v5724_v8, 0.0 }
0x27ae   :  { %v5656_v0 = vpop.permute.xlu1 %5655 }
0x27af   :  { %v5725_v45 = vmul.f32 %v9084_v21, %v5656_v0  ;;  %v5775_v0 = vsel %vm163_vm0, %v5731_v17, 0.0 }
0x27b1   :  { %v5748_v6 = vsel %vm163_vm0, %v5725_v45, 0.0 }
0x27b2   :  { %v5661_v41 = vpop.permute.xlu1 %5660 }
0x27b3   :  { %v5726_v22 = vmul.f32 %v9081_v12, %v5661_v41  ;;  %v5741_v41 = vadd.f32 %v5740_v54, %v5739_v24 }
0x27b5   :  { %v5749_v38 = vsel %vm163_vm0, %v5726_v22, 0.0  ;;  %v5742_v47 = vrot.slane %v5741_v41, 4 }
0x27b6   :  { %v5666_v55 = vpop.permute.xlu1 %5665  ;;  %v5750_v53 = vadd.f32 %v5749_v38, %v5748_v6  ;;  %v9094_v6 = vld [vmem:[#allocation9 + $0x68] sm:$0xff] }
0x27b7   :  { %v5727_v57 = vmul.f32 %v9086_v18, %v5666_v55  ;;  %v5743_v29 = vadd.f32 %v5742_v47, %v5741_v41 }
0x27b8   :  { %v5751_v12 = vrot.slane %v5750_v53, 4 }
0x27b9   :  { %v5757_v15 = vsel %vm163_vm0, %v5727_v57, 0.0 }
0x27ba   :  { %v5671_v40 = vpop.permute.xlu1 %5670 }
0x27bb   :  { %v5728_v16 = vmul.f32 %v9082_v56, %v5671_v40 }
0x27bd   :  { %v5758_v46 = vsel %vm163_vm0, %v5728_v16, 0.0  ;;  %v9092_v16 = vld [vmem:[#allocation9 + $0x58] sm:$0xff] }
0x27be   :  { %v5676_v26 = vpop.permute.xlu1 %5675  ;;  %v5759_v51 = vadd.f32 %v5758_v46, %v5757_v15  ;;  %v5744_v15 = vrot.slane %v5743_v29, 2 }
0x27bf   :  { %v5729_v23 = vmul.f32 %v9088_v5, %v5676_v26  ;;  %v9091_v26 = vld [vmem:[#allocation9 + $0x50] sm:$0xff] }
0x27c0   :  { %v5760_v56 = vrot.slane %v5759_v51, 4 }
0x27c1   :  { %v5766_v11 = vsel %vm163_vm0, %v5729_v23, 0.0  ;;  %v9093_v23 = vld [vmem:[#allocation9 + $0x60] sm:$0xff] }
0x27c2   :  { %v5681_v63 = vpop.permute.xlu1 %5680 }
0x27c3   :  { %v5730_v43 = vmul.f32 %v9085_v58, %v5681_v63 }
0x27c5   :  { %v5767_v44 = vsel %vm163_vm0, %v5730_v43, 0.0  ;;  %v5752_v43 = vadd.f32 %v5751_v12, %v5750_v53 }
0x27c6   :  { %v5691_v62 = vpop.permute.xlu1 %5690  ;;  %v5768_v55 = vadd.f32 %v5767_v44, %v5766_v11 }
0x27c7   :  { %v5732_v3 = vmul.f32 %v9089_v42, %v5691_v62  ;;  %v5761_v62 = vadd.f32 %v5760_v56, %v5759_v51  ;;  %v5753_v28 = vrot.slane %v5752_v43, 2 }
0x27c8   :  { %v5769_v8 = vrot.slane %v5768_v55, 4 }
0x27c9   :  { %v5776_v27 = vsel %vm163_vm0, %v5732_v3, 0.0  ;;  %v5716_v3 = vpop.permute.xlu0 %5715  ;;  %v5762_v54 = vrot.slane %v5761_v62, 2 }
0x27ca   :  { %v5696_v14 = vpop.permute.xlu1 %5695  ;;  %v5777_v40 = vadd.f32 %v5776_v27, %v5775_v0  ;;  %v5770_v2 = vadd.f32 %v5769_v8, %v5768_v55  ;;  %v5754_v0 = vadd.f32 %v5753_v28, %v5752_v43 }
0x27cb   :  { %v5733_v63 = vmul.f32 %v9091_v26, %v5696_v14  ;;  %v9095_v14 = vld [vmem:[#allocation9 + $0x70] sm:$0xff]  ;;  %v5763_v26 = vadd.f32 %v5762_v54, %v5761_v62 }
0x27cc   :  { %v5778_v21 = vrot.slane %v5777_v40, 4  ;;  %v5771_v27 = vrot.slane %v5770_v2, 2  ;;  %v5737_v53 = vmul.f32 %v9095_v14, %v5716_v3 }
0x27cd   :  { %v5784_v45 = vsel %vm163_vm0, %v5733_v63, 0.0  ;;  %v9096_v63 = vld [vmem:[#allocation9 + $0x78] sm:$0xff] }
0x27ce   :  { %v5701_v22 = vpop.permute.xlu1 %5700  ;;  %v5779_v5 = vadd.f32 %v5778_v21, %v5777_v40  ;;  %v5772_v56 = vadd.f32 %v5771_v27, %v5770_v2  ;;  %v5755_v21 = vrot.slane %v5754_v0, 1 }
0x27cf   :  { %v5734_v60 = vmul.f32 %v9092_v16, %v5701_v22  ;;  %v5745_v22 = vadd.f32 %v5744_v15, %v5743_v29 }
0x27d0   :  { %v5780_v24 = vrot.slane %v5779_v5, 2  ;;  %v5756_v3 = vadd.f32 %v5755_v21, %v5754_v0 }
0x27d1   :  { %v5785_v58 = vsel %vm163_vm0, %v5734_v60, 0.0  ;;  %v5802_v60 = vsel %vm163_vm0, %v5737_v53, 0.0  ;;  %v5746_v43 = vrot.slane %v5745_v22, 1 }
0x27d2   :  { %v5786_v18 = vadd.f32 %v5785_v58, %v5784_v45  ;;  %v5706_v57 = vpop.permute.xlu1 %5705  ;;  %v5781_v47 = vadd.f32 %v5780_v24, %v5779_v5 }
0x27d3   :  { %v5735_v42 = vmul.f32 %v9093_v23, %v5706_v57  ;;  %v5764_v57 = vrot.slane %v5763_v26, 1  ;;  %v5747_v54 = vadd.f32 %v5746_v43, %v5745_v22 }
0x27d4   :  { %v5787_v38 = vrot.slane %v5786_v18, 4  ;;  %v5782_v62 = vrot.slane %v5781_v47, 1 }
0x27d5   :  { %v5793_v51 = vsel %vm163_vm0, %v5735_v42, 0.0 }
0x27d6   :  { %v5788_v17 = vadd.f32 %v5787_v38, %v5786_v18  ;;  %v5711_v46 = vpop.permute.xlu1 %5710  ;;  %v5773_v38 = vrot.slane %v5772_v56, 1  ;;  %v5783_v15 = vadd.f32 %v5782_v62, %v5781_v47 }
0x27d7   :  { %v5736_v44 = vmul.f32 %v9094_v6, %v5711_v46  ;;  %v5765_v46 = vadd.f32 %v5764_v57, %v5763_v26 }
0x27d8   :  { %v5789_v41 = vrot.slane %v5788_v17, 2  ;;  %v5774_v6 = vadd.f32 %v5773_v38, %v5772_v56 }
0x27d9   :  { %v5794_v11 = vsel %vm163_vm0, %v5736_v44, 0.0 }
0x27da   :  { %v5795_v55 = vadd.f32 %v5794_v11, %v5793_v51  ;;  %v5721_v40 = vpop.permute.xlu1 %5720  ;;  %v5790_v45 = vadd.f32 %v5789_v41, %v5788_v17  ;;  %v5821_v17 = vsel %vm547_vm2, %v5756_v3, %v5747_v54 }
0x27db   :  { %v5738_v12 = vmul.f32 %v9096_v63, %v5721_v40  ;;  %v5822_v53 = vsel %vm549_vm3, %v5765_v46, %v5821_v17  ;;  %v5812_v63 = vld [vmem:[#allocation4 + $0x28] sm:$0xff] }
0x27dc   :  { %v5796_v16 = vrot.slane %v5795_v55, 4  ;;  %v5791_v28 = vrot.slane %v5790_v45, 1  ;;  %v5823_v11 = vsel %vm551_vm4, %v5774_v6, %v5822_v53  ;;  %v9098_v53 = vld [vmem:[#allocation7 + $0x8] sm:$0xff] }
0x27dd   :  { %v5803_v8 = vsel %vm163_vm0, %v5738_v12, 0.0  ;;  %v5824_v0 = vsel %vm553_vm5, %v5783_v15, %v5823_v11  ;;  %v9097_v15 = vld [vmem:[#allocation7] sm:$0xff] }
0x27de   :  { %v5797_v58 = vadd.f32 %v5796_v16, %v5795_v55  ;;  %v5804_v18 = vadd.f32 %v5803_v8, %v5802_v60  ;;  %v5792_v27 = vadd.f32 %v5791_v28, %v5790_v45 }
0x27e0   :  { %v5798_v23 = vrot.slane %v5797_v58, 2  ;;  %v5805_v42 = vrot.slane %v5804_v18, 4  ;;  %v5825_v55 = vsel %vm555_vm6, %v5792_v27, %v5824_v0  ;;  %v9100_v0 = vld [vmem:[#allocation7 + $0x18] sm:$0xff] }
0x27e2   :  { %v5799_v29 = vadd.f32 %v5798_v23, %v5797_v58  ;;  %v5806_v2 = vadd.f32 %v5805_v42, %v5804_v18 }
0x27e4   :  { %v5800_v5 = vrot.slane %v5799_v29, 1  ;;  %v5807_v44 = vrot.slane %v5806_v2, 2 }
0x27e6   :  { %v5808_v14 = vadd.f32 %v5807_v44, %v5806_v2  ;;  %v5801_v24 = vadd.f32 %v5800_v5, %v5799_v29 }
0x27e8   :  { %v5809_v51 = vrot.slane %v5808_v14, 1  ;;  %v5826_v40 = vsel %vm557_vm7, %v5801_v24, %v5825_v55 }
0x27ea   :  { %v5810_v41 = vadd.f32 %v5809_v51, %v5808_v14  ;;  %v9099_v51 = vld [vmem:[#allocation7 + $0x10] sm:$0xff] }
0x27ec   :  { %v5827_v26 = vsel %vm559_vm8, %v5810_v41, %v5826_v40  ;;  %v9101_v40 = vld [vmem:[#allocation7 + $0x20] sm:$0xff] }
0x27ed   :  { %8172 = vmatmul.mubr.msk.f32.vlgmr.msra.gmra.mrb[12].mxu1 %vm163_vm0, %v5827_v26 }
0x27ee   :  { %8310 = vmatpush3.bf16.msra.mxu1 %v9844_v50  ;;  %8182 = vmatprep.mubr.msk.f32.mxu1 %vm9338_vm10, %v12226_v49 }
0x27ef   :  { %8311 = vmatprep.subr.bf16.mxu1 %v12225_v48 }
0x27f2   :  { %8313 = vmatpush3.bf16.msra.mxu1 %v9849_v32 }
0x27f3   :  { %8322 = vmatprep.subr.bf16.mxu1 %v12225_v48 }
0x28c0   :  { %v5896_v12 = vpop.f32.mrb[12].mxu1 }
0x28c1   :  { %v5900_v22 = vadd.f32 %v5896_v12, %v5812_v63  ;;  %v8173_v56 = vpop.f32.mrb[13].mxu1 }
0x28c3   :  { %v5901_v16 = vadd.f32 %v5900_v22, %v11218_v19  ;;  %v9102_v22 = vld [vmem:[#allocation7 + $0x28] sm:$0xff] }
0x28c5   :  { %8792 = vtanh.f32 %v5901_v16  ;;  %v8040_v47 = vmul.f32 -1.442695, %v5901_v16  ;;  %v9103_v16 = vld [vmem:[#allocation7 + $0x40] sm:$0xff] }
0x28c7   :  { %8794 = vpow2.f32 %v8040_v47 }
0x28cf   :  { %v8793_v60 = vpop.eup %8792 }
0x28d0   :  { %5911 = vrot.lane.b32.xlu0 %v8793_v60, %s9339_s18 }
0x28d1   :  { %v8795_v8 = vpop.eup %8794 }
0x28d2   :  { %v5905_v21 = vadd.f32 1.0, %v8795_v8 }
0x28d4   :  { %8796 = vrcp.f32 %v5905_v21 }
0x28de   :  { %v8797_v45 = vpop.eup %8796 }
0x28df   :  { %v5909_v57 = vmul.f32 %v8797_v45, %v11206_v1 }
0x2942   :  { %v5912_v58 = vpop.permute.xlu0 %5911 }
0x2943   :  { %v5914_v18 = vmul.f32 %v8797_v45, %v5912_v58  ;;  %v9104_v58 = vld [vmem:[#allocation7 + $0x48] sm:$0xff] }
0x2945   :  { %5916 = vrot.lane.b32.xlu1 %v5914_v18, %s9340_s19 }
0x29b7   :  { %v5917_v43 = vpop.permute.xlu1 %5916 }
0x29b8   :  { %v11542_v38 = vadd.f32 %v5917_v43, %v5909_v57 }
0x29ba   :  { %8798 = vtanh.f32 %v11542_v38 }
0x29c4   :  { %v8799_v19 = vpop.eup %8798 }
0x29c5   :  { %5922 = vrot.lane.b32.xlu0 %v8799_v19, %s9339_s18 }
0x2a37   :  { %v5923_v23 = vpop.permute.xlu0 %5922 }
0x2a38   :  { %v5925_v42 = vmul.f32 %v8797_v45, %v5923_v23 }
0x2a3a   :  { %5927 = vrot.lane.b32.xlu1 %v5925_v42, %s9340_s19  ;;  %v11573_v42 = vld [vmem:[%s12208_s4] ss:$0 sm:$0xff] }
0x2aac   :  { %v5928_v62 = vpop.permute.xlu1 %5927 }
0x2aad   :  { %5931 = vst.msk [vmem:[#allocation2 + $0x28] sm:$0xff] %vm163_vm0, %v5928_v62  ;;  %8041 = vmatmul.mubr.msk.f32.vlgmr.msra.gmra.mrb[10].mxu0 %vm163_vm0, %v5928_v62 }
0x2aae   :  { %8317 = vmatpush1.bf16.msra.mxu0 %v9507_v9  ;;  %6955 = vmatprep.mubr.f32.mxu0 %v12226_v49 }
0x2aaf   :  { %8319 = vmatprep.subr.bf16.mxu0 %v9509_v10 }
0x2ab2   :  { %8321 = vmatpush1.bf16.msra.mxu0 %v9514_v13 }
0x2b80   :  { %v11553_v1 = vpop.f32.mrb[10].mxu0 }
0x2b81   :  { %v6002_v3 = vpop.f32.mrb[11].mxu0 }
0x2b82   :  { %v6006_v28 = vcombine.high %v6002_v3, %v6002_v3  ;;  %v6013_v29 = vrot.slane %v6002_v3, %v9527_v20 }
0x2b84   :  { %v6021_v2 = vcombine.high %v6013_v29, %v6013_v29  ;;  %v6029_v46 = vrot.slane %v6013_v29, %v9527_v20  ;;  %v6020_v54 = vrot.slane %v6006_v28, %v9527_v20  ;;  %v9106_v28 = vld [vmem:[#allocation7 + $0x38] sm:$0xff] }
0x2b86   :  { %v6043_v6 = vrot.slane %v6021_v2, %v9527_v20  ;;  %v6051_v9 = vcombine.high %v6029_v46, %v6029_v46  ;;  %v6058_v5 = vrot.slane %v6029_v46, %v9533_v25  ;;  %v6036_v13 = vrot.slane %v6020_v54, %v9527_v20 }
0x2b87   :  { %v6022_v27 = vcombine.high %v6020_v54, %v6020_v54 }
0x2b88   :  { %v6062_v10 = vrot.slane %v6043_v6, %v9533_v25  ;;  %v6066_v44 = vrot.slane %v6051_v9, %v9533_v25  ;;  %v6095_v17 = vadd.f32 %v9097_v15, %v6058_v5  ;;  %v6053_v14 = vcombine.high %v6043_v6, %v6043_v6 }
0x2b89   :  { %v6096_v24 = vadd.f32 %v9098_v53, %v6058_v5  ;;  %v6074_v55 = vrot.slane %v6036_v13, %v9533_v25  ;;  %v6050_v63 = vrot.slane %v6022_v27, %v9527_v20  ;;  %v6052_v47 = vcombine.high %v6036_v13, %v6036_v13  ;;  %v9107_v13 = vld [vmem:[#allocation7 + $0x58] sm:$0xff] }
0x2b8a   :  { %v6097_v11 = vadd.f32 %v9099_v51, %v6062_v10  ;;  %v6098_v41 = vadd.f32 %v9100_v0, %v6062_v10  ;;  %v6099_v26 = vadd.f32 %v9101_v40, %v6066_v44  ;;  %8800 = vtanh.f32 %v6095_v17 }
0x2b8b   :  { %v6070_v12 = vrot.slane %v6053_v14, %v9533_v25  ;;  %8802 = vtanh.f32 %v6096_v24  ;;  %v6100_v56 = vadd.f32 %v9102_v22, %v6066_v44  ;;  %v6103_v60 = vadd.f32 %v9103_v16, %v6074_v55 }
0x2b8c   :  { %8804 = vtanh.f32 %v6097_v11  ;;  %v6078_v8 = vrot.slane %v6050_v63, %v9533_v25  ;;  %v6054_v45 = vcombine.high %v6050_v63, %v6050_v63  ;;  %v6104_v18 = vadd.f32 %v9104_v58, %v6074_v55  ;;  %v9108_v11 = vld [vmem:[#allocation7 + $0x68] sm:$0xff] }
0x2b8d   :  { %8806 = vtanh.f32 %v6098_v41  ;;  %v6101_v21 = vadd.f32 %v11234_v30, %v6070_v12  ;;  %v6082_v57 = vrot.slane %v6052_v47, %v9533_v25  ;;  %v6102_v29 = vadd.f32 %v9106_v28, %v6070_v12  ;;  %v9109_v12 = vld [vmem:[#allocation7 + $0x78] sm:$0xff] }
0x2b8e   :  { %8808 = vtanh.f32 %v6099_v26  ;;  %v6105_v43 = vadd.f32 %v11246_v61, %v6078_v8  ;;  %v6086_v3 = vrot.slane %v6054_v45, %v9533_v25  ;;  %v6106_v44 = vadd.f32 %v9107_v13, %v6078_v8 }
0x2b8f   :  { %8810 = vtanh.f32 %v6100_v56  ;;  %v6107_v61 = vadd.f32 %v11255_v4, %v6082_v57  ;;  %v6108_v0 = vadd.f32 %v9108_v11, %v6082_v57 }
0x2b90   :  { %8812 = vtanh.f32 %v6103_v60  ;;  %v6109_v17 = vadd.f32 %v11263_v31, %v6086_v3  ;;  %v6110_v22 = vadd.f32 %v9109_v12, %v6086_v3 }
0x2b91   :  { %8814 = vtanh.f32 %v6101_v21 }
0x2b92   :  { %8816 = vtanh.f32 %v6104_v18 }
0x2b93   :  { %8818 = vtanh.f32 %v6105_v43 }
0x2b94   :  { %v8801_v19 = vpop.eup %8800  ;;  %8820 = vtanh.f32 %v6102_v29 }
0x2b95   :  { %v8803_v23 = vpop.eup %8802  ;;  %v6127_v62 = vmul.f32 %v11573_v42, %v8801_v19  ;;  %8822 = vtanh.f32 %v6107_v61 }
0x2b96   :  { %v8805_v30 = vpop.eup %8804  ;;  %v6128_v2 = vmul.f32 %v11573_v42, %v8803_v23  ;;  %8824 = vtanh.f32 %v6106_v44 }
0x2b97   :  { %v8807_v46 = vpop.eup %8806  ;;  %v6143_v54 = vsel %vm163_vm0, %v6127_v62, 0.0  ;;  %v6129_v6 = vmul.f32 %v11573_v42, %v8805_v30  ;;  %8826 = vtanh.f32 %v6109_v17 }
0x2b98   :  { %v8809_v9 = vpop.eup %8808  ;;  %v6146_v5 = vsel %vm163_vm0, %v6128_v2, 0.0  ;;  %6144 = vadd.xlane.f32.xlu0 %v6143_v54  ;;  %v6130_v27 = vmul.f32 %v11573_v42, %v8807_v46  ;;  %8828 = vtanh.f32 %v6108_v0 }
0x2b99   :  { %6147 = vadd.xlane.f32.xlu1 %v6146_v5  ;;  %v6131_v10 = vmul.f32 %v11573_v42, %v8809_v9  ;;  %v8811_v15 = vpop.eup %8810  ;;  %v6149_v4 = vsel %vm163_vm0, %v6129_v6, 0.0  ;;  %8830 = vtanh.f32 %v6110_v22 }
0x2b9a   :  { %v8813_v14 = vpop.eup %8812  ;;  %v6152_v41 = vsel %vm163_vm0, %v6130_v27, 0.0  ;;  %v6132_v31 = vmul.f32 %v11573_v42, %v8811_v15 }
0x2b9b   :  { %v6155_v53 = vsel %vm163_vm0, %v6131_v10, 0.0  ;;  %v8815_v24 = vpop.eup %8814  ;;  %v6135_v51 = vmul.f32 %v11573_v42, %v8813_v14 }
0x2b9c   :  { %6150 = vadd.xlane.f32.xlu0 %v6149_v4  ;;  %v8817_v55 = vpop.eup %8816  ;;  %v6133_v26 = vmul.f32 %v11573_v42, %v8815_v24  ;;  %v6158_v56 = vsel %vm163_vm0, %v6132_v31, 0.0  ;;  %v12232_v24 = vld [vmem:[#allocation21_spill] sm:$0xff] }
0x2b9d   :  { %6156 = vadd.xlane.f32.xlu1 %v6155_v53  ;;  %v6167_v40 = vsel %vm163_vm0, %v6135_v51, 0.0  ;;  %v8819_v63 = vpop.eup %8818  ;;  %v6136_v16 = vmul.f32 %v11573_v42, %v8817_v55 }
0x2b9e   :  { %v8821_v60 = vpop.eup %8820  ;;  %v6161_v47 = vsel %vm163_vm0, %v6133_v26, 0.0  ;;  %v6137_v8 = vmul.f32 %v11573_v42, %v8819_v63 }
0x2b9f   :  { %v8823_v21 = vpop.eup %8822  ;;  %v6170_v45 = vsel %vm163_vm0, %v6136_v16, 0.0  ;;  %v6134_v58 = vmul.f32 %v11573_v42, %v8821_v60 }
0x2ba0   :  { %6153 = vadd.xlane.f32.xlu0 %v6152_v41  ;;  %v8825_v18 = vpop.eup %8824  ;;  %v6173_v57 = vsel %vm163_vm0, %v6137_v8, 0.0  ;;  %v6139_v43 = vmul.f32 %v11573_v42, %v8823_v21 }
0x2ba1   :  { %6168 = vadd.xlane.f32.xlu1 %v6167_v40  ;;  %v8827_v19 = vpop.eup %8826  ;;  %v6164_v23 = vsel %vm163_vm0, %v6134_v58, 0.0  ;;  %v6138_v62 = vmul.f32 %v11573_v42, %v8825_v18 }
0x2ba2   :  { %v8829_v30 = vpop.eup %8828  ;;  %v6179_v3 = vsel %vm163_vm0, %v6139_v43, 0.0  ;;  %v6141_v28 = vmul.f32 %v11573_v42, %v8827_v19 }
0x2ba3   :  { %v6176_v29 = vsel %vm163_vm0, %v6138_v62, 0.0  ;;  %v6140_v2 = vmul.f32 %v11573_v42, %v8829_v30  ;;  %v8831_v46 = vpop.eup %8830 }
0x2ba4   :  { %6159 = vadd.xlane.f32.xlu0 %v6158_v56  ;;  %v6185_v61 = vsel %vm163_vm0, %v6141_v28, 0.0  ;;  %v6142_v6 = vmul.f32 %v11573_v42, %v8831_v46 }
0x2ba5   :  { %6162 = vadd.xlane.f32.xlu1 %v6161_v47  ;;  %v6182_v54 = vsel %vm163_vm0, %v6140_v2, 0.0 }
0x2ba6   :  { %v6188_v9 = vsel %vm163_vm0, %v6142_v6, 0.0 }
0x2ba8   :  { %6171 = vadd.xlane.f32.xlu0 %v6170_v45 }
0x2ba9   :  { %6174 = vadd.xlane.f32.xlu1 %v6173_v57 }
0x2bac   :  { %6165 = vadd.xlane.f32.xlu0 %v6164_v23 }
0x2bad   :  { %6180 = vadd.xlane.f32.xlu1 %v6179_v3 }
0x2bb0   :  { %6177 = vadd.xlane.f32.xlu0 %v6176_v29 }
0x2bb1   :  { %6186 = vadd.xlane.f32.xlu1 %v6185_v61 }
0x2bb4   :  { %6183 = vadd.xlane.f32.xlu0 %v6182_v54 }
0x2bb8   :  { %6189 = vadd.xlane.f32.xlu0 %v6188_v9 }
0x2c25   :  { %v6145_v5 = vpop.xlane.xlu0 %6144 }
0x2c26   :  { %v6148_v10 = vpop.xlane.xlu1 %6147  ;;  %v6191_v11 = vadd.f32 %v6145_v5, %v12232_v24 }
0x2c27   :  { %v6192_v41 = vadd.f32 %v6148_v10, %v12232_v24 }
0x2c28   :  { %v6226_v22 = vrot.slane %v6191_v11, %v9587_v36 }
0x2c29   :  { %v6151_v13 = vpop.xlane.xlu0 %6150  ;;  %v6230_v60 = vrot.slane %v6192_v41, %v9590_v37 }
0x2c2a   :  { %v6157_v44 = vpop.xlane.xlu1 %6156  ;;  %v11619_v31 = vadd.f32 %v6151_v13, %v12232_v24 }
0x2c2b   :  { %v11625_v40 = vadd.f32 %v6157_v44, %v12232_v24  ;;  %v6231_v28 = vsel %vm482_vm1, %v6230_v60, %v6226_v22 }
0x2c2c   :  { %v6235_v47 = vrot.slane %v11619_v31, %v9587_v36 }
0x2c2d   :  { %v6154_v15 = vpop.xlane.xlu0 %6153  ;;  %v6244_v45 = vrot.slane %v11625_v40, %v9587_v36 }
0x2c2e   :  { %v6169_v17 = vpop.xlane.xlu1 %6168  ;;  %v11611_v51 = vadd.f32 %v6154_v15, %v12232_v24 }
0x2c2f   :  { %v11655_v19 = vadd.f32 %v6169_v17, %v12232_v24 }
0x2c30   :  { %v6239_v63 = vrot.slane %v11611_v51, %v9590_v37 }
0x2c31   :  { %v6160_v4 = vpop.xlane.xlu0 %6159  ;;  %v6262_v13 = vrot.slane %v11655_v19, %v9587_v36 }
0x2c32   :  { %v6163_v27 = vpop.xlane.xlu1 %6162  ;;  %v11615_v42 = vadd.f32 %v6160_v4, %v12232_v24  ;;  %v6240_v18 = vsel %vm482_vm1, %v6239_v63, %v6235_v47 }
0x2c33   :  { %v11630_v12 = vadd.f32 %v6163_v27, %v12232_v24  ;;  %v6295_v61 = vsel %vm547_vm2, %v6240_v18, %v6231_v28 }
0x2c34   :  { %v6248_v56 = vrot.slane %v11615_v42, %v9590_v37 }
0x2c35   :  { %v6172_v14 = vpop.xlane.xlu0 %6171  ;;  %v6253_v57 = vrot.slane %v11630_v12, %v9587_v36 }
0x2c36   :  { %v6175_v53 = vpop.xlane.xlu1 %6174  ;;  %v11646_v58 = vadd.f32 %v6172_v14, %v12232_v24  ;;  %v6249_v23 = vsel %vm482_vm1, %v6248_v56, %v6244_v45 }
0x2c37   :  { %v11652_v43 = vadd.f32 %v6175_v53, %v12232_v24  ;;  %v6296_v6 = vsel %vm549_vm3, %v6249_v23, %v6295_v61 }
0x2c38   :  { %v6266_v54 = vrot.slane %v11646_v58, %v9590_v37 }
0x2c39   :  { %v6166_v0 = vpop.xlane.xlu0 %6165  ;;  %v6271_v9 = vrot.slane %v11652_v43, %v9587_v36 }
0x2c3a   :  { %v11622_v55 = vadd.f32 %v6166_v0, %v12232_v24  ;;  %v6181_v26 = vpop.xlane.xlu1 %6180  ;;  %v6267_v14 = vsel %vm482_vm1, %v6266_v54, %v6262_v13 }
0x2c3b   :  { %v11659_v62 = vadd.f32 %v6181_v26, %v12232_v24 }
0x2c3c   :  { %v6257_v8 = vrot.slane %v11622_v55, %v9590_v37 }
0x2c3d   :  { %v6178_v16 = vpop.xlane.xlu0 %6177  ;;  %v6280_v15 = vrot.slane %v11659_v62, %v9587_v36 }
0x2c3e   :  { %v11641_v21 = vadd.f32 %v6178_v16, %v12232_v24  ;;  %v6187_v30 = vpop.xlane.xlu1 %6186  ;;  %v6258_v29 = vsel %vm482_vm1, %v6257_v8, %v6253_v57 }
0x2c3f   :  { %v11675_v5 = vadd.f32 %v6187_v30, %v12232_v24  ;;  %v6297_v44 = vsel %vm551_vm4, %v6258_v29, %v6296_v6 }
0x2c40   :  { %v6275_v2 = vrot.slane %v11641_v21, %v9590_v37  ;;  %v6298_v63 = vsel %vm553_vm5, %v6267_v14, %v6297_v44 }
0x2c41   :  { %v6184_v3 = vpop.xlane.xlu0 %6183  ;;  %v6289_v0 = vrot.slane %v11675_v5, %v9587_v36 }
0x2c42   :  { %v11666_v46 = vadd.f32 %v6184_v3, %v12232_v24  ;;  %v6276_v4 = vsel %vm482_vm1, %v6275_v2, %v6271_v9 }
0x2c43   :  { %v6299_v22 = vsel %vm555_vm6, %v6276_v4, %v6298_v63 }
0x2c44   :  { %v6284_v10 = vrot.slane %v11666_v46, %v9590_v37 }
0x2c45   :  { %v6190_v17 = vpop.xlane.xlu0 %6189 }
0x2c46   :  { %v11686_v27 = vadd.f32 %v6190_v17, %v12232_v24  ;;  %v6285_v53 = vsel %vm482_vm1, %v6284_v10, %v6280_v15 }
0x2c47   :  { %v6300_v16 = vsel %vm557_vm7, %v6285_v53, %v6299_v22 }
0x2c48   :  { %v6293_v26 = vrot.slane %v11686_v27, %v9590_v37 }
0x2c4a   :  { %v6294_v56 = vsel %vm482_vm1, %v6293_v26, %v6289_v0 }
0x2c4b   :  { %v6301_v60 = vsel %vm559_vm8, %v6294_v56, %v6300_v16 }
0x2c4c   :  { %v6303_v47 = vsel %vm562_vm9, %v6301_v60, -inf }
0x2c4d   :  { %6304 = vmax.xlane.f32.xlu1 %v6303_v47 }
0x2cda   :  { %v6305_v8 = vpop.xlane.xlu1 %6304 }
0x2cdb   :  { %v6310_v45 = vrot.slane %v6305_v8, %v9533_v25  ;;  %v6314_v18 = vrot.slane %v6305_v8, %v9700_v52  ;;  %v6318_v30 = vrot.slane %v6305_v8, %v9725_v39  ;;  %v6322_v61 = vrot.slane %v6305_v8, %v9691_v33 }
0x2cdc   :  { %v6330_v44 = vrot.slane %v6305_v8, %v9697_v35  ;;  %v6338_v63 = vrot.slane %v6305_v8, %v9717_v7 }
0x2cdd   :  { %v6347_v57 = vsub.f32 %v6191_v11, %v6310_v45  ;;  %v6348_v23 = vsub.f32 %v6192_v41, %v6310_v45  ;;  %v6350_v3 = vsub.f32 %v11611_v51, %v6314_v18  ;;  %v6349_v28 = vsub.f32 %v11619_v31, %v6314_v18 }
0x2cde   :  { %v6352_v54 = vsub.f32 %v11615_v42, %v6318_v30  ;;  %v6351_v9 = vsub.f32 %v11625_v40, %v6318_v30  ;;  %v6326_v11 = vrot.slane %v6305_v8, %v9694_v34  ;;  %v6354_v41 = vsub.f32 %v11622_v55, %v6322_v61 }
0x2cdf   :  { %v6363_v29 = vmul.f32 1.442695, %v6347_v57  ;;  %v6365_v2 = vmul.f32 1.442695, %v6348_v23  ;;  %v6369_v6 = vmul.f32 1.442695, %v6350_v3  ;;  %v6353_v31 = vsub.f32 %v11630_v12, %v6322_v61 }
0x2ce0   :  { %v6367_v10 = vmul.f32 1.442695, %v6349_v28  ;;  %v6373_v51 = vmul.f32 1.442695, %v6352_v54  ;;  %v6371_v13 = vmul.f32 1.442695, %v6351_v9  ;;  %v6356_v42 = vsub.f32 %v11646_v58, %v6326_v11 }
0x2ce1   :  { %8832 = vpow2.f32 %v6363_v29  ;;  %v6377_v15 = vmul.f32 1.442695, %v6354_v41  ;;  %v6355_v40 = vsub.f32 %v11655_v19, %v6326_v11  ;;  %v6375_v17 = vmul.f32 1.442695, %v6353_v31 }
0x2ce2   :  { %8834 = vpow2.f32 %v6365_v2  ;;  %v6334_v55 = vrot.slane %v6305_v8, %v9706_v59  ;;  %v6358_v12 = vsub.f32 %v11641_v21, %v6330_v44  ;;  %v6381_v53 = vmul.f32 1.442695, %v6356_v42 }
0x2ce3   :  { %8836 = vpow2.f32 %v6369_v6  ;;  %v6357_v58 = vsub.f32 %v11652_v43, %v6330_v44  ;;  %v6379_v19 = vmul.f32 1.442695, %v6355_v40  ;;  %v6362_v47 = vsub.f32 %v11686_v27, %v6338_v63 }
0x2ce4   :  { %8838 = vpow2.f32 %v6367_v10  ;;  %v6360_v22 = vsub.f32 %v11666_v46, %v6334_v55  ;;  %v6385_v21 = vmul.f32 1.442695, %v6358_v12  ;;  %v6359_v56 = vsub.f32 %v11659_v62, %v6334_v55 }
0x2ce5   :  { %8840 = vpow2.f32 %v6373_v51  ;;  %v6383_v43 = vmul.f32 1.442695, %v6357_v58  ;;  %v6361_v46 = vsub.f32 %v11675_v5, %v6338_v63  ;;  %v6393_v57 = vmul.f32 1.442695, %v6362_v47 }
0x2ce6   :  { %8842 = vpow2.f32 %v6371_v13  ;;  %v6389_v8 = vmul.f32 1.442695, %v6360_v22  ;;  %v6387_v45 = vmul.f32 1.442695, %v6359_v56 }
0x2ce7   :  { %8844 = vpow2.f32 %v6377_v15  ;;  %v6391_v27 = vmul.f32 1.442695, %v6361_v46 }
0x2ce8   :  { %8846 = vpow2.f32 %v6375_v17 }
0x2ce9   :  { %8848 = vpow2.f32 %v6381_v53 }
0x2cea   :  { %8850 = vpow2.f32 %v6379_v19 }
0x2ceb   :  { %v11714_v4 = vpop.eup %8832  ;;  %8852 = vpow2.f32 %v6385_v21 }
0x2cec   :  { %v11716_v14 = vpop.eup %8834  ;;  %6412 = vperm.xlu0 %8354, %v11714_v4   ;;  %8854 = vpow2.f32 %v6383_v43 }
0x2ced   :  { %6415 = vperm.xlu1 %8355, %v11716_v14   ;;  %v11723_v0 = vpop.eup %8836  ;;  %8856 = vpow2.f32 %v6389_v8 }
0x2cee   :  { %v11725_v26 = vpop.eup %8838  ;;  %8858 = vpow2.f32 %v6387_v45 }
0x2cef   :  { %v11732_v16 = vpop.eup %8840  ;;  %8860 = vpow2.f32 %v6393_v57 }
0x2cf0   :  { %6421 = vperm.xlu0 %8354, %v11723_v0   ;;  %v11734_v60 = vpop.eup %8842  ;;  %8862 = vpow2.f32 %v6391_v27 }
0x2cf1   :  { %6418 = vperm.xlu1 %8355, %v11725_v26   ;;  %v11740_v18 = vpop.eup %8844 }
0x2cf2   :  { %v11742_v62 = vpop.eup %8846 }
0x2cf3   :  { %v11746_v23 = vpop.eup %8848 }
0x2cf4   :  { %6427 = vperm.xlu0 %8354, %v11732_v16   ;;  %v11748_v30 = vpop.eup %8850 }
0x2cf5   :  { %6424 = vperm.xlu1 %8355, %v11734_v60   ;;  %v11752_v5 = vpop.eup %8852 }
0x2cf6   :  { %v11754_v3 = vpop.eup %8854 }
0x2cf7   :  { %v11758_v28 = vpop.eup %8856 }
0x2cf8   :  { %6433 = vperm.xlu0 %8354, %v11740_v18   ;;  %v11760_v29 = vpop.eup %8858 }
0x2cf9   :  { %6430 = vperm.xlu1 %8355, %v11742_v62   ;;  %v11764_v2 = vpop.eup %8860 }
0x2cfa   :  { %v8863_v61 = vpop.eup %8862 }
0x2cfc   :  { %6439 = vperm.xlu0 %8354, %v11746_v23  }
0x2cfd   :  { %6436 = vperm.xlu1 %8355, %v11748_v30  }
0x2d00   :  { %6445 = vperm.xlu0 %8354, %v11752_v5  }
0x2d01   :  { %6442 = vperm.xlu1 %8355, %v11754_v3  }
0x2d04   :  { %6451 = vperm.xlu0 %8354, %v11758_v28  }
0x2d05   :  { %6448 = vperm.xlu1 %8355, %v11760_v29  }
0x2d08   :  { %6457 = vperm.xlu0 %8354, %v11764_v2  }
0x2d09   :  { %6454 = vperm.xlu1 %8355, %v8863_v61  }
0x2d6b   :  { %v6413_v54 = vpop.permute.xlu0 %6412 }
0x2d6c   :  { %v6416_v6 = vpop.permute.xlu1 %6415  ;;  %v6462_v58 = vrot.slane %v6413_v54, %v9587_v36 }
0x2d6d   :  { %v6466_v53 = vrot.slane %v6416_v6, %v9590_v37 }
0x2d6f   :  { %v6422_v9 = vpop.permute.xlu0 %6421  ;;  %v6467_v27 = vsel %vm482_vm1, %v6466_v53, %v6462_v58 }
0x2d70   :  { %v6419_v10 = vpop.permute.xlu1 %6418  ;;  %v6475_v15 = vrot.slane %v6422_v9, %v9590_v37 }
0x2d71   :  { %v6471_v42 = vrot.slane %v6419_v10, %v9587_v36 }
0x2d73   :  { %v6428_v11 = vpop.permute.xlu0 %6427  ;;  %v6476_v56 = vsel %vm482_vm1, %v6475_v15, %v6471_v42 }
0x2d74   :  { %v6425_v41 = vpop.permute.xlu1 %6424  ;;  %v6484_v55 = vrot.slane %v6428_v11, %v9590_v37  ;;  %v6531_v9 = vsel %vm547_vm2, %v6476_v56, %v6467_v27 }
0x2d75   :  { %v6480_v17 = vrot.slane %v6425_v41, %v9587_v36 }
0x2d77   :  { %v6434_v51 = vpop.permute.xlu0 %6433  ;;  %v6485_v46 = vsel %vm482_vm1, %v6484_v55, %v6480_v17 }
0x2d78   :  { %v6431_v31 = vpop.permute.xlu1 %6430  ;;  %v6493_v63 = vrot.slane %v6434_v51, %v9590_v37  ;;  %v6532_v11 = vsel %vm549_vm3, %v6485_v46, %v6531_v9 }
0x2d79   :  { %v6489_v19 = vrot.slane %v6431_v31, %v9587_v36 }
0x2d7b   :  { %v6440_v13 = vpop.permute.xlu0 %6439  ;;  %v6494_v54 = vsel %vm482_vm1, %v6493_v63, %v6489_v19 }
0x2d7c   :  { %v6437_v44 = vpop.permute.xlu1 %6436  ;;  %v6502_v21 = vrot.slane %v6440_v13, %v9590_v37  ;;  %v6533_v31 = vsel %vm551_vm4, %v6494_v54, %v6532_v11 }
0x2d7d   :  { %v6498_v22 = vrot.slane %v6437_v44, %v9587_v36 }
0x2d7f   :  { %v6446_v40 = vpop.permute.xlu0 %6445  ;;  %v6503_v10 = vsel %vm482_vm1, %v6502_v21, %v6498_v22 }
0x2d80   :  { %v6443_v12 = vpop.permute.xlu1 %6442  ;;  %v6511_v47 = vrot.slane %v6446_v40, %v9590_v37  ;;  %v6534_v15 = vsel %vm553_vm5, %v6503_v10, %v6533_v31 }
0x2d81   :  { %v6507_v43 = vrot.slane %v6443_v12, %v9587_v36 }
0x2d83   :  { %v6452_v8 = vpop.permute.xlu0 %6451  ;;  %v6512_v41 = vsel %vm482_vm1, %v6511_v47, %v6507_v43 }
0x2d84   :  { %v6449_v45 = vpop.permute.xlu1 %6448  ;;  %v6520_v57 = vrot.slane %v6452_v8, %v9590_v37  ;;  %v6535_v17 = vsel %vm555_vm6, %v6512_v41, %v6534_v15  ;;  %v9111_v15 = vld [vmem:[#allocation9 + $0x28] sm:$0xff] }
0x2d85   :  { %v6516_v6 = vrot.slane %v6449_v45, %v9587_v36 }
0x2d87   :  { %v6458_v51 = vpop.permute.xlu0 %6457  ;;  %v6521_v13 = vsel %vm482_vm1, %v6520_v57, %v6516_v6 }
0x2d88   :  { %v6455_v44 = vpop.permute.xlu1 %6454  ;;  %v6529_v42 = vrot.slane %v6458_v51, %v9590_v37  ;;  %v6536_v12 = vsel %vm557_vm7, %v6521_v13, %v6535_v17  ;;  %v9112_v17 = vld [vmem:[#allocation9 + $0x8] sm:$0xff] }
0x2d89   :  { %v6525_v40 = vrot.slane %v6455_v44, %v9587_v36  ;;  %v9110_v44 = vld [vmem:[#allocation9 + $0x18] sm:$0xff] }
0x2d8b   :  { %v6530_v55 = vsel %vm482_vm1, %v6529_v42, %v6525_v40 }
0x2d8c   :  { %v6537_v53 = vsel %vm559_vm8, %v6530_v55, %v6536_v12 }
0x2d8d   :  { %v6539_v58 = vsel %vm562_vm9, %v6537_v53, 0.0  ;;  %v9114_v53 = vld [vmem:[#allocation9 + $0x38] sm:$0xff] }
0x2d8e   :  { %6540 = vadd.xlane.f32.xlu1 %v6539_v58  ;;  %v9115_v58 = vld [vmem:[#allocation9 + $0x20] sm:$0xff] }
0x2e1b   :  { %v6541_v19 = vpop.xlane.xlu1 %6540 }
0x2e1c   :  { %8864 = vrcp.f32 %v6541_v19 }
0x2e26   :  { %v8865_v63 = vpop.eup %8864 }
0x2e27   :  { %v6563_v22 = vrot.slane %v8865_v63, %v9694_v34  ;;  %v6547_v21 = vrot.slane %v8865_v63, %v9533_v25  ;;  %v6575_v47 = vrot.slane %v8865_v63, %v9717_v7  ;;  %v6551_v45 = vrot.slane %v8865_v63, %v9700_v52 }
0x2e29   :  { %v6593_v56 = vmul.f32 %v11746_v23, %v6563_v22  ;;  %v6584_v43 = vmul.f32 %v11714_v4, %v6547_v21  ;;  %v6598_v8 = vmul.f32 %v8863_v61, %v6575_v47  ;;  %v6585_v46 = vmul.f32 %v11716_v14, %v6547_v21 }
0x2e2a   :  { %v6586_v57 = vmul.f32 %v11725_v26, %v6551_v45  ;;  %v6587_v27 = vmul.f32 %v11723_v0, %v6551_v45  ;;  %v6555_v23 = vrot.slane %v8865_v63, %v9725_v39  ;;  %v6559_v61 = vrot.slane %v8865_v63, %v9691_v33  ;;  %v9119_v45 = vld [vmem:[#allocation9 + $0x48] sm:$0xff] }
0x2e2b   :  { %6647 = vperm.xlu1 %8355, %v6593_v56   ;;  %6602 = vperm.xlu0 %8354, %v6584_v43   ;;  %v6592_v26 = vmul.f32 %v11748_v30, %v6563_v22  ;;  %v6567_v0 = vrot.slane %v8865_v63, %v9697_v35  ;;  %v9116_v22 = vld [vmem:[#allocation9] sm:$0xff]  ;;  %v9117_v43 = vld [vmem:[#allocation9 + $0x30] sm:$0xff] }
0x2e2c   :  { %v6588_v4 = vmul.f32 %v11734_v60, %v6555_v23  ;;  %v6589_v54 = vmul.f32 %v11732_v16, %v6555_v23  ;;  %v6590_v14 = vmul.f32 %v11742_v62, %v6559_v61  ;;  %v6591_v6 = vmul.f32 %v11740_v18, %v6559_v61 }
0x2e2d   :  { %v6594_v9 = vmul.f32 %v11754_v3, %v6567_v0  ;;  %v6595_v60 = vmul.f32 %v11752_v5, %v6567_v0  ;;  %v6571_v16 = vrot.slane %v8865_v63, %v9706_v59  ;;  %v6599_v18 = vmul.f32 %v11764_v2, %v6575_v47 }
0x2e2f   :  { %6672 = vperm.xlu1 %8355, %v6598_v8   ;;  %6607 = vperm.xlu0 %8354, %v6585_v46   ;;  %v6596_v10 = vmul.f32 %v11760_v29, %v6571_v16  ;;  %v6597_v62 = vmul.f32 %v11758_v28, %v6571_v16  ;;  %v9113_v28 = vld [vmem:[#allocation9 + $0x10] sm:$0xff]  ;;  %v9118_v8 = vld [vmem:[#allocation9 + $0x40] sm:$0xff] }
0x2e33   :  { %6612 = vperm.xlu0 %8354, %v6586_v57  }
0x2e37   :  { %6617 = vperm.xlu0 %8354, %v6587_v27  }
0x2e3b   :  { %6622 = vperm.xlu0 %8354, %v6588_v4  }
0x2e3f   :  { %6627 = vperm.xlu0 %8354, %v6589_v54  }
0x2e43   :  { %6632 = vperm.xlu0 %8354, %v6590_v14  }
0x2e47   :  { %6637 = vperm.xlu0 %8354, %v6591_v6  }
0x2e4b   :  { %6642 = vperm.xlu0 %8354, %v6592_v26  }
0x2e4f   :  { %6652 = vperm.xlu0 %8354, %v6594_v9  }
0x2e53   :  { %6657 = vperm.xlu0 %8354, %v6595_v60  }
0x2e57   :  { %6662 = vperm.xlu0 %8354, %v6596_v10  }
0x2e5b   :  { %6667 = vperm.xlu0 %8354, %v6597_v62  }
0x2e5f   :  { %6677 = vperm.xlu0 %8354, %v6599_v18  }
0x2eaa   :  { %v6603_v30 = vpop.permute.xlu0 %6602  ;;  %v6648_v29 = vpop.permute.xlu1 %6647 }
0x2eab   :  { %v6680_v21 = vmul.f32 %v9116_v22, %v6603_v30  ;;  %v6689_v57 = vmul.f32 %v9119_v45, %v6648_v29  ;;  %v9120_v30 = vld [vmem:[#allocation9 + $0x50] sm:$0xff] }
0x2ead   :  { %v6696_v0 = vsel %vm163_vm0, %v6680_v21, 0.0  ;;  %v6733_v16 = vsel %vm163_vm0, %v6689_v57, 0.0 }
0x2eae   :  { %v6608_v11 = vpop.permute.xlu0 %6607  ;;  %v6673_v22 = vpop.permute.xlu1 %6672 }
0x2eaf   :  { %v6681_v55 = vmul.f32 %v9112_v17, %v6608_v11 }
0x2eb1   :  { %v6697_v23 = vsel %vm163_vm0, %v6681_v55, 0.0 }
0x2eb2   :  { %v6613_v41 = vpop.permute.xlu0 %6612  ;;  %v6698_v10 = vadd.f32 %v6697_v23, %v6696_v0 }
0x2eb3   :  { %v6682_v12 = vmul.f32 %v9113_v28, %v6613_v41 }
0x2eb5   :  { %v6705_v4 = vsel %vm163_vm0, %v6682_v12, 0.0 }
0x2eb6   :  { %v6618_v51 = vpop.permute.xlu0 %6617 }
0x2eb7   :  { %v6683_v42 = vmul.f32 %v9110_v44, %v6618_v51 }
0x2eb9   :  { %v6706_v56 = vsel %vm163_vm0, %v6683_v42, 0.0 }
0x2eba   :  { %v6623_v3 = vpop.permute.xlu0 %6622  ;;  %v6707_v61 = vadd.f32 %v6706_v56, %v6705_v4 }
0x2ebb   :  { %v6684_v19 = vmul.f32 %v9115_v58, %v6623_v3 }
0x2ebc   :  { %v6708_v41 = vrot.slane %v6707_v61, 4 }
0x2ebd   :  { %v6714_v14 = vsel %vm163_vm0, %v6684_v19, 0.0  ;;  %v9122_v19 = vld [vmem:[#allocation9 + $0x60] sm:$0xff] }
0x2ebe   :  { %v6628_v31 = vpop.permute.xlu0 %6627  ;;  %v6709_v29 = vadd.f32 %v6708_v41, %v6707_v61 }
0x2ebf   :  { %v6685_v40 = vmul.f32 %v9111_v15, %v6628_v31  ;;  %v9121_v31 = vld [vmem:[#allocation9 + $0x58] sm:$0xff] }
0x2ec0   :  { %v6710_v21 = vrot.slane %v6709_v29, 2 }
0x2ec1   :  { %v6715_v27 = vsel %vm163_vm0, %v6685_v40, 0.0 }
0x2ec2   :  { %v6633_v13 = vpop.permute.xlu0 %6632  ;;  %v6716_v9 = vadd.f32 %v6715_v27, %v6714_v14  ;;  %v9124_v27 = vld [vmem:[#allocation9 + $0x70] sm:$0xff]  ;;  %v6711_v14 = vadd.f32 %v6710_v21, %v6709_v29 }
0x2ec3   :  { %v6686_v47 = vmul.f32 %v9117_v43, %v6633_v13  ;;  %v6694_v23 = vmul.f32 %v9124_v27, %v6673_v22 }
0x2ec4   :  { %v6717_v3 = vrot.slane %v6716_v9, 4 }
0x2ec5   :  { %v6723_v60 = vsel %vm163_vm0, %v6686_v47, 0.0 }
0x2ec6   :  { %v6638_v5 = vpop.permute.xlu0 %6637  ;;  %v6718_v28 = vadd.f32 %v6717_v3, %v6716_v9 }
0x2ec7   :  { %v6687_v2 = vmul.f32 %v9114_v53, %v6638_v5  ;;  %v6699_v5 = vrot.slane %v6698_v10, 4 }
0x2ec8   :  { %v6719_v47 = vrot.slane %v6718_v28, 2 }
0x2ec9   :  { %v6724_v54 = vsel %vm163_vm0, %v6687_v2, 0.0  ;;  %v6700_v12 = vadd.f32 %v6699_v5, %v6698_v10 }
0x2eca   :  { %v6643_v63 = vpop.permute.xlu0 %6642  ;;  %v6725_v62 = vadd.f32 %v6724_v54, %v6723_v60  ;;  %v6720_v9 = vadd.f32 %v6719_v47, %v6718_v28  ;;  %v9125_v60 = vld [vmem:[#allocation9 + $0x78] sm:$0xff] }
0x2ecb   :  { %v6688_v46 = vmul.f32 %v9118_v8, %v6643_v63  ;;  %v9123_v8 = vld [vmem:[#allocation9 + $0x68] sm:$0xff]  ;;  %v6701_v45 = vrot.slane %v6700_v12, 2 }
0x2ecc   :  { %v6726_v44 = vrot.slane %v6725_v62, 4  ;;  %v6721_v5 = vrot.slane %v6720_v9, 1 }
0x2ecd   :  { %v6732_v6 = vsel %vm163_vm0, %v6688_v46, 0.0  ;;  %v6702_v10 = vadd.f32 %v6701_v45, %v6700_v12 }
0x2ece   :  { %v6653_v26 = vpop.permute.xlu0 %6652  ;;  %v6734_v18 = vadd.f32 %v6733_v16, %v6732_v6  ;;  %v6727_v53 = vadd.f32 %v6726_v44, %v6725_v62 }
0x2ecf   :  { %v6690_v11 = vmul.f32 %v9120_v30, %v6653_v26  ;;  %v6759_v30 = vsel %vm163_vm0, %v6694_v23, 0.0  ;;  %v6703_v44 = vrot.slane %v6702_v10, 1 }
0x2ed0   :  { %v6735_v42 = vrot.slane %v6734_v18, 4  ;;  %v6728_v57 = vrot.slane %v6727_v53, 2 }
0x2ed1   :  { %v6741_v15 = vsel %vm163_vm0, %v6690_v11, 0.0 }
0x2ed2   :  { %v6658_v51 = vpop.permute.xlu0 %6657  ;;  %v6736_v58 = vadd.f32 %v6735_v42, %v6734_v18  ;;  %v6729_v62 = vadd.f32 %v6728_v57, %v6727_v53  ;;  %v6722_v53 = vadd.f32 %v6721_v5, %v6720_v9 }
0x2ed3   :  { %v6691_v13 = vmul.f32 %v9121_v31, %v6658_v51  ;;  %v6712_v51 = vrot.slane %v6711_v14, 1 }
0x2ed4   :  { %v6737_v4 = vrot.slane %v6736_v58, 2  ;;  %v6730_v42 = vrot.slane %v6729_v62, 1 }
0x2ed5   :  { %v6742_v40 = vsel %vm163_vm0, %v6691_v13, 0.0 }
0x2ed6   :  { %v6743_v17 = vadd.f32 %v6742_v40, %v6741_v15  ;;  %v6663_v55 = vpop.permute.xlu0 %6662  ;;  %v6738_v11 = vadd.f32 %v6737_v4, %v6736_v58 }
0x2ed7   :  { %v6692_v63 = vmul.f32 %v9122_v19, %v6663_v55  ;;  %v6731_v19 = vadd.f32 %v6730_v42, %v6729_v62  ;;  %v7847_v42 = vld [vmem:[#allocation2 + $0x8] sm:$0xff] }
0x2ed8   :  { %v6744_v2 = vrot.slane %v6743_v17, 4  ;;  %v6739_v29 = vrot.slane %v6738_v11, 1 }
0x2ed9   :  { %v6750_v54 = vsel %vm163_vm0, %v6692_v63, 0.0 }
0x2eda   :  { %v6745_v56 = vadd.f32 %v6744_v2, %v6743_v17  ;;  %v6668_v43 = vpop.permute.xlu0 %6667  ;;  %v6713_v17 = vadd.f32 %v6712_v51, %v6711_v14  ;;  %v6704_v2 = vadd.f32 %v6703_v44, %v6702_v10  ;;  %v6740_v22 = vadd.f32 %v6739_v29, %v6738_v11  ;;  %v7846_v44 = vld [vmem:[#allocation2] sm:$0xff] }
0x2edb   :  { %v6693_v46 = vmul.f32 %v9123_v8, %v6668_v43  ;;  %v7850_v29 = vld [vmem:[#allocation2 + $0x20] sm:$0xff] }
0x2edc   :  { %v6746_v6 = vrot.slane %v6745_v56, 2  ;;  %v6778_v21 = vsel %vm547_vm2, %v6713_v17, %v6704_v2  ;;  %v7851_v17 = vld [vmem:[#allocation2 + $0x28] sm:$0xff] }
0x2edd   :  { %v6751_v61 = vsel %vm163_vm0, %v6693_v46, 0.0  ;;  %v6779_v47 = vsel %vm549_vm3, %v6722_v53, %v6778_v21 }
0x2ede   :  { %v6752_v26 = vadd.f32 %v6751_v61, %v6750_v54  ;;  %v6678_v0 = vpop.permute.xlu0 %6677  ;;  %v6747_v3 = vadd.f32 %v6746_v6, %v6745_v56  ;;  %v6780_v46 = vsel %vm551_vm4, %v6731_v19, %v6779_v47  ;;  %v6769_v61 = vld [vmem:[#allocation4 + $0x30] sm:$0xff] }
0x2edf   :  { %v6695_v16 = vmul.f32 %v9125_v60, %v6678_v0  ;;  %v6781_v57 = vsel %vm553_vm5, %v6740_v22, %v6780_v46 }
0x2ee0   :  { %v6753_v18 = vrot.slane %v6752_v26, 4  ;;  %v6748_v55 = vrot.slane %v6747_v3, 1 }
0x2ee1   :  { %v6760_v41 = vsel %vm163_vm0, %v6695_v16, 0.0 }
0x2ee2   :  { %v6754_v31 = vadd.f32 %v6753_v18, %v6752_v26  ;;  %v6761_v13 = vadd.f32 %v6760_v41, %v6759_v30  ;;  %v6749_v56 = vadd.f32 %v6748_v55, %v6747_v3  ;;  %v7855_v30 = vld [vmem:[#allocation13 + $0x8] sm:$0xff] }
0x2ee4   :  { %v6755_v15 = vrot.slane %v6754_v31, 2  ;;  %v6762_v40 = vrot.slane %v6761_v13, 4  ;;  %v6782_v23 = vsel %vm555_vm6, %v6749_v56, %v6781_v57  ;;  %v9126_v57 = vld [vmem:[#allocation7] sm:$0xff] }
0x2ee6   :  { %v6756_v28 = vadd.f32 %v6755_v15, %v6754_v31  ;;  %v6763_v12 = vadd.f32 %v6762_v40, %v6761_v13  ;;  %v7856_v31 = vld [vmem:[#allocation13 + $0x10] sm:$0xff]  ;;  %v7857_v13 = vld [vmem:[#allocation13 + $0x18] sm:$0xff] }
0x2ee7   :  { %v8332_v5 = vpack.c.bf16 %v7857_v13, %v7856_v31  ;;  %v7848_v15 = vld [vmem:[#allocation2 + $0x10] sm:$0xff]  ;;  %v7849_v40 = vld [vmem:[#allocation2 + $0x18] sm:$0xff] }
0x2ee8   :  { %v6757_v58 = vrot.slane %v6756_v28, 1  ;;  %v6764_v63 = vrot.slane %v6763_v12, 2 }
0x2eea   :  { %v6765_v43 = vadd.f32 %v6764_v63, %v6763_v12  ;;  %v6758_v8 = vadd.f32 %v6757_v58, %v6756_v28 }
0x2eec   :  { %v6766_v45 = vrot.slane %v6765_v43, 1  ;;  %v6783_v4 = vsel %vm557_vm7, %v6758_v8, %v6782_v23  ;;  %v9127_v23 = vld [vmem:[#allocation7 + $0x8] sm:$0xff] }
0x2eee   :  { %v6767_v27 = vadd.f32 %v6766_v45, %v6765_v43 }
0x2ef0   :  { %v6784_v54 = vsel %vm559_vm8, %v6767_v27, %v6783_v4 }
0x2ef1   :  { %8183 = vmatmul.mubr.msk.f32.vlgmr.msra.gmra.mrb[14].mxu1 %vm163_vm0, %v6784_v54  ;;  %v9128_v54 = vld [vmem:[#allocation7 + $0x10] sm:$0xff] }
0x2ef2   :  { %8324 = vmatpush3.bf16.msra.mxu1 %v9844_v50  ;;  %8193 = vmatprep.mubr.msk.f32.mxu1 %vm9338_vm10, %v12226_v49 }
0x2ef3   :  { %8325 = vmatprep.subr.bf16.mxu1 %v12225_v48 }
0x2ef6   :  { %8327 = vmatpush3.bf16.msra.mxu1 %v9849_v32 }
0x2fc4   :  { %v6853_v14 = vpop.f32.mrb[14].mxu1 }
0x2fc5   :  { %v6857_v6 = vadd.f32 %v6853_v14, %v6769_v61  ;;  %v8184_v26 = vpop.f32.mrb[15].mxu1  ;;  %v11882_v14 = vld [vmem:[%s12212_s8] ss:$0 sm:$0xff] }
0x2fc7   :  { %v6858_v0 = vadd.f32 %v6857_v6, %v11553_v1  ;;  %v7854_v1 = vld [vmem:[#allocation13] sm:$0xff] }
0x2fc8   :  { %v8328_v11 = vpack.c.bf16 %v7855_v30, %v7854_v1 }
0x2fc9   :  { %8866 = vtanh.f32 %v6858_v0  ;;  %v8043_v60 = vmul.f32 -1.442695, %v6858_v0 }
0x2fca   :  { %8329 = vmatprep.subr.bf16.mxu0 %v8328_v11 }
0x2fcb   :  { %8868 = vpow2.f32 %v8043_v60 }
0x2fd3   :  { %v8867_v9 = vpop.eup %8866 }
0x2fd4   :  { %6868 = vrot.lane.b32.xlu1 %v8867_v9, %s9339_s18  ;;  %v9129_v9 = vld [vmem:[#allocation7 + $0x18] sm:$0xff] }
0x2fd5   :  { %v8869_v50 = vpop.eup %8868 }
0x2fd6   :  { %v6862_v16 = vadd.f32 1.0, %v8869_v50 }
0x2fd8   :  { %8870 = vrcp.f32 %v6862_v16 }
0x2fe2   :  { %v8871_v49 = vpop.eup %8870 }
0x2fe3   :  { %v6866_v32 = vmul.f32 %v8871_v49, %v11542_v38 }
0x3046   :  { %v6869_v10 = vpop.permute.xlu1 %6868 }
0x3047   :  { %v6871_v48 = vmul.f32 %v8871_v49, %v6869_v10 }
0x3049   :  { %6873 = vrot.lane.b32.xlu0 %v6871_v48, %s9340_s19  ;;  %v9131_v48 = vld [vmem:[#allocation7 + $0x28] sm:$0xff] }
0x30bb   :  { %v6874_v62 = vpop.permute.xlu0 %6873 }
0x30bc   :  { %v11855_v18 = vadd.f32 %v6874_v62, %v6866_v32 }
0x30be   :  { %8872 = vtanh.f32 %v11855_v18 }
0x30c8   :  { %v8873_v41 = vpop.eup %8872 }
0x30c9   :  { %6879 = vrot.lane.b32.xlu1 %v8873_v41, %s9339_s18 }
0x313b   :  { %v6880_v51 = vpop.permute.xlu1 %6879 }
0x313c   :  { %v6882_v3 = vmul.f32 %v8871_v49, %v6880_v51  ;;  %v9130_v49 = vld [vmem:[#allocation7 + $0x20] sm:$0xff] }
0x313e   :  { %6884 = vrot.lane.b32.xlu0 %v6882_v3, %s9340_s19 }
0x31b0   :  { %v6885_v38 = vpop.permute.xlu0 %6884 }
0x31b1   :  { %6888 = vst.msk [vmem:[#allocation2 + $0x30] sm:$0xff] %vm163_vm0, %v6885_v38  ;;  %8044 = vmatmul.mubr.msk.f32.vlgmr.msra.gmra.mrb[12].mxu0 %vm163_vm0, %v6885_v38 }
0x31b2   :  { %8331 = vmatpush3.bf16.msra.mxu0 %v8328_v11  ;;  %8204 = vmatprep.mubr.msk.f32.mxu0 %vm163_vm0, %v7846_v44 }
0x31b3   :  { %8333 = vmatprep.subr.bf16.mxu0 %v8332_v5 }
0x31b6   :  { %8335 = vmatpush3.bf16.msra.mxu0 %v8332_v5  ;;  %v9132_v5 = vld [vmem:[#allocation7 + $0x40] sm:$0xff] }
0x31b8   :  { %v7852_v55 = vld [vmem:[#allocation2 + $0x30] sm:$0xff] }
0x31b9   :  { %8205 = vmatmul.mubr.msk.f32.vlgmr.msra.gmra.mrb[14].mxu0 %vm163_vm0, %v7847_v42  ;;  %v9133_v42 = vld [vmem:[#allocation7 + $0x48] sm:$0xff] }
0x31ba   :  { %8207 = vmatprep.mubr.msk.f32.mxu0 %vm163_vm0, %v7848_v15 }
0x31bd   :  { %8208 = vmatmul.mubr.msk.f32.gmra.mrb[16].mxu0 %vm163_vm0, %v7849_v40 }
0x31be   :  { %8210 = vmatprep.mubr.msk.f32.mxu0 %vm163_vm0, %v7850_v29  ;;  %v9134_v29 = vld [vmem:[#allocation7 + $0x38] sm:$0xff] }
0x31c1   :  { %8211 = vmatmul.mubr.msk.f32.gmra.mrb[18].mxu0 %vm163_vm0, %v7851_v17 }
0x31c2   :  { %8213 = vmatprep.mubr.msk.f32.mxu0 %vm163_vm0, %v7852_v55  ;;  %v9135_v55 = vld [vmem:[#allocation7 + $0x30] sm:$0xff] }
0x3284   :  { %v11869_v28 = vpop.f32.mrb[12].mxu0 }
0x3285   :  { %v6959_v12 = vpop.f32.mrb[13].mxu0 }
0x3286   :  { %v6963_v53 = vcombine.high %v6959_v12, %v6959_v12  ;;  %v6970_v2 = vrot.slane %v6959_v12, %v9527_v20 }
0x3288   :  { %v6978_v19 = vcombine.high %v6970_v2, %v6970_v2  ;;  %v6986_v58 = vrot.slane %v6970_v2, %v9527_v20  ;;  %v6977_v63 = vrot.slane %v6963_v53, %v9527_v20 }
0x328a   :  { %v7000_v22 = vrot.slane %v6978_v19, %v9527_v20  ;;  %v7008_v21 = vcombine.high %v6986_v58, %v6986_v58  ;;  %v7015_v56 = vrot.slane %v6986_v58, %v9533_v25  ;;  %v6993_v46 = vrot.slane %v6977_v63, %v9527_v20  ;;  %v11897_v58 = vld [vmem:[%s12208_s4] ss:$0 sm:$0xff]  ;;  %s9341_s4 = smov [#allocation15]  }
0x328b   :  { %v6979_v26 = vcombine.high %v6977_v63, %v6977_v63  ;;  %s8007_s1 = sshll.u32 %s9341_s4, 4  ;;  %s8008_s1 = int_to_ptr.vmem [resolvable:$true] %s8007_s1 }
0x328c   :  { %v7019_v43 = vrot.slane %v7000_v22, %v9533_v25  ;;  %v8206_v47 = vpop.f32.mrb[14].mxu0  ;;  %v7023_v45 = vrot.slane %v7008_v21, %v9533_v25  ;;  %v7052_v27 = vadd.f32 %v9126_v57, %v7015_v56  ;;  %v7053_v4 = vadd.f32 %v9127_v23, %v7015_v56  ;;  %v9137_v56 = vld [vmem:[#allocation7 + $0x58] sm:$0xff]  ;;  %s9292_s16 = scalar_lea.vmem %s8008_s1, 1024  ;;  %p9297_p7 = scmp.lt.s32.totalorder %s8008_s1, %s8008_s1 }
0x328d   :  { %v7955_v8 = vpop.f32.mrb[15].mxu0  ;;  %v7010_v0 = vcombine.high %v7000_v22, %v7000_v22  ;;  %v7031_v16 = vrot.slane %v6993_v46, %v9533_v25  ;;  %v7961_v62 = vadd.f32 %v8206_v47, %v11882_v14  ;;  %v7007_v51 = vrot.slane %v6979_v26, %v9527_v20  ;;  %v9139_v26 = vld [vmem:[#allocation7 + $0x68] sm:$0xff]  ;;  %p9293_p6 = scmp.ne.s32.totalorder %s8008_s1, %s9292_s16  ;;  %p9298_p8 = scmp.lt.s32.totalorder %s9292_s16, %s9292_s16 }
0x328e   :  { %v7054_v61 = vadd.f32 %v9128_v54, %v7019_v43  ;;  %v7055_v60 = vadd.f32 %v9129_v9, %v7019_v43  ;;  %v7056_v10 = vadd.f32 %v9130_v49, %v7023_v45  ;;  %v7057_v32 = vadd.f32 %v9131_v48, %v7023_v45  ;;  %v9140_v9 = vld [vmem:[#allocation7 + $0x60] sm:$0xff] }
0x328f   :  { %8874 = vtanh.f32 %v7052_v27  ;;  %v7956_v1 = vadd.f32 %v11882_v14, %v7955_v8  ;;  %7995 = vst [vmem:[#allocation15 + $0x8] sm:$0xff] %v7961_v62  ;;  %v7027_v13 = vrot.slane %v7010_v0, %v9533_v25  ;;  %v7060_v38 = vadd.f32 %v9132_v5, %v7031_v16  ;;  %v9141_v62 = vld [vmem:[#allocation7 + $0x78] sm:$0xff]  ;;  %p9299_p9 = por %p9298_p8, %p9297_p7 }
0x3290   :  { %v8209_v6 = vpop.f32.mrb[16].mxu0  ;;  %8876 = vtanh.f32 %v7053_v4  ;;  %v7061_v15 = vadd.f32 %v9133_v42, %v7031_v16  ;;  %v7009_v20 = vcombine.high %v6993_v46, %v6993_v46  ;;  %v7035_v40 = vrot.slane %v7007_v51, %v9533_v25  ;;  %v9138_v46 = vld [vmem:[#allocation7 + $0x50] sm:$0xff] }
0x3291   :  { %v7965_v50 = vpop.f32.mrb[17].mxu0  ;;  %v7971_v30 = vadd.f32 %v8209_v6, %v11882_v14  ;;  %8878 = vtanh.f32 %v7054_v61  ;;  %7994 = vst [vmem:[#allocation15] sm:$0xff] %v7956_v1  ;;  %v7059_v17 = vadd.f32 %v9134_v29, %v7027_v13  ;;  %v7058_v12 = vadd.f32 %v9135_v55, %v7027_v13  ;;  %p9300_p10 = pnand %p9299_p9, %p9293_p6 }
0x3292   :  { %v7966_v11 = vadd.f32 %v11882_v14, %v7965_v50  ;;  %8880 = vtanh.f32 %v7055_v60  ;;  %v7011_v19 = vcombine.high %v7007_v51, %v7007_v51  ;;  %v7039_v21 = vrot.slane %v7009_v20, %v9533_v25 }
0x3293   :  { %7997 = vst [vmem:[#allocation15 + $0x18] sm:$0xff] %v7971_v30  ;;  %8882 = vtanh.f32 %v7056_v10  ;;  %v7063_v43 = vadd.f32 %v9137_v56, %v7035_v40  ;;  %v7062_v45 = vadd.f32 %v9138_v46, %v7035_v40  ;;  %v9142_v30 = vld [vmem:[#allocation7 + $0x70] sm:$0xff] }
0x3294   :  { %v8212_v41 = vpop.f32.mrb[18].mxu0  ;;  %7996 = vst [vmem:[#allocation15 + $0x10] sm:$0xff] %v7966_v11  ;;  %8884 = vtanh.f32 %v7057_v32  ;;  %v7043_v6 = vrot.slane %v7011_v19, %v9533_v25  ;;  %v7065_v0 = vadd.f32 %v9139_v26, %v7039_v21  ;;  %v7064_v60 = vadd.f32 %v9140_v9, %v7039_v21 }
0x3295   :  { %v7981_v3 = vadd.f32 %v8212_v41, %v11882_v14  ;;  %v7975_v31 = vpop.f32.mrb[19].mxu0  ;;  %8886 = vtanh.f32 %v7060_v38 }
0x3296   :  { %v7976_v44 = vadd.f32 %v11882_v14, %v7975_v31  ;;  %8888 = vtanh.f32 %v7061_v15  ;;  %v7067_v1 = vadd.f32 %v9141_v62, %v7043_v6  ;;  %v7066_v11 = vadd.f32 %v9142_v30, %v7043_v6 }
0x3297   :  { %7999 = vst [vmem:[#allocation15 + $0x28] sm:$0xff] %v7981_v3  ;;  %8890 = vtanh.f32 %v7059_v17 }
0x3298   :  { %7998 = vst [vmem:[#allocation15 + $0x20] sm:$0xff] %v7976_v44  ;;  %8892 = vtanh.f32 %v7058_v12 }
0x3299   :  { %v8875_v53 = vpop.eup %8874  ;;  %8894 = vtanh.f32 %v7063_v43 }
0x329a   :  { %v8877_v2 = vpop.eup %8876  ;;  %v7084_v63 = vmul.f32 %v11897_v58, %v8875_v53  ;;  %8896 = vtanh.f32 %v7062_v45 }
0x329b   :  { %v8879_v22 = vpop.eup %8878  ;;  %v7085_v47 = vmul.f32 %v11897_v58, %v8877_v2  ;;  %8898 = vtanh.f32 %v7065_v0 }
0x329c   :  { %v8881_v8 = vpop.eup %8880  ;;  %v7100_v57 = vsel %vm163_vm0, %v7084_v63, 0.0  ;;  %v7086_v54 = vmul.f32 %v11897_v58, %v8879_v22  ;;  %8900 = vtanh.f32 %v7064_v60 }
0x329d   :  { %v8883_v27 = vpop.eup %8882  ;;  %v7103_v23 = vsel %vm163_vm0, %v7085_v47, 0.0  ;;  %7101 = vadd.xlane.f32.xlu1 %v7100_v57  ;;  %v7087_v4 = vmul.f32 %v11897_v58, %v8881_v8  ;;  %8902 = vtanh.f32 %v7067_v1 }
0x329e   :  { %v8885_v61 = vpop.eup %8884  ;;  %7104 = vadd.xlane.f32.xlu0 %v7103_v23  ;;  %v7106_v10 = vsel %vm163_vm0, %v7086_v54, 0.0  ;;  %v7088_v48 = vmul.f32 %v11897_v58, %v8883_v27  ;;  %8904 = vtanh.f32 %v7066_v11 }
0x329f   :  { %v7109_v50 = vsel %vm163_vm0, %v7087_v4, 0.0  ;;  %v7089_v16 = vmul.f32 %v11897_v58, %v8885_v61  ;;  %v8887_v49 = vpop.eup %8886 }
0x32a0   :  { %v8889_v32 = vpop.eup %8888  ;;  %v7112_v31 = vsel %vm163_vm0, %v7088_v48, 0.0  ;;  %v7092_v13 = vmul.f32 %v11897_v58, %v8887_v49 }
0x32a1   :  { %7110 = vadd.xlane.f32.xlu1 %v7109_v50  ;;  %v7115_v41 = vsel %vm163_vm0, %v7089_v16, 0.0  ;;  %v7093_v51 = vmul.f32 %v11897_v58, %v8889_v32  ;;  %v8891_v3 = vpop.eup %8890 }
0x32a2   :  { %7107 = vadd.xlane.f32.xlu0 %v7106_v10  ;;  %v8893_v5 = vpop.eup %8892  ;;  %v7091_v44 = vmul.f32 %v11897_v58, %v8891_v3  ;;  %v7124_v15 = vsel %vm163_vm0, %v7092_v13, 0.0 }
0x32a3   :  { %v7127_v38 = vsel %vm163_vm0, %v7093_v51, 0.0  ;;  %v8895_v42 = vpop.eup %8894  ;;  %v7090_v20 = vmul.f32 %v11897_v58, %v8893_v5 }
0x32a4   :  { %v8897_v40 = vpop.eup %8896  ;;  %v7121_v29 = vsel %vm163_vm0, %v7091_v44, 0.0  ;;  %v7095_v17 = vmul.f32 %v11897_v58, %v8895_v42 }
0x32a5   :  { %7116 = vadd.xlane.f32.xlu1 %v7115_v41  ;;  %v8899_v55 = vpop.eup %8898  ;;  %v7118_v12 = vsel %vm163_vm0, %v7090_v20, 0.0  ;;  %v7094_v53 = vmul.f32 %v11897_v58, %v8897_v40 }
0x32a6   :  { %7113 = vadd.xlane.f32.xlu0 %v7112_v31  ;;  %v8901_v2 = vpop.eup %8900  ;;  %v7133_v19 = vsel %vm163_vm0, %v7095_v17, 0.0  ;;  %v7097_v63 = vmul.f32 %v11897_v58, %v8899_v55 }
0x32a7   :  { %v8903_v22 = vpop.eup %8902  ;;  %v7130_v21 = vsel %vm163_vm0, %v7094_v53, 0.0  ;;  %v7096_v56 = vmul.f32 %v11897_v58, %v8901_v2 }
0x32a8   :  { %v8905_v43 = vpop.eup %8904  ;;  %v7139_v47 = vsel %vm163_vm0, %v7097_v63, 0.0  ;;  %v7099_v8 = vmul.f32 %v11897_v58, %v8903_v22 }
0x32a9   :  { %7128 = vadd.xlane.f32.xlu1 %v7127_v38  ;;  %v7136_v46 = vsel %vm163_vm0, %v7096_v56, 0.0  ;;  %v7098_v45 = vmul.f32 %v11897_v58, %v8905_v43 }
0x32aa   :  { %7125 = vadd.xlane.f32.xlu0 %v7124_v15  ;;  %v7145_v57 = vsel %vm163_vm0, %v7099_v8, 0.0 }
0x32ab   :  { %v7142_v27 = vsel %vm163_vm0, %v7098_v45, 0.0 }
0x32ad   :  { %7122 = vadd.xlane.f32.xlu1 %v7121_v29 }
0x32ae   :  { %7119 = vadd.xlane.f32.xlu0 %v7118_v12 }
0x32b1   :  { %7134 = vadd.xlane.f32.xlu1 %v7133_v19 }
0x32b2   :  { %7131 = vadd.xlane.f32.xlu0 %v7130_v21 }
0x32b5   :  { %7140 = vadd.xlane.f32.xlu1 %v7139_v47 }
0x32b6   :  { %7137 = vadd.xlane.f32.xlu0 %v7136_v46 }
0x32b9   :  { %7146 = vadd.xlane.f32.xlu1 %v7145_v57 }
0x32ba   :  { %7143 = vadd.xlane.f32.xlu0 %v7142_v27 }
0x332a   :  { %v7102_v23 = vpop.xlane.xlu1 %7101 }
0x332b   :  { %v7105_v4 = vpop.xlane.xlu0 %7104  ;;  %v7148_v49 = vadd.f32 %v7102_v23, %v12232_v24 }
0x332c   :  { %v11940_v16 = vadd.f32 %v7105_v4, %v12232_v24 }
0x332d   :  { %v7183_v3 = vrot.slane %v7148_v49, %v9587_v36 }
0x332e   :  { %v7111_v54 = vpop.xlane.xlu1 %7110  ;;  %v7187_v51 = vrot.slane %v11940_v16, %v9590_v37 }
0x332f   :  { %v7108_v61 = vpop.xlane.xlu0 %7107  ;;  %v11934_v60 = vadd.f32 %v7111_v54, %v12232_v24 }
0x3330   :  { %v11937_v58 = vadd.f32 %v7108_v61, %v12232_v24  ;;  %v7188_v55 = vsel %vm482_vm1, %v7187_v51, %v7183_v3 }
0x3331   :  { %v7196_v30 = vrot.slane %v11934_v60, %v9590_v37 }
0x3332   :  { %v7117_v6 = vpop.xlane.xlu1 %7116  ;;  %v7192_v11 = vrot.slane %v11937_v58, %v9587_v36 }
0x3333   :  { %v7114_v26 = vpop.xlane.xlu0 %7113  ;;  %v11944_v10 = vadd.f32 %v7117_v6, %v12232_v24 }
0x3334   :  { %v11947_v48 = vadd.f32 %v7114_v26, %v12232_v24  ;;  %v7197_v29 = vsel %vm482_vm1, %v7196_v30, %v7192_v11 }
0x3335   :  { %v7205_v31 = vrot.slane %v11944_v10, %v9590_v37  ;;  %v7252_v56 = vsel %vm547_vm2, %v7197_v29, %v7188_v55 }
0x3336   :  { %v7129_v0 = vpop.xlane.xlu1 %7128  ;;  %v7201_v13 = vrot.slane %v11947_v48, %v9587_v36 }
0x3337   :  { %v7126_v9 = vpop.xlane.xlu0 %7125  ;;  %v11977_v20 = vadd.f32 %v7129_v0, %v12232_v24 }
0x3338   :  { %v11980_v40 = vadd.f32 %v7126_v9, %v12232_v24  ;;  %v7206_v12 = vsel %vm482_vm1, %v7205_v31, %v7201_v13 }
0x3339   :  { %v7223_v43 = vrot.slane %v11977_v20, %v9590_v37  ;;  %v7253_v46 = vsel %vm549_vm3, %v7206_v12, %v7252_v56 }
0x333a   :  { %v7123_v50 = vpop.xlane.xlu1 %7122  ;;  %v7219_v47 = vrot.slane %v11980_v40, %v9587_v36 }
0x333b   :  { %v7120_v32 = vpop.xlane.xlu0 %7119  ;;  %v11950_v62 = vadd.f32 %v7123_v50, %v12232_v24 }
0x333c   :  { %v11953_v1 = vadd.f32 %v7120_v32, %v12232_v24  ;;  %v7224_v6 = vsel %vm482_vm1, %v7223_v43, %v7219_v47 }
0x333d   :  { %v7214_v38 = vrot.slane %v11950_v62, %v9590_v37 }
0x333e   :  { %v7135_v41 = vpop.xlane.xlu1 %7134  ;;  %v7210_v44 = vrot.slane %v11953_v1, %v9587_v36 }
0x333f   :  { %v7132_v5 = vpop.xlane.xlu0 %7131  ;;  %v11971_v42 = vadd.f32 %v7135_v41, %v12232_v24 }
0x3340   :  { %v11974_v15 = vadd.f32 %v7132_v5, %v12232_v24  ;;  %v7215_v19 = vsel %vm482_vm1, %v7214_v38, %v7210_v44 }
0x3341   :  { %v7232_v63 = vrot.slane %v11971_v42, %v9590_v37  ;;  %v7254_v27 = vsel %vm551_vm4, %v7215_v19, %v7253_v46 }
0x3342   :  { %v7141_v17 = vpop.xlane.xlu1 %7140  ;;  %v7228_v22 = vrot.slane %v11974_v15, %v9587_v36  ;;  %v7255_v50 = vsel %vm553_vm5, %v7224_v6, %v7254_v27 }
0x3343   :  { %v11986_v53 = vadd.f32 %v7141_v17, %v12232_v24  ;;  %v7138_v2 = vpop.xlane.xlu0 %7137 }
0x3344   :  { %v11994_v21 = vadd.f32 %v7138_v2, %v12232_v24  ;;  %v7233_v54 = vsel %vm482_vm1, %v7232_v63, %v7228_v22 }
0x3345   :  { %v7241_v8 = vrot.slane %v11986_v53, %v9590_v37  ;;  %v7256_v32 = vsel %vm555_vm6, %v7233_v54, %v7255_v50 }
0x3346   :  { %v7237_v45 = vrot.slane %v11994_v21, %v9587_v36  ;;  %v7147_v57 = vpop.xlane.xlu1 %7146 }
0x3347   :  { %v12008_v23 = vadd.f32 %v7147_v57, %v12232_v24  ;;  %v7144_v4 = vpop.xlane.xlu0 %7143 }
0x3348   :  { %v12012_v61 = vadd.f32 %v7144_v4, %v12232_v24  ;;  %v7242_v26 = vsel %vm482_vm1, %v7241_v8, %v7237_v45 }
0x3349   :  { %v7250_v0 = vrot.slane %v12008_v23, %v9590_v37  ;;  %v7257_v11 = vsel %vm557_vm7, %v7242_v26, %v7256_v32 }
0x334a   :  { %v7246_v9 = vrot.slane %v12012_v61, %v9587_v36 }
0x334c   :  { %v7251_v30 = vsel %vm482_vm1, %v7250_v0, %v7246_v9 }
0x334d   :  { %v7258_v24 = vsel %vm559_vm8, %v7251_v30, %v7257_v11 }
0x334e   :  { %v7260_v41 = vsel %vm562_vm9, %v7258_v24, -inf }
0x334f   :  { %7261 = vmax.xlane.f32.xlu0 %v7260_v41 }
0x33dc   :  { %v7262_v51 = vpop.xlane.xlu0 %7261 }
0x33dd   :  { %v7267_v3 = vrot.slane %v7262_v51, %v9533_v25  ;;  %v7271_v31 = vrot.slane %v7262_v51, %v9700_v52  ;;  %v7275_v13 = vrot.slane %v7262_v51, %v9725_v39  ;;  %v7279_v29 = vrot.slane %v7262_v51, %v9691_v33 }
0x33de   :  { %v7283_v63 = vrot.slane %v7262_v51, %v9694_v34  ;;  %v7287_v56 = vrot.slane %v7262_v51, %v9697_v35  ;;  %v7291_v8 = vrot.slane %v7262_v51, %v9706_v59 }
0x33df   :  { %v7304_v5 = vsub.f32 %v7148_v49, %v7267_v3  ;;  %v7305_v38 = vsub.f32 %v11940_v16, %v7267_v3  ;;  %v7306_v44 = vsub.f32 %v11937_v58, %v7271_v31  ;;  %v7308_v17 = vsub.f32 %v11947_v48, %v7275_v13 }
0x33e0   :  { %v7307_v2 = vsub.f32 %v11934_v60, %v7271_v31  ;;  %v7310_v22 = vsub.f32 %v11953_v1, %v7279_v29  ;;  %v7309_v16 = vsub.f32 %v11944_v10, %v7275_v13  ;;  %v7312_v48 = vsub.f32 %v11980_v40, %v7283_v63 }
0x33e1   :  { %v7320_v55 = vmul.f32 1.442695, %v7304_v5  ;;  %v7322_v12 = vmul.f32 1.442695, %v7305_v38  ;;  %v7324_v19 = vmul.f32 1.442695, %v7306_v44  ;;  %v7311_v60 = vsub.f32 %v11950_v62, %v7279_v29 }
0x33e2   :  { %v7328_v49 = vmul.f32 1.442695, %v7308_v17  ;;  %v7326_v58 = vmul.f32 1.442695, %v7307_v2  ;;  %v7332_v43 = vmul.f32 1.442695, %v7310_v22  ;;  %v7314_v1 = vsub.f32 %v11974_v15, %v7287_v56 }
0x33e3   :  { %8906 = vpow2.f32 %v7320_v55  ;;  %v7330_v47 = vmul.f32 1.442695, %v7309_v16  ;;  %v7336_v46 = vmul.f32 1.442695, %v7312_v48  ;;  %v7313_v40 = vsub.f32 %v11977_v20, %v7283_v63 }
0x33e4   :  { %8908 = vpow2.f32 %v7322_v12  ;;  %v7334_v57 = vmul.f32 1.442695, %v7311_v60  ;;  %v7295_v62 = vrot.slane %v7262_v51, %v9717_v7  ;;  %v7316_v27 = vsub.f32 %v11994_v21, %v7291_v8 }
0x33e5   :  { %8910 = vpow2.f32 %v7324_v19  ;;  %v7340_v15 = vmul.f32 1.442695, %v7314_v1  ;;  %v7315_v6 = vsub.f32 %v11971_v42, %v7287_v56  ;;  %v7338_v20 = vmul.f32 1.442695, %v7313_v40 }
0x33e6   :  { %8912 = vpow2.f32 %v7328_v49  ;;  %v7318_v26 = vsub.f32 %v12012_v61, %v7295_v62  ;;  %v7344_v0 = vmul.f32 1.442695, %v7316_v27  ;;  %v7317_v50 = vsub.f32 %v11986_v53, %v7291_v8 }
0x33e7   :  { %8914 = vpow2.f32 %v7326_v58  ;;  %v7342_v32 = vmul.f32 1.442695, %v7315_v6  ;;  %v7319_v61 = vsub.f32 %v12008_v23, %v7295_v62 }
0x33e8   :  { %8916 = vpow2.f32 %v7332_v43  ;;  %v7348_v42 = vmul.f32 1.442695, %v7318_v26  ;;  %v7346_v24 = vmul.f32 1.442695, %v7317_v50 }
0x33e9   :  { %8918 = vpow2.f32 %v7330_v47  ;;  %v7350_v51 = vmul.f32 1.442695, %v7319_v61 }
0x33ea   :  { %8920 = vpow2.f32 %v7336_v46 }
0x33eb   :  { %8922 = vpow2.f32 %v7334_v57 }
0x33ec   :  { %8924 = vpow2.f32 %v7340_v15 }
0x33ed   :  { %v12042_v45 = vpop.eup %8906  ;;  %8926 = vpow2.f32 %v7338_v20 }
0x33ee   :  { %v12044_v10 = vpop.eup %8908  ;;  %7369 = vperm.xlu1 %8355, %v12042_v45   ;;  %8928 = vpow2.f32 %v7344_v0 }
0x33ef   :  { %7372 = vperm.xlu0 %8354, %v12044_v10   ;;  %v12051_v4 = vpop.eup %8910  ;;  %8930 = vpow2.f32 %v7342_v32 }
0x33f0   :  { %v12053_v54 = vpop.eup %8912  ;;  %8932 = vpow2.f32 %v7348_v42 }
0x33f1   :  { %v12059_v9 = vpop.eup %8914  ;;  %8934 = vpow2.f32 %v7346_v24 }
0x33f2   :  { %7375 = vperm.xlu1 %8355, %v12051_v4   ;;  %v12061_v21 = vpop.eup %8916  ;;  %8936 = vpow2.f32 %v7350_v51 }
0x33f3   :  { %7381 = vperm.xlu0 %8354, %v12053_v54   ;;  %v12066_v30 = vpop.eup %8918 }
0x33f4   :  { %v12068_v11 = vpop.eup %8920 }
0x33f5   :  { %v12073_v53 = vpop.eup %8922 }
0x33f6   :  { %7378 = vperm.xlu1 %8355, %v12059_v9   ;;  %v12075_v41 = vpop.eup %8924 }
0x33f7   :  { %7387 = vperm.xlu0 %8354, %v12061_v21   ;;  %v12079_v3 = vpop.eup %8926 }
0x33f8   :  { %v12081_v31 = vpop.eup %8928 }
0x33f9   :  { %v12085_v23 = vpop.eup %8930 }
0x33fa   :  { %7384 = vperm.xlu1 %8355, %v12066_v30   ;;  %v12087_v13 = vpop.eup %8932 }
0x33fb   :  { %7393 = vperm.xlu0 %8354, %v12068_v11   ;;  %v12091_v5 = vpop.eup %8934 }
0x33fc   :  { %v12094_v38 = vpop.eup %8936 }
0x33fe   :  { %7390 = vperm.xlu1 %8355, %v12073_v53  }
0x33ff   :  { %7399 = vperm.xlu0 %8354, %v12075_v41  }
0x3402   :  { %7396 = vperm.xlu1 %8355, %v12079_v3  }
0x3403   :  { %7405 = vperm.xlu0 %8354, %v12081_v31  }
0x3406   :  { %7402 = vperm.xlu1 %8355, %v12085_v23  }
0x3407   :  { %7411 = vperm.xlu0 %8354, %v12087_v13  }
0x340a   :  { %7408 = vperm.xlu1 %8355, %v12091_v5  }
0x340e   :  { %7414 = vperm.xlu1 %8355, %v12094_v38  }
0x346d   :  { %v7370_v44 = vpop.permute.xlu1 %7369 }
0x346e   :  { %v7373_v29 = vpop.permute.xlu0 %7372  ;;  %v7419_v47 = vrot.slane %v7370_v44, %v9587_v36 }
0x346f   :  { %v7423_v60 = vrot.slane %v7373_v29, %v9590_v37 }
0x3471   :  { %v7376_v17 = vpop.permute.xlu1 %7375  ;;  %v7424_v26 = vsel %vm482_vm1, %v7423_v60, %v7419_v47 }
0x3472   :  { %v7382_v55 = vpop.permute.xlu0 %7381  ;;  %v7428_v8 = vrot.slane %v7376_v17, %v9587_v36 }
0x3473   :  { %v7437_v46 = vrot.slane %v7382_v55, %v9587_v36 }
0x3475   :  { %v7379_v12 = vpop.permute.xlu1 %7378 }
0x3476   :  { %v7388_v2 = vpop.permute.xlu0 %7387  ;;  %v7432_v58 = vrot.slane %v7379_v12, %v9590_v37 }
0x3477   :  { %v7446_v57 = vrot.slane %v7388_v2, %v9587_v36 }
0x3478   :  { %v7433_v62 = vsel %vm482_vm1, %v7432_v58, %v7428_v8 }
0x3479   :  { %v7385_v19 = vpop.permute.xlu1 %7384  ;;  %v7488_v42 = vsel %vm547_vm2, %v7433_v62, %v7424_v26 }
0x347a   :  { %v7394_v63 = vpop.permute.xlu0 %7393  ;;  %v7441_v56 = vrot.slane %v7385_v19, %v9590_v37 }
0x347b   :  { %v7455_v15 = vrot.slane %v7394_v63, %v9587_v36 }
0x347c   :  { %v7442_v6 = vsel %vm482_vm1, %v7441_v56, %v7437_v46 }
0x347d   :  { %v7391_v22 = vpop.permute.xlu1 %7390  ;;  %v7489_v44 = vsel %vm549_vm3, %v7442_v6, %v7488_v42  ;;  %v9143_v6 = vld [vmem:[#allocation9 + $0x18] sm:$0xff] }
0x347e   :  { %v7400_v49 = vpop.permute.xlu0 %7399  ;;  %v7450_v1 = vrot.slane %v7391_v22, %v9590_v37  ;;  %v9147_v42 = vld [vmem:[#allocation9 + $0x38] sm:$0xff] }
0x347f   :  { %v7464_v0 = vrot.slane %v7400_v49, %v9587_v36 }
0x3480   :  { %v7451_v50 = vsel %vm482_vm1, %v7450_v1, %v7446_v57 }
0x3481   :  { %v7397_v16 = vpop.permute.xlu1 %7396  ;;  %v7490_v17 = vsel %vm551_vm4, %v7451_v50, %v7489_v44  ;;  %v9149_v44 = vld [vmem:[#allocation9] sm:$0xff] }
0x3482   :  { %v7406_v48 = vpop.permute.xlu0 %7405  ;;  %v7459_v40 = vrot.slane %v7397_v16, %v9590_v37 }
0x3483   :  { %v7473_v61 = vrot.slane %v7406_v48, %v9587_v36 }
0x3484   :  { %v7460_v24 = vsel %vm482_vm1, %v7459_v40, %v7455_v15 }
0x3485   :  { %v7403_v43 = vpop.permute.xlu1 %7402  ;;  %v7491_v2 = vsel %vm553_vm5, %v7460_v24, %v7490_v17 }
0x3486   :  { %v7468_v27 = vrot.slane %v7403_v43, %v9590_v37  ;;  %v7412_v51 = vpop.permute.xlu0 %7411 }
0x3487   :  { %v7482_v19 = vrot.slane %v7412_v51, %v9587_v36 }
0x3488   :  { %v7469_v29 = vsel %vm482_vm1, %v7468_v27, %v7464_v0  ;;  %v9145_v0 = vld [vmem:[#allocation9 + $0x8] sm:$0xff] }
0x3489   :  { %v7409_v20 = vpop.permute.xlu1 %7408  ;;  %v7492_v22 = vsel %vm555_vm6, %v7469_v29, %v7491_v2  ;;  %v9151_v2 = vld [vmem:[#allocation9 + $0x48] sm:$0xff] }
0x348a   :  { %v7477_v32 = vrot.slane %v7409_v20, %v9590_v37  ;;  %v9144_v20 = vld [vmem:[#allocation9 + $0x28] sm:$0xff] }
0x348c   :  { %v7478_v55 = vsel %vm482_vm1, %v7477_v32, %v7473_v61  ;;  %v9148_v61 = vld [vmem:[#allocation9 + $0x20] sm:$0xff] }
0x348d   :  { %v7415_v12 = vpop.permute.xlu1 %7414  ;;  %v7493_v16 = vsel %vm557_vm7, %v7478_v55, %v7492_v22  ;;  %v9150_v55 = vld [vmem:[#allocation9 + $0x30] sm:$0xff] }
0x348e   :  { %v7486_v63 = vrot.slane %v7415_v12, %v9590_v37 }
0x3490   :  { %v7487_v49 = vsel %vm482_vm1, %v7486_v63, %v7482_v19  ;;  %v9152_v63 = vld [vmem:[#allocation9 + $0x40] sm:$0xff] }
0x3491   :  { %v7494_v58 = vsel %vm559_vm8, %v7487_v49, %v7493_v16 }
0x3492   :  { %v7496_v56 = vsel %vm562_vm9, %v7494_v58, 0.0 }
0x3493   :  { %7497 = vadd.xlane.f32.xlu0 %v7496_v56 }
0x3520   :  { %v7498_v48 = vpop.xlane.xlu0 %7497 }
0x3521   :  { %8938 = vrcp.f32 %v7498_v48 }
0x352b   :  { %v8939_v43 = vpop.eup %8938 }
0x352c   :  { %v7520_v60 = vrot.slane %v8939_v43, %v9694_v34  ;;  %v7504_v36 = vrot.slane %v8939_v43, %v9533_v25  ;;  %v7532_v8 = vrot.slane %v8939_v43, %v9717_v7  ;;  %v7508_v40 = vrot.slane %v8939_v43, %v9700_v52 }
0x352e   :  { %v7549_v37 = vmul.f32 %v12068_v11, %v7520_v60  ;;  %v7541_v47 = vmul.f32 %v12042_v45, %v7504_v36  ;;  %v7555_v1 = vmul.f32 %v12087_v13, %v7532_v8  ;;  %v7542_v46 = vmul.f32 %v12044_v10, %v7504_v36 }
0x352f   :  { %v7543_v34 = vmul.f32 %v12051_v4, %v7508_v40  ;;  %v7544_v25 = vmul.f32 %v12059_v9, %v7508_v40  ;;  %v7512_v11 = vrot.slane %v8939_v43, %v9725_v39  ;;  %v7516_v13 = vrot.slane %v8939_v43, %v9691_v33 }
0x3530   :  { %7599 = vperm.xlu0 %8354, %v7549_v37   ;;  %7559 = vperm.xlu1 %8355, %v7541_v47   ;;  %v7550_v4 = vmul.f32 %v12079_v3, %v7520_v60  ;;  %v7524_v9 = vrot.slane %v8939_v43, %v9697_v35 }
0x3531   :  { %v7545_v7 = vmul.f32 %v12053_v54, %v7512_v11  ;;  %v7546_v45 = vmul.f32 %v12066_v30, %v7512_v11  ;;  %v7547_v52 = vmul.f32 %v12061_v21, %v7516_v13  ;;  %v7548_v10 = vmul.f32 %v12073_v53, %v7516_v13 }
0x3532   :  { %v7551_v39 = vmul.f32 %v12075_v41, %v7524_v9  ;;  %v7552_v54 = vmul.f32 %v12085_v23, %v7524_v9  ;;  %v7528_v30 = vrot.slane %v8939_v43, %v9706_v59  ;;  %v7556_v53 = vmul.f32 %v12094_v38, %v7532_v8 }
0x3534   :  { %7629 = vperm.xlu0 %8354, %v7555_v1   ;;  %7564 = vperm.xlu1 %8355, %v7542_v46   ;;  %v7553_v33 = vmul.f32 %v12081_v31, %v7528_v30  ;;  %v7554_v21 = vmul.f32 %v12091_v5, %v7528_v30  ;;  %v9146_v5 = vld [vmem:[#allocation9 + $0x10] sm:$0xff] }
0x3538   :  { %7569 = vperm.xlu1 %8355, %v7543_v34  }
0x353c   :  { %7574 = vperm.xlu1 %8355, %v7544_v25   ;;  %v9153_v25 = vld [vmem:[#allocation9 + $0x50] sm:$0xff] }
0x3540   :  { %7579 = vperm.xlu1 %8355, %v7545_v7  }
0x3544   :  { %7584 = vperm.xlu1 %8355, %v7546_v45  }
0x3548   :  { %7589 = vperm.xlu1 %8355, %v7547_v52   ;;  %v9154_v52 = vld [vmem:[#allocation9 + $0x58] sm:$0xff] }
0x354c   :  { %7594 = vperm.xlu1 %8355, %v7548_v10  }
0x3550   :  { %7604 = vperm.xlu1 %8355, %v7550_v4  }
0x3554   :  { %7609 = vperm.xlu1 %8355, %v7551_v39  }
0x3558   :  { %7614 = vperm.xlu1 %8355, %v7552_v54  }
0x355c   :  { %7619 = vperm.xlu1 %8355, %v7553_v33  }
0x3560   :  { %7624 = vperm.xlu1 %8355, %v7554_v21  }
0x3564   :  { %7634 = vperm.xlu1 %8355, %v7556_v53  }
0x35af   :  { %v7560_v3 = vpop.permute.xlu1 %7559  ;;  %v7600_v31 = vpop.permute.xlu0 %7599 }
0x35b0   :  { %v7637_v29 = vmul.f32 %v9149_v44, %v7560_v3  ;;  %v7645_v22 = vmul.f32 %v9152_v63, %v7600_v31  ;;  %v9156_v31 = vld [vmem:[#allocation9 + $0x68] sm:$0xff] }
0x35b2   :  { %v7653_v37 = vsel %vm163_vm0, %v7637_v29, 0.0  ;;  %v7689_v1 = vsel %vm163_vm0, %v7645_v22, 0.0 }
0x35b3   :  { %v7565_v35 = vpop.permute.xlu1 %7564 }
0x35b4   :  { %v7638_v50 = vmul.f32 %v9145_v0, %v7565_v35 }
0x35b6   :  { %v7654_v16 = vsel %vm163_vm0, %v7638_v50, 0.0 }
0x35b7   :  { %v7570_v57 = vpop.permute.xlu1 %7569  ;;  %v7655_v46 = vadd.f32 %v7654_v16, %v7653_v37 }
0x35b8   :  { %v7639_v32 = vmul.f32 %v9146_v5, %v7570_v57 }
0x35b9   :  { %v7656_v4 = vrot.slane %v7655_v46, 4 }
0x35ba   :  { %v7662_v58 = vsel %vm163_vm0, %v7639_v32, 0.0  ;;  %v9157_v32 = vld [vmem:[#allocation9 + $0x70] sm:$0xff] }
0x35bb   :  { %v7575_v62 = vpop.permute.xlu1 %7574  ;;  %v7657_v35 = vadd.f32 %v7656_v4, %v7655_v46 }
0x35bc   :  { %v7640_v59 = vmul.f32 %v9143_v6, %v7575_v62 }
0x35bd   :  { %v7658_v50 = vrot.slane %v7657_v35, 2 }
0x35be   :  { %v7663_v17 = vsel %vm163_vm0, %v7640_v59, 0.0 }
0x35bf   :  { %v7580_v41 = vpop.permute.xlu1 %7579  ;;  %v7664_v48 = vadd.f32 %v7663_v17, %v7662_v58 }
0x35c0   :  { %v7641_v24 = vmul.f32 %v9148_v61, %v7580_v41 }
0x35c1   :  { %v7665_v7 = vrot.slane %v7664_v48, 4 }
0x35c2   :  { %v7671_v43 = vsel %vm163_vm0, %v7641_v24, 0.0 }
0x35c3   :  { %v7585_v27 = vpop.permute.xlu1 %7584  ;;  %v7666_v33 = vadd.f32 %v7665_v7, %v7664_v48 }
0x35c4   :  { %v7642_v26 = vmul.f32 %v9144_v20, %v7585_v27  ;;  %v9155_v27 = vld [vmem:[#allocation9 + $0x60] sm:$0xff] }
0x35c5   :  { %v7667_v6 = vrot.slane %v7666_v33, 2 }
0x35c6   :  { %v7672_v49 = vsel %vm163_vm0, %v7642_v26, 0.0 }
0x35c7   :  { %v7590_v15 = vpop.permute.xlu1 %7589  ;;  %v7673_v47 = vadd.f32 %v7672_v49, %v7671_v43 }
0x35c8   :  { %v7643_v12 = vmul.f32 %v9150_v55, %v7590_v15 }
0x35c9   :  { %v7674_v13 = vrot.slane %v7673_v47, 4 }
0x35ca   :  { %v7680_v8 = vsel %vm163_vm0, %v7643_v12, 0.0  ;;  %v9158_v12 = vld [vmem:[#allocation9 + $0x78] sm:$0xff] }
0x35cb   :  { %v7595_v23 = vpop.permute.xlu1 %7594  ;;  %v7675_v3 = vadd.f32 %v7674_v13, %v7673_v47 }
0x35cc   :  { %v7644_v38 = vmul.f32 %v9147_v42, %v7595_v23  ;;  %v7630_v23 = vpop.permute.xlu0 %7629 }
0x35cd   :  { %v7676_v26 = vrot.slane %v7675_v3, 2  ;;  %v7651_v42 = vmul.f32 %v9157_v32, %v7630_v23 }
0x35ce   :  { %v7681_v56 = vsel %vm163_vm0, %v7644_v38, 0.0 }
0x35cf   :  { %v7605_v51 = vpop.permute.xlu1 %7604  ;;  %v7682_v40 = vadd.f32 %v7681_v56, %v7680_v8  ;;  %v7677_v55 = vadd.f32 %v7676_v26, %v7675_v3  ;;  %v7716_v49 = vsel %vm163_vm0, %v7651_v42, 0.0 }
0x35d0   :  { %v7646_v19 = vmul.f32 %v9151_v2, %v7605_v51  ;;  %v7668_v51 = vadd.f32 %v7667_v6, %v7666_v33 }
0x35d1   :  { %v7683_v9 = vrot.slane %v7682_v40, 4 }
0x35d2   :  { %v7690_v60 = vsel %vm163_vm0, %v7646_v19, 0.0  ;;  %v7659_v19 = vadd.f32 %v7658_v50, %v7657_v35  ;;  %v7669_v56 = vrot.slane %v7668_v51, 1 }
0x35d3   :  { %v7610_v36 = vpop.permute.xlu1 %7609  ;;  %v7691_v34 = vadd.f32 %v7690_v60, %v7689_v1  ;;  %v7684_v57 = vadd.f32 %v7683_v9, %v7682_v40 }
0x35d4   :  { %v7647_v11 = vmul.f32 %v9153_v25, %v7610_v36  ;;  %v7678_v36 = vrot.slane %v7677_v55, 1  ;;  %v7660_v37 = vrot.slane %v7659_v19, 1  ;;  %v7670_v40 = vadd.f32 %v7669_v56, %v7668_v51 }
0x35d5   :  { %v7692_v39 = vrot.slane %v7691_v34, 4  ;;  %v7685_v5 = vrot.slane %v7684_v57, 2 }
0x35d6   :  { %v7698_v54 = vsel %vm163_vm0, %v7647_v11, 0.0  ;;  %v7679_v7 = vadd.f32 %v7678_v36, %v7677_v55 }
0x35d7   :  { %v7615_v45 = vpop.permute.xlu1 %7614  ;;  %v7693_v41 = vadd.f32 %v7692_v39, %v7691_v34  ;;  %v7686_v63 = vadd.f32 %v7685_v5, %v7684_v57 }
0x35d8   :  { %v7648_v10 = vmul.f32 %v9154_v52, %v7615_v45  ;;  %v7661_v45 = vadd.f32 %v7660_v37, %v7659_v19 }
0x35d9   :  { %v7694_v38 = vrot.slane %v7693_v41, 2  ;;  %v7687_v47 = vrot.slane %v7686_v63, 1 }
0x35da   :  { %v7699_v30 = vsel %vm163_vm0, %v7648_v10, 0.0  ;;  %v7735_v9 = vsel %vm547_vm2, %v7670_v40, %v7661_v45 }
0x35db   :  { %v7700_v21 = vadd.f32 %v7699_v30, %v7698_v54  ;;  %v7620_v53 = vpop.permute.xlu1 %7619  ;;  %v7695_v16 = vadd.f32 %v7694_v38, %v7693_v41  ;;  %v7688_v13 = vadd.f32 %v7687_v47, %v7686_v63  ;;  %v7736_v30 = vsel %vm549_vm3, %v7679_v7, %v7735_v9 }
0x35dc   :  { %v7649_v15 = vmul.f32 %v9155_v27, %v7620_v53  ;;  %v7726_v27 = vld [vmem:[#allocation4 + $0x38] sm:$0xff] }
0x35dd   :  { %v7701_v62 = vrot.slane %v7700_v21, 4  ;;  %v7696_v46 = vrot.slane %v7695_v16, 1 }
0x35de   :  { %v7707_v61 = vsel %vm163_vm0, %v7649_v15, 0.0 }
0x35df   :  { %v7702_v59 = vadd.f32 %v7701_v62, %v7700_v21  ;;  %v7625_v20 = vpop.permute.xlu1 %7624  ;;  %v7697_v4 = vadd.f32 %v7696_v46, %v7695_v16  ;;  %v7737_v21 = vsel %vm551_vm4, %v7688_v13, %v7736_v30 }
0x35e0   :  { %v7650_v0 = vmul.f32 %v9156_v31, %v7625_v20 }
0x35e1   :  { %v7703_v44 = vrot.slane %v7702_v59, 2  ;;  %v7738_v3 = vsel %vm553_vm5, %v7697_v4, %v7737_v21 }
0x35e2   :  { %v7708_v24 = vsel %vm163_vm0, %v7650_v0, 0.0 }
0x35e3   :  { %v7709_v29 = vadd.f32 %v7708_v24, %v7707_v61  ;;  %v7635_v17 = vpop.permute.xlu1 %7634  ;;  %v7704_v48 = vadd.f32 %v7703_v44, %v7702_v59 }
0x35e4   :  { %v7652_v2 = vmul.f32 %v9158_v12, %v7635_v17  ;;  %v9159_v12 = vld [vmem:[%s12212_s8] ss:$0 sm:$0xff] }
0x35e5   :  { %v7710_v22 = vrot.slane %v7709_v29, 4  ;;  %v7705_v34 = vrot.slane %v7704_v48, 1 }
0x35e6   :  { %v7717_v58 = vsel %vm163_vm0, %v7652_v2, 0.0 }
0x35e7   :  { %v7711_v43 = vadd.f32 %v7710_v22, %v7709_v29  ;;  %v7718_v60 = vadd.f32 %v7717_v58, %v7716_v49  ;;  %v7706_v39 = vadd.f32 %v7705_v34, %v7704_v48 }
0x35e9   :  { %v7712_v8 = vrot.slane %v7711_v43, 2  ;;  %v7719_v1 = vrot.slane %v7718_v60, 4  ;;  %v7739_v57 = vsel %vm555_vm6, %v7706_v39, %v7738_v3 }
0x35eb   :  { %v7713_v25 = vadd.f32 %v7712_v8, %v7711_v43  ;;  %v7720_v11 = vadd.f32 %v7719_v1, %v7718_v60 }
0x35ed   :  { %v7714_v52 = vrot.slane %v7713_v25, 1  ;;  %v7721_v10 = vrot.slane %v7720_v11, 2 }
0x35ef   :  { %v7722_v54 = vadd.f32 %v7721_v10, %v7720_v11  ;;  %v7715_v33 = vadd.f32 %v7714_v52, %v7713_v25 }
0x35f1   :  { %v7723_v53 = vrot.slane %v7722_v54, 1  ;;  %v7740_v62 = vsel %vm557_vm7, %v7715_v33, %v7739_v57 }
0x35f3   :  { %v7724_v35 = vadd.f32 %v7723_v53, %v7722_v54 }
0x35f5   :  { %v7741_v41 = vsel %vm559_vm8, %v7724_v35, %v7740_v62 }
0x35f6   :  { %8194 = vmatmul.mubr.msk.f32.vlgmr.msra.gmra.mrb[16].mxu1 %vm163_vm0, %v7741_v41 }
0x36c9   :  { %v7810_v15 = vpop.f32.mrb[16].mxu1 }
0x36ca   :  { %v7814_v23 = vadd.f32 %v7810_v15, %v7726_v27  ;;  %v8195_v6 = vpop.f32.mrb[17].mxu1 }
0x36cc   :  { %v7815_v59 = vadd.f32 %v7814_v23, %v11869_v28 }
0x36ce   :  { %8940 = vtanh.f32 %v7815_v59  ;;  %v8046_v26 = vmul.f32 -1.442695, %v7815_v59 }
0x36d0   :  { %8942 = vpow2.f32 %v8046_v26 }
0x36d8   :  { %v8941_v20 = vpop.eup %8940 }
0x36d9   :  { %7825 = vrot.lane.b32.xlu0 %v8941_v20, %s9339_s18 }
0x36da   :  { %v8943_v31 = vpop.eup %8942 }
0x36db   :  { %v7819_v0 = vadd.f32 1.0, %v8943_v31 }
0x36dd   :  { %8944 = vrcp.f32 %v7819_v0 }
0x36e7   :  { %v8945_v50 = vpop.eup %8944 }
0x36e8   :  { %v7823_v42 = vmul.f32 %v8945_v50, %v11855_v18 }
0x374b   :  { %v7826_v5 = vpop.permute.xlu0 %7825 }
0x374c   :  { %v7828_v32 = vmul.f32 %v8945_v50, %v7826_v5 }
0x374e   :  { %7830 = vrot.lane.b32.xlu1 %v7828_v32, %s9340_s19 }
0x37c0   :  { %v7831_v38 = vpop.permute.xlu1 %7830 }
0x37c1   :  { %v7833_v61 = vadd.f32 %v7831_v38, %v7823_v42 }
0x37c3   :  { %8946 = vtanh.f32 %v7833_v61 }
0x37cd   :  { %v8947_v28 = vpop.eup %8946 }
0x37ce   :  { %7836 = vrot.lane.b32.xlu0 %v8947_v28, %s9339_s18 }
0x3840   :  { %v7837_v24 = vpop.permute.xlu0 %7836 }
0x3841   :  { %v7839_v51 = vmul.f32 %v8945_v50, %v7837_v24 }
0x3843   :  { %7841 = vrot.lane.b32.xlu1 %v7839_v51, %s9340_s19 }
0x38b5   :  { %v7842_v44 = vpop.permute.xlu1 %7841 }
0x38b6   :  { %7845 = vst.msk [vmem:[#allocation2 + $0x38] sm:$0xff] %vm163_vm0, %v7842_v44 }
0x38bd   :  { %v7853_v29 = vld [vmem:[#allocation2 + $0x38] sm:$0xff] }
0x38be   :  { %8214 = vmatmul.mubr.msk.f32.gmra.mrb[20].mxu0 %vm163_vm0, %v7853_v29 }
0x3991   :  { %v8215_v17 = vpop.f32.mrb[20].mxu0 }
0x3992   :  { %v7991_v18 = vadd.f32 %v8215_v17, %v11882_v14  ;;  %v7985_v55 = vpop.f32.mrb[21].mxu0 }
0x3993   :  { %v7986_v2 = vadd.f32 %v9159_v12, %v7985_v55 }
0x3994   :  { %8001 = vst [vmem:[#allocation15 + $0x38] sm:$0xff] %v7991_v18 }
0x3995   :  { %8000 = vst [vmem:[#allocation15 + $0x30] sm:$0xff] %v7986_v2 }
0x3996   :  { %9303 = shalt.err (!%p9300_p10)
}
0x3997   :  { %s9304_s7 = scalar_lea.hbm %s12213_s9, 1024 }
0x3998   :  { %p9305_p11 = scmp.ne.s32.totalorder %s12213_s9, %s9304_s7  ;;  %p9308_p12 = scmp.lt.u32.totalorder %s9304_s7, %s12213_s9 }
0x399a   :  { %p9310_p13 = pnand %p9308_p12, %p9305_p11 }
0x399c   :  { %9313 = shalt.err (!%p9310_p13)
}
0x399d   :  { %8013 = dma.vmem_to_hbm [thread:$0]  %s8008_s1, 1024, %s12213_s9, [#allocation6], %s9326_s22, %s9326_s22, %s9327_s23  }
0x399e   :  { %9322 = dma.done.wait [#allocation6], 1024  }
0x399f   :  { %9323 = vsyncadd [#allocation6], 4294966272 }
0x39a0   :  { %8017 = vsyncpa [#allocation5], 1 }
0x39a1   :  { %8018 = vsyncpa [#allocation8], 1 }
0x39a2   :  { %8019 = vsyncpa [#allocation11], 1 }
0x39a3   :  { %8020 = vsyncpa [#allocation14], 1 }
0x39a4   :  { %8021 = vsyncpa [#allocation6], 1 }

</bundles_post_ra>
